<compile_context>
chip_gen: v7x
topology: tpu7x:2x2x1
jax: 0.10.0
libtpu: 0.0.40
codegen_flags: <defaults>
</compile_context>

<pallas_src>
import functools
import math

import jax
import jax.numpy as jnp
from jax.experimental import pallas as pl
from jax.experimental.pallas import tpu as pltpu

CP = 128      # padded channel width (lane-dense GEMM outputs / K multiples of 128)
TM_MAX = 128  # max row tile; the actual tile adapts to M per call

_CPARAMS = pltpu.CompilerParams(
    dimension_semantics=("parallel",),
    vmem_limit_bytes=32 * 1024 * 1024,   # well under v7x's 64 MiB VMEM
)


def _round_up(x, m):
    return ((x + m - 1) // m) * m


def _row_tile(m):
    """Adaptive row tile: never much larger than M (no 99%-masked MXU passes),
    and split into >=2 grid steps when possible so both v7x TensorCores get a
    block (v5e/v6e: the extra ~0.35us step overhead is negligible here)."""
    tm = min(TM_MAX, _round_up(m, 8))
    if m <= tm and m >= 16:
        tm = _round_up((m + 1) // 2, 8)
    return tm


# ----------------------------- Pallas kernels ------------------------------
# Kernel argument order = (A, weights..., colwise..., rowwise..., outputs...).

def _stem_kernel(a_ref, w_ref, s_ref, b_ref, o_ref):
    # conv + fused BN + ReLU
    acc = jnp.dot(a_ref[...], w_ref[...], preferred_element_type=jnp.float32)
    o_ref[...] = jnp.maximum(acc * s_ref[...] + b_ref[...], 0.0).astype(o_ref.dtype)


def _conv1_kernel(a_ref, w_ref, s_ref, b_ref, raw_ref, act_ref):
    # conv1 (no downsample): emit pre-BN out1 (feeds 'tan' adapter) AND relu(bn1(.))
    acc = jnp.dot(a_ref[...], w_ref[...], preferred_element_type=jnp.float32)
    raw_ref[...] = acc.astype(raw_ref.dtype)
    act_ref[...] = jnp.maximum(acc * s_ref[...] + b_ref[...], 0.0).astype(act_ref.dtype)


def _conv1_ds_kernel(a_ref, w_ref, wd_ref, s_ref, b_ref, sd_ref, bd_ref,
                     raw_ref, act_ref, id_ref, *, cin):
    # conv1 + bn1/relu + fused stride-s 1x1 downsample(+bn).  The downsample's
    # im2col is exactly the center-tap (kh=1,kw=1) column slice of conv1's
    # patch matrix (same stride, identical output geometry).
    a = a_ref[...]
    acc = jnp.dot(a, w_ref[...], preferred_element_type=jnp.float32)
    raw_ref[...] = acc.astype(raw_ref.dtype)
    act_ref[...] = jnp.maximum(acc * s_ref[...] + b_ref[...], 0.0).astype(act_ref.dtype)
    center = a[:, 4 * cin:5 * cin]                 # static, 128-lane aligned slice
    dacc = jnp.dot(center, wd_ref[...], preferred_element_type=jnp.float32)
    id_ref[...] = (dacc * sd_ref[...] + bd_ref[...]).astype(id_ref.dtype)


def _adapter_skip_kernel(a_ref, w_ref, id_ref, o_ref):
    # 'tan' adapter GEMM (block-diagonal dense weight, a_bn scalar folded in)
    # with identity fused into the epilogue: skip = adapter + identity.
    acc = jnp.dot(a_ref[...], w_ref[...], preferred_element_type=jnp.float32)
    o_ref[...] = (acc + id_ref[...].astype(jnp.float32)).astype(o_ref.dtype)


def _conv2_residual_kernel(a_ref, w_ref, s_ref, b_ref, skip_ref, o_ref):
    # conv2 tail: relu(bn2(conv2(out2)) + skip), skip = identity + adapter.
    acc = jnp.dot(a_ref[...], w_ref[...], preferred_element_type=jnp.float32)
    y = acc * s_ref[...] + b_ref[...] + skip_ref[...].astype(jnp.float32)
    o_ref[...] = jnp.maximum(y, 0.0).astype(o_ref.dtype)


def _gemm_call(kernel_fn, a, *, weights, colwise=(), rowwise=(),
               num_outputs=1, out_dtype=jnp.bfloat16):
    """Row-tiled GEMM driver.

    a: (M, K) bf16 patch matrix (row axis tiled, ragged last block masked).
    weights: resident (K', N) bf16 matrices (constant index_map).
    colwise: (1, N) f32 epilogue vectors (BN scale/bias).
    rowwise: (M, N) bf16 row-tiled epilogue operands (identity / skip).
    """
    M, K = a.shape
    N = weights[0].shape[1]
    TM = _row_tile(M)

    in_specs = [pl.BlockSpec((TM, K), lambda i: (i, 0))]
    args = [a]
    for w in weights:
        in_specs.append(pl.BlockSpec(w.shape, lambda i: (0, 0)))
        args.append(w)
    for c in colwise:
        c2 = c.reshape(1, -1).astype(jnp.float32)
        in_specs.append(pl.BlockSpec((1, c2.shape[1]), lambda i: (0, 0)))
        args.append(c2)
    for r in rowwise:
        r2 = r.reshape(M, -1)
        in_specs.append(pl.BlockSpec((TM, r2.shape[1]), lambda i: (i, 0)))
        args.append(r2)

    out_shape = tuple(jax.ShapeDtypeStruct((M, N), out_dtype)
                      for _ in range(num_outputs))
    out_specs = tuple(pl.BlockSpec((TM, N), lambda i: (i, 0))
                      for _ in range(num_outputs))
    if num_outputs == 1:
        out_shape, out_specs = out_shape[0], out_specs[0]

    return pl.pallas_call(
        kernel_fn,
        out_shape=out_shape,
        grid=(pl.cdiv(M, TM),),
        in_specs=in_specs,
        out_specs=out_specs,
        compiler_params=_CPARAMS,
    )(*args)


# ------------------------------- glue helpers ------------------------------

def _im2col_nhwc(x, kh, kw, stride, padding):
    """NHWC im2col via strided slices (bf16).  K order is (kh, kw, c)."""
    N, H, W, C = x.shape
    xp = jnp.pad(x, ((0, 0), (padding, padding), (padding, padding), (0, 0)))
    Ho = (H + 2 * padding - kh) // stride + 1
    Wo = (W + 2 * padding - kw) // stride + 1
    taps = []
    for i in range(kh):
        for j in range(kw):
            taps.append(xp[:, i:i + stride * Ho:stride,
                           j:j + stride * Wo:stride, :])
    patches = jnp.concatenate(taps, axis=-1)        # (N, Ho, Wo, kh*kw*C)
    return patches.reshape(N * Ho * Wo, kh * kw * C), Ho, Wo
    # TODO(synk): at realistic resolutions, replace the HBM-materialized
    # im2col by an in-kernel halo-slab pipeline (emit_pipeline) per conv.


def maxpool2d_nhwc(x, k=3, stride=2, padding=1):
    # stem pooling (tiny, host glue)
    N, H, W, C = x.shape
    xp = jnp.pad(x, ((0, 0), (padding, padding), (padding, padding), (0, 0)),
                 constant_values=-jnp.inf)
    Ho = (H + 2 * padding - k) // stride + 1
    Wo = (W + 2 * padding - k) // stride + 1
    out = None
    for i in range(k):
        for j in range(k):
            sl = xp[:, i:i + stride * Ho:stride, j:j + stride * Wo:stride, :]
            out = sl if out is None else jnp.maximum(out, sl)
    return out


# ------------------------- one-time weight preparation ----------------------

def _bn_scale_bias(p):
    scale = p['gamma'] / jnp.sqrt(p['var'] + p['eps'])
    bias = p['beta'] - p['mean'] * scale
    return scale, bias


def _fold_alpha(w3x3, alpha):
    """Fold the 1x1 alpha adapter into the 3x3 center tap.  Exact: the 1x1
    conv uses the same stride as the 3x3 (by construction in conv_prolad_up),
    so both have identical output geometry and the center tap reads the same
    input pixel.  NOTE: |alpha| ~ 1e-5 may be rounded away by the later bf16
    weight cast; keep weights f32 here if small-alpha fidelity matters."""
    return w3x3.at[:, :, 1, 1].add(alpha[:, :, 0, 0])


def _blockdiag_grouped_weight(w_g, groups, scale=1.0):
    """Grouped conv weight (Cout, Cin/groups, kh, kw) -> dense block-diagonal
    (Cout, Cin, kh, kw); the dense conv equals the grouped conv exactly."""
    Cout, cin_g, kh, kw = w_g.shape
    assert Cout % groups == 0
    cout_g = Cout // groups
    Cin = cin_g * groups
    dense = jnp.zeros((Cout, Cin, kh, kw), jnp.float32)
    for g in range(groups):
        dense = dense.at[g * cout_g:(g + 1) * cout_g,
                         g * cin_g:(g + 1) * cin_g].set(
            w_g[g * cout_g:(g + 1) * cout_g].astype(jnp.float32) * scale)
    return dense


def _pad_wmat(w, cin_pad, cout_pad):
    """torch (Cout, Cin, kh, kw) -> zero-padded (kh*kw*cin_pad, cout_pad) bf16,
    K order (kh, kw, c) matching _im2col_nhwc."""
    cout, cin, kh, kw = w.shape
    wp = jnp.zeros((cout_pad, cin_pad, kh, kw), jnp.float32)
    wp = wp.at[:cout, :cin].set(w.astype(jnp.float32))
    return (jnp.transpose(wp, (2, 3, 1, 0))
            .reshape(kh * kw * cin_pad, cout_pad).astype(jnp.bfloat16))


def _pad_vec(v, n):
    return jnp.zeros((n,), jnp.float32).at[:v.shape[0]].set(
        v.astype(jnp.float32)).reshape(1, n)


def prepare_params(params):
    """One-time (per adaptation) weight prep: nothing here runs per forward."""
    a_bn_scale = 1.0 / math.sqrt(1.0 + 1e-7)   # a_bn: mean=0, var=1, affine=False
    prepped = {}
    sw = params['stem']['weight']
    ss, sb = _bn_scale_bias(params['stem']['bn'])
    prepped['stem'] = dict(w=_pad_wmat(sw, sw.shape[1], CP),
                           scale=_pad_vec(ss, CP), bias=_pad_vec(sb, CP))
    for layer in ('layer1', 'layer2', 'layer3', 'layer4'):
        blks = []
        for blk in params[layer]:
            w1 = _fold_alpha(blk['conv1']['weight'], blk['conv1']['alpha'])
            w2 = _fold_alpha(blk['conv2']['weight'], blk['conv2']['alpha'])
            s1, b1 = _bn_scale_bias(blk['bn1'])
            s2, b2 = _bn_scale_bias(blk['bn2'])
            w_ad = _blockdiag_grouped_weight(blk['alpha_norm'], 8, a_bn_scale)
            p = dict(stride=blk['stride'],
                     w1=_pad_wmat(w1, CP, CP), s1=_pad_vec(s1, CP), b1=_pad_vec(b1, CP),
                     w2=_pad_wmat(w2, CP, CP), s2=_pad_vec(s2, CP), b2=_pad_vec(b2, CP),
                     w_ad=_pad_wmat(w_ad, CP, CP),
                     downsample=None)
            if blk['downsample'] is not None:
                sd, bd = _bn_scale_bias(blk['downsample']['bn'])
                p['downsample'] = dict(
                    w=_pad_wmat(blk['downsample']['weight'], CP, CP),
                    scale=_pad_vec(sd, CP), bias=_pad_vec(bd, CP))
            blks.append(p)
        prepped[layer] = blks
    return prepped


# ----------------------------- module forward ------------------------------

def basic_block_prolad_forward(x, p):
    """BasicBlock_prolad (mode='tan') forward; x is NHWC bf16 with C == CP."""
    N, H, W, C = x.shape
    stride = p['stride']

    patches, Ho, Wo = _im2col_nhwc(x, 3, 3, stride, 1)
    M = N * Ho * Wo

    if p['downsample'] is not None:
        ds = p['downsample']
        raw, act, identity = _gemm_call(
            functools.partial(_conv1_ds_kernel, cin=C),
            patches, weights=(p['w1'], ds['w']),
            colwise=(p['s1'], p['b1'], ds['scale'], ds['bias']),
            num_outputs=3)
    else:
        raw, act = _gemm_call(_conv1_kernel, patches, weights=(p['w1'],),
                              colwise=(p['s1'], p['b1']), num_outputs=2)
        identity = x.reshape(M, C)                 # stride == 1 and Cin == Cout

    out1 = raw.reshape(N, Ho, Wo, C)               # pre-BN conv1 output
    out2 = act.reshape(N, Ho, Wo, C)               # relu(bn1(out1))

    # mode == 'tan': skip = identity + conv2d(a_bn(out1), alpha_norm, pad=1, groups=8)
    ad_patches, _, _ = _im2col_nhwc(out1, 3, 3, 1, 1)
    skip = _gemm_call(_adapter_skip_kernel, ad_patches, weights=(p['w_ad'],),
                      rowwise=(identity,))

    # conv2 with bn2 + skip + ReLU fused epilogue
    c2_patches, _, _ = _im2col_nhwc(out2, 3, 3, 1, 1)
    out = _gemm_call(_conv2_residual_kernel, c2_patches, weights=(p['w2'],),
                     colwise=(p['s2'], p['b2']), rowwise=(skip,))
    return out.reshape(N, Ho, Wo, C)


def resnet_prolad_plus_forward(x_nchw, prepped):
    # single NCHW -> NHWC transpose + bf16 cast; channel-last / bf16 downstream
    x = jnp.transpose(x_nchw, (0, 2, 3, 1)).astype(jnp.bfloat16)
    N = x.shape[0]
    # stem: conv7x7/s2 + bn + relu (one GEMM, output padded to 128 channels)
    patches, Ho, Wo = _im2col_nhwc(x, 7, 7, 2, 3)
    stem = prepped['stem']
    y = _gemm_call(_stem_kernel, patches, weights=(stem['w'],),
                   colwise=(stem['scale'], stem['bias']))
    x = maxpool2d_nhwc(y.reshape(N, Ho, Wo, CP), 3, 2, 1)
    for layer in ('layer1', 'layer2', 'layer3', 'layer4'):
        for blk in prepped[layer]:
            x = basic_block_prolad_forward(x, blk)
    # TODO(synk): backbone is used as a few-shot feature extractor; the
    # classifier / pa ('beta_*') heads are not on the forward() path.
    feats = jnp.mean(x.astype(jnp.float32), axis=(1, 2))   # global avg pool
    return feats


# ----------------------------- parameter init ------------------------------

def _conv_init(key, cout, cin, k):
    fan_in = cin * k * k
    std = (2.0 / fan_in) ** 0.5
    return jax.random.normal(key, (cout, cin, k, k), jnp.float32) * std


def _bn_init(key, c):
    k1, k2, k3, k4 = jax.random.split(key, 4)
    return dict(gamma=1.0 + 0.1 * jax.random.normal(k1, (c,), jnp.float32),
                beta=0.1 * jax.random.normal(k2, (c,), jnp.float32),
                mean=0.1 * jax.random.normal(k3, (c,), jnp.float32),
                var=1.0 + 0.1 * jax.random.uniform(k4, (c,), jnp.float32),
                eps=1e-5)


def init_params(key):
    keys = iter(jax.random.split(key, 128))
    nk = lambda: next(keys)
    params = {'stem': {'weight': _conv_init(nk(), 16, 3, 7),
                       'bn': _bn_init(nk(), 16)}}
    cfgs = [('layer1', 16, 16, 1), ('layer2', 16, 32, 2),
            ('layer3', 32, 64, 2), ('layer4', 64, 128, 2)]
    for name, cin, cout, stride in cfgs:
        blk = {
            'stride': stride,
            # adapter init follows resnet_prolad_plus.reset():
            #   alpha      -> randn(cout, cin)[..., None, None] * 1e-5
            #   alpha_norm -> randn(...) * 1e-4
            'conv1': {'weight': _conv_init(nk(), cout, cin, 3),
                      'alpha': jax.random.normal(nk(), (cout, cin, 1, 1),
                                                 jnp.float32) * 1e-5},
            'bn1': _bn_init(nk(), cout),
            'conv2': {'weight': _conv_init(nk(), cout, cout, 3),
                      'alpha': jax.random.normal(nk(), (cout, cout, 1, 1),
                                                 jnp.float32) * 1e-5},
            'bn2': _bn_init(nk(), cout),
            'alpha_norm': jax.random.normal(nk(), (cout, cout // 8, 3, 3),
                                            jnp.float32) * 1e-4,
            'downsample': None,
        }
        if stride != 1 or cin != cout:
            blk['downsample'] = {'weight': _conv_init(nk(), cout, cin, 1),
                                 'bn': _bn_init(nk(), cout)}
        params[name] = [blk]
    return params


if __name__ == "__main__":
    key = jax.random.PRNGKey(0)
    kx, kp = jax.random.split(key)
    x = jax.random.normal(kx, (2, 3, 32, 32), jnp.float32)   # NCHW input
    params = init_params(kp)
    prepped = prepare_params(params)                         # hoisted weight prep
    # jit with the prepped weights closed over (static strides, constant weights)
    fwd = jax.jit(lambda inp: resnet_prolad_plus_forward(inp, prepped))
    feats = jax.block_until_ready(fwd(x))
    assert feats.shape == (2, 128) and bool(jnp.all(jnp.isfinite(feats)))
    print("KERNEL_OK")
</pallas_src>

<mosaic_0001>
module attributes {stable_mosaic.version = 11 : i64} {
  func.func @_stem_kernel(%arg0: i32, %arg1: memref<128x147xbf16, #tpu.memory_space<vmem>>, %arg2: memref<147x128xbf16, #tpu.memory_space<vmem>>, %arg3: memref<1x128xf32, #tpu.memory_space<vmem>>, %arg4: memref<1x128xf32, #tpu.memory_space<vmem>>, %arg5: memref<128x128xbf16, #tpu.memory_space<vmem>>) attributes {dimension_semantics = [#tpu.dimension_semantics<parallel>], iteration_bounds = array<i64: 4>, scalar_prefetch = 0 : i64, scratch_operands = 0 : i64, tpu.core_type = #tpu.core_type<tc>, window_params = [{transform_indices = @transform_0, window_bounds = array<i64: 128, 147>}, {pipeline_mode = #tpu.pipeline_mode<synchronous>, transform_indices = @transform_1, window_bounds = array<i64: 147, 128>}, {pipeline_mode = #tpu.pipeline_mode<synchronous>, transform_indices = @transform_2, window_bounds = array<i64: 1, 128>}, {pipeline_mode = #tpu.pipeline_mode<synchronous>, transform_indices = @transform_3, window_bounds = array<i64: 1, 128>}, {transform_indices = @transform_4, window_bounds = array<i64: 128, 128>}]} {
    %c0 = arith.constant 0 : index
    %c0_0 = arith.constant 0 : index
    %0 = vector.load %arg1[%c0, %c0_0] : memref<128x147xbf16, #tpu.memory_space<vmem>>, vector<128x147xbf16>
    %c0_1 = arith.constant 0 : index
    %c0_2 = arith.constant 0 : index
    %1 = vector.load %arg2[%c0_1, %c0_2] : memref<147x128xbf16, #tpu.memory_space<vmem>>, vector<147x128xbf16>
    %cst = arith.constant dense<0.000000e+00> : vector<128x128xf32>
    %2 = tpu.matmul %0, %1, %cst {dimension_numbers = #tpu.dot_dimension_numbers<[1], [0], [0], [1], [0, 0, 1, 1], [], []>} : vector<128x147xbf16>, vector<147x128xbf16>, vector<128x128xf32> -> vector<128x128xf32>
    %c0_3 = arith.constant 0 : index
    %c0_4 = arith.constant 0 : index
    %3 = vector.load %arg3[%c0_3, %c0_4] : memref<1x128xf32, #tpu.memory_space<vmem>>, vector<1x128xf32>
    %4 = vector.broadcast %3 : vector<1x128xf32> to vector<128x128xf32>
    %5 = arith.mulf %2, %4 : vector<128x128xf32>
    %c0_5 = arith.constant 0 : index
    %c0_6 = arith.constant 0 : index
    %6 = vector.load %arg4[%c0_5, %c0_6] : memref<1x128xf32, #tpu.memory_space<vmem>>, vector<1x128xf32>
    %7 = vector.broadcast %6 : vector<1x128xf32> to vector<128x128xf32>
    %8 = arith.addf %5, %7 : vector<128x128xf32>
    %cst_7 = arith.constant 0.000000e+00 : f32
    %9 = vector.broadcast %cst_7 : f32 to vector<128x128xf32>
    %10 = arith.maximumf %8, %9 : vector<128x128xf32>
    %11 = arith.truncf %10 : vector<128x128xf32> to vector<128x128xbf16>
    %c0_8 = arith.constant 0 : index
    %c0_9 = arith.constant 0 : index
    %12 = vector.load %arg5[%c0_8, %c0_9] : memref<128x128xbf16, #tpu.memory_space<vmem>>, vector<128x128xbf16>
    tpu.vector_store %arg5[%c0_8, %c0_9], %11 {strides = array<i32>} : memref<128x128xbf16, #tpu.memory_space<vmem>>, vector<128x128xbf16>,
    return
  }
  func.func @transform_0(%arg0: i32) -> (i32, i32) {
    %c0_i32 = arith.constant 0 : i32
    %c0_i32_0 = arith.constant 0 : i32
    return %arg0, %c0_i32 : i32, i32
  }
  func.func @transform_1(%arg0: i32) -> (i32, i32) {
    %c0_i32 = arith.constant 0 : i32
    %c0_i32_0 = arith.constant 0 : i32
    %c0_i32_1 = arith.constant 0 : i32
    return %c0_i32, %c0_i32_0 : i32, i32
  }
  func.func @transform_2(%arg0: i32) -> (i32, i32) {
    %c0_i32 = arith.constant 0 : i32
    %c0_i32_0 = arith.constant 0 : i32
    %c0_i32_1 = arith.constant 0 : i32
    return %c0_i32, %c0_i32_0 : i32, i32
  }
  func.func @transform_3(%arg0: i32) -> (i32, i32) {
    %c0_i32 = arith.constant 0 : i32
    %c0_i32_0 = arith.constant 0 : i32
    %c0_i32_1 = arith.constant 0 : i32
    return %c0_i32, %c0_i32_0 : i32, i32
  }
  func.func @transform_4(%arg0: i32) -> (i32, i32) {
    %c0_i32 = arith.constant 0 : i32
    %c0_i32_0 = arith.constant 0 : i32
    return %arg0, %c0_i32 : i32, i32
  }
}

module attributes {stable_mosaic.version = 11 : i64} {
  func.func @_conv1_kernel(%arg0: i32, %arg1: memref<64x1152xbf16, #tpu.memory_space<vmem>>, %arg2: memref<1152x128xbf16, #tpu.memory_space<vmem>>, %arg3: memref<1x128xf32, #tpu.memory_space<vmem>>, %arg4: memref<1x128xf32, #tpu.memory_space<vmem>>, %arg5: memref<64x128xbf16, #tpu.memory_space<vmem>>, %arg6: memref<64x128xbf16, #tpu.memory_space<vmem>>) attributes {dimension_semantics = [#tpu.dimension_semantics<parallel>], iteration_bounds = array<i64: 2>, scalar_prefetch = 0 : i64, scratch_operands = 0 : i64, tpu.core_type = #tpu.core_type<tc>, window_params = [{transform_indices = @transform_0, window_bounds = array<i64: 64, 1152>}, {pipeline_mode = #tpu.pipeline_mode<synchronous>, transform_indices = @transform_1, window_bounds = array<i64: 1152, 128>}, {pipeline_mode = #tpu.pipeline_mode<synchronous>, transform_indices = @transform_2, window_bounds = array<i64: 1, 128>}, {pipeline_mode = #tpu.pipeline_mode<synchronous>, transform_indices = @transform_3, window_bounds = array<i64: 1, 128>}, {transform_indices = @transform_4, window_bounds = array<i64: 64, 128>}, {transform_indices = @transform_5, window_bounds = array<i64: 64, 128>}]} {
    %c0 = arith.constant 0 : index
    %c0_0 = arith.constant 0 : index
    %0 = vector.load %arg1[%c0, %c0_0] : memref<64x1152xbf16, #tpu.memory_space<vmem>>, vector<64x1152xbf16>
    %c0_1 = arith.constant 0 : index
    %c0_2 = arith.constant 0 : index
    %1 = vector.load %arg2[%c0_1, %c0_2] : memref<1152x128xbf16, #tpu.memory_space<vmem>>, vector<1152x128xbf16>
    %cst = arith.constant dense<0.000000e+00> : vector<64x128xf32>
    %2 = tpu.matmul %0, %1, %cst {dimension_numbers = #tpu.dot_dimension_numbers<[1], [0], [0], [1], [0, 0, 1, 1], [], []>} : vector<64x1152xbf16>, vector<1152x128xbf16>, vector<64x128xf32> -> vector<64x128xf32>
    %3 = arith.truncf %2 : vector<64x128xf32> to vector<64x128xbf16>
    %c0_3 = arith.constant 0 : index
    %c0_4 = arith.constant 0 : index
    %4 = vector.load %arg5[%c0_3, %c0_4] : memref<64x128xbf16, #tpu.memory_space<vmem>>, vector<64x128xbf16>
    tpu.vector_store %arg5[%c0_3, %c0_4], %3 {strides = array<i32>} : memref<64x128xbf16, #tpu.memory_space<vmem>>, vector<64x128xbf16>,
    %c0_5 = arith.constant 0 : index
    %c0_6 = arith.constant 0 : index
    %5 = vector.load %arg3[%c0_5, %c0_6] : memref<1x128xf32, #tpu.memory_space<vmem>>, vector<1x128xf32>
    %6 = vector.broadcast %5 : vector<1x128xf32> to vector<64x128xf32>
    %7 = arith.mulf %2, %6 : vector<64x128xf32>
    %c0_7 = arith.constant 0 : index
    %c0_8 = arith.constant 0 : index
    %8 = vector.load %arg4[%c0_7, %c0_8] : memref<1x128xf32, #tpu.memory_space<vmem>>, vector<1x128xf32>
    %9 = vector.broadcast %8 : vector<1x128xf32> to vector<64x128xf32>
    %10 = arith.addf %7, %9 : vector<64x128xf32>
    %cst_9 = arith.constant 0.000000e+00 : f32
    %11 = vector.broadcast %cst_9 : f32 to vector<64x128xf32>
    %12 = arith.maximumf %10, %11 : vector<64x128xf32>
    %13 = arith.truncf %12 : vector<64x128xf32> to vector<64x128xbf16>
    %c0_10 = arith.constant 0 : index
    %c0_11 = arith.constant 0 : index
    %14 = vector.load %arg6[%c0_10, %c0_11] : memref<64x128xbf16, #tpu.memory_space<vmem>>, vector<64x128xbf16>
    tpu.vector_store %arg6[%c0_10, %c0_11], %13 {strides = array<i32>} : memref<64x128xbf16, #tpu.memory_space<vmem>>, vector<64x128xbf16>,
    return
  }
  func.func @transform_0(%arg0: i32) -> (i32, i32) {
    %c0_i32 = arith.constant 0 : i32
    %c0_i32_0 = arith.constant 0 : i32
    return %arg0, %c0_i32 : i32, i32
  }
  func.func @transform_1(%arg0: i32) -> (i32, i32) {
    %c0_i32 = arith.constant 0 : i32
    %c0_i32_0 = arith.constant 0 : i32
    %c0_i32_1 = arith.constant 0 : i32
    return %c0_i32, %c0_i32_0 : i32, i32
  }
  func.func @transform_2(%arg0: i32) -> (i32, i32) {
    %c0_i32 = arith.constant 0 : i32
    %c0_i32_0 = arith.constant 0 : i32
    %c0_i32_1 = arith.constant 0 : i32
    return %c0_i32, %c0_i32_0 : i32, i32
  }
  func.func @transform_3(%arg0: i32) -> (i32, i32) {
    %c0_i32 = arith.constant 0 : i32
    %c0_i32_0 = arith.constant 0 : i32
    %c0_i32_1 = arith.constant 0 : i32
    return %c0_i32, %c0_i32_0 : i32, i32
  }
  func.func @transform_4(%arg0: i32) -> (i32, i32) {
    %c0_i32 = arith.constant 0 : i32
    %c0_i32_0 = arith.constant 0 : i32
    return %arg0, %c0_i32 : i32, i32
  }
  func.func @transform_5(%arg0: i32) -> (i32, i32) {
    %c0_i32 = arith.constant 0 : i32
    %c0_i32_0 = arith.constant 0 : i32
    return %arg0, %c0_i32 : i32, i32
  }
}

module attributes {stable_mosaic.version = 11 : i64} {
  func.func @_adapter_skip_kernel(%arg0: i32, %arg1: memref<64x1152xbf16, #tpu.memory_space<vmem>>, %arg2: memref<1152x128xbf16, #tpu.memory_space<vmem>>, %arg3: memref<64x128xbf16, #tpu.memory_space<vmem>>, %arg4: memref<64x128xbf16, #tpu.memory_space<vmem>>) attributes {dimension_semantics = [#tpu.dimension_semantics<parallel>], iteration_bounds = array<i64: 2>, scalar_prefetch = 0 : i64, scratch_operands = 0 : i64, tpu.core_type = #tpu.core_type<tc>, window_params = [{transform_indices = @transform_0, window_bounds = array<i64: 64, 1152>}, {pipeline_mode = #tpu.pipeline_mode<synchronous>, transform_indices = @transform_1, window_bounds = array<i64: 1152, 128>}, {transform_indices = @transform_2, window_bounds = array<i64: 64, 128>}, {transform_indices = @transform_3, window_bounds = array<i64: 64, 128>}]} {
    %c0 = arith.constant 0 : index
    %c0_0 = arith.constant 0 : index
    %0 = vector.load %arg1[%c0, %c0_0] : memref<64x1152xbf16, #tpu.memory_space<vmem>>, vector<64x1152xbf16>
    %c0_1 = arith.constant 0 : index
    %c0_2 = arith.constant 0 : index
    %1 = vector.load %arg2[%c0_1, %c0_2] : memref<1152x128xbf16, #tpu.memory_space<vmem>>, vector<1152x128xbf16>
    %cst = arith.constant dense<0.000000e+00> : vector<64x128xf32>
    %2 = tpu.matmul %0, %1, %cst {dimension_numbers = #tpu.dot_dimension_numbers<[1], [0], [0], [1], [0, 0, 1, 1], [], []>} : vector<64x1152xbf16>, vector<1152x128xbf16>, vector<64x128xf32> -> vector<64x128xf32>
    %c0_3 = arith.constant 0 : index
    %c0_4 = arith.constant 0 : index
    %3 = vector.load %arg3[%c0_3, %c0_4] : memref<64x128xbf16, #tpu.memory_space<vmem>>, vector<64x128xbf16>
    %4 = arith.extf %3 : vector<64x128xbf16> to vector<64x128xf32>
    %5 = arith.addf %2, %4 : vector<64x128xf32>
    %6 = arith.truncf %5 : vector<64x128xf32> to vector<64x128xbf16>
    %c0_5 = arith.constant 0 : index
    %c0_6 = arith.constant 0 : index
    %7 = vector.load %arg4[%c0_5, %c0_6] : memref<64x128xbf16, #tpu.memory_space<vmem>>, vector<64x128xbf16>
    tpu.vector_store %arg4[%c0_5, %c0_6], %6 {strides = array<i32>} : memref<64x128xbf16, #tpu.memory_space<vmem>>, vector<64x128xbf16>,
    return
  }
  func.func @transform_0(%arg0: i32) -> (i32, i32) {
    %c0_i32 = arith.constant 0 : i32
    %c0_i32_0 = arith.constant 0 : i32
    return %arg0, %c0_i32 : i32, i32
  }
  func.func @transform_1(%arg0: i32) -> (i32, i32) {
    %c0_i32 = arith.constant 0 : i32
    %c0_i32_0 = arith.constant 0 : i32
    %c0_i32_1 = arith.constant 0 : i32
    return %c0_i32, %c0_i32_0 : i32, i32
  }
  func.func @transform_2(%arg0: i32) -> (i32, i32) {
    %c0_i32 = arith.constant 0 : i32
    %c0_i32_0 = arith.constant 0 : i32
    return %arg0, %c0_i32 : i32, i32
  }
  func.func @transform_3(%arg0: i32) -> (i32, i32) {
    %c0_i32 = arith.constant 0 : i32
    %c0_i32_0 = arith.constant 0 : i32
    return %arg0, %c0_i32 : i32, i32
  }
}

module attributes {stable_mosaic.version = 11 : i64} {
  func.func @_conv2_residual_kernel(%arg0: i32, %arg1: memref<64x1152xbf16, #tpu.memory_space<vmem>>, %arg2: memref<1152x128xbf16, #tpu.memory_space<vmem>>, %arg3: memref<1x128xf32, #tpu.memory_space<vmem>>, %arg4: memref<1x128xf32, #tpu.memory_space<vmem>>, %arg5: memref<64x128xbf16, #tpu.memory_space<vmem>>, %arg6: memref<64x128xbf16, #tpu.memory_space<vmem>>) attributes {dimension_semantics = [#tpu.dimension_semantics<parallel>], iteration_bounds = array<i64: 2>, scalar_prefetch = 0 : i64, scratch_operands = 0 : i64, tpu.core_type = #tpu.core_type<tc>, window_params = [{transform_indices = @transform_0, window_bounds = array<i64: 64, 1152>}, {pipeline_mode = #tpu.pipeline_mode<synchronous>, transform_indices = @transform_1, window_bounds = array<i64: 1152, 128>}, {pipeline_mode = #tpu.pipeline_mode<synchronous>, transform_indices = @transform_2, window_bounds = array<i64: 1, 128>}, {pipeline_mode = #tpu.pipeline_mode<synchronous>, transform_indices = @transform_3, window_bounds = array<i64: 1, 128>}, {transform_indices = @transform_4, window_bounds = array<i64: 64, 128>}, {transform_indices = @transform_5, window_bounds = array<i64: 64, 128>}]} {
    %c0 = arith.constant 0 : index
    %c0_0 = arith.constant 0 : index
    %0 = vector.load %arg1[%c0, %c0_0] : memref<64x1152xbf16, #tpu.memory_space<vmem>>, vector<64x1152xbf16>
    %c0_1 = arith.constant 0 : index
    %c0_2 = arith.constant 0 : index
    %1 = vector.load %arg2[%c0_1, %c0_2] : memref<1152x128xbf16, #tpu.memory_space<vmem>>, vector<1152x128xbf16>
    %cst = arith.constant dense<0.000000e+00> : vector<64x128xf32>
    %2 = tpu.matmul %0, %1, %cst {dimension_numbers = #tpu.dot_dimension_numbers<[1], [0], [0], [1], [0, 0, 1, 1], [], []>} : vector<64x1152xbf16>, vector<1152x128xbf16>, vector<64x128xf32> -> vector<64x128xf32>
    %c0_3 = arith.constant 0 : index
    %c0_4 = arith.constant 0 : index
    %3 = vector.load %arg3[%c0_3, %c0_4] : memref<1x128xf32, #tpu.memory_space<vmem>>, vector<1x128xf32>
    %4 = vector.broadcast %3 : vector<1x128xf32> to vector<64x128xf32>
    %5 = arith.mulf %2, %4 : vector<64x128xf32>
    %c0_5 = arith.constant 0 : index
    %c0_6 = arith.constant 0 : index
    %6 = vector.load %arg4[%c0_5, %c0_6] : memref<1x128xf32, #tpu.memory_space<vmem>>, vector<1x128xf32>
    %7 = vector.broadcast %6 : vector<1x128xf32> to vector<64x128xf32>
    %8 = arith.addf %5, %7 : vector<64x128xf32>
    %c0_7 = arith.constant 0 : index
    %c0_8 = arith.constant 0 : index
    %9 = vector.load %arg5[%c0_7, %c0_8] : memref<64x128xbf16, #tpu.memory_space<vmem>>, vector<64x128xbf16>
    %10 = arith.extf %9 : vector<64x128xbf16> to vector<64x128xf32>
    %11 = arith.addf %8, %10 : vector<64x128xf32>
    %cst_9 = arith.constant 0.000000e+00 : f32
    %12 = vector.broadcast %cst_9 : f32 to vector<64x128xf32>
    %13 = arith.maximumf %11, %12 : vector<64x128xf32>
    %14 = arith.truncf %13 : vector<64x128xf32> to vector<64x128xbf16>
    %c0_10 = arith.constant 0 : index
    %c0_11 = arith.constant 0 : index
    %15 = vector.load %arg6[%c0_10, %c0_11] : memref<64x128xbf16, #tpu.memory_space<vmem>>, vector<64x128xbf16>
    tpu.vector_store %arg6[%c0_10, %c0_11], %14 {strides = array<i32>} : memref<64x128xbf16, #tpu.memory_space<vmem>>, vector<64x128xbf16>,
    return
  }
  func.func @transform_0(%arg0: i32) -> (i32, i32) {
    %c0_i32 = arith.constant 0 : i32
    %c0_i32_0 = arith.constant 0 : i32
    return %arg0, %c0_i32 : i32, i32
  }
  func.func @transform_1(%arg0: i32) -> (i32, i32) {
    %c0_i32 = arith.constant 0 : i32
    %c0_i32_0 = arith.constant 0 : i32
    %c0_i32_1 = arith.constant 0 : i32
    return %c0_i32, %c0_i32_0 : i32, i32
  }
  func.func @transform_2(%arg0: i32) -> (i32, i32) {
    %c0_i32 = arith.constant 0 : i32
    %c0_i32_0 = arith.constant 0 : i32
    %c0_i32_1 = arith.constant 0 : i32
    return %c0_i32, %c0_i32_0 : i32, i32
  }
  func.func @transform_3(%arg0: i32) -> (i32, i32) {
    %c0_i32 = arith.constant 0 : i32
    %c0_i32_0 = arith.constant 0 : i32
    %c0_i32_1 = arith.constant 0 : i32
    return %c0_i32, %c0_i32_0 : i32, i32
  }
  func.func @transform_4(%arg0: i32) -> (i32, i32) {
    %c0_i32 = arith.constant 0 : i32
    %c0_i32_0 = arith.constant 0 : i32
    return %arg0, %c0_i32 : i32, i32
  }
  func.func @transform_5(%arg0: i32) -> (i32, i32) {
    %c0_i32 = arith.constant 0 : i32
    %c0_i32_0 = arith.constant 0 : i32
    return %arg0, %c0_i32 : i32, i32
  }
}

module attributes {stable_mosaic.version = 11 : i64} {
  func.func @_conv1_ds_kernel(%arg0: i32, %arg1: memref<16x1152xbf16, #tpu.memory_space<vmem>>, %arg2: memref<1152x128xbf16, #tpu.memory_space<vmem>>, %arg3: memref<128x128xbf16, #tpu.memory_space<vmem>>, %arg4: memref<1x128xf32, #tpu.memory_space<vmem>>, %arg5: memref<1x128xf32, #tpu.memory_space<vmem>>, %arg6: memref<1x128xf32, #tpu.memory_space<vmem>>, %arg7: memref<1x128xf32, #tpu.memory_space<vmem>>, %arg8: memref<16x128xbf16, #tpu.memory_space<vmem>>, %arg9: memref<16x128xbf16, #tpu.memory_space<vmem>>, %arg10: memref<16x128xbf16, #tpu.memory_space<vmem>>) attributes {dimension_semantics = [#tpu.dimension_semantics<parallel>], iteration_bounds = array<i64: 2>, scalar_prefetch = 0 : i64, scratch_operands = 0 : i64, tpu.core_type = #tpu.core_type<tc>, window_params = [{transform_indices = @transform_0, window_bounds = array<i64: 16, 1152>}, {pipeline_mode = #tpu.pipeline_mode<synchronous>, transform_indices = @transform_1, window_bounds = array<i64: 1152, 128>}, {pipeline_mode = #tpu.pipeline_mode<synchronous>, transform_indices = @transform_2, window_bounds = array<i64: 128, 128>}, {pipeline_mode = #tpu.pipeline_mode<synchronous>, transform_indices = @transform_3, window_bounds = array<i64: 1, 128>}, {pipeline_mode = #tpu.pipeline_mode<synchronous>, transform_indices = @transform_4, window_bounds = array<i64: 1, 128>}, {pipeline_mode = #tpu.pipeline_mode<synchronous>, transform_indices = @transform_5, window_bounds = array<i64: 1, 128>}, {pipeline_mode = #tpu.pipeline_mode<synchronous>, transform_indices = @transform_6, window_bounds = array<i64: 1, 128>}, {transform_indices = @transform_7, window_bounds = array<i64: 16, 128>}, {transform_indices = @transform_8, window_bounds = array<i64: 16, 128>}, {transform_indices = @transform_9, window_bounds = array<i64: 16, 128>}]} {
    %c0 = arith.constant 0 : index
    %c0_0 = arith.constant 0 : index
    %0 = vector.load %arg1[%c0, %c0_0] : memref<16x1152xbf16, #tpu.memory_space<vmem>>, vector<16x1152xbf16>
    %c0_1 = arith.constant 0 : index
    %c0_2 = arith.constant 0 : index
    %1 = vector.load %arg2[%c0_1, %c0_2] : memref<1152x128xbf16, #tpu.memory_space<vmem>>, vector<1152x128xbf16>
    %cst = arith.constant dense<0.000000e+00> : vector<16x128xf32>
    %2 = tpu.matmul %0, %1, %cst {dimension_numbers = #tpu.dot_dimension_numbers<[1], [0], [0], [1], [0, 0, 1, 1], [], []>} : vector<16x1152xbf16>, vector<1152x128xbf16>, vector<16x128xf32> -> vector<16x128xf32>
    %3 = arith.truncf %2 : vector<16x128xf32> to vector<16x128xbf16>
    %c0_3 = arith.constant 0 : index
    %c0_4 = arith.constant 0 : index
    %4 = vector.load %arg8[%c0_3, %c0_4] : memref<16x128xbf16, #tpu.memory_space<vmem>>, vector<16x128xbf16>
    tpu.vector_store %arg8[%c0_3, %c0_4], %3 {strides = array<i32>} : memref<16x128xbf16, #tpu.memory_space<vmem>>, vector<16x128xbf16>,
    %c0_5 = arith.constant 0 : index
    %c0_6 = arith.constant 0 : index
    %5 = vector.load %arg4[%c0_5, %c0_6] : memref<1x128xf32, #tpu.memory_space<vmem>>, vector<1x128xf32>
    %6 = vector.broadcast %5 : vector<1x128xf32> to vector<16x128xf32>
    %7 = arith.mulf %2, %6 : vector<16x128xf32>
    %c0_7 = arith.constant 0 : index
    %c0_8 = arith.constant 0 : index
    %8 = vector.load %arg5[%c0_7, %c0_8] : memref<1x128xf32, #tpu.memory_space<vmem>>, vector<1x128xf32>
    %9 = vector.broadcast %8 : vector<1x128xf32> to vector<16x128xf32>
    %10 = arith.addf %7, %9 : vector<16x128xf32>
    %cst_9 = arith.constant 0.000000e+00 : f32
    %11 = vector.broadcast %cst_9 : f32 to vector<16x128xf32>
    %12 = arith.maximumf %10, %11 : vector<16x128xf32>
    %13 = arith.truncf %12 : vector<16x128xf32> to vector<16x128xbf16>
    %c0_10 = arith.constant 0 : index
    %c0_11 = arith.constant 0 : index
    %14 = vector.load %arg9[%c0_10, %c0_11] : memref<16x128xbf16, #tpu.memory_space<vmem>>, vector<16x128xbf16>
    tpu.vector_store %arg9[%c0_10, %c0_11], %13 {strides = array<i32>} : memref<16x128xbf16, #tpu.memory_space<vmem>>, vector<16x128xbf16>,
    %15 = vector.extract_strided_slice %0 {offsets = [0, 512], sizes = [16, 128], strides = [1, 1]} : vector<16x1152xbf16> to vector<16x128xbf16>
    %c0_12 = arith.constant 0 : index
    %c0_13 = arith.constant 0 : index
    %16 = vector.load %arg3[%c0_12, %c0_13] : memref<128x128xbf16, #tpu.memory_space<vmem>>, vector<128x128xbf16>
    %cst_14 = arith.constant dense<0.000000e+00> : vector<16x128xf32>
    %17 = tpu.matmul %15, %16, %cst_14 {dimension_numbers = #tpu.dot_dimension_numbers<[1], [0], [0], [1], [0, 0, 1, 1], [], []>} : vector<16x128xbf16>, vector<128x128xbf16>, vector<16x128xf32> -> vector<16x128xf32>
    %c0_15 = arith.constant 0 : index
    %c0_16 = arith.constant 0 : index
    %18 = vector.load %arg6[%c0_15, %c0_16] : memref<1x128xf32, #tpu.memory_space<vmem>>, vector<1x128xf32>
    %19 = vector.broadcast %18 : vector<1x128xf32> to vector<16x128xf32>
    %20 = arith.mulf %17, %19 : vector<16x128xf32>
    %c0_17 = arith.constant 0 : index
    %c0_18 = arith.constant 0 : index
    %21 = vector.load %arg7[%c0_17, %c0_18] : memref<1x128xf32, #tpu.memory_space<vmem>>, vector<1x128xf32>
    %22 = vector.broadcast %21 : vector<1x128xf32> to vector<16x128xf32>
    %23 = arith.addf %20, %22 : vector<16x128xf32>
    %24 = arith.truncf %23 : vector<16x128xf32> to vector<16x128xbf16>
    %c0_19 = arith.constant 0 : index
    %c0_20 = arith.constant 0 : index
    %25 = vector.load %arg10[%c0_19, %c0_20] : memref<16x128xbf16, #tpu.memory_space<vmem>>, vector<16x128xbf16>
    tpu.vector_store %arg10[%c0_19, %c0_20], %24 {strides = array<i32>} : memref<16x128xbf16, #tpu.memory_space<vmem>>, vector<16x128xbf16>,
    return
  }
  func.func @transform_0(%arg0: i32) -> (i32, i32) {
    %c0_i32 = arith.constant 0 : i32
    %c0_i32_0 = arith.constant 0 : i32
    return %arg0, %c0_i32 : i32, i32
  }
  func.func @transform_1(%arg0: i32) -> (i32, i32) {
    %c0_i32 = arith.constant 0 : i32
    %c0_i32_0 = arith.constant 0 : i32
    %c0_i32_1 = arith.constant 0 : i32
    return %c0_i32, %c0_i32_0 : i32, i32
  }
  func.func @transform_2(%arg0: i32) -> (i32, i32) {
    %c0_i32 = arith.constant 0 : i32
    %c0_i32_0 = arith.constant 0 : i32
    %c0_i32_1 = arith.constant 0 : i32
    return %c0_i32, %c0_i32_0 : i32, i32
  }
  func.func @transform_3(%arg0: i32) -> (i32, i32) {
    %c0_i32 = arith.constant 0 : i32
    %c0_i32_0 = arith.constant 0 : i32
    %c0_i32_1 = arith.constant 0 : i32
    return %c0_i32, %c0_i32_0 : i32, i32
  }
  func.func @transform_4(%arg0: i32) -> (i32, i32) {
    %c0_i32 = arith.constant 0 : i32
    %c0_i32_0 = arith.constant 0 : i32
    %c0_i32_1 = arith.constant 0 : i32
    return %c0_i32, %c0_i32_0 : i32, i32
  }
  func.func @transform_5(%arg0: i32) -> (i32, i32) {
    %c0_i32 = arith.constant 0 : i32
    %c0_i32_0 = arith.constant 0 : i32
    %c0_i32_1 = arith.constant 0 : i32
    return %c0_i32, %c0_i32_0 : i32, i32
  }
  func.func @transform_6(%arg0: i32) -> (i32, i32) {
    %c0_i32 = arith.constant 0 : i32
    %c0_i32_0 = arith.constant 0 : i32
    %c0_i32_1 = arith.constant 0 : i32
    return %c0_i32, %c0_i32_0 : i32, i32
  }
  func.func @transform_7(%arg0: i32) -> (i32, i32) {
    %c0_i32 = arith.constant 0 : i32
    %c0_i32_0 = arith.constant 0 : i32
    return %arg0, %c0_i32 : i32, i32
  }
  func.func @transform_8(%arg0: i32) -> (i32, i32) {
    %c0_i32 = arith.constant 0 : i32
    %c0_i32_0 = arith.constant 0 : i32
    return %arg0, %c0_i32 : i32, i32
  }
  func.func @transform_9(%arg0: i32) -> (i32, i32) {
    %c0_i32 = arith.constant 0 : i32
    %c0_i32_0 = arith.constant 0 : i32
    return %arg0, %c0_i32 : i32, i32
  }
}

module attributes {stable_mosaic.version = 11 : i64} {
  func.func @_conv2_residual_kernel(%arg0: i32, %arg1: memref<16x1152xbf16, #tpu.memory_space<vmem>>, %arg2: memref<1152x128xbf16, #tpu.memory_space<vmem>>, %arg3: memref<1x128xf32, #tpu.memory_space<vmem>>, %arg4: memref<1x128xf32, #tpu.memory_space<vmem>>, %arg5: memref<16x128xbf16, #tpu.memory_space<vmem>>, %arg6: memref<16x128xbf16, #tpu.memory_space<vmem>>) attributes {dimension_semantics = [#tpu.dimension_semantics<parallel>], iteration_bounds = array<i64: 2>, scalar_prefetch = 0 : i64, scratch_operands = 0 : i64, tpu.core_type = #tpu.core_type<tc>, window_params = [{transform_indices = @transform_0, window_bounds = array<i64: 16, 1152>}, {pipeline_mode = #tpu.pipeline_mode<synchronous>, transform_indices = @transform_1, window_bounds = array<i64: 1152, 128>}, {pipeline_mode = #tpu.pipeline_mode<synchronous>, transform_indices = @transform_2, window_bounds = array<i64: 1, 128>}, {pipeline_mode = #tpu.pipeline_mode<synchronous>, transform_indices = @transform_3, window_bounds = array<i64: 1, 128>}, {transform_indices = @transform_4, window_bounds = array<i64: 16, 128>}, {transform_indices = @transform_5, window_bounds = array<i64: 16, 128>}]} {
    %c0 = arith.constant 0 : index
    %c0_0 = arith.constant 0 : index
    %0 = vector.load %arg1[%c0, %c0_0] : memref<16x1152xbf16, #tpu.memory_space<vmem>>, vector<16x1152xbf16>
    %c0_1 = arith.constant 0 : index
    %c0_2 = arith.constant 0 : index
    %1 = vector.load %arg2[%c0_1, %c0_2] : memref<1152x128xbf16, #tpu.memory_space<vmem>>, vector<1152x128xbf16>
    %cst = arith.constant dense<0.000000e+00> : vector<16x128xf32>
    %2 = tpu.matmul %0, %1, %cst {dimension_numbers = #tpu.dot_dimension_numbers<[1], [0], [0], [1], [0, 0, 1, 1], [], []>} : vector<16x1152xbf16>, vector<1152x128xbf16>, vector<16x128xf32> -> vector<16x128xf32>
    %c0_3 = arith.constant 0 : index
    %c0_4 = arith.constant 0 : index
    %3 = vector.load %arg3[%c0_3, %c0_4] : memref<1x128xf32, #tpu.memory_space<vmem>>, vector<1x128xf32>
    %4 = vector.broadcast %3 : vector<1x128xf32> to vector<16x128xf32>
    %5 = arith.mulf %2, %4 : vector<16x128xf32>
    %c0_5 = arith.constant 0 : index
    %c0_6 = arith.constant 0 : index
    %6 = vector.load %arg4[%c0_5, %c0_6] : memref<1x128xf32, #tpu.memory_space<vmem>>, vector<1x128xf32>
    %7 = vector.broadcast %6 : vector<1x128xf32> to vector<16x128xf32>
    %8 = arith.addf %5, %7 : vector<16x128xf32>
    %c0_7 = arith.constant 0 : index
    %c0_8 = arith.constant 0 : index
    %9 = vector.load %arg5[%c0_7, %c0_8] : memref<16x128xbf16, #tpu.memory_space<vmem>>, vector<16x128xbf16>
    %10 = arith.extf %9 : vector<16x128xbf16> to vector<16x128xf32>
    %11 = arith.addf %8, %10 : vector<16x128xf32>
    %cst_9 = arith.constant 0.000000e+00 : f32
    %12 = vector.broadcast %cst_9 : f32 to vector<16x128xf32>
    %13 = arith.maximumf %11, %12 : vector<16x128xf32>
    %14 = arith.truncf %13 : vector<16x128xf32> to vector<16x128xbf16>
    %c0_10 = arith.constant 0 : index
    %c0_11 = arith.constant 0 : index
    %15 = vector.load %arg6[%c0_10, %c0_11] : memref<16x128xbf16, #tpu.memory_space<vmem>>, vector<16x128xbf16>
    tpu.vector_store %arg6[%c0_10, %c0_11], %14 {strides = array<i32>} : memref<16x128xbf16, #tpu.memory_space<vmem>>, vector<16x128xbf16>,
    return
  }
  func.func @transform_0(%arg0: i32) -> (i32, i32) {
    %c0_i32 = arith.constant 0 : i32
    %c0_i32_0 = arith.constant 0 : i32
    return %arg0, %c0_i32 : i32, i32
  }
  func.func @transform_1(%arg0: i32) -> (i32, i32) {
    %c0_i32 = arith.constant 0 : i32
    %c0_i32_0 = arith.constant 0 : i32
    %c0_i32_1 = arith.constant 0 : i32
    return %c0_i32, %c0_i32_0 : i32, i32
  }
  func.func @transform_2(%arg0: i32) -> (i32, i32) {
    %c0_i32 = arith.constant 0 : i32
    %c0_i32_0 = arith.constant 0 : i32
    %c0_i32_1 = arith.constant 0 : i32
    return %c0_i32, %c0_i32_0 : i32, i32
  }
  func.func @transform_3(%arg0: i32) -> (i32, i32) {
    %c0_i32 = arith.constant 0 : i32
    %c0_i32_0 = arith.constant 0 : i32
    %c0_i32_1 = arith.constant 0 : i32
    return %c0_i32, %c0_i32_0 : i32, i32
  }
  func.func @transform_4(%arg0: i32) -> (i32, i32) {
    %c0_i32 = arith.constant 0 : i32
    %c0_i32_0 = arith.constant 0 : i32
    return %arg0, %c0_i32 : i32, i32
  }
  func.func @transform_5(%arg0: i32) -> (i32, i32) {
    %c0_i32 = arith.constant 0 : i32
    %c0_i32_0 = arith.constant 0 : i32
    return %arg0, %c0_i32 : i32, i32
  }
}

module attributes {stable_mosaic.version = 11 : i64} {
  func.func @_adapter_skip_kernel(%arg0: i32, %arg1: memref<16x1152xbf16, #tpu.memory_space<vmem>>, %arg2: memref<1152x128xbf16, #tpu.memory_space<vmem>>, %arg3: memref<16x128xbf16, #tpu.memory_space<vmem>>, %arg4: memref<16x128xbf16, #tpu.memory_space<vmem>>) attributes {dimension_semantics = [#tpu.dimension_semantics<parallel>], iteration_bounds = array<i64: 2>, scalar_prefetch = 0 : i64, scratch_operands = 0 : i64, tpu.core_type = #tpu.core_type<tc>, window_params = [{transform_indices = @transform_0, window_bounds = array<i64: 16, 1152>}, {pipeline_mode = #tpu.pipeline_mode<synchronous>, transform_indices = @transform_1, window_bounds = array<i64: 1152, 128>}, {transform_indices = @transform_2, window_bounds = array<i64: 16, 128>}, {transform_indices = @transform_3, window_bounds = array<i64: 16, 128>}]} {
    %c0 = arith.constant 0 : index
    %c0_0 = arith.constant 0 : index
    %0 = vector.load %arg1[%c0, %c0_0] : memref<16x1152xbf16, #tpu.memory_space<vmem>>, vector<16x1152xbf16>
    %c0_1 = arith.constant 0 : index
    %c0_2 = arith.constant 0 : index
    %1 = vector.load %arg2[%c0_1, %c0_2] : memref<1152x128xbf16, #tpu.memory_space<vmem>>, vector<1152x128xbf16>
    %cst = arith.constant dense<0.000000e+00> : vector<16x128xf32>
    %2 = tpu.matmul %0, %1, %cst {dimension_numbers = #tpu.dot_dimension_numbers<[1], [0], [0], [1], [0, 0, 1, 1], [], []>} : vector<16x1152xbf16>, vector<1152x128xbf16>, vector<16x128xf32> -> vector<16x128xf32>
    %c0_3 = arith.constant 0 : index
    %c0_4 = arith.constant 0 : index
    %3 = vector.load %arg3[%c0_3, %c0_4] : memref<16x128xbf16, #tpu.memory_space<vmem>>, vector<16x128xbf16>
    %4 = arith.extf %3 : vector<16x128xbf16> to vector<16x128xf32>
    %5 = arith.addf %2, %4 : vector<16x128xf32>
    %6 = arith.truncf %5 : vector<16x128xf32> to vector<16x128xbf16>
    %c0_5 = arith.constant 0 : index
    %c0_6 = arith.constant 0 : index
    %7 = vector.load %arg4[%c0_5, %c0_6] : memref<16x128xbf16, #tpu.memory_space<vmem>>, vector<16x128xbf16>
    tpu.vector_store %arg4[%c0_5, %c0_6], %6 {strides = array<i32>} : memref<16x128xbf16, #tpu.memory_space<vmem>>, vector<16x128xbf16>,
    return
  }
  func.func @transform_0(%arg0: i32) -> (i32, i32) {
    %c0_i32 = arith.constant 0 : i32
    %c0_i32_0 = arith.constant 0 : i32
    return %arg0, %c0_i32 : i32, i32
  }
  func.func @transform_1(%arg0: i32) -> (i32, i32) {
    %c0_i32 = arith.constant 0 : i32
    %c0_i32_0 = arith.constant 0 : i32
    %c0_i32_1 = arith.constant 0 : i32
    return %c0_i32, %c0_i32_0 : i32, i32
  }
  func.func @transform_2(%arg0: i32) -> (i32, i32) {
    %c0_i32 = arith.constant 0 : i32
    %c0_i32_0 = arith.constant 0 : i32
    return %arg0, %c0_i32 : i32, i32
  }
  func.func @transform_3(%arg0: i32) -> (i32, i32) {
    %c0_i32 = arith.constant 0 : i32
    %c0_i32_0 = arith.constant 0 : i32
    return %arg0, %c0_i32 : i32, i32
  }
}

module attributes {stable_mosaic.version = 11 : i64} {
  func.func @_conv1_ds_kernel(%arg0: i32, %arg1: memref<8x1152xbf16, #tpu.memory_space<vmem>>, %arg2: memref<1152x128xbf16, #tpu.memory_space<vmem>>, %arg3: memref<128x128xbf16, #tpu.memory_space<vmem>>, %arg4: memref<1x128xf32, #tpu.memory_space<vmem>>, %arg5: memref<1x128xf32, #tpu.memory_space<vmem>>, %arg6: memref<1x128xf32, #tpu.memory_space<vmem>>, %arg7: memref<1x128xf32, #tpu.memory_space<vmem>>, %arg8: memref<8x128xbf16, #tpu.memory_space<vmem>>, %arg9: memref<8x128xbf16, #tpu.memory_space<vmem>>, %arg10: memref<8x128xbf16, #tpu.memory_space<vmem>>) attributes {dimension_semantics = [#tpu.dimension_semantics<parallel>], iteration_bounds = array<i64: 1>, scalar_prefetch = 0 : i64, scratch_operands = 0 : i64, tpu.core_type = #tpu.core_type<tc>, window_params = [{transform_indices = @transform_0, window_bounds = array<i64: 8, 1152>}, {pipeline_mode = #tpu.pipeline_mode<synchronous>, transform_indices = @transform_1, window_bounds = array<i64: 1152, 128>}, {pipeline_mode = #tpu.pipeline_mode<synchronous>, transform_indices = @transform_2, window_bounds = array<i64: 128, 128>}, {pipeline_mode = #tpu.pipeline_mode<synchronous>, transform_indices = @transform_3, window_bounds = array<i64: 1, 128>}, {pipeline_mode = #tpu.pipeline_mode<synchronous>, transform_indices = @transform_4, window_bounds = array<i64: 1, 128>}, {pipeline_mode = #tpu.pipeline_mode<synchronous>, transform_indices = @transform_5, window_bounds = array<i64: 1, 128>}, {pipeline_mode = #tpu.pipeline_mode<synchronous>, transform_indices = @transform_6, window_bounds = array<i64: 1, 128>}, {transform_indices = @transform_7, window_bounds = array<i64: 8, 128>}, {transform_indices = @transform_8, window_bounds = array<i64: 8, 128>}, {transform_indices = @transform_9, window_bounds = array<i64: 8, 128>}]} {
    %c0 = arith.constant 0 : index
    %c0_0 = arith.constant 0 : index
    %0 = vector.load %arg1[%c0, %c0_0] : memref<8x1152xbf16, #tpu.memory_space<vmem>>, vector<8x1152xbf16>
    %c0_1 = arith.constant 0 : index
    %c0_2 = arith.constant 0 : index
    %1 = vector.load %arg2[%c0_1, %c0_2] : memref<1152x128xbf16, #tpu.memory_space<vmem>>, vector<1152x128xbf16>
    %cst = arith.constant dense<0.000000e+00> : vector<8x128xf32>
    %2 = tpu.matmul %0, %1, %cst {dimension_numbers = #tpu.dot_dimension_numbers<[1], [0], [0], [1], [0, 0, 1, 1], [], []>} : vector<8x1152xbf16>, vector<1152x128xbf16>, vector<8x128xf32> -> vector<8x128xf32>
    %3 = arith.truncf %2 : vector<8x128xf32> to vector<8x128xbf16>
    %c0_3 = arith.constant 0 : index
    %c0_4 = arith.constant 0 : index
    %4 = vector.load %arg8[%c0_3, %c0_4] : memref<8x128xbf16, #tpu.memory_space<vmem>>, vector<8x128xbf16>
    tpu.vector_store %arg8[%c0_3, %c0_4], %3 {strides = array<i32>} : memref<8x128xbf16, #tpu.memory_space<vmem>>, vector<8x128xbf16>,
    %c0_5 = arith.constant 0 : index
    %c0_6 = arith.constant 0 : index
    %5 = vector.load %arg4[%c0_5, %c0_6] : memref<1x128xf32, #tpu.memory_space<vmem>>, vector<1x128xf32>
    %6 = vector.broadcast %5 : vector<1x128xf32> to vector<8x128xf32>
    %7 = arith.mulf %2, %6 : vector<8x128xf32>
    %c0_7 = arith.constant 0 : index
    %c0_8 = arith.constant 0 : index
    %8 = vector.load %arg5[%c0_7, %c0_8] : memref<1x128xf32, #tpu.memory_space<vmem>>, vector<1x128xf32>
    %9 = vector.broadcast %8 : vector<1x128xf32> to vector<8x128xf32>
    %10 = arith.addf %7, %9 : vector<8x128xf32>
    %cst_9 = arith.constant 0.000000e+00 : f32
    %11 = vector.broadcast %cst_9 : f32 to vector<8x128xf32>
    %12 = arith.maximumf %10, %11 : vector<8x128xf32>
    %13 = arith.truncf %12 : vector<8x128xf32> to vector<8x128xbf16>
    %c0_10 = arith.constant 0 : index
    %c0_11 = arith.constant 0 : index
    %14 = vector.load %arg9[%c0_10, %c0_11] : memref<8x128xbf16, #tpu.memory_space<vmem>>, vector<8x128xbf16>
    tpu.vector_store %arg9[%c0_10, %c0_11], %13 {strides = array<i32>} : memref<8x128xbf16, #tpu.memory_space<vmem>>, vector<8x128xbf16>,
    %15 = vector.extract_strided_slice %0 {offsets = [0, 512], sizes = [8, 128], strides = [1, 1]} : vector<8x1152xbf16> to vector<8x128xbf16>
    %c0_12 = arith.constant 0 : index
    %c0_13 = arith.constant 0 : index
    %16 = vector.load %arg3[%c0_12, %c0_13] : memref<128x128xbf16, #tpu.memory_space<vmem>>, vector<128x128xbf16>
    %cst_14 = arith.constant dense<0.000000e+00> : vector<8x128xf32>
    %17 = tpu.matmul %15, %16, %cst_14 {dimension_numbers = #tpu.dot_dimension_numbers<[1], [0], [0], [1], [0, 0, 1, 1], [], []>} : vector<8x128xbf16>, vector<128x128xbf16>, vector<8x128xf32> -> vector<8x128xf32>
    %c0_15 = arith.constant 0 : index
    %c0_16 = arith.constant 0 : index
    %18 = vector.load %arg6[%c0_15, %c0_16] : memref<1x128xf32, #tpu.memory_space<vmem>>, vector<1x128xf32>
    %19 = vector.broadcast %18 : vector<1x128xf32> to vector<8x128xf32>
    %20 = arith.mulf %17, %19 : vector<8x128xf32>
    %c0_17 = arith.constant 0 : index
    %c0_18 = arith.constant 0 : index
    %21 = vector.load %arg7[%c0_17, %c0_18] : memref<1x128xf32, #tpu.memory_space<vmem>>, vector<1x128xf32>
    %22 = vector.broadcast %21 : vector<1x128xf32> to vector<8x128xf32>
    %23 = arith.addf %20, %22 : vector<8x128xf32>
    %24 = arith.truncf %23 : vector<8x128xf32> to vector<8x128xbf16>
    %c0_19 = arith.constant 0 : index
    %c0_20 = arith.constant 0 : index
    %25 = vector.load %arg10[%c0_19, %c0_20] : memref<8x128xbf16, #tpu.memory_space<vmem>>, vector<8x128xbf16>
    tpu.vector_store %arg10[%c0_19, %c0_20], %24 {strides = array<i32>} : memref<8x128xbf16, #tpu.memory_space<vmem>>, vector<8x128xbf16>,
    return
  }
  func.func @transform_0(%arg0: i32) -> (i32, i32) {
    %c0_i32 = arith.constant 0 : i32
    %c0_i32_0 = arith.constant 0 : i32
    return %arg0, %c0_i32 : i32, i32
  }
  func.func @transform_1(%arg0: i32) -> (i32, i32) {
    %c0_i32 = arith.constant 0 : i32
    %c0_i32_0 = arith.constant 0 : i32
    %c0_i32_1 = arith.constant 0 : i32
    return %c0_i32, %c0_i32_0 : i32, i32
  }
  func.func @transform_2(%arg0: i32) -> (i32, i32) {
    %c0_i32 = arith.constant 0 : i32
    %c0_i32_0 = arith.constant 0 : i32
    %c0_i32_1 = arith.constant 0 : i32
    return %c0_i32, %c0_i32_0 : i32, i32
  }
  func.func @transform_3(%arg0: i32) -> (i32, i32) {
    %c0_i32 = arith.constant 0 : i32
    %c0_i32_0 = arith.constant 0 : i32
    %c0_i32_1 = arith.constant 0 : i32
    return %c0_i32, %c0_i32_0 : i32, i32
  }
  func.func @transform_4(%arg0: i32) -> (i32, i32) {
    %c0_i32 = arith.constant 0 : i32
    %c0_i32_0 = arith.constant 0 : i32
    %c0_i32_1 = arith.constant 0 : i32
    return %c0_i32, %c0_i32_0 : i32, i32
  }
  func.func @transform_5(%arg0: i32) -> (i32, i32) {
    %c0_i32 = arith.constant 0 : i32
    %c0_i32_0 = arith.constant 0 : i32
    %c0_i32_1 = arith.constant 0 : i32
    return %c0_i32, %c0_i32_0 : i32, i32
  }
  func.func @transform_6(%arg0: i32) -> (i32, i32) {
    %c0_i32 = arith.constant 0 : i32
    %c0_i32_0 = arith.constant 0 : i32
    %c0_i32_1 = arith.constant 0 : i32
    return %c0_i32, %c0_i32_0 : i32, i32
  }
  func.func @transform_7(%arg0: i32) -> (i32, i32) {
    %c0_i32 = arith.constant 0 : i32
    %c0_i32_0 = arith.constant 0 : i32
    return %arg0, %c0_i32 : i32, i32
  }
  func.func @transform_8(%arg0: i32) -> (i32, i32) {
    %c0_i32 = arith.constant 0 : i32
    %c0_i32_0 = arith.constant 0 : i32
    return %arg0, %c0_i32 : i32, i32
  }
  func.func @transform_9(%arg0: i32) -> (i32, i32) {
    %c0_i32 = arith.constant 0 : i32
    %c0_i32_0 = arith.constant 0 : i32
    return %arg0, %c0_i32 : i32, i32
  }
}

module attributes {stable_mosaic.version = 11 : i64} {
  func.func @_adapter_skip_kernel(%arg0: i32, %arg1: memref<8x1152xbf16, #tpu.memory_space<vmem>>, %arg2: memref<1152x128xbf16, #tpu.memory_space<vmem>>, %arg3: memref<8x128xbf16, #tpu.memory_space<vmem>>, %arg4: memref<8x128xbf16, #tpu.memory_space<vmem>>) attributes {dimension_semantics = [#tpu.dimension_semantics<parallel>], iteration_bounds = array<i64: 1>, scalar_prefetch = 0 : i64, scratch_operands = 0 : i64, tpu.core_type = #tpu.core_type<tc>, window_params = [{transform_indices = @transform_0, window_bounds = array<i64: 8, 1152>}, {pipeline_mode = #tpu.pipeline_mode<synchronous>, transform_indices = @transform_1, window_bounds = array<i64: 1152, 128>}, {transform_indices = @transform_2, window_bounds = array<i64: 8, 128>}, {transform_indices = @transform_3, window_bounds = array<i64: 8, 128>}]} {
    %c0 = arith.constant 0 : index
    %c0_0 = arith.constant 0 : index
    %0 = vector.load %arg1[%c0, %c0_0] : memref<8x1152xbf16, #tpu.memory_space<vmem>>, vector<8x1152xbf16>
    %c0_1 = arith.constant 0 : index
    %c0_2 = arith.constant 0 : index
    %1 = vector.load %arg2[%c0_1, %c0_2] : memref<1152x128xbf16, #tpu.memory_space<vmem>>, vector<1152x128xbf16>
    %cst = arith.constant dense<0.000000e+00> : vector<8x128xf32>
    %2 = tpu.matmul %0, %1, %cst {dimension_numbers = #tpu.dot_dimension_numbers<[1], [0], [0], [1], [0, 0, 1, 1], [], []>} : vector<8x1152xbf16>, vector<1152x128xbf16>, vector<8x128xf32> -> vector<8x128xf32>
    %c0_3 = arith.constant 0 : index
    %c0_4 = arith.constant 0 : index
    %3 = vector.load %arg3[%c0_3, %c0_4] : memref<8x128xbf16, #tpu.memory_space<vmem>>, vector<8x128xbf16>
    %4 = arith.extf %3 : vector<8x128xbf16> to vector<8x128xf32>
    %5 = arith.addf %2, %4 : vector<8x128xf32>
    %6 = arith.truncf %5 : vector<8x128xf32> to vector<8x128xbf16>
    %c0_5 = arith.constant 0 : index
    %c0_6 = arith.constant 0 : index
    %7 = vector.load %arg4[%c0_5, %c0_6] : memref<8x128xbf16, #tpu.memory_space<vmem>>, vector<8x128xbf16>
    tpu.vector_store %arg4[%c0_5, %c0_6], %6 {strides = array<i32>} : memref<8x128xbf16, #tpu.memory_space<vmem>>, vector<8x128xbf16>,
    return
  }
  func.func @transform_0(%arg0: i32) -> (i32, i32) {
    %c0_i32 = arith.constant 0 : i32
    %c0_i32_0 = arith.constant 0 : i32
    return %arg0, %c0_i32 : i32, i32
  }
  func.func @transform_1(%arg0: i32) -> (i32, i32) {
    %c0_i32 = arith.constant 0 : i32
    %c0_i32_0 = arith.constant 0 : i32
    %c0_i32_1 = arith.constant 0 : i32
    return %c0_i32, %c0_i32_0 : i32, i32
  }
  func.func @transform_2(%arg0: i32) -> (i32, i32) {
    %c0_i32 = arith.constant 0 : i32
    %c0_i32_0 = arith.constant 0 : i32
    return %arg0, %c0_i32 : i32, i32
  }
  func.func @transform_3(%arg0: i32) -> (i32, i32) {
    %c0_i32 = arith.constant 0 : i32
    %c0_i32_0 = arith.constant 0 : i32
    return %arg0, %c0_i32 : i32, i32
  }
}

module attributes {stable_mosaic.version = 11 : i64} {
  func.func @_conv2_residual_kernel(%arg0: i32, %arg1: memref<8x1152xbf16, #tpu.memory_space<vmem>>, %arg2: memref<1152x128xbf16, #tpu.memory_space<vmem>>, %arg3: memref<1x128xf32, #tpu.memory_space<vmem>>, %arg4: memref<1x128xf32, #tpu.memory_space<vmem>>, %arg5: memref<8x128xbf16, #tpu.memory_space<vmem>>, %arg6: memref<8x128xbf16, #tpu.memory_space<vmem>>) attributes {dimension_semantics = [#tpu.dimension_semantics<parallel>], iteration_bounds = array<i64: 1>, scalar_prefetch = 0 : i64, scratch_operands = 0 : i64, tpu.core_type = #tpu.core_type<tc>, window_params = [{transform_indices = @transform_0, window_bounds = array<i64: 8, 1152>}, {pipeline_mode = #tpu.pipeline_mode<synchronous>, transform_indices = @transform_1, window_bounds = array<i64: 1152, 128>}, {pipeline_mode = #tpu.pipeline_mode<synchronous>, transform_indices = @transform_2, window_bounds = array<i64: 1, 128>}, {pipeline_mode = #tpu.pipeline_mode<synchronous>, transform_indices = @transform_3, window_bounds = array<i64: 1, 128>}, {transform_indices = @transform_4, window_bounds = array<i64: 8, 128>}, {transform_indices = @transform_5, window_bounds = array<i64: 8, 128>}]} {
    %c0 = arith.constant 0 : index
    %c0_0 = arith.constant 0 : index
    %0 = vector.load %arg1[%c0, %c0_0] : memref<8x1152xbf16, #tpu.memory_space<vmem>>, vector<8x1152xbf16>
    %c0_1 = arith.constant 0 : index
    %c0_2 = arith.constant 0 : index
    %1 = vector.load %arg2[%c0_1, %c0_2] : memref<1152x128xbf16, #tpu.memory_space<vmem>>, vector<1152x128xbf16>
    %cst = arith.constant dense<0.000000e+00> : vector<8x128xf32>
    %2 = tpu.matmul %0, %1, %cst {dimension_numbers = #tpu.dot_dimension_numbers<[1], [0], [0], [1], [0, 0, 1, 1], [], []>} : vector<8x1152xbf16>, vector<1152x128xbf16>, vector<8x128xf32> -> vector<8x128xf32>
    %c0_3 = arith.constant 0 : index
    %c0_4 = arith.constant 0 : index
    %3 = vector.load %arg3[%c0_3, %c0_4] : memref<1x128xf32, #tpu.memory_space<vmem>>, vector<1x128xf32>
    %4 = vector.broadcast %3 : vector<1x128xf32> to vector<8x128xf32>
    %5 = arith.mulf %2, %4 : vector<8x128xf32>
    %c0_5 = arith.constant 0 : index
    %c0_6 = arith.constant 0 : index
    %6 = vector.load %arg4[%c0_5, %c0_6] : memref<1x128xf32, #tpu.memory_space<vmem>>, vector<1x128xf32>
    %7 = vector.broadcast %6 : vector<1x128xf32> to vector<8x128xf32>
    %8 = arith.addf %5, %7 : vector<8x128xf32>
    %c0_7 = arith.constant 0 : index
    %c0_8 = arith.constant 0 : index
    %9 = vector.load %arg5[%c0_7, %c0_8] : memref<8x128xbf16, #tpu.memory_space<vmem>>, vector<8x128xbf16>
    %10 = arith.extf %9 : vector<8x128xbf16> to vector<8x128xf32>
    %11 = arith.addf %8, %10 : vector<8x128xf32>
    %cst_9 = arith.constant 0.000000e+00 : f32
    %12 = vector.broadcast %cst_9 : f32 to vector<8x128xf32>
    %13 = arith.maximumf %11, %12 : vector<8x128xf32>
    %14 = arith.truncf %13 : vector<8x128xf32> to vector<8x128xbf16>
    %c0_10 = arith.constant 0 : index
    %c0_11 = arith.constant 0 : index
    %15 = vector.load %arg6[%c0_10, %c0_11] : memref<8x128xbf16, #tpu.memory_space<vmem>>, vector<8x128xbf16>
    tpu.vector_store %arg6[%c0_10, %c0_11], %14 {strides = array<i32>} : memref<8x128xbf16, #tpu.memory_space<vmem>>, vector<8x128xbf16>,
    return
  }
  func.func @transform_0(%arg0: i32) -> (i32, i32) {
    %c0_i32 = arith.constant 0 : i32
    %c0_i32_0 = arith.constant 0 : i32
    return %arg0, %c0_i32 : i32, i32
  }
  func.func @transform_1(%arg0: i32) -> (i32, i32) {
    %c0_i32 = arith.constant 0 : i32
    %c0_i32_0 = arith.constant 0 : i32
    %c0_i32_1 = arith.constant 0 : i32
    return %c0_i32, %c0_i32_0 : i32, i32
  }
  func.func @transform_2(%arg0: i32) -> (i32, i32) {
    %c0_i32 = arith.constant 0 : i32
    %c0_i32_0 = arith.constant 0 : i32
    %c0_i32_1 = arith.constant 0 : i32
    return %c0_i32, %c0_i32_0 : i32, i32
  }
  func.func @transform_3(%arg0: i32) -> (i32, i32) {
    %c0_i32 = arith.constant 0 : i32
    %c0_i32_0 = arith.constant 0 : i32
    %c0_i32_1 = arith.constant 0 : i32
    return %c0_i32, %c0_i32_0 : i32, i32
  }
  func.func @transform_4(%arg0: i32) -> (i32, i32) {
    %c0_i32 = arith.constant 0 : i32
    %c0_i32_0 = arith.constant 0 : i32
    return %arg0, %c0_i32 : i32, i32
  }
  func.func @transform_5(%arg0: i32) -> (i32, i32) {
    %c0_i32 = arith.constant 0 : i32
    %c0_i32_0 = arith.constant 0 : i32
    return %arg0, %c0_i32 : i32, i32
  }
}

module attributes {stable_mosaic.version = 11 : i64} {
  func.func @_adapter_skip_kernel(%arg0: i32, %arg1: memref<8x1152xbf16, #tpu.memory_space<vmem>>, %arg2: memref<1152x128xbf16, #tpu.memory_space<vmem>>, %arg3: memref<8x128xbf16, #tpu.memory_space<vmem>>, %arg4: memref<8x128xbf16, #tpu.memory_space<vmem>>) attributes {dimension_semantics = [#tpu.dimension_semantics<parallel>], iteration_bounds = array<i64: 1>, scalar_prefetch = 0 : i64, scratch_operands = 0 : i64, tpu.core_type = #tpu.core_type<tc>, window_params = [{transform_indices = @transform_0, window_bounds = array<i64: 8, 1152>}, {pipeline_mode = #tpu.pipeline_mode<synchronous>, transform_indices = @transform_1, window_bounds = array<i64: 1152, 128>}, {transform_indices = @transform_2, window_bounds = array<i64: 8, 128>}, {transform_indices = @transform_3, window_bounds = array<i64: 8, 128>}]} {
    %c0 = arith.constant 0 : index
    %c0_0 = arith.constant 0 : index
    %0 = vector.load %arg1[%c0, %c0_0] : memref<8x1152xbf16, #tpu.memory_space<vmem>>, vector<8x1152xbf16>
    %c0_1 = arith.constant 0 : index
    %c0_2 = arith.constant 0 : index
    %1 = vector.load %arg2[%c0_1, %c0_2] : memref<1152x128xbf16, #tpu.memory_space<vmem>>, vector<1152x128xbf16>
    %cst = arith.constant dense<0.000000e+00> : vector<8x128xf32>
    %2 = tpu.matmul %0, %1, %cst {dimension_numbers = #tpu.dot_dimension_numbers<[1], [0], [0], [1], [0, 0, 1, 1], [], []>} : vector<8x1152xbf16>, vector<1152x128xbf16>, vector<8x128xf32> -> vector<8x128xf32>
    %c0_3 = arith.constant 0 : index
    %c0_4 = arith.constant 0 : index
    %3 = vector.load %arg3[%c0_3, %c0_4] : memref<8x128xbf16, #tpu.memory_space<vmem>>, vector<8x128xbf16>
    %4 = arith.extf %3 : vector<8x128xbf16> to vector<8x128xf32>
    %5 = arith.addf %2, %4 : vector<8x128xf32>
    %6 = arith.truncf %5 : vector<8x128xf32> to vector<8x128xbf16>
    %c0_5 = arith.constant 0 : index
    %c0_6 = arith.constant 0 : index
    %7 = vector.load %arg4[%c0_5, %c0_6] : memref<8x128xbf16, #tpu.memory_space<vmem>>, vector<8x128xbf16>
    tpu.vector_store %arg4[%c0_5, %c0_6], %6 {strides = array<i32>} : memref<8x128xbf16, #tpu.memory_space<vmem>>, vector<8x128xbf16>,
    return
  }
  func.func @transform_0(%arg0: i32) -> (i32, i32) {
    %c0_i32 = arith.constant 0 : i32
    %c0_i32_0 = arith.constant 0 : i32
    return %arg0, %c0_i32 : i32, i32
  }
  func.func @transform_1(%arg0: i32) -> (i32, i32) {
    %c0_i32 = arith.constant 0 : i32
    %c0_i32_0 = arith.constant 0 : i32
    %c0_i32_1 = arith.constant 0 : i32
    return %c0_i32, %c0_i32_0 : i32, i32
  }
  func.func @transform_2(%arg0: i32) -> (i32, i32) {
    %c0_i32 = arith.constant 0 : i32
    %c0_i32_0 = arith.constant 0 : i32
    return %arg0, %c0_i32 : i32, i32
  }
  func.func @transform_3(%arg0: i32) -> (i32, i32) {
    %c0_i32 = arith.constant 0 : i32
    %c0_i32_0 = arith.constant 0 : i32
    return %arg0, %c0_i32 : i32, i32
  }
}

module attributes {stable_mosaic.version = 11 : i64} {
  func.func @_conv1_ds_kernel(%arg0: i32, %arg1: memref<8x1152xbf16, #tpu.memory_space<vmem>>, %arg2: memref<1152x128xbf16, #tpu.memory_space<vmem>>, %arg3: memref<128x128xbf16, #tpu.memory_space<vmem>>, %arg4: memref<1x128xf32, #tpu.memory_space<vmem>>, %arg5: memref<1x128xf32, #tpu.memory_space<vmem>>, %arg6: memref<1x128xf32, #tpu.memory_space<vmem>>, %arg7: memref<1x128xf32, #tpu.memory_space<vmem>>, %arg8: memref<8x128xbf16, #tpu.memory_space<vmem>>, %arg9: memref<8x128xbf16, #tpu.memory_space<vmem>>, %arg10: memref<8x128xbf16, #tpu.memory_space<vmem>>) attributes {dimension_semantics = [#tpu.dimension_semantics<parallel>], iteration_bounds = array<i64: 1>, scalar_prefetch = 0 : i64, scratch_operands = 0 : i64, tpu.core_type = #tpu.core_type<tc>, window_params = [{transform_indices = @transform_0, window_bounds = array<i64: 8, 1152>}, {pipeline_mode = #tpu.pipeline_mode<synchronous>, transform_indices = @transform_1, window_bounds = array<i64: 1152, 128>}, {pipeline_mode = #tpu.pipeline_mode<synchronous>, transform_indices = @transform_2, window_bounds = array<i64: 128, 128>}, {pipeline_mode = #tpu.pipeline_mode<synchronous>, transform_indices = @transform_3, window_bounds = array<i64: 1, 128>}, {pipeline_mode = #tpu.pipeline_mode<synchronous>, transform_indices = @transform_4, window_bounds = array<i64: 1, 128>}, {pipeline_mode = #tpu.pipeline_mode<synchronous>, transform_indices = @transform_5, window_bounds = array<i64: 1, 128>}, {pipeline_mode = #tpu.pipeline_mode<synchronous>, transform_indices = @transform_6, window_bounds = array<i64: 1, 128>}, {transform_indices = @transform_7, window_bounds = array<i64: 8, 128>}, {transform_indices = @transform_8, window_bounds = array<i64: 8, 128>}, {transform_indices = @transform_9, window_bounds = array<i64: 8, 128>}]} {
    %c0 = arith.constant 0 : index
    %c0_0 = arith.constant 0 : index
    %0 = vector.load %arg1[%c0, %c0_0] : memref<8x1152xbf16, #tpu.memory_space<vmem>>, vector<8x1152xbf16>
    %c0_1 = arith.constant 0 : index
    %c0_2 = arith.constant 0 : index
    %1 = vector.load %arg2[%c0_1, %c0_2] : memref<1152x128xbf16, #tpu.memory_space<vmem>>, vector<1152x128xbf16>
    %cst = arith.constant dense<0.000000e+00> : vector<8x128xf32>
    %2 = tpu.matmul %0, %1, %cst {dimension_numbers = #tpu.dot_dimension_numbers<[1], [0], [0], [1], [0, 0, 1, 1], [], []>} : vector<8x1152xbf16>, vector<1152x128xbf16>, vector<8x128xf32> -> vector<8x128xf32>
    %3 = arith.truncf %2 : vector<8x128xf32> to vector<8x128xbf16>
    %c0_3 = arith.constant 0 : index
    %c0_4 = arith.constant 0 : index
    %4 = vector.load %arg8[%c0_3, %c0_4] : memref<8x128xbf16, #tpu.memory_space<vmem>>, vector<8x128xbf16>
    tpu.vector_store %arg8[%c0_3, %c0_4], %3 {strides = array<i32>} : memref<8x128xbf16, #tpu.memory_space<vmem>>, vector<8x128xbf16>,
    %c0_5 = arith.constant 0 : index
    %c0_6 = arith.constant 0 : index
    %5 = vector.load %arg4[%c0_5, %c0_6] : memref<1x128xf32, #tpu.memory_space<vmem>>, vector<1x128xf32>
    %6 = vector.broadcast %5 : vector<1x128xf32> to vector<8x128xf32>
    %7 = arith.mulf %2, %6 : vector<8x128xf32>
    %c0_7 = arith.constant 0 : index
    %c0_8 = arith.constant 0 : index
    %8 = vector.load %arg5[%c0_7, %c0_8] : memref<1x128xf32, #tpu.memory_space<vmem>>, vector<1x128xf32>
    %9 = vector.broadcast %8 : vector<1x128xf32> to vector<8x128xf32>
    %10 = arith.addf %7, %9 : vector<8x128xf32>
    %cst_9 = arith.constant 0.000000e+00 : f32
    %11 = vector.broadcast %cst_9 : f32 to vector<8x128xf32>
    %12 = arith.maximumf %10, %11 : vector<8x128xf32>
    %13 = arith.truncf %12 : vector<8x128xf32> to vector<8x128xbf16>
    %c0_10 = arith.constant 0 : index
    %c0_11 = arith.constant 0 : index
    %14 = vector.load %arg9[%c0_10, %c0_11] : memref<8x128xbf16, #tpu.memory_space<vmem>>, vector<8x128xbf16>
    tpu.vector_store %arg9[%c0_10, %c0_11], %13 {strides = array<i32>} : memref<8x128xbf16, #tpu.memory_space<vmem>>, vector<8x128xbf16>,
    %15 = vector.extract_strided_slice %0 {offsets = [0, 512], sizes = [8, 128], strides = [1, 1]} : vector<8x1152xbf16> to vector<8x128xbf16>
    %c0_12 = arith.constant 0 : index
    %c0_13 = arith.constant 0 : index
    %16 = vector.load %arg3[%c0_12, %c0_13] : memref<128x128xbf16, #tpu.memory_space<vmem>>, vector<128x128xbf16>
    %cst_14 = arith.constant dense<0.000000e+00> : vector<8x128xf32>
    %17 = tpu.matmul %15, %16, %cst_14 {dimension_numbers = #tpu.dot_dimension_numbers<[1], [0], [0], [1], [0, 0, 1, 1], [], []>} : vector<8x128xbf16>, vector<128x128xbf16>, vector<8x128xf32> -> vector<8x128xf32>
    %c0_15 = arith.constant 0 : index
    %c0_16 = arith.constant 0 : index
    %18 = vector.load %arg6[%c0_15, %c0_16] : memref<1x128xf32, #tpu.memory_space<vmem>>, vector<1x128xf32>
    %19 = vector.broadcast %18 : vector<1x128xf32> to vector<8x128xf32>
    %20 = arith.mulf %17, %19 : vector<8x128xf32>
    %c0_17 = arith.constant 0 : index
    %c0_18 = arith.constant 0 : index
    %21 = vector.load %arg7[%c0_17, %c0_18] : memref<1x128xf32, #tpu.memory_space<vmem>>, vector<1x128xf32>
    %22 = vector.broadcast %21 : vector<1x128xf32> to vector<8x128xf32>
    %23 = arith.addf %20, %22 : vector<8x128xf32>
    %24 = arith.truncf %23 : vector<8x128xf32> to vector<8x128xbf16>
    %c0_19 = arith.constant 0 : index
    %c0_20 = arith.constant 0 : index
    %25 = vector.load %arg10[%c0_19, %c0_20] : memref<8x128xbf16, #tpu.memory_space<vmem>>, vector<8x128xbf16>
    tpu.vector_store %arg10[%c0_19, %c0_20], %24 {strides = array<i32>} : memref<8x128xbf16, #tpu.memory_space<vmem>>, vector<8x128xbf16>,
    return
  }
  func.func @transform_0(%arg0: i32) -> (i32, i32) {
    %c0_i32 = arith.constant 0 : i32
    %c0_i32_0 = arith.constant 0 : i32
    return %arg0, %c0_i32 : i32, i32
  }
  func.func @transform_1(%arg0: i32) -> (i32, i32) {
    %c0_i32 = arith.constant 0 : i32
    %c0_i32_0 = arith.constant 0 : i32
    %c0_i32_1 = arith.constant 0 : i32
    return %c0_i32, %c0_i32_0 : i32, i32
  }
  func.func @transform_2(%arg0: i32) -> (i32, i32) {
    %c0_i32 = arith.constant 0 : i32
    %c0_i32_0 = arith.constant 0 : i32
    %c0_i32_1 = arith.constant 0 : i32
    return %c0_i32, %c0_i32_0 : i32, i32
  }
  func.func @transform_3(%arg0: i32) -> (i32, i32) {
    %c0_i32 = arith.constant 0 : i32
    %c0_i32_0 = arith.constant 0 : i32
    %c0_i32_1 = arith.constant 0 : i32
    return %c0_i32, %c0_i32_0 : i32, i32
  }
  func.func @transform_4(%arg0: i32) -> (i32, i32) {
    %c0_i32 = arith.constant 0 : i32
    %c0_i32_0 = arith.constant 0 : i32
    %c0_i32_1 = arith.constant 0 : i32
    return %c0_i32, %c0_i32_0 : i32, i32
  }
  func.func @transform_5(%arg0: i32) -> (i32, i32) {
    %c0_i32 = arith.constant 0 : i32
    %c0_i32_0 = arith.constant 0 : i32
    %c0_i32_1 = arith.constant 0 : i32
    return %c0_i32, %c0_i32_0 : i32, i32
  }
  func.func @transform_6(%arg0: i32) -> (i32, i32) {
    %c0_i32 = arith.constant 0 : i32
    %c0_i32_0 = arith.constant 0 : i32
    %c0_i32_1 = arith.constant 0 : i32
    return %c0_i32, %c0_i32_0 : i32, i32
  }
  func.func @transform_7(%arg0: i32) -> (i32, i32) {
    %c0_i32 = arith.constant 0 : i32
    %c0_i32_0 = arith.constant 0 : i32
    return %arg0, %c0_i32 : i32, i32
  }
  func.func @transform_8(%arg0: i32) -> (i32, i32) {
    %c0_i32 = arith.constant 0 : i32
    %c0_i32_0 = arith.constant 0 : i32
    return %arg0, %c0_i32 : i32, i32
  }
  func.func @transform_9(%arg0: i32) -> (i32, i32) {
    %c0_i32 = arith.constant 0 : i32
    %c0_i32_0 = arith.constant 0 : i32
    return %arg0, %c0_i32 : i32, i32
  }
}

module attributes {stable_mosaic.version = 11 : i64} {
  func.func @_conv2_residual_kernel(%arg0: i32, %arg1: memref<8x1152xbf16, #tpu.memory_space<vmem>>, %arg2: memref<1152x128xbf16, #tpu.memory_space<vmem>>, %arg3: memref<1x128xf32, #tpu.memory_space<vmem>>, %arg4: memref<1x128xf32, #tpu.memory_space<vmem>>, %arg5: memref<8x128xbf16, #tpu.memory_space<vmem>>, %arg6: memref<8x128xbf16, #tpu.memory_space<vmem>>) attributes {dimension_semantics = [#tpu.dimension_semantics<parallel>], iteration_bounds = array<i64: 1>, scalar_prefetch = 0 : i64, scratch_operands = 0 : i64, tpu.core_type = #tpu.core_type<tc>, window_params = [{transform_indices = @transform_0, window_bounds = array<i64: 8, 1152>}, {pipeline_mode = #tpu.pipeline_mode<synchronous>, transform_indices = @transform_1, window_bounds = array<i64: 1152, 128>}, {pipeline_mode = #tpu.pipeline_mode<synchronous>, transform_indices = @transform_2, window_bounds = array<i64: 1, 128>}, {pipeline_mode = #tpu.pipeline_mode<synchronous>, transform_indices = @transform_3, window_bounds = array<i64: 1, 128>}, {transform_indices = @transform_4, window_bounds = array<i64: 8, 128>}, {transform_indices = @transform_5, window_bounds = array<i64: 8, 128>}]} {
    %c0 = arith.constant 0 : index
    %c0_0 = arith.constant 0 : index
    %0 = vector.load %arg1[%c0, %c0_0] : memref<8x1152xbf16, #tpu.memory_space<vmem>>, vector<8x1152xbf16>
    %c0_1 = arith.constant 0 : index
    %c0_2 = arith.constant 0 : index
    %1 = vector.load %arg2[%c0_1, %c0_2] : memref<1152x128xbf16, #tpu.memory_space<vmem>>, vector<1152x128xbf16>
    %cst = arith.constant dense<0.000000e+00> : vector<8x128xf32>
    %2 = tpu.matmul %0, %1, %cst {dimension_numbers = #tpu.dot_dimension_numbers<[1], [0], [0], [1], [0, 0, 1, 1], [], []>} : vector<8x1152xbf16>, vector<1152x128xbf16>, vector<8x128xf32> -> vector<8x128xf32>
    %c0_3 = arith.constant 0 : index
    %c0_4 = arith.constant 0 : index
    %3 = vector.load %arg3[%c0_3, %c0_4] : memref<1x128xf32, #tpu.memory_space<vmem>>, vector<1x128xf32>
    %4 = vector.broadcast %3 : vector<1x128xf32> to vector<8x128xf32>
    %5 = arith.mulf %2, %4 : vector<8x128xf32>
    %c0_5 = arith.constant 0 : index
    %c0_6 = arith.constant 0 : index
    %6 = vector.load %arg4[%c0_5, %c0_6] : memref<1x128xf32, #tpu.memory_space<vmem>>, vector<1x128xf32>
    %7 = vector.broadcast %6 : vector<1x128xf32> to vector<8x128xf32>
    %8 = arith.addf %5, %7 : vector<8x128xf32>
    %c0_7 = arith.constant 0 : index
    %c0_8 = arith.constant 0 : index
    %9 = vector.load %arg5[%c0_7, %c0_8] : memref<8x128xbf16, #tpu.memory_space<vmem>>, vector<8x128xbf16>
    %10 = arith.extf %9 : vector<8x128xbf16> to vector<8x128xf32>
    %11 = arith.addf %8, %10 : vector<8x128xf32>
    %cst_9 = arith.constant 0.000000e+00 : f32
    %12 = vector.broadcast %cst_9 : f32 to vector<8x128xf32>
    %13 = arith.maximumf %11, %12 : vector<8x128xf32>
    %14 = arith.truncf %13 : vector<8x128xf32> to vector<8x128xbf16>
    %c0_10 = arith.constant 0 : index
    %c0_11 = arith.constant 0 : index
    %15 = vector.load %arg6[%c0_10, %c0_11] : memref<8x128xbf16, #tpu.memory_space<vmem>>, vector<8x128xbf16>
    tpu.vector_store %arg6[%c0_10, %c0_11], %14 {strides = array<i32>} : memref<8x128xbf16, #tpu.memory_space<vmem>>, vector<8x128xbf16>,
    return
  }
  func.func @transform_0(%arg0: i32) -> (i32, i32) {
    %c0_i32 = arith.constant 0 : i32
    %c0_i32_0 = arith.constant 0 : i32
    return %arg0, %c0_i32 : i32, i32
  }
  func.func @transform_1(%arg0: i32) -> (i32, i32) {
    %c0_i32 = arith.constant 0 : i32
    %c0_i32_0 = arith.constant 0 : i32
    %c0_i32_1 = arith.constant 0 : i32
    return %c0_i32, %c0_i32_0 : i32, i32
  }
  func.func @transform_2(%arg0: i32) -> (i32, i32) {
    %c0_i32 = arith.constant 0 : i32
    %c0_i32_0 = arith.constant 0 : i32
    %c0_i32_1 = arith.constant 0 : i32
    return %c0_i32, %c0_i32_0 : i32, i32
  }
  func.func @transform_3(%arg0: i32) -> (i32, i32) {
    %c0_i32 = arith.constant 0 : i32
    %c0_i32_0 = arith.constant 0 : i32
    %c0_i32_1 = arith.constant 0 : i32
    return %c0_i32, %c0_i32_0 : i32, i32
  }
  func.func @transform_4(%arg0: i32) -> (i32, i32) {
    %c0_i32 = arith.constant 0 : i32
    %c0_i32_0 = arith.constant 0 : i32
    return %arg0, %c0_i32 : i32, i32
  }
  func.func @transform_5(%arg0: i32) -> (i32, i32) {
    %c0_i32 = arith.constant 0 : i32
    %c0_i32_0 = arith.constant 0 : i32
    return %arg0, %c0_i32 : i32, i32
  }
}

</mosaic_0001>

<bundles_post_ra>
// kernel: _lambda_.13
= control target key start
LH: loop header
LB: loop body
LE: loop exit
PB: predicated region body
PF: predicated region fallthrough
CT: control target
= control target key end

     0   :  { %s923_s15 = smov 0   ;;  %s1052_s0 = inlined_call_operand.vmem [shape: bf16[512,147], index: 0, kind: input, shape index: {}]   ;;  %s1053_s1 = inlined_call_operand.vmem [shape: bf16[147,128], index: 1, kind: input, shape index: {}]   ;;  %s1054_s2 = inlined_call_operand.vmem [shape: f32[1,128], index: 2, kind: input, shape index: {}]   ;;  %s1055_s3 = inlined_call_operand.vmem [shape: f32[1,128], index: 3, kind: input, shape index: {}]   ;;  %s1056_s4 = inlined_call_operand.vmem [shape: bf16[512,128], index: 4, kind: output, shape index: {}]  }
   0x1 LB: > { %s696_s16 = sadd.s32 4294967295, %s894_s15   ;;  %p700_p0 = scmp.ge.s32.totalorder %s894_s15, 1  ;;  %s894_s15 = sphi %s923_s15, %s14_s15  }
   0x2   : > { %p164_p1 = scmp.lt.s32.totalorder %s894_s15, 5 }
   0x4   : > { %p165_p2 = pnand %p700_p0, %p164_p1 }
   0x5   : > { %v854_v0 = vld [vmem:[%s1053_s1] sm:$0xff] (!%p165_p2)   ;;  %v896_v1 = vmov (!%p165_p2), 0   ;;  %v855_v2 = vld [vmem:[%s1053_s1 + $0x8] sm:$0xff] (!%p165_p2)   ;;  %v856_v3 = vld [vmem:[%s1053_s1 + $0x10] sm:$0xff] (!%p165_p2)   ;;  %s701_s23 = sshll.u32 (!%p165_p2), %s696_s16, 4  ;;  %vm369_vm0 = vcmask (!%p165_p2), 154624  }
   0x6   : > { %168 = sbr.rel (%p165_p2) target bundleno = 294 (0x126), region = 36  ;;  %401 = vmatprep.subr.bf16.mxu0 (!%p165_p2), %v896_v1  ;;  %824 = vmatprep.subr.bf16.mxu1 (!%p165_p2), %v896_v1  ;;  %p192_p3 = scmp.lt.s32.totalorder (!%p165_p2), %s701_s23, 63  ;;  %v857_v4 = vld [vmem:[%s1053_s1 + $0x18] sm:$0xff] (!%p165_p2)   ;;  %v858_v5 = vld [vmem:[%s1053_s1 + $0x20] sm:$0xff] (!%p165_p2)   ;;  %v859_v8 = vld [vmem:[%s1053_s1 + $0x28] sm:$0xff] (!%p165_p2)   ;;  %vm394_vm1 = vcmask (!%p165_p2), 1040384  }
   0x7   : > { %402 = vmatpush1.bf16.msra.mxu0 (!%p165_p2), %v854_v0  ;;  %834 = vmatpush1.bf16.msra.mxu1 (!%p165_p2), %v854_v0  ;;  %v860_v9 = vld [vmem:[%s1053_s1 + $0x30] sm:$0xff] (!%p165_p2)   ;;  %v861_v10 = vld [vmem:[%s1053_s1 + $0x38] sm:$0xff] (!%p165_p2)   ;;  %vm395_vm2 = vcmask (!%p165_p2), 1041408   ;;  %v897_v11 = vmov (!%p165_p2), 65535   ;;  %v862_v13 = vld [vmem:[%s1053_s1 + $0x40] sm:$0xff] (!%p165_p2)  }
   0x8   : > { %403 = vmatprep.subr.bf16.mxu0 (!%p165_p2), %v896_v1  ;;  %825 = vmatprep.subr.bf16.mxu1 (!%p165_p2), %v896_v1  ;;  %v396_v12 = vsel (!%p165_p2), %vm394_vm1, 4294967295, %v897_v11  ;;  %v863_v14 = vld [vmem:[%s1053_s1 + $0x48] ss:$0 sps:$4 sm:$0x33] (!%p165_p2)   ;;  %v996_v31 = vld [vmem:[%s1054_s2] ss:$0 sm:$0xff] (!%p165_p2) }
   0x9   : > { %v397_v15 = vsel (!%p165_p2), %vm395_vm2, %v396_v12, 0  ;;  %v1001_v33 = vld [vmem:[%s1055_s3] ss:$0 sm:$0xff] (!%p165_p2) }
   0xa   : > { %v399_v16 = vand.u32 (!%p165_p2), %v863_v14, %v397_v15 }
   0xb   : > { %404 = vmatpush1.bf16.msra.mxu0 (!%p165_p2), %v855_v2  ;;  %835 = vmatpush1.bf16.msra.mxu1 (!%p165_p2), %v855_v2 }
   0xc   : > { %405 = vmatprep.subr.bf16.mxu0 (!%p165_p2), %v896_v1  ;;  %826 = vmatprep.subr.bf16.mxu1 (!%p165_p2), %v896_v1 }
   0xd   : > { %s1058_s23 = smov (!%p192_p3, %s701_s23), 63 }
   0xe   : > { %s760_s26 = sshll.u32 %s1058_s23, 3  ;;  %s705_s21 = sshll.u32 %s1058_s23, 2 }
   0xf   : > { %406 = vmatpush1.bf16.msra.mxu0 %v856_v3  ;;  %836 = vmatpush1.bf16.msra.mxu1 %v856_v3  ;;  %s949_s29 = scalar_lea.vmem %s1052_s0, %s760_s26  ;;  %s1015_s25 = scalar_lea.vmem %s1056_s4, %s705_s21 }
  0x10   : > { %407 = vmatprep.subr.bf16.mxu0 %v896_v1  ;;  %827 = vmatprep.subr.bf16.mxu1 %v896_v1  ;;  %v866_v6 = vld [vmem:[%s949_s29 + $0x4] ss:$8 sps:$4 sm:$0xff]   ;;  %v864_v17 = vld [vmem:[%s949_s29] ss:$8 sps:$4 sm:$0xff]   ;;  %v870_v19 = vld [vmem:[%s949_s29 + $0x14] ss:$8 sps:$4 sm:$0xff]  }
  0x11   : > { %v869_v7 = vld [vmem:[%s949_s29 + $0x44] ss:$8 sps:$4 sm:$0xff]   ;;  %732 = vmatprep.mubr.msk.bf16.mxu0 %vm369_vm0, %v866_v6  ;;  %v867_v18 = vld [vmem:[%s949_s29 + $0x40] ss:$8 sps:$4 sm:$0xff]   ;;  %v872_v20 = vld [vmem:[%s949_s29 + $0x54] ss:$8 sps:$4 sm:$0xff]  }
  0x12   : > { %736 = vmatprep.mubr.msk.bf16.mxu1 %vm369_vm0, %v869_v7  ;;  %v874_v21 = vld [vmem:[%s949_s29 + $0x10] ss:$8 sps:$4 sm:$0xff]   ;;  %v876_v23 = vld [vmem:[%s949_s29 + $0x24] ss:$8 sps:$4 sm:$0xff]   ;;  %v880_v25 = vld [vmem:[%s949_s29 + $0x20] ss:$8 sps:$4 sm:$0xff]  }
  0x13   : > { %408 = vmatpush1.bf16.msra.mxu0 %v857_v4  ;;  %837 = vmatpush1.bf16.msra.mxu1 %v857_v4  ;;  %v875_v22 = vld [vmem:[%s949_s29 + $0x50] ss:$8 sps:$4 sm:$0xff]   ;;  %v878_v24 = vld [vmem:[%s949_s29 + $0x64] ss:$8 sps:$4 sm:$0xff]   ;;  %v881_v26 = vld [vmem:[%s949_s29 + $0x60] ss:$8 sps:$4 sm:$0xff]  }
  0x14   : > { %409 = vmatprep.subr.bf16.mxu0 %v896_v1  ;;  %828 = vmatprep.subr.bf16.mxu1 %v896_v1  ;;  %v882_v27 = vld [vmem:[%s949_s29 + $0x34] ss:$8 sps:$4 sm:$0xff]   ;;  %v886_v29 = vld [vmem:[%s949_s29 + $0x30] ss:$8 sps:$4 sm:$0xff]  }
  0x15   : > { %v884_v28 = vld [vmem:[%s949_s29 + $0x74] ss:$8 sps:$4 sm:$0xff]   ;;  %v887_v30 = vld [vmem:[%s949_s29 + $0x70] ss:$8 sps:$4 sm:$0xff]  }
  0x17   : > { %410 = vmatpush1.bf16.msra.mxu0 %v858_v5  ;;  %838 = vmatpush1.bf16.msra.mxu1 %v858_v5 }
  0x18   : > { %411 = vmatprep.subr.bf16.mxu0 %v896_v1  ;;  %829 = vmatprep.subr.bf16.mxu1 %v896_v1 }
  0x1b   : > { %412 = vmatpush1.bf16.msra.mxu0 %v859_v8  ;;  %839 = vmatpush1.bf16.msra.mxu1 %v859_v8 }
  0x1c   : > { %413 = vmatprep.subr.bf16.mxu0 %v896_v1  ;;  %830 = vmatprep.subr.bf16.mxu1 %v896_v1 }
  0x1f   : > { %414 = vmatpush1.bf16.msra.mxu0 %v860_v9  ;;  %840 = vmatpush1.bf16.msra.mxu1 %v860_v9 }
  0x20   : > { %415 = vmatprep.subr.bf16.mxu0 %v896_v1  ;;  %831 = vmatprep.subr.bf16.mxu1 %v896_v1 }
  0x23   : > { %416 = vmatpush1.bf16.msra.mxu0 %v861_v10  ;;  %841 = vmatpush1.bf16.msra.mxu1 %v861_v10 }
  0x24   : > { %417 = vmatprep.subr.bf16.mxu0 %v896_v1  ;;  %832 = vmatprep.subr.bf16.mxu1 %v896_v1 }
  0x27   : > { %418 = vmatpush1.bf16.msra.mxu0 %v862_v13  ;;  %842 = vmatpush1.bf16.msra.mxu1 %v862_v13 }
  0x28   : > { %419 = vmatprep.subr.bf16.mxu0 %v896_v1  ;;  %833 = vmatprep.subr.bf16.mxu1 %v896_v1 }
  0x2b   : > { %420 = vmatpush1.bf16.msra.mxu0 %v399_v16  ;;  %843 = vmatpush1.bf16.msra.mxu1 %v399_v16 }
  0x2e   : > { %434 = vmatmul.mubr.bf16.vlgmr.msra.gmra.mrb[0].mxu0 %v864_v17  ;;  %466 = vmatmul.mubr.bf16.vlgmr.msra.gmra.mrb[0].mxu1 %v867_v18 }
  0x2f   : > { %733 = vmatprep.mubr.msk.bf16.mxu0 %vm369_vm0, %v870_v19  ;;  %737 = vmatprep.mubr.msk.bf16.mxu1 %vm369_vm0, %v872_v20 }
  0x36   : > { %442 = vmatmul.mubr.bf16.gmra.mrb[4].mxu0 %v874_v21  ;;  %474 = vmatmul.mubr.bf16.gmra.mrb[4].mxu1 %v875_v22 }
  0x37   : > { %734 = vmatprep.mubr.msk.bf16.mxu0 %vm369_vm0, %v876_v23  ;;  %738 = vmatprep.mubr.msk.bf16.mxu1 %vm369_vm0, %v878_v24 }
  0x3e   : > { %450 = vmatmul.mubr.bf16.gmra.mrb[8].mxu0 %v880_v25  ;;  %482 = vmatmul.mubr.bf16.gmra.mrb[8].mxu1 %v881_v26 }
  0x3f   : > { %735 = vmatprep.mubr.msk.bf16.mxu0 %vm369_vm0, %v882_v27  ;;  %739 = vmatprep.mubr.msk.bf16.mxu1 %vm369_vm0, %v884_v28 }
  0x46   : > { %458 = vmatmul.mubr.bf16.gmra.mrb[12].mxu0 %v886_v29  ;;  %490 = vmatmul.mubr.bf16.gmra.mrb[12].mxu1 %v887_v30 }
 0x101   : > { %v435_v32 = vpop.f32.mrb[0].mxu0  ;;  %v467_v34 = vpop.f32.mrb[0].mxu1 }
 0x102   : > { %v505_v35 = vmul.f32 %v996_v31, %v435_v32  ;;  %v513_v36 = vmul.f32 %v996_v31, %v467_v34  ;;  %v437_v37 = vpop.f32.mrb[1].mxu0  ;;  %v469_v38 = vpop.f32.mrb[1].mxu1 }
 0x103   : > { %v438_v39 = vpop.f32.mrb[2].mxu0  ;;  %v470_v40 = vpop.f32.mrb[2].mxu1 }
 0x104   : > { %v528_v41 = vadd.f32 %v1001_v33, %v505_v35  ;;  %v536_v42 = vadd.f32 %v1001_v33, %v513_v36  ;;  %v506_v43 = vmul.f32 %v996_v31, %v438_v39  ;;  %v514_v44 = vmul.f32 %v996_v31, %v470_v40  ;;  %v440_v45 = vpop.f32.mrb[3].mxu0  ;;  %v472_v46 = vpop.f32.mrb[3].mxu1 }
 0x106   : > { %v529_v47 = vadd.f32 %v1001_v33, %v506_v43  ;;  %v537_v48 = vadd.f32 %v1001_v33, %v514_v44  ;;  %v544_v49 = vmax.f32 %v528_v41, 0.0  ;;  %v552_v50 = vmax.f32 %v536_v42, 0.0 }
 0x108   : > { %v545_v51 = vmax.f32 %v529_v47, 0.0  ;;  %v553_v52 = vmax.f32 %v537_v48, 0.0 }
 0x109   : > { %v443_v53 = vpop.f32.mrb[4].mxu0  ;;  %v475_v54 = vpop.f32.mrb[4].mxu1 }
 0x10a   : > { %v780_v55 = vpack.c.bf16 %v545_v51, %v544_v49  ;;  %v800_v56 = vpack.c.bf16 %v553_v52, %v552_v50  ;;  %v507_v57 = vmul.f32 %v996_v31, %v443_v53  ;;  %v515_v58 = vmul.f32 %v996_v31, %v475_v54  ;;  %v445_v59 = vpop.f32.mrb[5].mxu0  ;;  %v477_v60 = vpop.f32.mrb[5].mxu1 }
 0x10b   : > { %v446_v61 = vpop.f32.mrb[6].mxu0  ;;  %v478_v62 = vpop.f32.mrb[6].mxu1 }
 0x10c   : > { %781 = vst [vmem:[%s1015_s25] sm:$0xff] %v780_v55   ;;  %820 = vst [vmem:[%s1015_s25 + $0x20] sm:$0xff] %v800_v56   ;;  %v530_v63 = vadd.f32 %v1001_v33, %v507_v57  ;;  %v538_v0 = vadd.f32 %v1001_v33, %v515_v58  ;;  %v508_v1 = vmul.f32 %v996_v31, %v446_v61  ;;  %v448_v3 = vpop.f32.mrb[7].mxu0  ;;  %v480_v4 = vpop.f32.mrb[7].mxu1 }
 0x10d   : > { %v516_v2 = vmul.f32 %v996_v31, %v478_v62 }
 0x10e   : > { %v531_v5 = vadd.f32 %v1001_v33, %v508_v1  ;;  %v546_v7 = vmax.f32 %v530_v63, 0.0  ;;  %v554_v8 = vmax.f32 %v538_v0, 0.0 }
 0x10f   : > { %v539_v6 = vadd.f32 %v1001_v33, %v516_v2 }
 0x110   : > { %v547_v9 = vmax.f32 %v531_v5, 0.0 }
 0x111   : > { %v555_v10 = vmax.f32 %v539_v6, 0.0  ;;  %v451_v11 = vpop.f32.mrb[8].mxu0  ;;  %v483_v12 = vpop.f32.mrb[8].mxu1 }
 0x112   : > { %v785_v13 = vpack.c.bf16 %v547_v9, %v546_v7  ;;  %v509_v15 = vmul.f32 %v996_v31, %v451_v11  ;;  %v517_v16 = vmul.f32 %v996_v31, %v483_v12  ;;  %v453_v17 = vpop.f32.mrb[9].mxu0  ;;  %v485_v18 = vpop.f32.mrb[9].mxu1 }
 0x113   : > { %v805_v14 = vpack.c.bf16 %v555_v10, %v554_v8  ;;  %v454_v19 = vpop.f32.mrb[10].mxu0  ;;  %v486_v20 = vpop.f32.mrb[10].mxu1 }
 0x114   : > { %817 = vst [vmem:[%s1015_s25 + $0x8] sm:$0xff] %v785_v13   ;;  %v532_v21 = vadd.f32 %v1001_v33, %v509_v15  ;;  %v540_v22 = vadd.f32 %v1001_v33, %v517_v16  ;;  %v510_v23 = vmul.f32 %v996_v31, %v454_v19  ;;  %v518_v24 = vmul.f32 %v996_v31, %v486_v20  ;;  %v456_v25 = vpop.f32.mrb[11].mxu0  ;;  %v488_v26 = vpop.f32.mrb[11].mxu1 }
 0x115   : > { %821 = vst [vmem:[%s1015_s25 + $0x28] sm:$0xff] %v805_v14  }
 0x116   : > { %v533_v27 = vadd.f32 %v1001_v33, %v510_v23  ;;  %v541_v28 = vadd.f32 %v1001_v33, %v518_v24  ;;  %v548_v29 = vmax.f32 %v532_v21, 0.0  ;;  %v556_v30 = vmax.f32 %v540_v22, 0.0 }
 0x118   : > { %v549_v32 = vmax.f32 %v533_v27, 0.0  ;;  %v557_v34 = vmax.f32 %v541_v28, 0.0 }
 0x119   : > { %v459_v35 = vpop.f32.mrb[12].mxu0  ;;  %v491_v36 = vpop.f32.mrb[12].mxu1 }
 0x11a   : > { %v790_v37 = vpack.c.bf16 %v549_v32, %v548_v29  ;;  %v810_v38 = vpack.c.bf16 %v557_v34, %v556_v30  ;;  %v511_v39 = vmul.f32 %v996_v31, %v459_v35  ;;  %v519_v40 = vmul.f32 %v996_v31, %v491_v36  ;;  %v461_v41 = vpop.f32.mrb[13].mxu0  ;;  %v493_v42 = vpop.f32.mrb[13].mxu1 }
 0x11b   : > { %v462_v43 = vpop.f32.mrb[14].mxu0  ;;  %v494_v44 = vpop.f32.mrb[14].mxu1 }
 0x11c   : > { %818 = vst [vmem:[%s1015_s25 + $0x10] sm:$0xff] %v790_v37   ;;  %822 = vst [vmem:[%s1015_s25 + $0x30] sm:$0xff] %v810_v38   ;;  %v534_v45 = vadd.f32 %v1001_v33, %v511_v39  ;;  %v542_v46 = vadd.f32 %v1001_v33, %v519_v40  ;;  %v512_v47 = vmul.f32 %v996_v31, %v462_v43  ;;  %v464_v49 = vpop.f32.mrb[15].mxu0  ;;  %v496_v50 = vpop.f32.mrb[15].mxu1 }
 0x11d   : > { %v520_v48 = vmul.f32 %v996_v31, %v494_v44 }
 0x11e   : > { %v535_v51 = vadd.f32 %v1001_v33, %v512_v47  ;;  %v550_v53 = vmax.f32 %v534_v45, 0.0  ;;  %v558_v54 = vmax.f32 %v542_v46, 0.0 }
 0x11f   : > { %v543_v52 = vadd.f32 %v1001_v33, %v520_v48 }
 0x120   : > { %v551_v55 = vmax.f32 %v535_v51, 0.0 }
 0x121   : > { %v559_v56 = vmax.f32 %v543_v52, 0.0 }
 0x122   : > { %v795_v57 = vpack.c.bf16 %v551_v55, %v550_v53 }
 0x123   : > { %v815_v58 = vpack.c.bf16 %v559_v56, %v558_v54 }
 0x124   : > { %819 = vst [vmem:[%s1015_s25 + $0x18] sm:$0xff] %v795_v57  }
 0x125   : > { %823 = vst [vmem:[%s1015_s25 + $0x38] sm:$0xff] %v815_v58  }
 0x126 PF: > { %s14_s15 = sadd.s32 1, %s894_s15  }
 0x127   : > { %p11_p4 = scmp.ge.s32.totalorder %s14_s15, 6  }
 0x129   :  { %13 = sbr.rel (!%p11_p4) target bundleno = 1 (0x1), region = 66 }

// kernel: _lambda_.15
= control target key start
LH: loop header
LB: loop body
LE: loop exit
PB: predicated region body
PF: predicated region fallthrough
CT: control target
= control target key end

     0   :  { %s2001_s12 = smov 0   ;;  %s2306_s0 = inlined_call_operand.vmem [shape: bf16[128,1152], index: 0, kind: input, shape index: {}]   ;;  %s2307_s1 = inlined_call_operand.vmem [shape: bf16[1152,128], index: 1, kind: input, shape index: {}]   ;;  %s2308_s2 = inlined_call_operand.vmem [shape: bf16[128,128], index: 2, kind: input, shape index: {}]   ;;  %s2309_s3 = inlined_call_operand.vmem [shape: bf16[128,128], index: 3, kind: output, shape index: {}]  }
   0x1 LB: > { %s1449_s13 = sadd.s32 4294967295, %s1979_s12   ;;  %p1453_p0 = scmp.ge.s32.totalorder %s1979_s12, 1  ;;  %s1979_s12 = sphi %s2001_s12, %s13_s12  }
   0x2   : > { %p150_p1 = scmp.lt.s32.totalorder %s1979_s12, 3 }
   0x4   : > { %p151_p2 = pnand %p1453_p0, %p150_p1 }
   0x5   : > { %v1849_v0 = vld [vmem:[%s2307_s1 + $0x40] sm:$0xff] (!%p151_p2)   ;;  %v1853_v4 = vld [vmem:[%s2307_s1 + $0x48] sm:$0xff] (!%p151_p2)   ;;  %v1857_v8 = vld [vmem:[%s2307_s1 + $0x50] sm:$0xff] (!%p151_p2)   ;;  %s1454_s19 = sshll.u32 (!%p151_p2), %s1449_s13, 3 }
   0x6   : > { %154 = sbr.rel (%p151_p2) target bundleno = 325 (0x145), region = 32  ;;  %v1850_v1 = vld [vmem:[%s2307_s1 + $0xc0] sm:$0xff] (!%p151_p2)   ;;  %1628 = vmatprep.subr.bf16.mxu0 (!%p151_p2), %v1849_v0  ;;  %v1854_v5 = vld [vmem:[%s2307_s1 + $0xc8] sm:$0xff] (!%p151_p2)   ;;  %v1858_v9 = vld [vmem:[%s2307_s1 + $0xd0] sm:$0xff] (!%p151_p2)   ;;  %p181_p3 = scmp.lt.s32.totalorder (!%p151_p2), %s1454_s19, 15 }
   0x7   : > { %v1851_v2 = vld [vmem:[%s2307_s1] sm:$0xff] (!%p151_p2)   ;;  %1668 = vmatprep.subr.bf16.mxu1 (!%p151_p2), %v1850_v1  ;;  %v1855_v6 = vld [vmem:[%s2307_s1 + $0x8] sm:$0xff] (!%p151_p2)   ;;  %v1859_v10 = vld [vmem:[%s2307_s1 + $0x10] sm:$0xff] (!%p151_p2)  }
   0x8   : > { %v1852_v3 = vld [vmem:[%s2307_s1 + $0x80] sm:$0xff] (!%p151_p2)   ;;  %1629 = vmatpush3.bf16.msra.mxu0 (!%p151_p2), %v1851_v2  ;;  %v1856_v7 = vld [vmem:[%s2307_s1 + $0x88] sm:$0xff] (!%p151_p2)   ;;  %v1860_v11 = vld [vmem:[%s2307_s1 + $0x90] sm:$0xff] (!%p151_p2)  }
   0x9   : > { %1669 = vmatpush3.bf16.msra.mxu1 (!%p151_p2), %v1852_v3  ;;  %1630 = vmatprep.subr.bf16.mxu0 (!%p151_p2), %v1853_v4  ;;  %v1861_v12 = vld [vmem:[%s2307_s1 + $0x58] sm:$0xff] (!%p151_p2)   ;;  %v1865_v16 = vld [vmem:[%s2307_s1 + $0x60] sm:$0xff] (!%p151_p2)   ;;  %v1869_v20 = vld [vmem:[%s2307_s1 + $0x68] sm:$0xff] (!%p151_p2)  }
   0xa   : > { %1670 = vmatprep.subr.bf16.mxu1 (!%p151_p2), %v1854_v5  ;;  %v1862_v13 = vld [vmem:[%s2307_s1 + $0xd8] sm:$0xff] (!%p151_p2)   ;;  %v1866_v17 = vld [vmem:[%s2307_s1 + $0xe0] sm:$0xff] (!%p151_p2)   ;;  %v1870_v21 = vld [vmem:[%s2307_s1 + $0xe8] sm:$0xff] (!%p151_p2)  }
   0xb   : > { %v1863_v14 = vld [vmem:[%s2307_s1 + $0x18] sm:$0xff] (!%p151_p2)   ;;  %v1867_v18 = vld [vmem:[%s2307_s1 + $0x20] sm:$0xff] (!%p151_p2)   ;;  %v1871_v22 = vld [vmem:[%s2307_s1 + $0x28] sm:$0xff] (!%p151_p2)  }
   0xc   : > { %1631 = vmatpush3.bf16.msra.mxu0 (!%p151_p2), %v1855_v6  ;;  %v1864_v15 = vld [vmem:[%s2307_s1 + $0x98] sm:$0xff] (!%p151_p2)   ;;  %v1868_v19 = vld [vmem:[%s2307_s1 + $0xa0] sm:$0xff] (!%p151_p2)   ;;  %v1872_v23 = vld [vmem:[%s2307_s1 + $0xa8] sm:$0xff] (!%p151_p2)  }
   0xd   : > { %1671 = vmatpush3.bf16.msra.mxu1 %v1856_v7  ;;  %1632 = vmatprep.subr.bf16.mxu0 %v1857_v8  ;;  %s2311_s19 = smov (!%p181_p3, %s1454_s19), 15  ;;  %v1873_v24 = vld [vmem:[%s2307_s1 + $0x70] sm:$0xff]   ;;  %v1877_v28 = vld [vmem:[%s2307_s1 + $0x78] sm:$0xff]   ;;  %v1887_v36 = vld [vmem:[%s2307_s1 + $0x140] sm:$0xff]  }
   0xe   : > { %1672 = vmatprep.subr.bf16.mxu1 %v1858_v9  ;;  %v1874_v25 = vld [vmem:[%s2307_s1 + $0xf0] sm:$0xff]   ;;  %s1840_s16 = smul.u32 36, %s2311_s19  ;;  %v1878_v29 = vld [vmem:[%s2307_s1 + $0xf8] sm:$0xff]   ;;  %v1888_v37 = vld [vmem:[%s2307_s1 + $0x1c0] sm:$0xff]   ;;  %s1457_s15 = sshll.u32 %s2311_s19, 2 }
   0xf   : > { %v1875_v26 = vld [vmem:[%s2307_s1 + $0x30] sm:$0xff]   ;;  %v1879_v30 = vld [vmem:[%s2307_s1 + $0x38] sm:$0xff]   ;;  %v1889_v38 = vld [vmem:[%s2307_s1 + $0x100] sm:$0xff]   ;;  %s2277_s18 = scalar_lea.vmem %s2308_s2, %s1457_s15  ;;  %s197_s21 = scalar_lea.vmem %s2309_s3, %s1457_s15 }
  0x10   : > { %1633 = vmatpush3.bf16.msra.mxu0 %v1859_v10  ;;  %v1876_v27 = vld [vmem:[%s2307_s1 + $0xb0] sm:$0xff]   ;;  %s2107_s13 = scalar_lea.vmem %s2306_s0, %s1840_s16  ;;  %v1880_v31 = vld [vmem:[%s2307_s1 + $0xb8] sm:$0xff]   ;;  %v1890_v39 = vld [vmem:[%s2307_s1 + $0x180] sm:$0xff]  }
  0x11   : > { %1673 = vmatpush3.bf16.msra.mxu1 %v1860_v11  ;;  %1634 = vmatprep.subr.bf16.mxu0 %v1861_v12  ;;  %v1881_v32 = vld [vmem:[%s2107_s13] ss:$36 sps:$4 sm:$0xff]   ;;  %v1884_v34 = vld [vmem:[%s2107_s13 + $0x8] ss:$36 sps:$4 sm:$0xff]   ;;  %v1897_v45 = vld [vmem:[%s2107_s13 + $0x54] ss:$36 sps:$4 sm:$0xff]  }
  0x12   : > { %1674 = vmatprep.subr.bf16.mxu1 %v1862_v13  ;;  %v1883_v33 = vld [vmem:[%s2107_s13 + $0x4] ss:$36 sps:$4 sm:$0xff]   ;;  %v1886_v35 = vld [vmem:[%s2107_s13 + $0xc] ss:$36 sps:$4 sm:$0xff]   ;;  %v1905_v52 = vld [vmem:[%s2307_s1 + $0x158] sm:$0xff]  }
  0x13   : > { %1048 = vmatprep.mubr.bf16.mxu0 %v1883_v33  ;;  %1113 = vmatprep.mubr.bf16.mxu1 %v1886_v35  ;;  %v1891_v40 = vld [vmem:[%s2307_s1 + $0x148] sm:$0xff]   ;;  %v1900_v47 = vld [vmem:[%s2107_s13 + $0x50] ss:$36 sps:$4 sm:$0xff]   ;;  %v1906_v53 = vld [vmem:[%s2307_s1 + $0x1d8] sm:$0xff]  }
  0x14   : > { %1635 = vmatpush3.bf16.msra.mxu0 %v1863_v14  ;;  %v1892_v41 = vld [vmem:[%s2307_s1 + $0x1c8] sm:$0xff]   ;;  %v1901_v48 = vld [vmem:[%s2307_s1 + $0x150] sm:$0xff]   ;;  %v1907_v54 = vld [vmem:[%s2307_s1 + $0x118] sm:$0xff]  }
  0x15   : > { %1675 = vmatpush3.bf16.msra.mxu1 %v1864_v15  ;;  %1636 = vmatprep.subr.bf16.mxu0 %v1865_v16  ;;  %v1893_v42 = vld [vmem:[%s2307_s1 + $0x108] sm:$0xff]   ;;  %v1902_v49 = vld [vmem:[%s2307_s1 + $0x1d0] sm:$0xff]   ;;  %v1908_v55 = vld [vmem:[%s2307_s1 + $0x198] sm:$0xff]  }
  0x16   : > { %1676 = vmatprep.subr.bf16.mxu1 %v1866_v17  ;;  %v1894_v43 = vld [vmem:[%s2307_s1 + $0x188] sm:$0xff]   ;;  %v1903_v50 = vld [vmem:[%s2307_s1 + $0x110] sm:$0xff]   ;;  %v1911_v57 = vld [vmem:[%s2107_s13 + $0x9c] ss:$36 sps:$4 sm:$0xff]  }
  0x17   : > { %v1895_v44 = vld [vmem:[%s2107_s13 + $0x4c] ss:$36 sps:$4 sm:$0xff]   ;;  %v1909_v56 = vld [vmem:[%s2107_s13 + $0x94] ss:$36 sps:$4 sm:$0xff]   ;;  %v1915_v60 = vld [vmem:[%s2307_s1 + $0x160] sm:$0xff]  }
  0x18   : > { %1637 = vmatpush3.bf16.msra.mxu0 %v1867_v18  ;;  %v1899_v46 = vld [vmem:[%s2107_s13 + $0x48] ss:$36 sps:$4 sm:$0xff]   ;;  %v1904_v51 = vld [vmem:[%s2307_s1 + $0x190] sm:$0xff]   ;;  %v1914_v59 = vld [vmem:[%s2107_s13 + $0x98] ss:$36 sps:$4 sm:$0xff]  }
  0x19   : > { %1677 = vmatpush3.bf16.msra.mxu1 %v1868_v19  ;;  %1638 = vmatprep.subr.bf16.mxu0 %v1869_v20  ;;  %v1913_v58 = vld [vmem:[%s2107_s13 + $0x90] ss:$36 sps:$4 sm:$0xff]   ;;  %v1916_v61 = vld [vmem:[%s2307_s1 + $0x1e0] sm:$0xff]   ;;  %v1919_v0 = vld [vmem:[%s2307_s1 + $0x168] sm:$0xff]  }
  0x1a   : > { %1678 = vmatprep.subr.bf16.mxu1 %v1870_v21  ;;  %v1917_v62 = vld [vmem:[%s2307_s1 + $0x120] sm:$0xff]   ;;  %v1920_v1 = vld [vmem:[%s2307_s1 + $0x1e8] sm:$0xff]   ;;  %v1927_v6 = vld [vmem:[%s2107_s13 + $0xd8] ss:$36 sps:$4 sm:$0xff]  }
  0x1b   : > { %v1918_v63 = vld [vmem:[%s2307_s1 + $0x1a0] sm:$0xff]   ;;  %v1921_v2 = vld [vmem:[%s2307_s1 + $0x128] sm:$0xff]   ;;  %v1929_v8 = vld [vmem:[%s2307_s1 + $0x170] sm:$0xff]  }
  0x1c   : > { %1639 = vmatpush3.bf16.msra.mxu0 %v1871_v22  ;;  %v1922_v3 = vld [vmem:[%s2307_s1 + $0x1a8] sm:$0xff]   ;;  %v1923_v4 = vld [vmem:[%s2107_s13 + $0xdc] ss:$36 sps:$4 sm:$0xff]   ;;  %v1930_v9 = vld [vmem:[%s2307_s1 + $0x1f0] sm:$0xff]  }
  0x1d   : > { %1679 = vmatpush3.bf16.msra.mxu1 %v1872_v23  ;;  %1640 = vmatprep.subr.bf16.mxu0 %v1873_v24  ;;  %v1925_v5 = vld [vmem:[%s2107_s13 + $0xe4] ss:$36 sps:$4 sm:$0xff]   ;;  %v1931_v10 = vld [vmem:[%s2307_s1 + $0x130] sm:$0xff]   ;;  %v1933_v12 = vld [vmem:[%s2307_s1 + $0x178] sm:$0xff]  }
  0x1e   : > { %1680 = vmatprep.subr.bf16.mxu1 %v1874_v25  ;;  %v1928_v7 = vld [vmem:[%s2107_s13 + $0xe0] ss:$36 sps:$4 sm:$0xff]   ;;  %v1932_v11 = vld [vmem:[%s2307_s1 + $0x1b0] sm:$0xff]   ;;  %v1934_v13 = vld [vmem:[%s2307_s1 + $0x1f8] sm:$0xff]  }
  0x1f   : > { %v1935_v14 = vld [vmem:[%s2307_s1 + $0x138] sm:$0xff]   ;;  %v1937_v16 = vld [vmem:[%s2107_s13 + $0x10] ss:$36 sps:$4 sm:$0xff]   ;;  %v1943_v20 = vld [vmem:[%s2307_s1 + $0x200] sm:$0xff]  }
  0x20   : > { %1641 = vmatpush3.bf16.msra.mxu0 %v1875_v26  ;;  %v1936_v15 = vld [vmem:[%s2307_s1 + $0x1b8] sm:$0xff]   ;;  %v1944_v21 = vld [vmem:[%s2307_s1 + $0x208] sm:$0xff]   ;;  %v1950_v25 = vld [vmem:[%s2107_s13 + $0x60] ss:$36 sps:$4 sm:$0xff]  }
  0x21   : > { %1681 = vmatpush3.bf16.msra.mxu1 %v1876_v27  ;;  %1642 = vmatprep.subr.bf16.mxu0 %v1877_v28  ;;  %v1939_v17 = vld [vmem:[%s2107_s13 + $0x14] ss:$36 sps:$4 sm:$0xff]   ;;  %v1942_v19 = vld [vmem:[%s2107_s13 + $0x1c] ss:$36 sps:$4 sm:$0xff]   ;;  %v1947_v23 = vld [vmem:[%s2107_s13 + $0x64] ss:$36 sps:$4 sm:$0xff]  }
  0x22   : > { %1682 = vmatprep.subr.bf16.mxu1 %v1878_v29  ;;  %v1940_v18 = vld [vmem:[%s2107_s13 + $0x18] ss:$36 sps:$4 sm:$0xff]   ;;  %v1951_v26 = vld [vmem:[%s2307_s1 + $0x210] sm:$0xff]   ;;  %v1953_v27 = vld [vmem:[%s2107_s13 + $0xa4] ss:$36 sps:$4 sm:$0xff]  }
  0x23   : > { %v1945_v22 = vld [vmem:[%s2107_s13 + $0x5c] ss:$36 sps:$4 sm:$0xff]   ;;  %v1955_v28 = vld [vmem:[%s2107_s13 + $0xac] ss:$36 sps:$4 sm:$0xff]  }
  0x24   : > { %1643 = vmatpush3.bf16.msra.mxu0 %v1879_v30  ;;  %v1949_v24 = vld [vmem:[%s2107_s13 + $0x58] ss:$36 sps:$4 sm:$0xff]   ;;  %v1957_v30 = vld [vmem:[%s2107_s13 + $0xa0] ss:$36 sps:$4 sm:$0xff]   ;;  %v1961_v33 = vld [vmem:[%s2107_s13 + $0xec] ss:$36 sps:$4 sm:$0xff]  }
  0x25   : > { %1683 = vmatpush3.bf16.msra.mxu1 %v1880_v31  ;;  %1708 = vmatprep.subr.bf16.mxu0 %v1887_v36  ;;  %v1952_v29 = vld [vmem:[%s2307_s1 + $0x218] sm:$0xff]   ;;  %v1958_v31 = vld [vmem:[%s2107_s13 + $0xa8] ss:$36 sps:$4 sm:$0xff]  }
  0x26   : > { %1748 = vmatprep.subr.bf16.mxu1 %v1888_v37  ;;  %v1960_v35 = vld [vmem:[%s2307_s1 + $0x228] sm:$0xff]   ;;  %v1967_v37 = vld [vmem:[%s2307_s1 + $0x230] sm:$0xff]  }
  0x27   : > { %1049 = vmatmul.mubr.bf16.vlgmr.msra.gmra.mrb[0].mxu0 %v1881_v32  ;;  %v1959_v32 = vld [vmem:[%s2307_s1 + $0x220] sm:$0xff]   ;;  %v1965_v36 = vld [vmem:[%s2107_s13 + $0xe8] ss:$36 sps:$4 sm:$0xff]  }
  0x28   : > { %1114 = vmatmul.mubr.bf16.vlgmr.msra.gmra.mrb[0].mxu1 %v1884_v34  ;;  %1709 = vmatpush3.bf16.msra.mxu0 %v1889_v38  ;;  %v1963_v34 = vld [vmem:[%s2107_s13 + $0xf4] ss:$36 sps:$4 sm:$0xff]  }
  0x29   : > { %1749 = vmatpush3.bf16.msra.mxu1 %v1890_v39  ;;  %1710 = vmatprep.subr.bf16.mxu0 %v1891_v40  ;;  %v1966_v38 = vld [vmem:[%s2107_s13 + $0xf0] ss:$36 sps:$4 sm:$0xff]   ;;  %v1969_v39 = vld [vmem:[%s2107_s13 + $0x20] ss:$36 sps:$4 sm:$0xff]  }
  0x2a   : > { %1750 = vmatprep.subr.bf16.mxu1 %v1892_v41  ;;  %1056 = vmatprep.mubr.bf16.mxu0 %v1895_v44  ;;  %v1970_v40 = vld [vmem:[%s2107_s13 + $0xb0] ss:$36 sps:$4 sm:$0xff]   ;;  %v1968_v41 = vld [vmem:[%s2307_s1 + $0x238] sm:$0xff]   ;;  %v1587_v44 = vld [vmem:[%s2277_s18] sm:$0xff]  }
  0x2b   : > { %1121 = vmatprep.mubr.bf16.mxu1 %v1897_v45 }
  0x2c   : > { %1711 = vmatpush3.bf16.msra.mxu0 %v1893_v42  ;;  %v1971_v42 = vld [vmem:[%s2107_s13 + $0x68] ss:$36 sps:$4 sm:$0xff]  }
  0x2d   : > { %1751 = vmatpush3.bf16.msra.mxu1 %v1894_v43  ;;  %1712 = vmatprep.subr.bf16.mxu0 %v1901_v48  ;;  %v1972_v43 = vld [vmem:[%s2107_s13 + $0xf8] ss:$36 sps:$4 sm:$0xff]  }
  0x2e   : > { %1752 = vmatprep.subr.bf16.mxu1 %v1902_v49 }
  0x2f   : > { %1057 = vmatmul.mubr.bf16.gmra.mrb[4].mxu0 %v1899_v46  ;;  %v1588_v46 = vunpack.c.l.bf16 %v1587_v44 }
  0x30   : > { %1122 = vmatmul.mubr.bf16.gmra.mrb[4].mxu1 %v1900_v47  ;;  %1713 = vmatpush3.bf16.msra.mxu0 %v1903_v50 }
  0x31   : > { %1753 = vmatpush3.bf16.msra.mxu1 %v1904_v51  ;;  %1714 = vmatprep.subr.bf16.mxu0 %v1905_v52  ;;  %v1589_v52 = vunpack.c.h.bf16 %v1587_v44 }
  0x32   : > { %1754 = vmatprep.subr.bf16.mxu1 %v1906_v53  ;;  %1064 = vmatprep.mubr.bf16.mxu0 %v1909_v56 }
  0x33   : > { %1129 = vmatprep.mubr.bf16.mxu1 %v1911_v57 }
  0x34   : > { %1715 = vmatpush3.bf16.msra.mxu0 %v1907_v54 }
  0x35   : > { %1755 = vmatpush3.bf16.msra.mxu1 %v1908_v55  ;;  %1716 = vmatprep.subr.bf16.mxu0 %v1915_v60 }
  0x36   : > { %1756 = vmatprep.subr.bf16.mxu1 %v1916_v61 }
  0x37   : > { %1065 = vmatmul.mubr.bf16.gmra.mrb[8].mxu0 %v1913_v58 }
  0x38   : > { %1130 = vmatmul.mubr.bf16.gmra.mrb[8].mxu1 %v1914_v59  ;;  %1717 = vmatpush3.bf16.msra.mxu0 %v1917_v62  ;;  %v1622_v62 = vld [vmem:[%s2277_s18 + $0x8] sm:$0xff]  }
  0x39   : > { %1757 = vmatpush3.bf16.msra.mxu1 %v1918_v63  ;;  %1718 = vmatprep.subr.bf16.mxu0 %v1919_v0 }
  0x3a   : > { %1758 = vmatprep.subr.bf16.mxu1 %v1920_v1  ;;  %1072 = vmatprep.mubr.bf16.mxu0 %v1923_v4  ;;  %v1592_v1 = vunpack.c.l.bf16 %v1622_v62 }
  0x3b   : > { %1137 = vmatprep.mubr.bf16.mxu1 %v1925_v5 }
  0x3c   : > { %1719 = vmatpush3.bf16.msra.mxu0 %v1921_v2 }
  0x3d   : > { %1759 = vmatpush3.bf16.msra.mxu1 %v1922_v3  ;;  %1720 = vmatprep.subr.bf16.mxu0 %v1929_v8 }
  0x3e   : > { %1760 = vmatprep.subr.bf16.mxu1 %v1930_v9 }
  0x3f   : > { %1073 = vmatmul.mubr.bf16.gmra.mrb[12].mxu0 %v1927_v6 }
  0x40   : > { %1138 = vmatmul.mubr.bf16.gmra.mrb[12].mxu1 %v1928_v7  ;;  %1721 = vmatpush3.bf16.msra.mxu0 %v1931_v10  ;;  %v1593_v7 = vunpack.c.h.bf16 %v1622_v62 }
  0x41   : > { %1761 = vmatpush3.bf16.msra.mxu1 %v1932_v11  ;;  %1722 = vmatprep.subr.bf16.mxu0 %v1933_v12 }
  0x42   : > { %1762 = vmatprep.subr.bf16.mxu1 %v1934_v13  ;;  %1178 = vmatprep.mubr.bf16.mxu0 %v1939_v17 }
  0x43   : > { %1243 = vmatprep.mubr.bf16.mxu1 %v1942_v19 }
  0x44   : > { %1723 = vmatpush3.bf16.msra.mxu0 %v1935_v14 }
  0x45   : > { %1763 = vmatpush3.bf16.msra.mxu1 %v1936_v15  ;;  %1800 = vmatprep.subr.bf16.mxu0 %v1943_v20 }
  0x46   : > { %1824 = vmatprep.subr.bf16.mxu1 %v1943_v20 }
  0x47   : > { %1179 = vmatmul.mubr.bf16.vlgmr.msra.gmra.mrb[16].mxu0 %v1937_v16 }
  0x48   : > { %1244 = vmatmul.mubr.bf16.vlgmr.msra.gmra.mrb[16].mxu1 %v1940_v18  ;;  %1801 = vmatpush3.bf16.msra.mxu0 %v1943_v20  ;;  %v1623_v18 = vld [vmem:[%s2277_s18 + $0x10] sm:$0xff]  }
  0x49   : > { %1832 = vmatpush3.bf16.msra.mxu1 %v1943_v20  ;;  %1802 = vmatprep.subr.bf16.mxu0 %v1944_v21  ;;  %v1596_v20 = vunpack.c.l.bf16 %v1623_v18 }
  0x4a   : > { %1825 = vmatprep.subr.bf16.mxu1 %v1944_v21  ;;  %1186 = vmatprep.mubr.bf16.mxu0 %v1945_v22 }
  0x4b   : > { %1251 = vmatprep.mubr.bf16.mxu1 %v1947_v23 }
  0x4c   : > { %1803 = vmatpush3.bf16.msra.mxu0 %v1944_v21 }
  0x4d   : > { %1833 = vmatpush3.bf16.msra.mxu1 %v1944_v21  ;;  %1804 = vmatprep.subr.bf16.mxu0 %v1951_v26 }
  0x4e   : > { %1826 = vmatprep.subr.bf16.mxu1 %v1951_v26 }
  0x4f   : > { %1187 = vmatmul.mubr.bf16.gmra.mrb[20].mxu0 %v1949_v24 }
  0x50   : > { %1252 = vmatmul.mubr.bf16.gmra.mrb[20].mxu1 %v1950_v25  ;;  %1194 = vmatprep.mubr.bf16.mxu0 %v1953_v27 }
  0x51   : > { %1805 = vmatpush3.bf16.msra.mxu0 %v1951_v26  ;;  %1259 = vmatprep.mubr.bf16.mxu1 %v1955_v28 }
  0x52   : > { %1834 = vmatpush3.bf16.msra.mxu1 %v1951_v26  ;;  %1806 = vmatprep.subr.bf16.mxu0 %v1952_v29  ;;  %v1597_v26 = vunpack.c.h.bf16 %v1623_v18 }
  0x53   : > { %1827 = vmatprep.subr.bf16.mxu1 %v1952_v29 }
  0x55   : > { %1807 = vmatpush3.bf16.msra.mxu0 %v1952_v29 }
  0x56   : > { %1835 = vmatpush3.bf16.msra.mxu1 %v1952_v29  ;;  %1808 = vmatprep.subr.bf16.mxu0 %v1959_v32 }
  0x57   : > { %1195 = vmatmul.mubr.bf16.gmra.mrb[24].mxu0 %v1957_v30  ;;  %1828 = vmatprep.subr.bf16.mxu1 %v1959_v32 }
  0x58   : > { %1260 = vmatmul.mubr.bf16.gmra.mrb[24].mxu1 %v1958_v31  ;;  %1202 = vmatprep.mubr.bf16.mxu0 %v1961_v33 }
  0x59   : > { %1809 = vmatpush3.bf16.msra.mxu0 %v1959_v32  ;;  %1267 = vmatprep.mubr.bf16.mxu1 %v1963_v34 }
  0x5a   : > { %1836 = vmatpush3.bf16.msra.mxu1 %v1959_v32  ;;  %1810 = vmatprep.subr.bf16.mxu0 %v1960_v35 }
  0x5b   : > { %1829 = vmatprep.subr.bf16.mxu1 %v1960_v35 }
  0x5d   : > { %1811 = vmatpush3.bf16.msra.mxu0 %v1960_v35 }
  0x5e   : > { %1837 = vmatpush3.bf16.msra.mxu1 %v1960_v35  ;;  %1812 = vmatprep.subr.bf16.mxu0 %v1967_v37 }
  0x5f   : > { %1203 = vmatmul.mubr.bf16.gmra.mrb[28].mxu0 %v1965_v36  ;;  %1830 = vmatprep.subr.bf16.mxu1 %v1967_v37 }
  0x60   : > { %1268 = vmatmul.mubr.bf16.gmra.mrb[28].mxu1 %v1966_v38  ;;  %1816 = vmatprep.mubr.bf16.mxu0 %v1969_v39 }
  0x61   : > { %1813 = vmatpush3.bf16.msra.mxu0 %v1967_v37  ;;  %1820 = vmatprep.mubr.bf16.mxu1 %v1970_v40 }
  0x62   : > { %1838 = vmatpush3.bf16.msra.mxu1 %v1967_v37  ;;  %1814 = vmatprep.subr.bf16.mxu0 %v1968_v41  ;;  %v1624_v37 = vld [vmem:[%s2277_s18 + $0x18] sm:$0xff]  }
  0x63   : > { %1831 = vmatprep.subr.bf16.mxu1 %v1968_v41  ;;  %v1600_v40 = vunpack.c.l.bf16 %v1624_v37 }
  0x65   : > { %1815 = vmatpush3.bf16.msra.mxu0 %v1968_v41 }
  0x66   : > { %1839 = vmatpush3.bf16.msra.mxu1 %v1968_v41 }
  0x68   : > { %1817 = vmatmul.mubr.bf16.vlgmr.msra.gmra.mrb[32].mxu0 %v1971_v42 }
  0x69   : > { %1821 = vmatmul.mubr.bf16.vlgmr.msra.gmra.mrb[32].mxu1 %v1972_v43 }
  0xfa   : > { %v1644_v45 = vpop.f32.mrb[0].mxu0 }
  0xfb   : > { %v1684_v47 = vpop.f32.mrb[0].mxu1  ;;  %v1645_v48 = vpop.f32.mrb[1].mxu0 }
  0xfc   : > { %v1646_v49 = vadd.f32 %v1645_v48, %v1644_v45  ;;  %v1685_v50 = vpop.f32.mrb[1].mxu1  ;;  %v1647_v51 = vpop.f32.mrb[2].mxu0 }
  0xfd   : > { %v1686_v53 = vadd.f32 %v1685_v50, %v1684_v47  ;;  %v1687_v54 = vpop.f32.mrb[2].mxu1  ;;  %v1648_v55 = vpop.f32.mrb[3].mxu0  ;;  %v1601_v47 = vunpack.c.h.bf16 %v1624_v37 }
  0xfe   : > { %v1051_v56 = vadd.f32 %v1646_v49, %v1588_v46  ;;  %v1649_v57 = vadd.f32 %v1648_v55, %v1647_v51  ;;  %v1688_v58 = vpop.f32.mrb[3].mxu1 }
  0xff   : > { %v1689_v59 = vadd.f32 %v1688_v58, %v1687_v54 }
 0x100   : > { %v2280_v60 = vadd.f32 %v1686_v53, %v1051_v56  ;;  %v1054_v61 = vadd.f32 %v1649_v57, %v1589_v52 }
 0x102   : > { %v2283_v63 = vadd.f32 %v1689_v59, %v1054_v61  ;;  %v1650_v0 = vpop.f32.mrb[4].mxu0 }
 0x103   : > { %v1690_v2 = vpop.f32.mrb[4].mxu1  ;;  %v1651_v3 = vpop.f32.mrb[5].mxu0 }
 0x104   : > { %v1652_v4 = vadd.f32 %v1651_v3, %v1650_v0  ;;  %v1691_v5 = vpop.f32.mrb[5].mxu1  ;;  %v1653_v6 = vpop.f32.mrb[6].mxu0 }
 0x105   : > { %v1692_v8 = vadd.f32 %v1691_v5, %v1690_v2  ;;  %v1693_v9 = vpop.f32.mrb[6].mxu1  ;;  %v1654_v10 = vpop.f32.mrb[7].mxu0 }
 0x106   : > { %v1059_v11 = vadd.f32 %v1652_v4, %v1592_v1  ;;  %v1655_v12 = vadd.f32 %v1654_v10, %v1653_v6  ;;  %v1694_v13 = vpop.f32.mrb[7].mxu1 }
 0x107   : > { %v1695_v14 = vadd.f32 %v1694_v13, %v1693_v9 }
 0x108   : > { %v2285_v15 = vadd.f32 %v1692_v8, %v1059_v11  ;;  %v1062_v16 = vadd.f32 %v1655_v12, %v1593_v7 }
 0x10a   : > { %v2287_v17 = vadd.f32 %v1695_v14, %v1062_v16  ;;  %v1656_v19 = vpop.f32.mrb[8].mxu0 }
 0x10b   : > { %v1696_v21 = vpop.f32.mrb[8].mxu1  ;;  %v1657_v22 = vpop.f32.mrb[9].mxu0 }
 0x10c   : > { %v1658_v23 = vadd.f32 %v1657_v22, %v1656_v19  ;;  %v1697_v24 = vpop.f32.mrb[9].mxu1  ;;  %v1659_v25 = vpop.f32.mrb[10].mxu0 }
 0x10d   : > { %v1698_v27 = vadd.f32 %v1697_v24, %v1696_v21  ;;  %v1699_v28 = vpop.f32.mrb[10].mxu1  ;;  %v1660_v29 = vpop.f32.mrb[11].mxu0 }
 0x10e   : > { %v1067_v30 = vadd.f32 %v1658_v23, %v1596_v20  ;;  %v1661_v31 = vadd.f32 %v1660_v29, %v1659_v25  ;;  %v1700_v32 = vpop.f32.mrb[11].mxu1 }
 0x10f   : > { %v1701_v33 = vadd.f32 %v1700_v32, %v1699_v28 }
 0x110   : > { %v1132_v34 = vadd.f32 %v1698_v27, %v1067_v30  ;;  %v1070_v35 = vadd.f32 %v1661_v31, %v1597_v26 }
 0x112   : > { %v2290_v36 = vadd.f32 %v1701_v33, %v1070_v35  ;;  %v1662_v38 = vpop.f32.mrb[12].mxu0 }
 0x113   : > { %v1702_v39 = vpop.f32.mrb[12].mxu1  ;;  %v1663_v41 = vpop.f32.mrb[13].mxu0 }
 0x114   : > { %v1703_v42 = vpop.f32.mrb[13].mxu1  ;;  %v1664_v43 = vadd.f32 %v1663_v41, %v1662_v38  ;;  %v1665_v45 = vpop.f32.mrb[14].mxu0 }
 0x115   : > { %v1704_v44 = vadd.f32 %v1703_v42, %v1702_v39  ;;  %v1705_v46 = vpop.f32.mrb[14].mxu1  ;;  %v1666_v48 = vpop.f32.mrb[15].mxu0 }
 0x116   : > { %v1706_v49 = vpop.f32.mrb[15].mxu1  ;;  %v1075_v50 = vadd.f32 %v1664_v43, %v1600_v40  ;;  %v1667_v51 = vadd.f32 %v1666_v48, %v1665_v45 }
 0x117   : > { %v1707_v52 = vadd.f32 %v1706_v49, %v1705_v46 }
 0x118   : > { %v1140_v53 = vadd.f32 %v1704_v44, %v1075_v50  ;;  %v1078_v54 = vadd.f32 %v1667_v51, %v1601_v47 }
 0x11a   : > { %v1143_v55 = vadd.f32 %v1707_v52, %v1078_v54  ;;  %v1724_v56 = vpop.f32.mrb[16].mxu0 }
 0x11b   : > { %v1725_v57 = vpop.f32.mrb[17].mxu0  ;;  %v1764_v58 = vpop.f32.mrb[16].mxu1 }
 0x11c   : > { %v1726_v59 = vadd.f32 %v1725_v57, %v1724_v56  ;;  %v1727_v61 = vpop.f32.mrb[18].mxu0  ;;  %v1765_v62 = vpop.f32.mrb[17].mxu1 }
 0x11d   : > { %v1728_v0 = vpop.f32.mrb[19].mxu0  ;;  %v1766_v2 = vadd.f32 %v1765_v62, %v1764_v58  ;;  %v1767_v3 = vpop.f32.mrb[18].mxu1 }
 0x11e   : > { %v1181_v1 = vadd.f32 %v1726_v59, %v2280_v60  ;;  %v1729_v4 = vadd.f32 %v1728_v0, %v1727_v61  ;;  %v1768_v5 = vpop.f32.mrb[19].mxu1 }
 0x11f   : > { %v1769_v7 = vadd.f32 %v1768_v5, %v1767_v3 }
 0x120   : > { %v1184_v6 = vadd.f32 %v1729_v4, %v2283_v63  ;;  %v1246_v8 = vadd.f32 %v1766_v2, %v1181_v1 }
 0x122   : > { %v1730_v9 = vpop.f32.mrb[20].mxu0  ;;  %v1249_v10 = vadd.f32 %v1769_v7, %v1184_v6 }
 0x123   : > { %v1731_v11 = vpop.f32.mrb[21].mxu0  ;;  %v1770_v12 = vpop.f32.mrb[20].mxu1 }
 0x124   : > { %v1732_v13 = vadd.f32 %v1731_v11, %v1730_v9  ;;  %v1733_v14 = vpop.f32.mrb[22].mxu0  ;;  %v1771_v16 = vpop.f32.mrb[21].mxu1 }
 0x125   : > { %v1734_v18 = vpop.f32.mrb[23].mxu0  ;;  %v1772_v20 = vadd.f32 %v1771_v16, %v1770_v12  ;;  %v1773_v60 = vpop.f32.mrb[22].mxu1 }
 0x126   : > { %v1189_v19 = vadd.f32 %v1732_v13, %v2285_v15  ;;  %v1735_v21 = vadd.f32 %v1734_v18, %v1733_v14  ;;  %v1774_v22 = vpop.f32.mrb[23].mxu1 }
 0x127   : > { %v1775_v24 = vadd.f32 %v1774_v22, %v1773_v60 }
 0x128   : > { %v1192_v23 = vadd.f32 %v1735_v21, %v2287_v17  ;;  %v1254_v63 = vadd.f32 %v1772_v20, %v1189_v19 }
 0x12a   : > { %v1736_v25 = vpop.f32.mrb[24].mxu0  ;;  %v1257_v26 = vadd.f32 %v1775_v24, %v1192_v23 }
 0x12b   : > { %v1737_v27 = vpop.f32.mrb[25].mxu0  ;;  %v1776_v28 = vpop.f32.mrb[24].mxu1 }
 0x12c   : > { %v1738_v29 = vadd.f32 %v1737_v27, %v1736_v25  ;;  %v1739_v30 = vpop.f32.mrb[26].mxu0  ;;  %v1777_v31 = vpop.f32.mrb[25].mxu1 }
 0x12d   : > { %v1740_v32 = vpop.f32.mrb[27].mxu0  ;;  %v1778_v35 = vadd.f32 %v1777_v31, %v1776_v28  ;;  %v1779_v37 = vpop.f32.mrb[26].mxu1 }
 0x12e   : > { %v1197_v33 = vadd.f32 %v1738_v29, %v1132_v34  ;;  %v1741_v15 = vadd.f32 %v1740_v32, %v1739_v30  ;;  %v1780_v38 = vpop.f32.mrb[27].mxu1 }
 0x12f   : > { %v1781_v40 = vadd.f32 %v1780_v38, %v1779_v37 }
 0x130   : > { %v1200_v39 = vadd.f32 %v1741_v15, %v2290_v36  ;;  %v1262_v41 = vadd.f32 %v1778_v35, %v1197_v33 }
 0x132   : > { %v1742_v17 = vpop.f32.mrb[28].mxu0  ;;  %v1265_v42 = vadd.f32 %v1781_v40, %v1200_v39 }
 0x133   : > { %v1743_v43 = vpop.f32.mrb[29].mxu0  ;;  %v1782_v44 = vpop.f32.mrb[28].mxu1 }
 0x134   : > { %v1744_v45 = vadd.f32 %v1743_v43, %v1742_v17  ;;  %v1745_v46 = vpop.f32.mrb[30].mxu0  ;;  %v1783_v47 = vpop.f32.mrb[29].mxu1 }
 0x135   : > { %v1746_v48 = vpop.f32.mrb[31].mxu0  ;;  %v1784_v50 = vadd.f32 %v1783_v47, %v1782_v44  ;;  %v1785_v51 = vpop.f32.mrb[30].mxu1 }
 0x136   : > { %v1205_v49 = vadd.f32 %v1744_v45, %v1140_v53  ;;  %v1747_v34 = vadd.f32 %v1746_v48, %v1745_v46  ;;  %v1786_v52 = vpop.f32.mrb[31].mxu1 }
 0x137   : > { %v1787_v56 = vadd.f32 %v1786_v52, %v1785_v51 }
 0x138   : > { %v1208_v54 = vadd.f32 %v1747_v34, %v1143_v55  ;;  %v1270_v57 = vadd.f32 %v1784_v50, %v1205_v49 }
 0x13a   : > { %v1273_v36 = vadd.f32 %v1787_v56, %v1208_v54 }
 0x13b   : > { %v1818_v58 = vpop.f32.mrb[32].mxu0 }
 0x13c   : > { %v1319_v59 = vadd.f32 %v1818_v58, %v1254_v63  ;;  %v1822_v61 = vpop.f32.mrb[32].mxu1  ;;  %v1310_v62 = vpop.f32.mrb[33].mxu0 }
 0x13d   : > { %v1335_v0 = vadd.f32 %v1822_v61, %v1270_v57  ;;  %v1311_v1 = vadd.f32 %v1310_v62, %v1246_v8  ;;  %v1326_v2 = vpop.f32.mrb[33].mxu1  ;;  %v1819_v3 = vpop.f32.mrb[34].mxu0 }
 0x13e   : > { %v1327_v4 = vadd.f32 %v1326_v2, %v1262_v41  ;;  %v1322_v5 = vadd.f32 %v1819_v3, %v1257_v26  ;;  %v1823_v53 = vpop.f32.mrb[34].mxu1  ;;  %v1313_v6 = vpop.f32.mrb[35].mxu0 }
 0x13f   : > { %v1338_v55 = vadd.f32 %v1823_v53, %v1273_v36  ;;  %v1314_v7 = vadd.f32 %v1313_v6, %v1249_v10  ;;  %v1329_v9 = vpop.f32.mrb[35].mxu1 }
 0x140   : > { %v1610_v11 = vpack.c.bf16 %v1322_v5, %v1319_v59  ;;  %v1330_v12 = vadd.f32 %v1329_v9, %v1265_v42 }
 0x141   : > { %v1620_v13 = vpack.c.bf16 %v1338_v55, %v1335_v0  ;;  %v1605_v14 = vpack.c.bf16 %v1314_v7, %v1311_v1 }
 0x142   : > { %1625 = vst [vmem:[%s197_s21 + $0x8] sm:$0xff] %v1610_v11   ;;  %v1615_v8 = vpack.c.bf16 %v1330_v12, %v1327_v4 }
 0x143   : > { %1627 = vst [vmem:[%s197_s21 + $0x18] sm:$0xff] %v1620_v13   ;;  %1606 = vst [vmem:[%s197_s21] sm:$0xff] %v1605_v14  }
 0x144   : > { %1626 = vst [vmem:[%s197_s21 + $0x10] sm:$0xff] %v1615_v8  }
 0x145 PF: > { %s13_s12 = sadd.s32 1, %s1979_s12  }
 0x146   : > { %p10_p4 = scmp.ge.s32.totalorder %s13_s12, 4  }
 0x148   :  { %12 = sbr.rel (!%p10_p4) target bundleno = 1 (0x1), region = 65 }

// kernel: _lambda_.14
= control target key start
LH: loop header
LB: loop body
LE: loop exit
PB: predicated region body
PF: predicated region fallthrough
CT: control target
= control target key end

     0   :  { %s2163_s18 = smov 0   ;;  %s2462_s0 = inlined_call_operand.vmem [shape: bf16[128,1152], index: 0, kind: input, shape index: {}]   ;;  %s2463_s1 = inlined_call_operand.vmem [shape: bf16[1152,128], index: 1, kind: input, shape index: {}]   ;;  %s2464_s2 = inlined_call_operand.vmem [shape: f32[1,128], index: 2, kind: input, shape index: {}]   ;;  %s2465_s3 = inlined_call_operand.vmem [shape: f32[1,128], index: 3, kind: input, shape index: {}]   ;;  %s2466_s4 = inlined_call_operand.vmem [shape: bf16[128,128], index: 4, kind: output, shape index: {0}]   ;;  %s2467_s5 = inlined_call_operand.vmem [shape: bf16[128,128], index: 5, kind: output, shape index: {1}]  }
   0x1 LB: > { %s1579_s19 = sadd.s32 4294967295, %s2131_s18   ;;  %p1583_p0 = scmp.ge.s32.totalorder %s2131_s18, 1  ;;  %s2131_s18 = sphi %s2163_s18, %s16_s18  }
   0x2   : > { %p192_p1 = scmp.lt.s32.totalorder %s2131_s18, 3 }
   0x4   : > { %p193_p2 = pnand %p1583_p0, %p192_p1 }
   0x5   : > { %v2001_v0 = vld [vmem:[%s2463_s1 + $0x40] sm:$0xff] (!%p193_p2)   ;;  %v2005_v4 = vld [vmem:[%s2463_s1 + $0x48] sm:$0xff] (!%p193_p2)   ;;  %v2009_v8 = vld [vmem:[%s2463_s1 + $0x50] sm:$0xff] (!%p193_p2)   ;;  %s1584_s27 = sshll.u32 (!%p193_p2), %s1579_s19, 3 }
   0x6   : > { %196 = sbr.rel (%p193_p2) target bundleno = 334 (0x14e), region = 36  ;;  %v2002_v1 = vld [vmem:[%s2463_s1 + $0xc0] sm:$0xff] (!%p193_p2)   ;;  %1780 = vmatprep.subr.bf16.mxu0 (!%p193_p2), %v2001_v0  ;;  %v2006_v5 = vld [vmem:[%s2463_s1 + $0xc8] sm:$0xff] (!%p193_p2)   ;;  %v2010_v9 = vld [vmem:[%s2463_s1 + $0xd0] sm:$0xff] (!%p193_p2)   ;;  %p227_p3 = scmp.lt.s32.totalorder (!%p193_p2), %s1584_s27, 15 }
   0x7   : > { %v2003_v2 = vld [vmem:[%s2463_s1] sm:$0xff] (!%p193_p2)   ;;  %1820 = vmatprep.subr.bf16.mxu1 (!%p193_p2), %v2002_v1  ;;  %v2007_v6 = vld [vmem:[%s2463_s1 + $0x8] sm:$0xff] (!%p193_p2)   ;;  %v2011_v10 = vld [vmem:[%s2463_s1 + $0x10] sm:$0xff] (!%p193_p2)  }
   0x8   : > { %v2004_v3 = vld [vmem:[%s2463_s1 + $0x80] sm:$0xff] (!%p193_p2)   ;;  %1781 = vmatpush3.bf16.msra.mxu0 (!%p193_p2), %v2003_v2  ;;  %v2008_v7 = vld [vmem:[%s2463_s1 + $0x88] sm:$0xff] (!%p193_p2)   ;;  %v2012_v11 = vld [vmem:[%s2463_s1 + $0x90] sm:$0xff] (!%p193_p2)  }
   0x9   : > { %1821 = vmatpush3.bf16.msra.mxu1 (!%p193_p2), %v2004_v3  ;;  %1782 = vmatprep.subr.bf16.mxu0 (!%p193_p2), %v2005_v4  ;;  %v2013_v12 = vld [vmem:[%s2463_s1 + $0x58] sm:$0xff] (!%p193_p2)   ;;  %v2017_v16 = vld [vmem:[%s2463_s1 + $0x60] sm:$0xff] (!%p193_p2)   ;;  %v2021_v20 = vld [vmem:[%s2463_s1 + $0x68] sm:$0xff] (!%p193_p2)  }
   0xa   : > { %1822 = vmatprep.subr.bf16.mxu1 (!%p193_p2), %v2006_v5  ;;  %v2014_v13 = vld [vmem:[%s2463_s1 + $0xd8] sm:$0xff] (!%p193_p2)   ;;  %v2018_v17 = vld [vmem:[%s2463_s1 + $0xe0] sm:$0xff] (!%p193_p2)   ;;  %v2022_v21 = vld [vmem:[%s2463_s1 + $0xe8] sm:$0xff] (!%p193_p2)  }
   0xb   : > { %v2015_v14 = vld [vmem:[%s2463_s1 + $0x18] sm:$0xff] (!%p193_p2)   ;;  %v2019_v18 = vld [vmem:[%s2463_s1 + $0x20] sm:$0xff] (!%p193_p2)   ;;  %v2023_v22 = vld [vmem:[%s2463_s1 + $0x28] sm:$0xff] (!%p193_p2)  }
   0xc   : > { %1783 = vmatpush3.bf16.msra.mxu0 (!%p193_p2), %v2007_v6  ;;  %v2016_v15 = vld [vmem:[%s2463_s1 + $0x98] sm:$0xff] (!%p193_p2)   ;;  %v2020_v19 = vld [vmem:[%s2463_s1 + $0xa0] sm:$0xff] (!%p193_p2)   ;;  %v2024_v23 = vld [vmem:[%s2463_s1 + $0xa8] sm:$0xff] (!%p193_p2)  }
   0xd   : > { %1823 = vmatpush3.bf16.msra.mxu1 %v2008_v7  ;;  %1784 = vmatprep.subr.bf16.mxu0 %v2009_v8  ;;  %s2469_s27 = smov (!%p227_p3, %s1584_s27), 15  ;;  %v2025_v24 = vld [vmem:[%s2463_s1 + $0x70] sm:$0xff]   ;;  %v2029_v28 = vld [vmem:[%s2463_s1 + $0x78] sm:$0xff]   ;;  %v2039_v36 = vld [vmem:[%s2463_s1 + $0x140] sm:$0xff]  }
   0xe   : > { %1824 = vmatprep.subr.bf16.mxu1 %v2010_v9  ;;  %v2026_v25 = vld [vmem:[%s2463_s1 + $0xf0] sm:$0xff]   ;;  %s1992_s26 = smul.u32 36, %s2469_s27  ;;  %v2030_v29 = vld [vmem:[%s2463_s1 + $0xf8] sm:$0xff]   ;;  %v2040_v37 = vld [vmem:[%s2463_s1 + $0x1c0] sm:$0xff]   ;;  %s1587_s10 = sshll.u32 %s2469_s27, 2 }
   0xf   : > { %v2027_v26 = vld [vmem:[%s2463_s1 + $0x30] sm:$0xff]   ;;  %v2031_v30 = vld [vmem:[%s2463_s1 + $0x38] sm:$0xff]   ;;  %v2041_v38 = vld [vmem:[%s2463_s1 + $0x100] sm:$0xff]   ;;  %s2447_s15 = scalar_lea.vmem %s2466_s4, %s1587_s10  ;;  %s243_s20 = scalar_lea.vmem %s2467_s5, %s1587_s10 }
  0x10   : > { %1785 = vmatpush3.bf16.msra.mxu0 %v2011_v10  ;;  %v2028_v27 = vld [vmem:[%s2463_s1 + $0xb0] sm:$0xff]   ;;  %s2269_s12 = scalar_lea.vmem %s2462_s0, %s1992_s26  ;;  %v2032_v31 = vld [vmem:[%s2463_s1 + $0xb8] sm:$0xff]   ;;  %v2042_v39 = vld [vmem:[%s2463_s1 + $0x180] sm:$0xff]  }
  0x11   : > { %1825 = vmatpush3.bf16.msra.mxu1 %v2012_v11  ;;  %1786 = vmatprep.subr.bf16.mxu0 %v2013_v12  ;;  %v2033_v32 = vld [vmem:[%s2269_s12] ss:$36 sps:$4 sm:$0xff]   ;;  %v2036_v34 = vld [vmem:[%s2269_s12 + $0x8] ss:$36 sps:$4 sm:$0xff]   ;;  %v2049_v45 = vld [vmem:[%s2269_s12 + $0x54] ss:$36 sps:$4 sm:$0xff]  }
  0x12   : > { %1826 = vmatprep.subr.bf16.mxu1 %v2014_v13  ;;  %v2035_v33 = vld [vmem:[%s2269_s12 + $0x4] ss:$36 sps:$4 sm:$0xff]   ;;  %v2038_v35 = vld [vmem:[%s2269_s12 + $0xc] ss:$36 sps:$4 sm:$0xff]   ;;  %v2057_v52 = vld [vmem:[%s2463_s1 + $0x158] sm:$0xff]  }
  0x13   : > { %1078 = vmatprep.mubr.bf16.mxu0 %v2035_v33  ;;  %1143 = vmatprep.mubr.bf16.mxu1 %v2038_v35  ;;  %v2043_v40 = vld [vmem:[%s2463_s1 + $0x148] sm:$0xff]   ;;  %v2052_v47 = vld [vmem:[%s2269_s12 + $0x50] ss:$36 sps:$4 sm:$0xff]   ;;  %v2058_v53 = vld [vmem:[%s2463_s1 + $0x1d8] sm:$0xff]  }
  0x14   : > { %1787 = vmatpush3.bf16.msra.mxu0 %v2015_v14  ;;  %v2044_v41 = vld [vmem:[%s2463_s1 + $0x1c8] sm:$0xff]   ;;  %v2053_v48 = vld [vmem:[%s2463_s1 + $0x150] sm:$0xff]   ;;  %v2059_v54 = vld [vmem:[%s2463_s1 + $0x118] sm:$0xff]  }
  0x15   : > { %1827 = vmatpush3.bf16.msra.mxu1 %v2016_v15  ;;  %1788 = vmatprep.subr.bf16.mxu0 %v2017_v16  ;;  %v2045_v42 = vld [vmem:[%s2463_s1 + $0x108] sm:$0xff]   ;;  %v2054_v49 = vld [vmem:[%s2463_s1 + $0x1d0] sm:$0xff]   ;;  %v2060_v55 = vld [vmem:[%s2463_s1 + $0x198] sm:$0xff]  }
  0x16   : > { %1828 = vmatprep.subr.bf16.mxu1 %v2018_v17  ;;  %v2046_v43 = vld [vmem:[%s2463_s1 + $0x188] sm:$0xff]   ;;  %v2055_v50 = vld [vmem:[%s2463_s1 + $0x110] sm:$0xff]   ;;  %v2063_v57 = vld [vmem:[%s2269_s12 + $0x9c] ss:$36 sps:$4 sm:$0xff]  }
  0x17   : > { %v2047_v44 = vld [vmem:[%s2269_s12 + $0x4c] ss:$36 sps:$4 sm:$0xff]   ;;  %v2061_v56 = vld [vmem:[%s2269_s12 + $0x94] ss:$36 sps:$4 sm:$0xff]   ;;  %v2067_v60 = vld [vmem:[%s2463_s1 + $0x160] sm:$0xff]  }
  0x18   : > { %1789 = vmatpush3.bf16.msra.mxu0 %v2019_v18  ;;  %v2051_v46 = vld [vmem:[%s2269_s12 + $0x48] ss:$36 sps:$4 sm:$0xff]   ;;  %v2056_v51 = vld [vmem:[%s2463_s1 + $0x190] sm:$0xff]   ;;  %v2066_v59 = vld [vmem:[%s2269_s12 + $0x98] ss:$36 sps:$4 sm:$0xff]  }
  0x19   : > { %1829 = vmatpush3.bf16.msra.mxu1 %v2020_v19  ;;  %1790 = vmatprep.subr.bf16.mxu0 %v2021_v20  ;;  %v2065_v58 = vld [vmem:[%s2269_s12 + $0x90] ss:$36 sps:$4 sm:$0xff]   ;;  %v2068_v61 = vld [vmem:[%s2463_s1 + $0x1e0] sm:$0xff]   ;;  %v2071_v0 = vld [vmem:[%s2463_s1 + $0x168] sm:$0xff]  }
  0x1a   : > { %1830 = vmatprep.subr.bf16.mxu1 %v2022_v21  ;;  %v2069_v62 = vld [vmem:[%s2463_s1 + $0x120] sm:$0xff]   ;;  %v2072_v1 = vld [vmem:[%s2463_s1 + $0x1e8] sm:$0xff]   ;;  %v2079_v6 = vld [vmem:[%s2269_s12 + $0xd8] ss:$36 sps:$4 sm:$0xff]  }
  0x1b   : > { %v2070_v63 = vld [vmem:[%s2463_s1 + $0x1a0] sm:$0xff]   ;;  %v2073_v2 = vld [vmem:[%s2463_s1 + $0x128] sm:$0xff]   ;;  %v2081_v8 = vld [vmem:[%s2463_s1 + $0x170] sm:$0xff]  }
  0x1c   : > { %1791 = vmatpush3.bf16.msra.mxu0 %v2023_v22  ;;  %v2074_v3 = vld [vmem:[%s2463_s1 + $0x1a8] sm:$0xff]   ;;  %v2075_v4 = vld [vmem:[%s2269_s12 + $0xdc] ss:$36 sps:$4 sm:$0xff]   ;;  %v2082_v9 = vld [vmem:[%s2463_s1 + $0x1f0] sm:$0xff]  }
  0x1d   : > { %1831 = vmatpush3.bf16.msra.mxu1 %v2024_v23  ;;  %1792 = vmatprep.subr.bf16.mxu0 %v2025_v24  ;;  %v2077_v5 = vld [vmem:[%s2269_s12 + $0xe4] ss:$36 sps:$4 sm:$0xff]   ;;  %v2083_v10 = vld [vmem:[%s2463_s1 + $0x130] sm:$0xff]   ;;  %v2085_v12 = vld [vmem:[%s2463_s1 + $0x178] sm:$0xff]  }
  0x1e   : > { %1832 = vmatprep.subr.bf16.mxu1 %v2026_v25  ;;  %v2080_v7 = vld [vmem:[%s2269_s12 + $0xe0] ss:$36 sps:$4 sm:$0xff]   ;;  %v2084_v11 = vld [vmem:[%s2463_s1 + $0x1b0] sm:$0xff]   ;;  %v2086_v13 = vld [vmem:[%s2463_s1 + $0x1f8] sm:$0xff]  }
  0x1f   : > { %v2087_v14 = vld [vmem:[%s2463_s1 + $0x138] sm:$0xff]   ;;  %v2089_v16 = vld [vmem:[%s2269_s12 + $0x10] ss:$36 sps:$4 sm:$0xff]   ;;  %v2095_v20 = vld [vmem:[%s2463_s1 + $0x200] sm:$0xff]  }
  0x20   : > { %1793 = vmatpush3.bf16.msra.mxu0 %v2027_v26  ;;  %v2088_v15 = vld [vmem:[%s2463_s1 + $0x1b8] sm:$0xff]   ;;  %v2096_v21 = vld [vmem:[%s2463_s1 + $0x208] sm:$0xff]   ;;  %v2102_v25 = vld [vmem:[%s2269_s12 + $0x60] ss:$36 sps:$4 sm:$0xff]  }
  0x21   : > { %1833 = vmatpush3.bf16.msra.mxu1 %v2028_v27  ;;  %1794 = vmatprep.subr.bf16.mxu0 %v2029_v28  ;;  %v2091_v17 = vld [vmem:[%s2269_s12 + $0x14] ss:$36 sps:$4 sm:$0xff]   ;;  %v2094_v19 = vld [vmem:[%s2269_s12 + $0x1c] ss:$36 sps:$4 sm:$0xff]   ;;  %v2099_v23 = vld [vmem:[%s2269_s12 + $0x64] ss:$36 sps:$4 sm:$0xff]  }
  0x22   : > { %1834 = vmatprep.subr.bf16.mxu1 %v2030_v29  ;;  %v2092_v18 = vld [vmem:[%s2269_s12 + $0x18] ss:$36 sps:$4 sm:$0xff]   ;;  %v2103_v26 = vld [vmem:[%s2463_s1 + $0x210] sm:$0xff]   ;;  %v2105_v27 = vld [vmem:[%s2269_s12 + $0xa4] ss:$36 sps:$4 sm:$0xff]  }
  0x23   : > { %v2097_v22 = vld [vmem:[%s2269_s12 + $0x5c] ss:$36 sps:$4 sm:$0xff]   ;;  %v2107_v28 = vld [vmem:[%s2269_s12 + $0xac] ss:$36 sps:$4 sm:$0xff]  }
  0x24   : > { %1795 = vmatpush3.bf16.msra.mxu0 %v2031_v30  ;;  %v2101_v24 = vld [vmem:[%s2269_s12 + $0x58] ss:$36 sps:$4 sm:$0xff]   ;;  %v2109_v30 = vld [vmem:[%s2269_s12 + $0xa0] ss:$36 sps:$4 sm:$0xff]   ;;  %v2113_v33 = vld [vmem:[%s2269_s12 + $0xec] ss:$36 sps:$4 sm:$0xff]  }
  0x25   : > { %1835 = vmatpush3.bf16.msra.mxu1 %v2032_v31  ;;  %1860 = vmatprep.subr.bf16.mxu0 %v2039_v36  ;;  %v2104_v29 = vld [vmem:[%s2463_s1 + $0x218] sm:$0xff]   ;;  %v2110_v31 = vld [vmem:[%s2269_s12 + $0xa8] ss:$36 sps:$4 sm:$0xff]  }
  0x26   : > { %1900 = vmatprep.subr.bf16.mxu1 %v2040_v37  ;;  %v2112_v35 = vld [vmem:[%s2463_s1 + $0x228] sm:$0xff]   ;;  %v2119_v37 = vld [vmem:[%s2463_s1 + $0x230] sm:$0xff]  }
  0x27   : > { %1079 = vmatmul.mubr.bf16.vlgmr.msra.gmra.mrb[0].mxu0 %v2033_v32  ;;  %v2111_v32 = vld [vmem:[%s2463_s1 + $0x220] sm:$0xff]   ;;  %v2117_v36 = vld [vmem:[%s2269_s12 + $0xe8] ss:$36 sps:$4 sm:$0xff]  }
  0x28   : > { %1144 = vmatmul.mubr.bf16.vlgmr.msra.gmra.mrb[0].mxu1 %v2036_v34  ;;  %1861 = vmatpush3.bf16.msra.mxu0 %v2041_v38  ;;  %v2115_v34 = vld [vmem:[%s2269_s12 + $0xf4] ss:$36 sps:$4 sm:$0xff]  }
  0x29   : > { %1901 = vmatpush3.bf16.msra.mxu1 %v2042_v39  ;;  %1862 = vmatprep.subr.bf16.mxu0 %v2043_v40  ;;  %v2118_v38 = vld [vmem:[%s2269_s12 + $0xf0] ss:$36 sps:$4 sm:$0xff]   ;;  %v2121_v39 = vld [vmem:[%s2269_s12 + $0x20] ss:$36 sps:$4 sm:$0xff]  }
  0x2a   : > { %1902 = vmatprep.subr.bf16.mxu1 %v2044_v41  ;;  %1086 = vmatprep.mubr.bf16.mxu0 %v2047_v44  ;;  %v2122_v40 = vld [vmem:[%s2269_s12 + $0xb0] ss:$36 sps:$4 sm:$0xff]   ;;  %v2120_v41 = vld [vmem:[%s2463_s1 + $0x238] sm:$0xff]  }
  0x2b   : > { %1151 = vmatprep.mubr.bf16.mxu1 %v2049_v45 }
  0x2c   : > { %1863 = vmatpush3.bf16.msra.mxu0 %v2045_v42  ;;  %v2123_v42 = vld [vmem:[%s2269_s12 + $0x68] ss:$36 sps:$4 sm:$0xff]  }
  0x2d   : > { %1903 = vmatpush3.bf16.msra.mxu1 %v2046_v43  ;;  %1864 = vmatprep.subr.bf16.mxu0 %v2053_v48  ;;  %v2124_v43 = vld [vmem:[%s2269_s12 + $0xf8] ss:$36 sps:$4 sm:$0xff]  }
  0x2e   : > { %1904 = vmatprep.subr.bf16.mxu1 %v2054_v49 }
  0x2f   : > { %1087 = vmatmul.mubr.bf16.gmra.mrb[4].mxu0 %v2051_v46 }
  0x30   : > { %1152 = vmatmul.mubr.bf16.gmra.mrb[4].mxu1 %v2052_v47  ;;  %1865 = vmatpush3.bf16.msra.mxu0 %v2055_v50 }
  0x31   : > { %1905 = vmatpush3.bf16.msra.mxu1 %v2056_v51  ;;  %1866 = vmatprep.subr.bf16.mxu0 %v2057_v52 }
  0x32   : > { %1906 = vmatprep.subr.bf16.mxu1 %v2058_v53  ;;  %1094 = vmatprep.mubr.bf16.mxu0 %v2061_v56 }
  0x33   : > { %1159 = vmatprep.mubr.bf16.mxu1 %v2063_v57 }
  0x34   : > { %1867 = vmatpush3.bf16.msra.mxu0 %v2059_v54 }
  0x35   : > { %1907 = vmatpush3.bf16.msra.mxu1 %v2060_v55  ;;  %1868 = vmatprep.subr.bf16.mxu0 %v2067_v60 }
  0x36   : > { %1908 = vmatprep.subr.bf16.mxu1 %v2068_v61 }
  0x37   : > { %1095 = vmatmul.mubr.bf16.gmra.mrb[8].mxu0 %v2065_v58 }
  0x38   : > { %1160 = vmatmul.mubr.bf16.gmra.mrb[8].mxu1 %v2066_v59  ;;  %1869 = vmatpush3.bf16.msra.mxu0 %v2069_v62 }
  0x39   : > { %1909 = vmatpush3.bf16.msra.mxu1 %v2070_v63  ;;  %1870 = vmatprep.subr.bf16.mxu0 %v2071_v0 }
  0x3a   : > { %1910 = vmatprep.subr.bf16.mxu1 %v2072_v1  ;;  %1102 = vmatprep.mubr.bf16.mxu0 %v2075_v4 }
  0x3b   : > { %1167 = vmatprep.mubr.bf16.mxu1 %v2077_v5 }
  0x3c   : > { %1871 = vmatpush3.bf16.msra.mxu0 %v2073_v2 }
  0x3d   : > { %1911 = vmatpush3.bf16.msra.mxu1 %v2074_v3  ;;  %1872 = vmatprep.subr.bf16.mxu0 %v2081_v8 }
  0x3e   : > { %1912 = vmatprep.subr.bf16.mxu1 %v2082_v9 }
  0x3f   : > { %1103 = vmatmul.mubr.bf16.gmra.mrb[12].mxu0 %v2079_v6 }
  0x40   : > { %1168 = vmatmul.mubr.bf16.gmra.mrb[12].mxu1 %v2080_v7  ;;  %1873 = vmatpush3.bf16.msra.mxu0 %v2083_v10 }
  0x41   : > { %1913 = vmatpush3.bf16.msra.mxu1 %v2084_v11  ;;  %1874 = vmatprep.subr.bf16.mxu0 %v2085_v12 }
  0x42   : > { %1914 = vmatprep.subr.bf16.mxu1 %v2086_v13  ;;  %1208 = vmatprep.mubr.bf16.mxu0 %v2091_v17 }
  0x43   : > { %1273 = vmatprep.mubr.bf16.mxu1 %v2094_v19 }
  0x44   : > { %1875 = vmatpush3.bf16.msra.mxu0 %v2087_v14 }
  0x45   : > { %1915 = vmatpush3.bf16.msra.mxu1 %v2088_v15  ;;  %1952 = vmatprep.subr.bf16.mxu0 %v2095_v20 }
  0x46   : > { %1976 = vmatprep.subr.bf16.mxu1 %v2095_v20 }
  0x47   : > { %1209 = vmatmul.mubr.bf16.vlgmr.msra.gmra.mrb[16].mxu0 %v2089_v16 }
  0x48   : > { %1274 = vmatmul.mubr.bf16.vlgmr.msra.gmra.mrb[16].mxu1 %v2092_v18  ;;  %1953 = vmatpush3.bf16.msra.mxu0 %v2095_v20 }
  0x49   : > { %1984 = vmatpush3.bf16.msra.mxu1 %v2095_v20  ;;  %1954 = vmatprep.subr.bf16.mxu0 %v2096_v21 }
  0x4a   : > { %1977 = vmatprep.subr.bf16.mxu1 %v2096_v21  ;;  %1216 = vmatprep.mubr.bf16.mxu0 %v2097_v22 }
  0x4b   : > { %1281 = vmatprep.mubr.bf16.mxu1 %v2099_v23 }
  0x4c   : > { %1955 = vmatpush3.bf16.msra.mxu0 %v2096_v21 }
  0x4d   : > { %1985 = vmatpush3.bf16.msra.mxu1 %v2096_v21  ;;  %1956 = vmatprep.subr.bf16.mxu0 %v2103_v26 }
  0x4e   : > { %1978 = vmatprep.subr.bf16.mxu1 %v2103_v26 }
  0x4f   : > { %1217 = vmatmul.mubr.bf16.gmra.mrb[20].mxu0 %v2101_v24 }
  0x50   : > { %1282 = vmatmul.mubr.bf16.gmra.mrb[20].mxu1 %v2102_v25  ;;  %1224 = vmatprep.mubr.bf16.mxu0 %v2105_v27 }
  0x51   : > { %1957 = vmatpush3.bf16.msra.mxu0 %v2103_v26  ;;  %1289 = vmatprep.mubr.bf16.mxu1 %v2107_v28 }
  0x52   : > { %1986 = vmatpush3.bf16.msra.mxu1 %v2103_v26  ;;  %1958 = vmatprep.subr.bf16.mxu0 %v2104_v29 }
  0x53   : > { %1979 = vmatprep.subr.bf16.mxu1 %v2104_v29 }
  0x55   : > { %1959 = vmatpush3.bf16.msra.mxu0 %v2104_v29 }
  0x56   : > { %1987 = vmatpush3.bf16.msra.mxu1 %v2104_v29  ;;  %1960 = vmatprep.subr.bf16.mxu0 %v2111_v32 }
  0x57   : > { %1225 = vmatmul.mubr.bf16.gmra.mrb[24].mxu0 %v2109_v30  ;;  %1980 = vmatprep.subr.bf16.mxu1 %v2111_v32 }
  0x58   : > { %1290 = vmatmul.mubr.bf16.gmra.mrb[24].mxu1 %v2110_v31  ;;  %1232 = vmatprep.mubr.bf16.mxu0 %v2113_v33 }
  0x59   : > { %1961 = vmatpush3.bf16.msra.mxu0 %v2111_v32  ;;  %1297 = vmatprep.mubr.bf16.mxu1 %v2115_v34 }
  0x5a   : > { %1988 = vmatpush3.bf16.msra.mxu1 %v2111_v32  ;;  %1962 = vmatprep.subr.bf16.mxu0 %v2112_v35 }
  0x5b   : > { %1981 = vmatprep.subr.bf16.mxu1 %v2112_v35 }
  0x5d   : > { %1963 = vmatpush3.bf16.msra.mxu0 %v2112_v35 }
  0x5e   : > { %1989 = vmatpush3.bf16.msra.mxu1 %v2112_v35  ;;  %1964 = vmatprep.subr.bf16.mxu0 %v2119_v37 }
  0x5f   : > { %1233 = vmatmul.mubr.bf16.gmra.mrb[28].mxu0 %v2117_v36  ;;  %1982 = vmatprep.subr.bf16.mxu1 %v2119_v37 }
  0x60   : > { %1298 = vmatmul.mubr.bf16.gmra.mrb[28].mxu1 %v2118_v38  ;;  %1968 = vmatprep.mubr.bf16.mxu0 %v2121_v39 }
  0x61   : > { %1965 = vmatpush3.bf16.msra.mxu0 %v2119_v37  ;;  %1972 = vmatprep.mubr.bf16.mxu1 %v2122_v40 }
  0x62   : > { %1990 = vmatpush3.bf16.msra.mxu1 %v2119_v37  ;;  %1966 = vmatprep.subr.bf16.mxu0 %v2120_v41 }
  0x63   : > { %1983 = vmatprep.subr.bf16.mxu1 %v2120_v41 }
  0x65   : > { %1967 = vmatpush3.bf16.msra.mxu0 %v2120_v41 }
  0x66   : > { %1991 = vmatpush3.bf16.msra.mxu1 %v2120_v41 }
  0x68   : > { %1969 = vmatmul.mubr.bf16.vlgmr.msra.gmra.mrb[32].mxu0 %v2123_v42 }
  0x69   : > { %1973 = vmatmul.mubr.bf16.vlgmr.msra.gmra.mrb[32].mxu1 %v2124_v43 }
  0xfa   : > { %v1796_v44 = vpop.f32.mrb[0].mxu0 }
  0xfb   : > { %v1836_v45 = vpop.f32.mrb[0].mxu1  ;;  %v1797_v46 = vpop.f32.mrb[1].mxu0 }
  0xfc   : > { %v1798_v47 = vadd.f32 %v1797_v46, %v1796_v44  ;;  %v1837_v48 = vpop.f32.mrb[1].mxu1  ;;  %v1799_v49 = vpop.f32.mrb[2].mxu0 }
  0xfd   : > { %v1838_v50 = vadd.f32 %v1837_v48, %v1836_v45  ;;  %v1839_v51 = vpop.f32.mrb[2].mxu1  ;;  %v1800_v52 = vpop.f32.mrb[3].mxu0 }
  0xfe   : > { %v1801_v53 = vadd.f32 %v1800_v52, %v1799_v49  ;;  %v1840_v54 = vpop.f32.mrb[3].mxu1 }
  0xff   : > { %v1146_v55 = vadd.f32 %v1838_v50, %v1798_v47  ;;  %v1841_v56 = vadd.f32 %v1840_v54, %v1839_v51 }
 0x101   : > { %v1149_v57 = vadd.f32 %v1841_v56, %v1801_v53 }
 0x102   : > { %v1802_v58 = vpop.f32.mrb[4].mxu0 }
 0x103   : > { %v1842_v59 = vpop.f32.mrb[4].mxu1  ;;  %v1803_v60 = vpop.f32.mrb[5].mxu0 }
 0x104   : > { %v1804_v61 = vadd.f32 %v1803_v60, %v1802_v58  ;;  %v1843_v62 = vpop.f32.mrb[5].mxu1  ;;  %v1805_v63 = vpop.f32.mrb[6].mxu0 }
 0x105   : > { %v1844_v0 = vadd.f32 %v1843_v62, %v1842_v59  ;;  %v1845_v1 = vpop.f32.mrb[6].mxu1  ;;  %v1806_v2 = vpop.f32.mrb[7].mxu0 }
 0x106   : > { %v1807_v3 = vadd.f32 %v1806_v2, %v1805_v63  ;;  %v1846_v4 = vpop.f32.mrb[7].mxu1 }
 0x107   : > { %v1154_v5 = vadd.f32 %v1844_v0, %v1804_v61  ;;  %v1847_v6 = vadd.f32 %v1846_v4, %v1845_v1 }
 0x109   : > { %v1157_v7 = vadd.f32 %v1847_v6, %v1807_v3 }
 0x10a   : > { %v1808_v8 = vpop.f32.mrb[8].mxu0 }
 0x10b   : > { %v1848_v9 = vpop.f32.mrb[8].mxu1  ;;  %v1809_v10 = vpop.f32.mrb[9].mxu0 }
 0x10c   : > { %v1810_v11 = vadd.f32 %v1809_v10, %v1808_v8  ;;  %v1849_v12 = vpop.f32.mrb[9].mxu1  ;;  %v1811_v13 = vpop.f32.mrb[10].mxu0 }
 0x10d   : > { %v1850_v14 = vadd.f32 %v1849_v12, %v1848_v9  ;;  %v1851_v15 = vpop.f32.mrb[10].mxu1  ;;  %v1812_v16 = vpop.f32.mrb[11].mxu0 }
 0x10e   : > { %v1813_v17 = vadd.f32 %v1812_v16, %v1811_v13  ;;  %v1852_v18 = vpop.f32.mrb[11].mxu1 }
 0x10f   : > { %v1162_v19 = vadd.f32 %v1850_v14, %v1810_v11  ;;  %v1853_v20 = vadd.f32 %v1852_v18, %v1851_v15 }
 0x111   : > { %v1165_v21 = vadd.f32 %v1853_v20, %v1813_v17 }
 0x112   : > { %v1814_v22 = vpop.f32.mrb[12].mxu0 }
 0x113   : > { %v1854_v23 = vpop.f32.mrb[12].mxu1  ;;  %v1815_v24 = vpop.f32.mrb[13].mxu0 }
 0x114   : > { %v1855_v25 = vpop.f32.mrb[13].mxu1  ;;  %v1816_v26 = vadd.f32 %v1815_v24, %v1814_v22  ;;  %v1817_v28 = vpop.f32.mrb[14].mxu0 }
 0x115   : > { %v1856_v27 = vadd.f32 %v1855_v25, %v1854_v23  ;;  %v1857_v29 = vpop.f32.mrb[14].mxu1  ;;  %v1818_v30 = vpop.f32.mrb[15].mxu0 }
 0x116   : > { %v1858_v31 = vpop.f32.mrb[15].mxu1  ;;  %v1819_v33 = vadd.f32 %v1818_v30, %v1817_v28 }
 0x117   : > { %v1170_v32 = vadd.f32 %v1856_v27, %v1816_v26  ;;  %v1859_v34 = vadd.f32 %v1858_v31, %v1857_v29 }
 0x119   : > { %v1173_v35 = vadd.f32 %v1859_v34, %v1819_v33 }
 0x11a   : > { %v1876_v36 = vpop.f32.mrb[16].mxu0 }
 0x11b   : > { %v1877_v37 = vpop.f32.mrb[17].mxu0  ;;  %v1916_v38 = vpop.f32.mrb[16].mxu1 }
 0x11c   : > { %v1878_v39 = vadd.f32 %v1877_v37, %v1876_v36  ;;  %v1879_v40 = vpop.f32.mrb[18].mxu0  ;;  %v1917_v41 = vpop.f32.mrb[17].mxu1 }
 0x11d   : > { %v1880_v42 = vpop.f32.mrb[19].mxu0  ;;  %v1918_v44 = vadd.f32 %v1917_v41, %v1916_v38  ;;  %v1919_v45 = vpop.f32.mrb[18].mxu1 }
 0x11e   : > { %v1211_v43 = vadd.f32 %v1878_v39, %v1146_v55  ;;  %v1881_v46 = vadd.f32 %v1880_v42, %v1879_v40  ;;  %v1920_v47 = vpop.f32.mrb[19].mxu1  ;;  %v1706_v39 = vld [vmem:[%s2464_s2] ss:$0 sm:$0xff] }
 0x11f   : > { %v1921_v49 = vadd.f32 %v1920_v47, %v1919_v45 }
 0x120   : > { %v1214_v48 = vadd.f32 %v1881_v46, %v1149_v57  ;;  %v1276_v50 = vadd.f32 %v1918_v44, %v1211_v43 }
 0x122   : > { %v1882_v51 = vpop.f32.mrb[20].mxu0  ;;  %v2433_v52 = vadd.f32 %v1921_v49, %v1214_v48 }
 0x123   : > { %v1883_v53 = vpop.f32.mrb[21].mxu0  ;;  %v1922_v54 = vpop.f32.mrb[20].mxu1 }
 0x124   : > { %v1884_v56 = vadd.f32 %v1883_v53, %v1882_v51  ;;  %v1885_v58 = vpop.f32.mrb[22].mxu0  ;;  %v1923_v59 = vpop.f32.mrb[21].mxu1 }
 0x125   : > { %v1886_v60 = vpop.f32.mrb[23].mxu0  ;;  %v1924_v62 = vadd.f32 %v1923_v59, %v1922_v54  ;;  %v1925_v63 = vpop.f32.mrb[22].mxu1 }
 0x126   : > { %v1219_v61 = vadd.f32 %v1884_v56, %v1154_v5  ;;  %v1887_v55 = vadd.f32 %v1886_v60, %v1885_v58  ;;  %v1926_v0 = vpop.f32.mrb[23].mxu1 }
 0x127   : > { %v1927_v2 = vadd.f32 %v1926_v0, %v1925_v63 }
 0x128   : > { %v1222_v1 = vadd.f32 %v1887_v55, %v1157_v7  ;;  %v1284_v3 = vadd.f32 %v1924_v62, %v1219_v61 }
 0x12a   : > { %v1888_v57 = vpop.f32.mrb[24].mxu0  ;;  %v1287_v4 = vadd.f32 %v1927_v2, %v1222_v1 }
 0x12b   : > { %v1889_v6 = vpop.f32.mrb[25].mxu0  ;;  %v1928_v8 = vpop.f32.mrb[24].mxu1 }
 0x12c   : > { %v1890_v9 = vadd.f32 %v1889_v6, %v1888_v57  ;;  %v1891_v10 = vpop.f32.mrb[26].mxu0  ;;  %v1929_v11 = vpop.f32.mrb[25].mxu1 }
 0x12d   : > { %v1892_v12 = vpop.f32.mrb[27].mxu0  ;;  %v1930_v14 = vadd.f32 %v1929_v11, %v1928_v8  ;;  %v1931_v15 = vpop.f32.mrb[26].mxu1 }
 0x12e   : > { %v1227_v13 = vadd.f32 %v1890_v9, %v1162_v19  ;;  %v1893_v16 = vadd.f32 %v1892_v12, %v1891_v10  ;;  %v1932_v5 = vpop.f32.mrb[27].mxu1 }
 0x12f   : > { %v1933_v18 = vadd.f32 %v1932_v5, %v1931_v15 }
 0x130   : > { %v1230_v17 = vadd.f32 %v1893_v16, %v1165_v21  ;;  %v1292_v20 = vadd.f32 %v1930_v14, %v1227_v13 }
 0x132   : > { %v1894_v22 = vpop.f32.mrb[28].mxu0  ;;  %v1295_v7 = vadd.f32 %v1933_v18, %v1230_v17 }
 0x133   : > { %v1895_v23 = vpop.f32.mrb[29].mxu0  ;;  %v1934_v24 = vpop.f32.mrb[28].mxu1 }
 0x134   : > { %v1896_v25 = vadd.f32 %v1895_v23, %v1894_v22  ;;  %v1897_v26 = vpop.f32.mrb[30].mxu0  ;;  %v1935_v27 = vpop.f32.mrb[29].mxu1 }
 0x135   : > { %v1898_v28 = vpop.f32.mrb[31].mxu0  ;;  %v1936_v30 = vadd.f32 %v1935_v27, %v1934_v24  ;;  %v1937_v31 = vpop.f32.mrb[30].mxu1 }
 0x136   : > { %v1235_v29 = vadd.f32 %v1896_v25, %v1170_v32  ;;  %v1899_v19 = vadd.f32 %v1898_v28, %v1897_v26  ;;  %v1938_v33 = vpop.f32.mrb[31].mxu1  ;;  %v1707_v32 = vld [vmem:[%s2465_s3] ss:$0 sm:$0xff] }
 0x137   : > { %v1939_v36 = vadd.f32 %v1938_v33, %v1937_v31 }
 0x138   : > { %v1238_v34 = vadd.f32 %v1899_v19, %v1173_v35  ;;  %v1300_v37 = vadd.f32 %v1936_v30, %v1235_v29 }
 0x13a   : > { %v1303_v21 = vadd.f32 %v1939_v36, %v1238_v34 }
 0x13b   : > { %v1970_v38 = vpop.f32.mrb[32].mxu0 }
 0x13c   : > { %v1349_v40 = vadd.f32 %v1970_v38, %v1284_v3  ;;  %v1974_v41 = vpop.f32.mrb[32].mxu1  ;;  %v1340_v42 = vpop.f32.mrb[33].mxu0 }
 0x13d   : > { %v1365_v43 = vadd.f32 %v1974_v41, %v1300_v37  ;;  %v1341_v44 = vadd.f32 %v1340_v42, %v1276_v50  ;;  %v1356_v35 = vpop.f32.mrb[33].mxu1  ;;  %v1971_v45 = vpop.f32.mrb[34].mxu0 }
 0x13e   : > { %v1420_v46 = vmul.f32 %v1706_v39, %v1349_v40  ;;  %v1357_v47 = vadd.f32 %v1356_v35, %v1292_v20  ;;  %v1352_v48 = vadd.f32 %v1971_v45, %v1287_v4  ;;  %v1975_v49 = vpop.f32.mrb[34].mxu1  ;;  %v1343_v51 = vpop.f32.mrb[35].mxu0 }
 0x13f   : > { %v1424_v53 = vmul.f32 %v1706_v39, %v1365_v43  ;;  %v1418_v54 = vmul.f32 %v1706_v39, %v1341_v44  ;;  %v1368_v56 = vadd.f32 %v1975_v49, %v1303_v21  ;;  %v1344_v50 = vadd.f32 %v1343_v51, %v2433_v52  ;;  %v1359_v58 = vpop.f32.mrb[35].mxu1 }
 0x140   : > { %v1435_v59 = vadd.f32 %v1707_v32, %v1420_v46  ;;  %v1742_v60 = vpack.c.bf16 %v1352_v48, %v1349_v40  ;;  %v1421_v61 = vmul.f32 %v1706_v39, %v1352_v48  ;;  %v1422_v0 = vmul.f32 %v1706_v39, %v1357_v47 }
 0x141   : > { %v1439_v62 = vadd.f32 %v1707_v32, %v1424_v53  ;;  %v1752_v63 = vpack.c.bf16 %v1368_v56, %v1365_v43  ;;  %v1425_v55 = vmul.f32 %v1706_v39, %v1368_v56  ;;  %v1737_v2 = vpack.c.bf16 %v1344_v50, %v1341_v44 }
 0x142   : > { %1774 = vst [vmem:[%s2447_s15 + $0x8] sm:$0xff] %v1742_v60   ;;  %v1436_v1 = vadd.f32 %v1707_v32, %v1421_v61  ;;  %v1433_v3 = vadd.f32 %v1707_v32, %v1418_v54  ;;  %v1419_v4 = vmul.f32 %v1706_v39, %v1344_v50  ;;  %v1443_v6 = vmax.f32 %v1435_v59, 0.0 }
 0x143   : > { %1776 = vst [vmem:[%s2447_s15 + $0x18] sm:$0xff] %v1752_v63   ;;  %v1440_v57 = vadd.f32 %v1707_v32, %v1425_v55  ;;  %1738 = vst [vmem:[%s2447_s15] sm:$0xff] %v1737_v2   ;;  %v1360_v8 = vadd.f32 %v1359_v58, %v1295_v7  ;;  %v1447_v9 = vmax.f32 %v1439_v62, 0.0  ;;  %v1437_v12 = vadd.f32 %v1707_v32, %v1422_v0 }
 0x144   : > { %v1444_v52 = vmax.f32 %v1436_v1, 0.0  ;;  %v1434_v11 = vadd.f32 %v1707_v32, %v1419_v4  ;;  %v1441_v16 = vmax.f32 %v1433_v3, 0.0 }
 0x145   : > { %v1448_v10 = vmax.f32 %v1440_v57, 0.0  ;;  %v1747_v14 = vpack.c.bf16 %v1360_v8, %v1357_v47  ;;  %v1423_v15 = vmul.f32 %v1706_v39, %v1360_v8  ;;  %v1445_v22 = vmax.f32 %v1437_v12, 0.0 }
 0x146   : > { %v1762_v13 = vpack.c.bf16 %v1444_v52, %v1443_v6  ;;  %v1442_v17 = vmax.f32 %v1434_v11, 0.0 }
 0x147   : > { %v1772_v5 = vpack.c.bf16 %v1448_v10, %v1447_v9  ;;  %1775 = vst [vmem:[%s2447_s15 + $0x10] sm:$0xff] %v1747_v14   ;;  %v1438_v18 = vadd.f32 %v1707_v32, %v1423_v15 }
 0x148   : > { %1777 = vst [vmem:[%s243_s20 + $0x8] sm:$0xff] %v1762_v13   ;;  %v1757_v20 = vpack.c.bf16 %v1442_v17, %v1441_v16 }
 0x149   : > { %1779 = vst [vmem:[%s243_s20 + $0x18] sm:$0xff] %v1772_v5   ;;  %v1446_v7 = vmax.f32 %v1438_v18, 0.0 }
 0x14a   : > { %1758 = vst [vmem:[%s243_s20] sm:$0xff] %v1757_v20  }
 0x14b   : > { %v1767_v23 = vpack.c.bf16 %v1446_v7, %v1445_v22 }
 0x14d   : > { %1778 = vst [vmem:[%s243_s20 + $0x10] sm:$0xff] %v1767_v23  }
 0x14e PF: > { %s16_s18 = sadd.s32 1, %s2131_s18  }
 0x14f   : > { %p13_p4 = scmp.ge.s32.totalorder %s16_s18, 4  }
 0x151   :  { %15 = sbr.rel (!%p13_p4) target bundleno = 1 (0x1), region = 78 }

// kernel: _lambda_.16
= control target key start
LH: loop header
LB: loop body
LE: loop exit
PB: predicated region body
PF: predicated region fallthrough
CT: control target
= control target key end

     0   :  { %s2113_s18 = smov 0   ;;  %s2412_s0 = inlined_call_operand.vmem [shape: bf16[128,1152], index: 0, kind: input, shape index: {}]   ;;  %s2413_s1 = inlined_call_operand.vmem [shape: bf16[1152,128], index: 1, kind: input, shape index: {}]   ;;  %s2414_s2 = inlined_call_operand.vmem [shape: f32[1,128], index: 2, kind: input, shape index: {}]   ;;  %s2415_s3 = inlined_call_operand.vmem [shape: f32[1,128], index: 3, kind: input, shape index: {}]   ;;  %s2416_s4 = inlined_call_operand.vmem [shape: bf16[128,128], index: 4, kind: input, shape index: {}]   ;;  %s2417_s5 = inlined_call_operand.vmem [shape: bf16[128,128], index: 5, kind: output, shape index: {}]  }
   0x1 LB: > { %s1549_s19 = sadd.s32 4294967295, %s2081_s18   ;;  %p1553_p0 = scmp.ge.s32.totalorder %s2081_s18, 1  ;;  %s2081_s18 = sphi %s2113_s18, %s15_s18  }
   0x2   : > { %p200_p1 = scmp.lt.s32.totalorder %s2081_s18, 3 }
   0x4   : > { %p201_p2 = pnand %p1553_p0, %p200_p1 }
   0x5   : > { %v1951_v0 = vld [vmem:[%s2413_s1 + $0x40] sm:$0xff] (!%p201_p2)   ;;  %v1955_v4 = vld [vmem:[%s2413_s1 + $0x48] sm:$0xff] (!%p201_p2)   ;;  %v1959_v8 = vld [vmem:[%s2413_s1 + $0x50] sm:$0xff] (!%p201_p2)   ;;  %s1554_s27 = sshll.u32 (!%p201_p2), %s1549_s19, 3 }
   0x6   : > { %204 = sbr.rel (%p201_p2) target bundleno = 333 (0x14d), region = 40  ;;  %v1952_v1 = vld [vmem:[%s2413_s1 + $0xc0] sm:$0xff] (!%p201_p2)   ;;  %1730 = vmatprep.subr.bf16.mxu0 (!%p201_p2), %v1951_v0  ;;  %v1956_v5 = vld [vmem:[%s2413_s1 + $0xc8] sm:$0xff] (!%p201_p2)   ;;  %v1960_v9 = vld [vmem:[%s2413_s1 + $0xd0] sm:$0xff] (!%p201_p2)   ;;  %p235_p3 = scmp.lt.s32.totalorder (!%p201_p2), %s1554_s27, 15 }
   0x7   : > { %v1953_v2 = vld [vmem:[%s2413_s1] sm:$0xff] (!%p201_p2)   ;;  %1770 = vmatprep.subr.bf16.mxu1 (!%p201_p2), %v1952_v1  ;;  %v1957_v6 = vld [vmem:[%s2413_s1 + $0x8] sm:$0xff] (!%p201_p2)   ;;  %v1961_v10 = vld [vmem:[%s2413_s1 + $0x10] sm:$0xff] (!%p201_p2)  }
   0x8   : > { %v1954_v3 = vld [vmem:[%s2413_s1 + $0x80] sm:$0xff] (!%p201_p2)   ;;  %1731 = vmatpush3.bf16.msra.mxu0 (!%p201_p2), %v1953_v2  ;;  %v1958_v7 = vld [vmem:[%s2413_s1 + $0x88] sm:$0xff] (!%p201_p2)   ;;  %v1962_v11 = vld [vmem:[%s2413_s1 + $0x90] sm:$0xff] (!%p201_p2)  }
   0x9   : > { %1771 = vmatpush3.bf16.msra.mxu1 (!%p201_p2), %v1954_v3  ;;  %1732 = vmatprep.subr.bf16.mxu0 (!%p201_p2), %v1955_v4  ;;  %v1963_v12 = vld [vmem:[%s2413_s1 + $0x58] sm:$0xff] (!%p201_p2)   ;;  %v1967_v16 = vld [vmem:[%s2413_s1 + $0x60] sm:$0xff] (!%p201_p2)   ;;  %v1971_v20 = vld [vmem:[%s2413_s1 + $0x68] sm:$0xff] (!%p201_p2)  }
   0xa   : > { %1772 = vmatprep.subr.bf16.mxu1 (!%p201_p2), %v1956_v5  ;;  %v1964_v13 = vld [vmem:[%s2413_s1 + $0xd8] sm:$0xff] (!%p201_p2)   ;;  %v1968_v17 = vld [vmem:[%s2413_s1 + $0xe0] sm:$0xff] (!%p201_p2)   ;;  %v1972_v21 = vld [vmem:[%s2413_s1 + $0xe8] sm:$0xff] (!%p201_p2)  }
   0xb   : > { %v1965_v14 = vld [vmem:[%s2413_s1 + $0x18] sm:$0xff] (!%p201_p2)   ;;  %v1969_v18 = vld [vmem:[%s2413_s1 + $0x20] sm:$0xff] (!%p201_p2)   ;;  %v1973_v22 = vld [vmem:[%s2413_s1 + $0x28] sm:$0xff] (!%p201_p2)  }
   0xc   : > { %1733 = vmatpush3.bf16.msra.mxu0 (!%p201_p2), %v1957_v6  ;;  %v1966_v15 = vld [vmem:[%s2413_s1 + $0x98] sm:$0xff] (!%p201_p2)   ;;  %v1970_v19 = vld [vmem:[%s2413_s1 + $0xa0] sm:$0xff] (!%p201_p2)   ;;  %v1974_v23 = vld [vmem:[%s2413_s1 + $0xa8] sm:$0xff] (!%p201_p2)  }
   0xd   : > { %1773 = vmatpush3.bf16.msra.mxu1 %v1958_v7  ;;  %1734 = vmatprep.subr.bf16.mxu0 %v1959_v8  ;;  %s2419_s27 = smov (!%p235_p3, %s1554_s27), 15  ;;  %v1975_v24 = vld [vmem:[%s2413_s1 + $0x70] sm:$0xff]   ;;  %v1979_v28 = vld [vmem:[%s2413_s1 + $0x78] sm:$0xff]   ;;  %v1989_v36 = vld [vmem:[%s2413_s1 + $0x140] sm:$0xff]  }
   0xe   : > { %1774 = vmatprep.subr.bf16.mxu1 %v1960_v9  ;;  %v1976_v25 = vld [vmem:[%s2413_s1 + $0xf0] sm:$0xff]   ;;  %s1942_s26 = smul.u32 36, %s2419_s27  ;;  %v1980_v29 = vld [vmem:[%s2413_s1 + $0xf8] sm:$0xff]   ;;  %v1990_v37 = vld [vmem:[%s2413_s1 + $0x1c0] sm:$0xff]  }
   0xf   : > { %v1977_v26 = vld [vmem:[%s2413_s1 + $0x30] sm:$0xff]   ;;  %v1981_v30 = vld [vmem:[%s2413_s1 + $0x38] sm:$0xff]   ;;  %v1991_v38 = vld [vmem:[%s2413_s1 + $0x100] sm:$0xff]  }
  0x10   : > { %1735 = vmatpush3.bf16.msra.mxu0 %v1961_v10  ;;  %v1978_v27 = vld [vmem:[%s2413_s1 + $0xb0] sm:$0xff]   ;;  %s2219_s12 = scalar_lea.vmem %s2412_s0, %s1942_s26  ;;  %v1982_v31 = vld [vmem:[%s2413_s1 + $0xb8] sm:$0xff]   ;;  %v1992_v39 = vld [vmem:[%s2413_s1 + $0x180] sm:$0xff]  }
  0x11   : > { %1775 = vmatpush3.bf16.msra.mxu1 %v1962_v11  ;;  %1736 = vmatprep.subr.bf16.mxu0 %v1963_v12  ;;  %v1983_v32 = vld [vmem:[%s2219_s12] ss:$36 sps:$4 sm:$0xff]   ;;  %v1986_v34 = vld [vmem:[%s2219_s12 + $0x8] ss:$36 sps:$4 sm:$0xff]   ;;  %v1999_v45 = vld [vmem:[%s2219_s12 + $0x54] ss:$36 sps:$4 sm:$0xff]  }
  0x12   : > { %1776 = vmatprep.subr.bf16.mxu1 %v1964_v13  ;;  %v1985_v33 = vld [vmem:[%s2219_s12 + $0x4] ss:$36 sps:$4 sm:$0xff]   ;;  %v1988_v35 = vld [vmem:[%s2219_s12 + $0xc] ss:$36 sps:$4 sm:$0xff]   ;;  %v2007_v52 = vld [vmem:[%s2413_s1 + $0x158] sm:$0xff]  }
  0x13   : > { %1086 = vmatprep.mubr.bf16.mxu0 %v1985_v33  ;;  %1151 = vmatprep.mubr.bf16.mxu1 %v1988_v35  ;;  %v1993_v40 = vld [vmem:[%s2413_s1 + $0x148] sm:$0xff]   ;;  %v2002_v47 = vld [vmem:[%s2219_s12 + $0x50] ss:$36 sps:$4 sm:$0xff]   ;;  %v2008_v53 = vld [vmem:[%s2413_s1 + $0x1d8] sm:$0xff]  }
  0x14   : > { %1737 = vmatpush3.bf16.msra.mxu0 %v1965_v14  ;;  %v1994_v41 = vld [vmem:[%s2413_s1 + $0x1c8] sm:$0xff]   ;;  %v2003_v48 = vld [vmem:[%s2413_s1 + $0x150] sm:$0xff]   ;;  %v2009_v54 = vld [vmem:[%s2413_s1 + $0x118] sm:$0xff]  }
  0x15   : > { %1777 = vmatpush3.bf16.msra.mxu1 %v1966_v15  ;;  %1738 = vmatprep.subr.bf16.mxu0 %v1967_v16  ;;  %v1995_v42 = vld [vmem:[%s2413_s1 + $0x108] sm:$0xff]   ;;  %v2004_v49 = vld [vmem:[%s2413_s1 + $0x1d0] sm:$0xff]   ;;  %v2010_v55 = vld [vmem:[%s2413_s1 + $0x198] sm:$0xff]  }
  0x16   : > { %1778 = vmatprep.subr.bf16.mxu1 %v1968_v17  ;;  %v1996_v43 = vld [vmem:[%s2413_s1 + $0x188] sm:$0xff]   ;;  %v2005_v50 = vld [vmem:[%s2413_s1 + $0x110] sm:$0xff]   ;;  %v2013_v57 = vld [vmem:[%s2219_s12 + $0x9c] ss:$36 sps:$4 sm:$0xff]  }
  0x17   : > { %v1997_v44 = vld [vmem:[%s2219_s12 + $0x4c] ss:$36 sps:$4 sm:$0xff]   ;;  %v2011_v56 = vld [vmem:[%s2219_s12 + $0x94] ss:$36 sps:$4 sm:$0xff]   ;;  %v2017_v60 = vld [vmem:[%s2413_s1 + $0x160] sm:$0xff]  }
  0x18   : > { %1739 = vmatpush3.bf16.msra.mxu0 %v1969_v18  ;;  %v2001_v46 = vld [vmem:[%s2219_s12 + $0x48] ss:$36 sps:$4 sm:$0xff]   ;;  %v2006_v51 = vld [vmem:[%s2413_s1 + $0x190] sm:$0xff]   ;;  %v2016_v59 = vld [vmem:[%s2219_s12 + $0x98] ss:$36 sps:$4 sm:$0xff]  }
  0x19   : > { %1779 = vmatpush3.bf16.msra.mxu1 %v1970_v19  ;;  %1740 = vmatprep.subr.bf16.mxu0 %v1971_v20  ;;  %v2015_v58 = vld [vmem:[%s2219_s12 + $0x90] ss:$36 sps:$4 sm:$0xff]   ;;  %v2018_v61 = vld [vmem:[%s2413_s1 + $0x1e0] sm:$0xff]   ;;  %v2021_v0 = vld [vmem:[%s2413_s1 + $0x168] sm:$0xff]  }
  0x1a   : > { %1780 = vmatprep.subr.bf16.mxu1 %v1972_v21  ;;  %v2019_v62 = vld [vmem:[%s2413_s1 + $0x120] sm:$0xff]   ;;  %v2022_v1 = vld [vmem:[%s2413_s1 + $0x1e8] sm:$0xff]   ;;  %v2029_v6 = vld [vmem:[%s2219_s12 + $0xd8] ss:$36 sps:$4 sm:$0xff]  }
  0x1b   : > { %v2020_v63 = vld [vmem:[%s2413_s1 + $0x1a0] sm:$0xff]   ;;  %v2023_v2 = vld [vmem:[%s2413_s1 + $0x128] sm:$0xff]   ;;  %v2031_v8 = vld [vmem:[%s2413_s1 + $0x170] sm:$0xff]  }
  0x1c   : > { %1741 = vmatpush3.bf16.msra.mxu0 %v1973_v22  ;;  %v2024_v3 = vld [vmem:[%s2413_s1 + $0x1a8] sm:$0xff]   ;;  %v2025_v4 = vld [vmem:[%s2219_s12 + $0xdc] ss:$36 sps:$4 sm:$0xff]   ;;  %v2032_v9 = vld [vmem:[%s2413_s1 + $0x1f0] sm:$0xff]  }
  0x1d   : > { %1781 = vmatpush3.bf16.msra.mxu1 %v1974_v23  ;;  %1742 = vmatprep.subr.bf16.mxu0 %v1975_v24  ;;  %v2027_v5 = vld [vmem:[%s2219_s12 + $0xe4] ss:$36 sps:$4 sm:$0xff]   ;;  %v2033_v10 = vld [vmem:[%s2413_s1 + $0x130] sm:$0xff]   ;;  %v2035_v12 = vld [vmem:[%s2413_s1 + $0x178] sm:$0xff]  }
  0x1e   : > { %1782 = vmatprep.subr.bf16.mxu1 %v1976_v25  ;;  %v2030_v7 = vld [vmem:[%s2219_s12 + $0xe0] ss:$36 sps:$4 sm:$0xff]   ;;  %v2034_v11 = vld [vmem:[%s2413_s1 + $0x1b0] sm:$0xff]   ;;  %v2036_v13 = vld [vmem:[%s2413_s1 + $0x1f8] sm:$0xff]  }
  0x1f   : > { %v2037_v14 = vld [vmem:[%s2413_s1 + $0x138] sm:$0xff]   ;;  %v2039_v16 = vld [vmem:[%s2219_s12 + $0x10] ss:$36 sps:$4 sm:$0xff]   ;;  %v2045_v20 = vld [vmem:[%s2413_s1 + $0x200] sm:$0xff]  }
  0x20   : > { %1743 = vmatpush3.bf16.msra.mxu0 %v1977_v26  ;;  %v2038_v15 = vld [vmem:[%s2413_s1 + $0x1b8] sm:$0xff]   ;;  %v2046_v21 = vld [vmem:[%s2413_s1 + $0x208] sm:$0xff]   ;;  %v2052_v25 = vld [vmem:[%s2219_s12 + $0x60] ss:$36 sps:$4 sm:$0xff]  }
  0x21   : > { %1783 = vmatpush3.bf16.msra.mxu1 %v1978_v27  ;;  %1744 = vmatprep.subr.bf16.mxu0 %v1979_v28  ;;  %v2041_v17 = vld [vmem:[%s2219_s12 + $0x14] ss:$36 sps:$4 sm:$0xff]   ;;  %v2044_v19 = vld [vmem:[%s2219_s12 + $0x1c] ss:$36 sps:$4 sm:$0xff]   ;;  %v2049_v23 = vld [vmem:[%s2219_s12 + $0x64] ss:$36 sps:$4 sm:$0xff]  }
  0x22   : > { %1784 = vmatprep.subr.bf16.mxu1 %v1980_v29  ;;  %v2042_v18 = vld [vmem:[%s2219_s12 + $0x18] ss:$36 sps:$4 sm:$0xff]   ;;  %v2053_v26 = vld [vmem:[%s2413_s1 + $0x210] sm:$0xff]   ;;  %v2055_v27 = vld [vmem:[%s2219_s12 + $0xa4] ss:$36 sps:$4 sm:$0xff]  }
  0x23   : > { %v2047_v22 = vld [vmem:[%s2219_s12 + $0x5c] ss:$36 sps:$4 sm:$0xff]   ;;  %v2057_v28 = vld [vmem:[%s2219_s12 + $0xac] ss:$36 sps:$4 sm:$0xff]  }
  0x24   : > { %1745 = vmatpush3.bf16.msra.mxu0 %v1981_v30  ;;  %v2051_v24 = vld [vmem:[%s2219_s12 + $0x58] ss:$36 sps:$4 sm:$0xff]   ;;  %v2059_v30 = vld [vmem:[%s2219_s12 + $0xa0] ss:$36 sps:$4 sm:$0xff]   ;;  %v2063_v33 = vld [vmem:[%s2219_s12 + $0xec] ss:$36 sps:$4 sm:$0xff]  }
  0x25   : > { %1785 = vmatpush3.bf16.msra.mxu1 %v1982_v31  ;;  %1810 = vmatprep.subr.bf16.mxu0 %v1989_v36  ;;  %v2054_v29 = vld [vmem:[%s2413_s1 + $0x218] sm:$0xff]   ;;  %v2060_v31 = vld [vmem:[%s2219_s12 + $0xa8] ss:$36 sps:$4 sm:$0xff]  }
  0x26   : > { %1850 = vmatprep.subr.bf16.mxu1 %v1990_v37  ;;  %v2062_v35 = vld [vmem:[%s2413_s1 + $0x228] sm:$0xff]   ;;  %v2069_v37 = vld [vmem:[%s2413_s1 + $0x230] sm:$0xff]  }
  0x27   : > { %1087 = vmatmul.mubr.bf16.vlgmr.msra.gmra.mrb[0].mxu0 %v1983_v32  ;;  %v2061_v32 = vld [vmem:[%s2413_s1 + $0x220] sm:$0xff]   ;;  %v2067_v36 = vld [vmem:[%s2219_s12 + $0xe8] ss:$36 sps:$4 sm:$0xff]  }
  0x28   : > { %1152 = vmatmul.mubr.bf16.vlgmr.msra.gmra.mrb[0].mxu1 %v1986_v34  ;;  %1811 = vmatpush3.bf16.msra.mxu0 %v1991_v38  ;;  %v2065_v34 = vld [vmem:[%s2219_s12 + $0xf4] ss:$36 sps:$4 sm:$0xff]  }
  0x29   : > { %1851 = vmatpush3.bf16.msra.mxu1 %v1992_v39  ;;  %1812 = vmatprep.subr.bf16.mxu0 %v1993_v40  ;;  %v2068_v38 = vld [vmem:[%s2219_s12 + $0xf0] ss:$36 sps:$4 sm:$0xff]   ;;  %v2071_v39 = vld [vmem:[%s2219_s12 + $0x20] ss:$36 sps:$4 sm:$0xff]  }
  0x2a   : > { %1852 = vmatprep.subr.bf16.mxu1 %v1994_v41  ;;  %1094 = vmatprep.mubr.bf16.mxu0 %v1997_v44  ;;  %v2072_v40 = vld [vmem:[%s2219_s12 + $0xb0] ss:$36 sps:$4 sm:$0xff]   ;;  %v2070_v41 = vld [vmem:[%s2413_s1 + $0x238] sm:$0xff]  }
  0x2b   : > { %1159 = vmatprep.mubr.bf16.mxu1 %v1999_v45 }
  0x2c   : > { %1813 = vmatpush3.bf16.msra.mxu0 %v1995_v42  ;;  %v2073_v42 = vld [vmem:[%s2219_s12 + $0x68] ss:$36 sps:$4 sm:$0xff]  }
  0x2d   : > { %1853 = vmatpush3.bf16.msra.mxu1 %v1996_v43  ;;  %1814 = vmatprep.subr.bf16.mxu0 %v2003_v48  ;;  %v2074_v43 = vld [vmem:[%s2219_s12 + $0xf8] ss:$36 sps:$4 sm:$0xff]   ;;  %s1557_s12 = sshll.u32 %s2419_s27, 2 }
  0x2e   : > { %1854 = vmatprep.subr.bf16.mxu1 %v2004_v49  ;;  %s245_s19 = scalar_lea.vmem %s2416_s4, %s1557_s12  ;;  %s251_s20 = scalar_lea.vmem %s2417_s5, %s1557_s12 }
  0x2f   : > { %1095 = vmatmul.mubr.bf16.gmra.mrb[4].mxu0 %v2001_v46 }
  0x30   : > { %1160 = vmatmul.mubr.bf16.gmra.mrb[4].mxu1 %v2002_v47  ;;  %1815 = vmatpush3.bf16.msra.mxu0 %v2005_v50 }
  0x31   : > { %1855 = vmatpush3.bf16.msra.mxu1 %v2006_v51  ;;  %1816 = vmatprep.subr.bf16.mxu0 %v2007_v52 }
  0x32   : > { %1856 = vmatprep.subr.bf16.mxu1 %v2008_v53  ;;  %1102 = vmatprep.mubr.bf16.mxu0 %v2011_v56 }
  0x33   : > { %1167 = vmatprep.mubr.bf16.mxu1 %v2013_v57 }
  0x34   : > { %1817 = vmatpush3.bf16.msra.mxu0 %v2009_v54 }
  0x35   : > { %1857 = vmatpush3.bf16.msra.mxu1 %v2010_v55  ;;  %1818 = vmatprep.subr.bf16.mxu0 %v2017_v60 }
  0x36   : > { %1858 = vmatprep.subr.bf16.mxu1 %v2018_v61 }
  0x37   : > { %1103 = vmatmul.mubr.bf16.gmra.mrb[8].mxu0 %v2015_v58 }
  0x38   : > { %1168 = vmatmul.mubr.bf16.gmra.mrb[8].mxu1 %v2016_v59  ;;  %1819 = vmatpush3.bf16.msra.mxu0 %v2019_v62 }
  0x39   : > { %1859 = vmatpush3.bf16.msra.mxu1 %v2020_v63  ;;  %1820 = vmatprep.subr.bf16.mxu0 %v2021_v0 }
  0x3a   : > { %1860 = vmatprep.subr.bf16.mxu1 %v2022_v1  ;;  %1110 = vmatprep.mubr.bf16.mxu0 %v2025_v4 }
  0x3b   : > { %1175 = vmatprep.mubr.bf16.mxu1 %v2027_v5 }
  0x3c   : > { %1821 = vmatpush3.bf16.msra.mxu0 %v2023_v2 }
  0x3d   : > { %1861 = vmatpush3.bf16.msra.mxu1 %v2024_v3  ;;  %1822 = vmatprep.subr.bf16.mxu0 %v2031_v8 }
  0x3e   : > { %1862 = vmatprep.subr.bf16.mxu1 %v2032_v9 }
  0x3f   : > { %1111 = vmatmul.mubr.bf16.gmra.mrb[12].mxu0 %v2029_v6 }
  0x40   : > { %1176 = vmatmul.mubr.bf16.gmra.mrb[12].mxu1 %v2030_v7  ;;  %1823 = vmatpush3.bf16.msra.mxu0 %v2033_v10 }
  0x41   : > { %1863 = vmatpush3.bf16.msra.mxu1 %v2034_v11  ;;  %1824 = vmatprep.subr.bf16.mxu0 %v2035_v12 }
  0x42   : > { %1864 = vmatprep.subr.bf16.mxu1 %v2036_v13  ;;  %1216 = vmatprep.mubr.bf16.mxu0 %v2041_v17 }
  0x43   : > { %1281 = vmatprep.mubr.bf16.mxu1 %v2044_v19 }
  0x44   : > { %1825 = vmatpush3.bf16.msra.mxu0 %v2037_v14 }
  0x45   : > { %1865 = vmatpush3.bf16.msra.mxu1 %v2038_v15  ;;  %1902 = vmatprep.subr.bf16.mxu0 %v2045_v20 }
  0x46   : > { %1926 = vmatprep.subr.bf16.mxu1 %v2045_v20 }
  0x47   : > { %1217 = vmatmul.mubr.bf16.vlgmr.msra.gmra.mrb[16].mxu0 %v2039_v16 }
  0x48   : > { %1282 = vmatmul.mubr.bf16.vlgmr.msra.gmra.mrb[16].mxu1 %v2042_v18  ;;  %1903 = vmatpush3.bf16.msra.mxu0 %v2045_v20 }
  0x49   : > { %1934 = vmatpush3.bf16.msra.mxu1 %v2045_v20  ;;  %1904 = vmatprep.subr.bf16.mxu0 %v2046_v21 }
  0x4a   : > { %1927 = vmatprep.subr.bf16.mxu1 %v2046_v21  ;;  %1224 = vmatprep.mubr.bf16.mxu0 %v2047_v22 }
  0x4b   : > { %1289 = vmatprep.mubr.bf16.mxu1 %v2049_v23 }
  0x4c   : > { %1905 = vmatpush3.bf16.msra.mxu0 %v2046_v21 }
  0x4d   : > { %1935 = vmatpush3.bf16.msra.mxu1 %v2046_v21  ;;  %1906 = vmatprep.subr.bf16.mxu0 %v2053_v26 }
  0x4e   : > { %1928 = vmatprep.subr.bf16.mxu1 %v2053_v26 }
  0x4f   : > { %1225 = vmatmul.mubr.bf16.gmra.mrb[20].mxu0 %v2051_v24 }
  0x50   : > { %1290 = vmatmul.mubr.bf16.gmra.mrb[20].mxu1 %v2052_v25  ;;  %1232 = vmatprep.mubr.bf16.mxu0 %v2055_v27 }
  0x51   : > { %1907 = vmatpush3.bf16.msra.mxu0 %v2053_v26  ;;  %1297 = vmatprep.mubr.bf16.mxu1 %v2057_v28 }
  0x52   : > { %1936 = vmatpush3.bf16.msra.mxu1 %v2053_v26  ;;  %1908 = vmatprep.subr.bf16.mxu0 %v2054_v29 }
  0x53   : > { %1929 = vmatprep.subr.bf16.mxu1 %v2054_v29 }
  0x55   : > { %1909 = vmatpush3.bf16.msra.mxu0 %v2054_v29 }
  0x56   : > { %1937 = vmatpush3.bf16.msra.mxu1 %v2054_v29  ;;  %1910 = vmatprep.subr.bf16.mxu0 %v2061_v32 }
  0x57   : > { %1233 = vmatmul.mubr.bf16.gmra.mrb[24].mxu0 %v2059_v30  ;;  %1930 = vmatprep.subr.bf16.mxu1 %v2061_v32 }
  0x58   : > { %1298 = vmatmul.mubr.bf16.gmra.mrb[24].mxu1 %v2060_v31  ;;  %1240 = vmatprep.mubr.bf16.mxu0 %v2063_v33 }
  0x59   : > { %1911 = vmatpush3.bf16.msra.mxu0 %v2061_v32  ;;  %1305 = vmatprep.mubr.bf16.mxu1 %v2065_v34 }
  0x5a   : > { %1938 = vmatpush3.bf16.msra.mxu1 %v2061_v32  ;;  %1912 = vmatprep.subr.bf16.mxu0 %v2062_v35 }
  0x5b   : > { %1931 = vmatprep.subr.bf16.mxu1 %v2062_v35 }
  0x5d   : > { %1913 = vmatpush3.bf16.msra.mxu0 %v2062_v35 }
  0x5e   : > { %1939 = vmatpush3.bf16.msra.mxu1 %v2062_v35  ;;  %1914 = vmatprep.subr.bf16.mxu0 %v2069_v37 }
  0x5f   : > { %1241 = vmatmul.mubr.bf16.gmra.mrb[28].mxu0 %v2067_v36  ;;  %1932 = vmatprep.subr.bf16.mxu1 %v2069_v37 }
  0x60   : > { %1306 = vmatmul.mubr.bf16.gmra.mrb[28].mxu1 %v2068_v38  ;;  %1918 = vmatprep.mubr.bf16.mxu0 %v2071_v39 }
  0x61   : > { %1915 = vmatpush3.bf16.msra.mxu0 %v2069_v37  ;;  %1922 = vmatprep.mubr.bf16.mxu1 %v2072_v40 }
  0x62   : > { %1940 = vmatpush3.bf16.msra.mxu1 %v2069_v37  ;;  %1916 = vmatprep.subr.bf16.mxu0 %v2070_v41 }
  0x63   : > { %1933 = vmatprep.subr.bf16.mxu1 %v2070_v41 }
  0x65   : > { %1917 = vmatpush3.bf16.msra.mxu0 %v2070_v41 }
  0x66   : > { %1941 = vmatpush3.bf16.msra.mxu1 %v2070_v41 }
  0x68   : > { %1919 = vmatmul.mubr.bf16.vlgmr.msra.gmra.mrb[32].mxu0 %v2073_v42 }
  0x69   : > { %1923 = vmatmul.mubr.bf16.vlgmr.msra.gmra.mrb[32].mxu1 %v2074_v43 }
  0xfa   : > { %v1746_v44 = vpop.f32.mrb[0].mxu0 }
  0xfb   : > { %v1786_v45 = vpop.f32.mrb[0].mxu1  ;;  %v1747_v46 = vpop.f32.mrb[1].mxu0 }
  0xfc   : > { %v1748_v47 = vadd.f32 %v1747_v46, %v1746_v44  ;;  %v1787_v48 = vpop.f32.mrb[1].mxu1  ;;  %v1749_v49 = vpop.f32.mrb[2].mxu0 }
  0xfd   : > { %v1788_v50 = vadd.f32 %v1787_v48, %v1786_v45  ;;  %v1789_v51 = vpop.f32.mrb[2].mxu1  ;;  %v1750_v52 = vpop.f32.mrb[3].mxu0 }
  0xfe   : > { %v1751_v53 = vadd.f32 %v1750_v52, %v1749_v49  ;;  %v1790_v54 = vpop.f32.mrb[3].mxu1 }
  0xff   : > { %v1154_v55 = vadd.f32 %v1788_v50, %v1748_v47  ;;  %v1791_v56 = vadd.f32 %v1790_v54, %v1789_v51 }
 0x101   : > { %v1157_v57 = vadd.f32 %v1791_v56, %v1751_v53 }
 0x102   : > { %v1752_v58 = vpop.f32.mrb[4].mxu0 }
 0x103   : > { %v1792_v59 = vpop.f32.mrb[4].mxu1  ;;  %v1753_v60 = vpop.f32.mrb[5].mxu0 }
 0x104   : > { %v1754_v61 = vadd.f32 %v1753_v60, %v1752_v58  ;;  %v1793_v62 = vpop.f32.mrb[5].mxu1  ;;  %v1755_v63 = vpop.f32.mrb[6].mxu0 }
 0x105   : > { %v1794_v0 = vadd.f32 %v1793_v62, %v1792_v59  ;;  %v1795_v1 = vpop.f32.mrb[6].mxu1  ;;  %v1756_v2 = vpop.f32.mrb[7].mxu0 }
 0x106   : > { %v1757_v3 = vadd.f32 %v1756_v2, %v1755_v63  ;;  %v1796_v4 = vpop.f32.mrb[7].mxu1 }
 0x107   : > { %v1162_v5 = vadd.f32 %v1794_v0, %v1754_v61  ;;  %v1797_v6 = vadd.f32 %v1796_v4, %v1795_v1 }
 0x109   : > { %v1165_v7 = vadd.f32 %v1797_v6, %v1757_v3 }
 0x10a   : > { %v1758_v8 = vpop.f32.mrb[8].mxu0 }
 0x10b   : > { %v1798_v9 = vpop.f32.mrb[8].mxu1  ;;  %v1759_v10 = vpop.f32.mrb[9].mxu0 }
 0x10c   : > { %v1760_v11 = vadd.f32 %v1759_v10, %v1758_v8  ;;  %v1799_v12 = vpop.f32.mrb[9].mxu1  ;;  %v1761_v13 = vpop.f32.mrb[10].mxu0 }
 0x10d   : > { %v1800_v14 = vadd.f32 %v1799_v12, %v1798_v9  ;;  %v1801_v15 = vpop.f32.mrb[10].mxu1  ;;  %v1762_v16 = vpop.f32.mrb[11].mxu0 }
 0x10e   : > { %v1763_v17 = vadd.f32 %v1762_v16, %v1761_v13  ;;  %v1802_v18 = vpop.f32.mrb[11].mxu1 }
 0x10f   : > { %v1170_v19 = vadd.f32 %v1800_v14, %v1760_v11  ;;  %v1803_v20 = vadd.f32 %v1802_v18, %v1801_v15 }
 0x111   : > { %v1173_v21 = vadd.f32 %v1803_v20, %v1763_v17 }
 0x112   : > { %v1764_v22 = vpop.f32.mrb[12].mxu0 }
 0x113   : > { %v1804_v23 = vpop.f32.mrb[12].mxu1  ;;  %v1765_v24 = vpop.f32.mrb[13].mxu0 }
 0x114   : > { %v1805_v25 = vpop.f32.mrb[13].mxu1  ;;  %v1766_v26 = vadd.f32 %v1765_v24, %v1764_v22  ;;  %v1767_v28 = vpop.f32.mrb[14].mxu0 }
 0x115   : > { %v1806_v27 = vadd.f32 %v1805_v25, %v1804_v23  ;;  %v1807_v29 = vpop.f32.mrb[14].mxu1  ;;  %v1768_v30 = vpop.f32.mrb[15].mxu0 }
 0x116   : > { %v1808_v31 = vpop.f32.mrb[15].mxu1  ;;  %v1769_v33 = vadd.f32 %v1768_v30, %v1767_v28 }
 0x117   : > { %v1178_v32 = vadd.f32 %v1806_v27, %v1766_v26  ;;  %v1809_v34 = vadd.f32 %v1808_v31, %v1807_v29 }
 0x119   : > { %v2383_v35 = vadd.f32 %v1809_v34, %v1769_v33 }
 0x11a   : > { %v1826_v36 = vpop.f32.mrb[16].mxu0 }
 0x11b   : > { %v1827_v37 = vpop.f32.mrb[17].mxu0  ;;  %v1866_v38 = vpop.f32.mrb[16].mxu1 }
 0x11c   : > { %v1828_v39 = vadd.f32 %v1827_v37, %v1826_v36  ;;  %v1829_v40 = vpop.f32.mrb[18].mxu0  ;;  %v1867_v41 = vpop.f32.mrb[17].mxu1  ;;  %v1724_v37 = vld [vmem:[%s245_s19 + $0x8] sm:$0xff]  }
 0x11d   : > { %v1830_v42 = vpop.f32.mrb[19].mxu0  ;;  %v1868_v44 = vadd.f32 %v1867_v41, %v1866_v38  ;;  %v1869_v45 = vpop.f32.mrb[18].mxu1  ;;  %v1726_v38 = vld [vmem:[%s245_s19 + $0x18] sm:$0xff]  }
 0x11e   : > { %v1219_v43 = vadd.f32 %v1828_v39, %v1154_v55  ;;  %v1831_v46 = vadd.f32 %v1830_v42, %v1829_v40  ;;  %v1870_v47 = vpop.f32.mrb[19].mxu1  ;;  %v1689_v39 = vld [vmem:[%s245_s19] sm:$0xff]   ;;  %v1725_v40 = vld [vmem:[%s245_s19 + $0x10] sm:$0xff]  }
 0x11f   : > { %v1871_v49 = vadd.f32 %v1870_v47, %v1869_v45 }
 0x120   : > { %v1222_v48 = vadd.f32 %v1831_v46, %v1157_v57  ;;  %v2385_v50 = vadd.f32 %v1868_v44, %v1219_v43  ;;  %v1694_v43 = vunpack.c.l.bf16 %v1724_v37  ;;  %v1702_v44 = vunpack.c.l.bf16 %v1726_v38 }
 0x122   : > { %v1832_v51 = vpop.f32.mrb[20].mxu0  ;;  %v2387_v52 = vadd.f32 %v1871_v49, %v1222_v48  ;;  %v1690_v48 = vunpack.c.l.bf16 %v1689_v39  ;;  %v1698_v49 = vunpack.c.l.bf16 %v1725_v40 }
 0x123   : > { %v1833_v53 = vpop.f32.mrb[21].mxu0  ;;  %v1872_v54 = vpop.f32.mrb[20].mxu1 }
 0x124   : > { %v1834_v56 = vadd.f32 %v1833_v53, %v1832_v51  ;;  %v1835_v58 = vpop.f32.mrb[22].mxu0  ;;  %v1873_v59 = vpop.f32.mrb[21].mxu1  ;;  %v1669_v51 = vld [vmem:[%s2415_s3] ss:$0 sm:$0xff] }
 0x125   : > { %v1836_v60 = vpop.f32.mrb[23].mxu0  ;;  %v1874_v62 = vadd.f32 %v1873_v59, %v1872_v54  ;;  %v1875_v55 = vpop.f32.mrb[22].mxu1  ;;  %v1703_v59 = vunpack.c.h.bf16 %v1726_v38 }
 0x126   : > { %v1227_v61 = vadd.f32 %v1834_v56, %v1162_v5  ;;  %v1837_v63 = vadd.f32 %v1836_v60, %v1835_v58  ;;  %v1876_v0 = vpop.f32.mrb[23].mxu1  ;;  %v1691_v60 = vunpack.c.h.bf16 %v1689_v39 }
 0x127   : > { %v1877_v2 = vadd.f32 %v1876_v0, %v1875_v55 }
 0x128   : > { %v1230_v1 = vadd.f32 %v1837_v63, %v1165_v7  ;;  %v1292_v57 = vadd.f32 %v1874_v62, %v1227_v61 }
 0x12a   : > { %v1838_v3 = vpop.f32.mrb[24].mxu0  ;;  %v1295_v4 = vadd.f32 %v1877_v2, %v1230_v1  ;;  %v1699_v1 = vunpack.c.h.bf16 %v1725_v40 }
 0x12b   : > { %v1839_v6 = vpop.f32.mrb[25].mxu0  ;;  %v1878_v8 = vpop.f32.mrb[24].mxu1 }
 0x12c   : > { %v1840_v9 = vadd.f32 %v1839_v6, %v1838_v3  ;;  %v1841_v10 = vpop.f32.mrb[26].mxu0  ;;  %v1879_v11 = vpop.f32.mrb[25].mxu1 }
 0x12d   : > { %v1842_v12 = vpop.f32.mrb[27].mxu0  ;;  %v1880_v14 = vadd.f32 %v1879_v11, %v1878_v8  ;;  %v1881_v15 = vpop.f32.mrb[26].mxu1 }
 0x12e   : > { %v1235_v13 = vadd.f32 %v1840_v9, %v1170_v19  ;;  %v1843_v5 = vadd.f32 %v1842_v12, %v1841_v10  ;;  %v1882_v16 = vpop.f32.mrb[27].mxu1 }
 0x12f   : > { %v1883_v18 = vadd.f32 %v1882_v16, %v1881_v15 }
 0x130   : > { %v1238_v17 = vadd.f32 %v1843_v5, %v1173_v21  ;;  %v1300_v7 = vadd.f32 %v1880_v14, %v1235_v13 }
 0x132   : > { %v1844_v20 = vpop.f32.mrb[28].mxu0  ;;  %v1303_v22 = vadd.f32 %v1883_v18, %v1238_v17 }
 0x133   : > { %v1845_v23 = vpop.f32.mrb[29].mxu0  ;;  %v1884_v24 = vpop.f32.mrb[28].mxu1 }
 0x134   : > { %v1846_v25 = vadd.f32 %v1845_v23, %v1844_v20  ;;  %v1847_v26 = vpop.f32.mrb[30].mxu0  ;;  %v1885_v27 = vpop.f32.mrb[29].mxu1 }
 0x135   : > { %v1848_v28 = vpop.f32.mrb[31].mxu0  ;;  %v1886_v30 = vadd.f32 %v1885_v27, %v1884_v24  ;;  %v1887_v19 = vpop.f32.mrb[30].mxu1 }
 0x136   : > { %v1243_v29 = vadd.f32 %v1846_v25, %v1178_v32  ;;  %v1849_v31 = vadd.f32 %v1848_v28, %v1847_v26  ;;  %v1888_v21 = vpop.f32.mrb[31].mxu1  ;;  %v1668_v32 = vld [vmem:[%s2414_s2] ss:$0 sm:$0xff] }
 0x137   : > { %v1889_v34 = vadd.f32 %v1888_v21, %v1887_v19 }
 0x138   : > { %v1246_v33 = vadd.f32 %v1849_v31, %v2383_v35  ;;  %v1308_v36 = vadd.f32 %v1886_v30, %v1243_v29  ;;  %v1695_v35 = vunpack.c.h.bf16 %v1724_v37 }
 0x13a   : > { %v1311_v41 = vadd.f32 %v1889_v34, %v1246_v33 }
 0x13b   : > { %v1920_v42 = vpop.f32.mrb[32].mxu0 }
 0x13c   : > { %v1357_v45 = vadd.f32 %v1920_v42, %v1292_v57  ;;  %v1924_v46 = vpop.f32.mrb[32].mxu1  ;;  %v1348_v47 = vpop.f32.mrb[33].mxu0 }
 0x13d   : > { %v1373_v53 = vadd.f32 %v1924_v46, %v1308_v36  ;;  %v1349_v54 = vadd.f32 %v1348_v47, %v2385_v50  ;;  %v1364_v56 = vpop.f32.mrb[33].mxu1  ;;  %v1921_v58 = vpop.f32.mrb[34].mxu0 }
 0x13e   : > { %v1388_v61 = vmul.f32 %v1668_v32, %v1357_v45  ;;  %v1365_v62 = vadd.f32 %v1364_v56, %v1300_v7  ;;  %v1360_v55 = vadd.f32 %v1921_v58, %v1295_v4  ;;  %v1925_v63 = vpop.f32.mrb[34].mxu1  ;;  %v1351_v0 = vpop.f32.mrb[35].mxu0 }
 0x13f   : > { %v1392_v2 = vmul.f32 %v1668_v32, %v1373_v53  ;;  %v1386_v57 = vmul.f32 %v1668_v32, %v1349_v54  ;;  %v1376_v3 = vadd.f32 %v1925_v63, %v1311_v41  ;;  %v1352_v6 = vadd.f32 %v1351_v0, %v2387_v52  ;;  %v1367_v8 = vpop.f32.mrb[35].mxu1 }
 0x140   : > { %v1403_v9 = vadd.f32 %v1669_v51, %v1388_v61  ;;  %v1390_v10 = vmul.f32 %v1668_v32, %v1365_v62  ;;  %v1389_v11 = vmul.f32 %v1668_v32, %v1360_v55  ;;  %v1368_v50 = vadd.f32 %v1367_v8, %v1303_v22 }
 0x141   : > { %v1407_v12 = vadd.f32 %v1669_v51, %v1392_v2  ;;  %v1401_v13 = vadd.f32 %v1669_v51, %v1386_v57  ;;  %v1393_v14 = vmul.f32 %v1668_v32, %v1376_v3  ;;  %v1387_v15 = vmul.f32 %v1668_v32, %v1352_v6 }
 0x142   : > { %v1427_v5 = vadd.f32 %v1694_v43, %v1403_v9  ;;  %v1405_v16 = vadd.f32 %v1669_v51, %v1390_v10  ;;  %v1404_v4 = vadd.f32 %v1669_v51, %v1389_v11  ;;  %v1391_v17 = vmul.f32 %v1668_v32, %v1368_v50 }
 0x143   : > { %v1431_v18 = vadd.f32 %v1702_v44, %v1407_v12  ;;  %v1425_v7 = vadd.f32 %v1690_v48, %v1401_v13  ;;  %v1408_v20 = vadd.f32 %v1669_v51, %v1393_v14  ;;  %v1402_v23 = vadd.f32 %v1669_v51, %v1387_v15 }
 0x144   : > { %v1429_v24 = vadd.f32 %v1698_v49, %v1405_v16  ;;  %v1428_v52 = vadd.f32 %v1695_v35, %v1404_v4  ;;  %v1406_v25 = vadd.f32 %v1669_v51, %v1391_v17  ;;  %v1435_v28 = vmax.f32 %v1427_v5, 0.0 }
 0x145   : > { %v1432_v26 = vadd.f32 %v1703_v59, %v1408_v20  ;;  %v1426_v27 = vadd.f32 %v1691_v60, %v1402_v23  ;;  %v1439_v30 = vmax.f32 %v1431_v18, 0.0  ;;  %v1433_v19 = vmax.f32 %v1425_v7, 0.0 }
 0x146   : > { %v1436_v22 = vmax.f32 %v1428_v52, 0.0  ;;  %v1430_v29 = vadd.f32 %v1699_v1, %v1406_v25  ;;  %v1437_v33 = vmax.f32 %v1429_v24, 0.0 }
 0x147   : > { %v1440_v31 = vmax.f32 %v1432_v26, 0.0  ;;  %v1434_v21 = vmax.f32 %v1426_v27, 0.0 }
 0x148   : > { %v1712_v34 = vpack.c.bf16 %v1436_v22, %v1435_v28  ;;  %v1438_v36 = vmax.f32 %v1430_v29, 0.0 }
 0x149   : > { %v1722_v37 = vpack.c.bf16 %v1440_v31, %v1439_v30  ;;  %v1707_v38 = vpack.c.bf16 %v1434_v21, %v1433_v19 }
 0x14a   : > { %1727 = vst [vmem:[%s251_s20 + $0x8] sm:$0xff] %v1712_v34   ;;  %v1717_v39 = vpack.c.bf16 %v1438_v36, %v1437_v33 }
 0x14b   : > { %1729 = vst [vmem:[%s251_s20 + $0x18] sm:$0xff] %v1722_v37   ;;  %1708 = vst [vmem:[%s251_s20] sm:$0xff] %v1707_v38  }
 0x14c   : > { %1728 = vst [vmem:[%s251_s20 + $0x10] sm:$0xff] %v1717_v39  }
 0x14d PF: > { %s15_s18 = sadd.s32 1, %s2081_s18  }
 0x14e   : > { %p12_p4 = scmp.ge.s32.totalorder %s15_s18, 4  }
 0x150   :  { %14 = sbr.rel (!%p12_p4) target bundleno = 1 (0x1), region = 73 }

// kernel: _lambda_.17
= control target key start
LH: loop header
LB: loop body
LE: loop exit
PB: predicated region body
PF: predicated region fallthrough
CT: control target
= control target key end

     0   :  { %s1946_s30 = smov 0   ;;  %s2238_s0 = inlined_call_operand.vmem [shape: bf16[32,1152], index: 0, kind: input, shape index: {}]   ;;  %s2239_s1 = inlined_call_operand.vmem [shape: bf16[1152,128], index: 1, kind: input, shape index: {}]   ;;  %s2240_s2 = inlined_call_operand.vmem [shape: bf16[128,128], index: 2, kind: input, shape index: {}]   ;;  %s2241_s3 = inlined_call_operand.vmem [shape: f32[1,128], index: 3, kind: input, shape index: {}]   ;;  %s2242_s4 = inlined_call_operand.vmem [shape: f32[1,128], index: 4, kind: input, shape index: {}]   ;;  %s2243_s5 = inlined_call_operand.vmem [shape: f32[1,128], index: 5, kind: input, shape index: {}]   ;;  %s2244_s6 = inlined_call_operand.vmem [shape: f32[1,128], index: 6, kind: input, shape index: {}]   ;;  %s2245_s7 = inlined_call_operand.vmem [shape: bf16[32,128], index: 7, kind: output, shape index: {0}]   ;;  %s2246_s8 = inlined_call_operand.vmem [shape: bf16[32,128], index: 8, kind: output, shape index: {1}]   ;;  %s2247_s9 = inlined_call_operand.vmem [shape: bf16[32,128], index: 9, kind: output, shape index: {2}]  }
   0x1 LB: > { %s1501_s10 = sadd.s32 4294967295, %s1892_s30   ;;  %p1505_p0 = scmp.ge.s32.totalorder %s1892_s30, 1  ;;  %s1892_s30 = sphi %s1946_s30, %s20_s30  }
   0x2   : > { %p294_p1 = scmp.lt.s32.totalorder %s1892_s30, 3 }
   0x4   : > { %p295_p2 = pnand %p1505_p0, %p294_p1 }
   0x5   : > { %v1793_v0 = vld [vmem:[%s2239_s1 + $0x40] sm:$0xff] (!%p295_p2)   ;;  %v1797_v4 = vld [vmem:[%s2239_s1 + $0x48] sm:$0xff] (!%p295_p2)   ;;  %v1801_v8 = vld [vmem:[%s2239_s1 + $0x50] sm:$0xff] (!%p295_p2)   ;;  %s1506_s22 = sshll.u32 (!%p295_p2), %s1501_s10, 1  ;;  %vm1895_vm0 = vmmov (!%p295_p2), 0  }
   0x6   : > { %298 = sbr.rel (%p295_p2) target bundleno = 329 (0x149), region = 48  ;;  %v1794_v1 = vld [vmem:[%s2239_s1 + $0xc0] sm:$0xff] (!%p295_p2)   ;;  %1636 = vmatprep.subr.bf16.mxu0 (!%p295_p2), %v1793_v0  ;;  %v1798_v5 = vld [vmem:[%s2239_s1 + $0xc8] sm:$0xff] (!%p295_p2)   ;;  %v1802_v9 = vld [vmem:[%s2239_s1 + $0xd0] sm:$0xff] (!%p295_p2)   ;;  %p342_p3 = scmp.lt.s32.totalorder (!%p295_p2), %s1506_s22, 3 }
   0x7   : > { %v1795_v2 = vld [vmem:[%s2239_s1] sm:$0xff] (!%p295_p2)   ;;  %1658 = vmatprep.subr.bf16.mxu1 (!%p295_p2), %v1794_v1  ;;  %v1799_v6 = vld [vmem:[%s2239_s1 + $0x8] sm:$0xff] (!%p295_p2)   ;;  %v1803_v10 = vld [vmem:[%s2239_s1 + $0x10] sm:$0xff] (!%p295_p2)  }
   0x8   : > { %v1796_v3 = vld [vmem:[%s2239_s1 + $0x80] sm:$0xff] (!%p295_p2)   ;;  %1637 = vmatpush3.bf16.msra.mxu0 (!%p295_p2), %v1795_v2  ;;  %v1800_v7 = vld [vmem:[%s2239_s1 + $0x88] sm:$0xff] (!%p295_p2)   ;;  %v1804_v11 = vld [vmem:[%s2239_s1 + $0x90] sm:$0xff] (!%p295_p2)  }
   0x9   : > { %1659 = vmatpush3.bf16.msra.mxu1 (!%p295_p2), %v1796_v3  ;;  %1638 = vmatprep.subr.bf16.mxu0 (!%p295_p2), %v1797_v4  ;;  %v1805_v12 = vld [vmem:[%s2239_s1 + $0x58] sm:$0xff] (!%p295_p2)   ;;  %v1809_v16 = vld [vmem:[%s2239_s1 + $0x60] sm:$0xff] (!%p295_p2)   ;;  %v1813_v20 = vld [vmem:[%s2239_s1 + $0x68] sm:$0xff] (!%p295_p2)  }
   0xa   : > { %1660 = vmatprep.subr.bf16.mxu1 (!%p295_p2), %v1798_v5  ;;  %v1806_v13 = vld [vmem:[%s2239_s1 + $0xd8] sm:$0xff] (!%p295_p2)   ;;  %v1810_v17 = vld [vmem:[%s2239_s1 + $0xe0] sm:$0xff] (!%p295_p2)   ;;  %v1814_v21 = vld [vmem:[%s2239_s1 + $0xe8] sm:$0xff] (!%p295_p2)  }
   0xb   : > { %v1807_v14 = vld [vmem:[%s2239_s1 + $0x18] sm:$0xff] (!%p295_p2)   ;;  %v1811_v18 = vld [vmem:[%s2239_s1 + $0x20] sm:$0xff] (!%p295_p2)   ;;  %v1815_v22 = vld [vmem:[%s2239_s1 + $0x28] sm:$0xff] (!%p295_p2)  }
   0xc   : > { %1639 = vmatpush3.bf16.msra.mxu0 (!%p295_p2), %v1799_v6  ;;  %v1808_v15 = vld [vmem:[%s2239_s1 + $0x98] sm:$0xff] (!%p295_p2)   ;;  %v1812_v19 = vld [vmem:[%s2239_s1 + $0xa0] sm:$0xff] (!%p295_p2)   ;;  %v1816_v23 = vld [vmem:[%s2239_s1 + $0xa8] sm:$0xff] (!%p295_p2)   ;;  %v1894_v6 = vmov (!%p295_p2), 0.0  }
   0xd   : > { %1661 = vmatpush3.bf16.msra.mxu1 %v1800_v7  ;;  %1640 = vmatprep.subr.bf16.mxu0 %v1801_v8  ;;  %s2249_s22 = smov (!%p342_p3, %s1506_s22), 3  ;;  %v1817_v24 = vld [vmem:[%s2239_s1 + $0x70] sm:$0xff]   ;;  %v1821_v28 = vld [vmem:[%s2239_s1 + $0x78] sm:$0xff]   ;;  %v1831_v36 = vld [vmem:[%s2239_s1 + $0x140] sm:$0xff]  }
   0xe   : > { %1662 = vmatprep.subr.bf16.mxu1 %v1802_v9  ;;  %v1818_v25 = vld [vmem:[%s2239_s1 + $0xf0] sm:$0xff]   ;;  %s1782_s26 = smul.u32 36, %s2249_s22  ;;  %v1822_v29 = vld [vmem:[%s2239_s1 + $0xf8] sm:$0xff]   ;;  %v1832_v37 = vld [vmem:[%s2239_s1 + $0x100] sm:$0xff]   ;;  %s1509_s14 = sshll.u32 %s2249_s22, 2 }
   0xf   : > { %v1819_v26 = vld [vmem:[%s2239_s1 + $0x30] sm:$0xff]   ;;  %v1823_v30 = vld [vmem:[%s2239_s1 + $0x38] sm:$0xff]   ;;  %v1833_v38 = vld [vmem:[%s2239_s1 + $0x1c0] sm:$0xff]   ;;  %s352_s20 = scalar_lea.vmem %s2245_s7, %s1509_s14  ;;  %s364_s23 = scalar_lea.vmem %s2247_s9, %s1509_s14 }
  0x10   : > { %1641 = vmatpush3.bf16.msra.mxu0 %v1803_v10  ;;  %v1820_v27 = vld [vmem:[%s2239_s1 + $0xb0] sm:$0xff]   ;;  %s2052_s17 = scalar_lea.vmem %s2238_s0, %s1782_s26  ;;  %v1824_v31 = vld [vmem:[%s2239_s1 + $0xb8] sm:$0xff]   ;;  %v1834_v39 = vld [vmem:[%s2239_s1 + $0x180] sm:$0xff]   ;;  %s358_s26 = scalar_lea.vmem %s2246_s8, %s1509_s14 }
  0x11   : > { %1663 = vmatpush3.bf16.msra.mxu1 %v1804_v11  ;;  %1642 = vmatprep.subr.bf16.mxu0 %v1805_v12  ;;  %v1825_v32 = vld [vmem:[%s2052_s17] ss:$36 sps:$4 sm:$0xff]   ;;  %v1828_v34 = vld [vmem:[%s2052_s17 + $0x8] ss:$36 sps:$4 sm:$0xff]   ;;  %v1839_v44 = vld [vmem:[%s2239_s1 + $0x150] sm:$0xff]  }
  0x12   : > { %1664 = vmatprep.subr.bf16.mxu1 %v1806_v13  ;;  %v1827_v33 = vld [vmem:[%s2052_s17 + $0x4] ss:$36 sps:$4 sm:$0xff]   ;;  %v1830_v35 = vld [vmem:[%s2052_s17 + $0xc] ss:$36 sps:$4 sm:$0xff]   ;;  %v1843_v48 = vld [vmem:[%s2239_s1 + $0x158] sm:$0xff]  }
  0x13   : > { %1031 = vmatprep.mubr.bf16.mxu0 %v1827_v33  ;;  %1072 = vmatprep.mubr.bf16.mxu1 %v1830_v35  ;;  %v1835_v40 = vld [vmem:[%s2239_s1 + $0x148] sm:$0xff]   ;;  %v1840_v45 = vld [vmem:[%s2239_s1 + $0x110] sm:$0xff]   ;;  %v1844_v49 = vld [vmem:[%s2239_s1 + $0x118] sm:$0xff]  }
  0x14   : > { %1643 = vmatpush3.bf16.msra.mxu0 %v1807_v14  ;;  %v1836_v41 = vld [vmem:[%s2239_s1 + $0x108] sm:$0xff]   ;;  %v1841_v46 = vld [vmem:[%s2239_s1 + $0x1d0] sm:$0xff]   ;;  %v1845_v50 = vld [vmem:[%s2239_s1 + $0x1d8] sm:$0xff]  }
  0x15   : > { %1665 = vmatpush3.bf16.msra.mxu1 %v1808_v15  ;;  %1644 = vmatprep.subr.bf16.mxu0 %v1809_v16  ;;  %v1837_v42 = vld [vmem:[%s2239_s1 + $0x1c8] sm:$0xff]   ;;  %v1842_v47 = vld [vmem:[%s2239_s1 + $0x190] sm:$0xff]   ;;  %v1846_v51 = vld [vmem:[%s2239_s1 + $0x198] sm:$0xff]  }
  0x16   : > { %1666 = vmatprep.subr.bf16.mxu1 %v1810_v17  ;;  %v1838_v43 = vld [vmem:[%s2239_s1 + $0x188] sm:$0xff]   ;;  %v1847_v52 = vld [vmem:[%s2239_s1 + $0x160] sm:$0xff]   ;;  %v1855_v60 = vld [vmem:[%s2239_s1 + $0x170] sm:$0xff]  }
  0x17   : > { %v1848_v53 = vld [vmem:[%s2239_s1 + $0x120] sm:$0xff]   ;;  %v1851_v56 = vld [vmem:[%s2239_s1 + $0x168] sm:$0xff]   ;;  %v1856_v61 = vld [vmem:[%s2239_s1 + $0x130] sm:$0xff]  }
  0x18   : > { %1645 = vmatpush3.bf16.msra.mxu0 %v1811_v18  ;;  %v1849_v54 = vld [vmem:[%s2239_s1 + $0x1e0] sm:$0xff]   ;;  %v1852_v57 = vld [vmem:[%s2239_s1 + $0x128] sm:$0xff]   ;;  %v1857_v62 = vld [vmem:[%s2239_s1 + $0x1f0] sm:$0xff]  }
  0x19   : > { %1667 = vmatpush3.bf16.msra.mxu1 %v1812_v19  ;;  %1646 = vmatprep.subr.bf16.mxu0 %v1813_v20  ;;  %v1850_v55 = vld [vmem:[%s2239_s1 + $0x1a0] sm:$0xff]   ;;  %v1853_v58 = vld [vmem:[%s2239_s1 + $0x1e8] sm:$0xff]   ;;  %v1858_v63 = vld [vmem:[%s2239_s1 + $0x1b0] sm:$0xff]  }
  0x1a   : > { %1668 = vmatprep.subr.bf16.mxu1 %v1814_v21  ;;  %v1854_v59 = vld [vmem:[%s2239_s1 + $0x1a8] sm:$0xff]   ;;  %v1859_v0 = vld [vmem:[%s2239_s1 + $0x178] sm:$0xff]   ;;  %v1863_v4 = vld [vmem:[%s2052_s17 + $0x10] ss:$36 sps:$4 sm:$0xff]  }
  0x1b   : > { %v1860_v1 = vld [vmem:[%s2239_s1 + $0x138] sm:$0xff]   ;;  %v1869_v9 = vld [vmem:[%s2239_s1 + $0x200] sm:$0xff]   ;;  %v1871_v11 = vld [vmem:[%s2239_s1 + $0x208] sm:$0xff]  }
  0x1c   : > { %1647 = vmatpush3.bf16.msra.mxu0 %v1815_v22  ;;  %v1861_v2 = vld [vmem:[%s2239_s1 + $0x1f8] sm:$0xff]   ;;  %v1870_v10 = vld [vmem:[%s2240_s2] sm:$0xff]   ;;  %v1872_v12 = vld [vmem:[%s2240_s2 + $0x8] sm:$0xff]  }
  0x1d   : > { %1669 = vmatpush3.bf16.msra.mxu1 %v1816_v23  ;;  %1648 = vmatprep.subr.bf16.mxu0 %v1817_v24  ;;  %v1862_v3 = vld [vmem:[%s2239_s1 + $0x1b8] sm:$0xff]   ;;  %v1873_v13 = vld [vmem:[%s2239_s1 + $0x210] sm:$0xff]   ;;  %v1877_v17 = vld [vmem:[%s2239_s1 + $0x220] sm:$0xff]  }
  0x1e   : > { %1670 = vmatprep.subr.bf16.mxu1 %v1818_v25  ;;  %v1865_v5 = vld [vmem:[%s2052_s17 + $0x14] ss:$36 sps:$4 sm:$0xff]   ;;  %v1868_v8 = vld [vmem:[%s2052_s17 + $0x1c] ss:$36 sps:$4 sm:$0xff]   ;;  %v1879_v19 = vld [vmem:[%s2239_s1 + $0x228] sm:$0xff]  }
  0x1f   : > { %v1866_v7 = vld [vmem:[%s2052_s17 + $0x18] ss:$36 sps:$4 sm:$0xff]   ;;  %v1874_v14 = vld [vmem:[%s2240_s2 + $0x10] sm:$0xff]   ;;  %v1878_v18 = vld [vmem:[%s2240_s2 + $0x20] sm:$0xff]  }
  0x20   : > { %1649 = vmatpush3.bf16.msra.mxu0 %v1819_v26  ;;  %v1875_v15 = vld [vmem:[%s2239_s1 + $0x218] sm:$0xff]   ;;  %v1880_v20 = vld [vmem:[%s2240_s2 + $0x28] sm:$0xff]   ;;  %v1881_v21 = vld [vmem:[%s2239_s1 + $0x230] sm:$0xff]  }
  0x21   : > { %1671 = vmatpush3.bf16.msra.mxu1 %v1820_v27  ;;  %1650 = vmatprep.subr.bf16.mxu0 %v1821_v28  ;;  %v1876_v16 = vld [vmem:[%s2240_s2 + $0x18] sm:$0xff]   ;;  %v1882_v22 = vld [vmem:[%s2240_s2 + $0x30] sm:$0xff]   ;;  %v1885_v25 = vld [vmem:[%s2052_s17 + $0x20] ss:$36 sps:$4 sm:$0xff]  }
  0x22   : > { %1672 = vmatprep.subr.bf16.mxu1 %v1822_v29  ;;  %v1883_v23 = vld [vmem:[%s2239_s1 + $0x238] sm:$0xff]  }
  0x23   : > { %v1884_v24 = vld [vmem:[%s2240_s2 + $0x38] sm:$0xff]  }
  0x24   : > { %1651 = vmatpush3.bf16.msra.mxu0 %v1823_v30 }
  0x25   : > { %1673 = vmatpush3.bf16.msra.mxu1 %v1824_v31  ;;  %1680 = vmatprep.subr.bf16.mxu0 %v1831_v36 }
  0x26   : > { %1702 = vmatprep.subr.bf16.mxu1 %v1833_v38 }
  0x27   : > { %1032 = vmatmul.mubr.bf16.vlgmr.msra.gmra.mrb[0].mxu0 %v1825_v32 }
  0x28   : > { %1073 = vmatmul.mubr.bf16.vlgmr.msra.gmra.mrb[0].mxu1 %v1828_v34  ;;  %1681 = vmatpush3.bf16.msra.mxu0 %v1832_v37 }
  0x29   : > { %1703 = vmatpush3.bf16.msra.mxu1 %v1834_v39  ;;  %1682 = vmatprep.subr.bf16.mxu0 %v1835_v40 }
  0x2a   : > { %1704 = vmatprep.subr.bf16.mxu1 %v1837_v42  ;;  %1113 = vmatprep.mubr.bf16.mxu0 %v1865_v5 }
  0x2b   : > { %1154 = vmatprep.mubr.bf16.mxu1 %v1868_v8 }
  0x2c   : > { %1683 = vmatpush3.bf16.msra.mxu0 %v1836_v41 }
  0x2d   : > { %1705 = vmatpush3.bf16.msra.mxu1 %v1838_v43  ;;  %1684 = vmatprep.subr.bf16.mxu0 %v1839_v44 }
  0x2e   : > { %1706 = vmatprep.subr.bf16.mxu1 %v1841_v46 }
  0x30   : > { %1685 = vmatpush3.bf16.msra.mxu0 %v1840_v45 }
  0x31   : > { %1707 = vmatpush3.bf16.msra.mxu1 %v1842_v47  ;;  %1686 = vmatprep.subr.bf16.mxu0 %v1843_v48 }
  0x32   : > { %1708 = vmatprep.subr.bf16.mxu1 %v1845_v50 }
  0x34   : > { %1687 = vmatpush3.bf16.msra.mxu0 %v1844_v49 }
  0x35   : > { %1709 = vmatpush3.bf16.msra.mxu1 %v1846_v51  ;;  %1688 = vmatprep.subr.bf16.mxu0 %v1847_v52 }
  0x36   : > { %1710 = vmatprep.subr.bf16.mxu1 %v1849_v54 }
  0x38   : > { %1689 = vmatpush3.bf16.msra.mxu0 %v1848_v53 }
  0x39   : > { %1711 = vmatpush3.bf16.msra.mxu1 %v1850_v55  ;;  %1690 = vmatprep.subr.bf16.mxu0 %v1851_v56  ;;  %v1609_v56 = vld [vmem:[%s2243_s5] ss:$0 sm:$0xff] }
  0x3a   : > { %1712 = vmatprep.subr.bf16.mxu1 %v1853_v58  ;;  %v1597_v58 = vld [vmem:[%s2241_s3] ss:$0 sm:$0xff] }
  0x3c   : > { %1691 = vmatpush3.bf16.msra.mxu0 %v1852_v57 }
  0x3d   : > { %1713 = vmatpush3.bf16.msra.mxu1 %v1854_v59  ;;  %1692 = vmatprep.subr.bf16.mxu0 %v1855_v60 }
  0x3e   : > { %1714 = vmatprep.subr.bf16.mxu1 %v1857_v62  ;;  %v1610_v62 = vld [vmem:[%s2244_s6] ss:$0 sm:$0xff] }
  0x40   : > { %1693 = vmatpush3.bf16.msra.mxu0 %v1856_v61 }
  0x41   : > { %1715 = vmatpush3.bf16.msra.mxu1 %v1858_v63  ;;  %1694 = vmatprep.subr.bf16.mxu0 %v1859_v0  ;;  %v1598_v63 = vld [vmem:[%s2242_s4] ss:$0 sm:$0xff] }
  0x42   : > { %1716 = vmatprep.subr.bf16.mxu1 %v1861_v2 }
  0x44   : > { %1695 = vmatpush3.bf16.msra.mxu0 %v1860_v1 }
  0x45   : > { %1742 = vmatprep.subr.bf16.mxu0 %v1894_v6  ;;  %1717 = vmatpush3.bf16.msra.mxu1 %v1862_v3 }
  0x46   : > { %1762 = vmatprep.subr.bf16.mxu1 %v1894_v6 }
  0x47   : > { %1114 = vmatmul.mubr.bf16.vlgmr.msra.gmra.mrb[4].mxu0 %v1863_v4 }
  0x48   : > { %1758 = vmatprep.mubr.msk.bf16.mxu0 %vm1895_vm0, %v1894_v6  ;;  %1743 = vmatpush3.bf16.msra.mxu0 %v1869_v9 }
  0x49   : > { %1155 = vmatmul.mubr.bf16.vlgmr.msra.gmra.mrb[4].mxu1 %v1866_v7  ;;  %1744 = vmatprep.subr.bf16.mxu0 %v1894_v6 }
  0x4a   : > { %1763 = vmatpush3.bf16.msra.mxu1 %v1870_v10  ;;  %1778 = vmatprep.mubr.msk.bf16.mxu1 %vm1895_vm0, %v1894_v6 }
  0x4b   : > { %1764 = vmatprep.subr.bf16.mxu1 %v1894_v6 }
  0x4c   : > { %1745 = vmatpush3.bf16.msra.mxu0 %v1871_v11 }
  0x4d   : > { %1746 = vmatprep.subr.bf16.mxu0 %v1894_v6 }
  0x4e   : > { %1765 = vmatpush3.bf16.msra.mxu1 %v1872_v12 }
  0x4f   : > { %1766 = vmatprep.subr.bf16.mxu1 %v1894_v6 }
  0x50   : > { %1747 = vmatpush3.bf16.msra.mxu0 %v1873_v13 }
  0x51   : > { %1748 = vmatprep.subr.bf16.mxu0 %v1894_v6 }
  0x52   : > { %1767 = vmatpush3.bf16.msra.mxu1 %v1874_v14 }
  0x53   : > { %1768 = vmatprep.subr.bf16.mxu1 %v1894_v6 }
  0x54   : > { %1749 = vmatpush3.bf16.msra.mxu0 %v1875_v15 }
  0x55   : > { %1750 = vmatprep.subr.bf16.mxu0 %v1894_v6 }
  0x56   : > { %1769 = vmatpush3.bf16.msra.mxu1 %v1876_v16 }
  0x57   : > { %1770 = vmatprep.subr.bf16.mxu1 %v1894_v6 }
  0x58   : > { %1751 = vmatpush3.bf16.msra.mxu0 %v1877_v17 }
  0x59   : > { %1752 = vmatprep.subr.bf16.mxu0 %v1894_v6 }
  0x5a   : > { %1771 = vmatpush3.bf16.msra.mxu1 %v1878_v18 }
  0x5b   : > { %1772 = vmatprep.subr.bf16.mxu1 %v1894_v6 }
  0x5c   : > { %1753 = vmatpush3.bf16.msra.mxu0 %v1879_v19 }
  0x5d   : > { %1754 = vmatprep.subr.bf16.mxu0 %v1894_v6 }
  0x5e   : > { %1773 = vmatpush3.bf16.msra.mxu1 %v1880_v20 }
  0x5f   : > { %1774 = vmatprep.subr.bf16.mxu1 %v1894_v6 }
  0x60   : > { %1755 = vmatpush3.bf16.msra.mxu0 %v1881_v21 }
  0x61   : > { %1756 = vmatprep.subr.bf16.mxu0 %v1894_v6 }
  0x62   : > { %1775 = vmatpush3.bf16.msra.mxu1 %v1882_v22 }
  0x63   : > { %1776 = vmatprep.subr.bf16.mxu1 %v1894_v6 }
  0x64   : > { %1757 = vmatpush3.bf16.msra.mxu0 %v1883_v23 }
  0x66   : > { %1777 = vmatpush3.bf16.msra.mxu1 %v1884_v24 }
  0x67   : > { %1759 = vmatmul.mubr.bf16.vlgmr.msra.gmra.mrb[8].mxu0 %v1885_v25 }
  0x69   : > { %1779 = vmatmul.mubr.bf16.vlgmr.msra.gmra.mrb[8].mxu1 %v1863_v4 }
  0xfa   : > { %v1652_v26 = vpop.f32.mrb[0].mxu0 }
  0xfb   : > { %v1674_v27 = vpop.f32.mrb[0].mxu1  ;;  %v1653_v28 = vpop.f32.mrb[1].mxu0 }
  0xfc   : > { %v1654_v29 = vadd.f32 %v1653_v28, %v1652_v26  ;;  %v1675_v30 = vpop.f32.mrb[1].mxu1  ;;  %v1655_v31 = vpop.f32.mrb[2].mxu0 }
  0xfd   : > { %v1676_v32 = vadd.f32 %v1675_v30, %v1674_v27  ;;  %v1677_v33 = vpop.f32.mrb[2].mxu1  ;;  %v1656_v34 = vpop.f32.mrb[3].mxu0 }
  0xfe   : > { %v1657_v35 = vadd.f32 %v1656_v34, %v1655_v31  ;;  %v1678_v36 = vpop.f32.mrb[3].mxu1 }
  0xff   : > { %v1075_v37 = vadd.f32 %v1676_v32, %v1654_v29  ;;  %v1679_v38 = vadd.f32 %v1678_v36, %v1677_v33 }
 0x101   : > { %v1078_v39 = vadd.f32 %v1679_v38, %v1657_v35 }
 0x11a   : > { %v1696_v40 = vpop.f32.mrb[4].mxu0 }
 0x11b   : > { %v1697_v41 = vpop.f32.mrb[5].mxu0 }
 0x11c   : > { %v1698_v42 = vadd.f32 %v1697_v41, %v1696_v40  ;;  %v1699_v43 = vpop.f32.mrb[6].mxu0  ;;  %v1718_v44 = vpop.f32.mrb[4].mxu1 }
 0x11d   : > { %v1700_v45 = vpop.f32.mrb[7].mxu0  ;;  %v1719_v46 = vpop.f32.mrb[5].mxu1 }
 0x11e   : > { %v1116_v47 = vadd.f32 %v1698_v42, %v1075_v37  ;;  %v1701_v48 = vadd.f32 %v1700_v45, %v1699_v43  ;;  %v1720_v49 = vadd.f32 %v1719_v46, %v1718_v44  ;;  %v1721_v50 = vpop.f32.mrb[6].mxu1 }
 0x11f   : > { %v1722_v51 = vpop.f32.mrb[7].mxu1 }
 0x120   : > { %v1119_v52 = vadd.f32 %v1701_v48, %v1078_v39  ;;  %v1723_v53 = vadd.f32 %v1722_v51, %v1721_v50  ;;  %v1157_v54 = vadd.f32 %v1720_v49, %v1116_v47 }
 0x122   : > { %v1160_v55 = vadd.f32 %v1723_v53, %v1119_v52 }
 0x13a   : > { %v1197_v57 = vpop.f32.mrb[8].mxu0 }
 0x13b   : > { %v1198_v59 = vadd.f32 %v1197_v57, %v1157_v54  ;;  %v1760_v60 = vpop.f32.mrb[9].mxu0 }
 0x13c   : > { %v1342_v61 = vpop.f32.mrb[8].mxu1  ;;  %v1200_v1 = vpop.f32.mrb[10].mxu0 }
 0x13d   : > { %v1356_v0 = vmul.f32 %v1609_v56, %v1342_v61  ;;  %v1780_v2 = vpop.f32.mrb[9].mxu1  ;;  %v1221_v3 = vmul.f32 %v1597_v58, %v1198_v59  ;;  %v1201_v4 = vadd.f32 %v1200_v1, %v1160_v55  ;;  %v1761_v5 = vpop.f32.mrb[11].mxu0 }
 0x13e   : > { %v1345_v6 = vpop.f32.mrb[10].mxu1 }
 0x13f   : > { %v1365_v7 = vadd.f32 %v1610_v62, %v1356_v0  ;;  %v1357_v8 = vmul.f32 %v1609_v56, %v1345_v6  ;;  %v1781_v9 = vpop.f32.mrb[11].mxu1  ;;  %v1230_v10 = vadd.f32 %v1598_v63, %v1221_v3  ;;  %v1624_v11 = vpack.c.bf16 %v1201_v4, %v1198_v59 }
 0x140   : > { %v1222_v12 = vmul.f32 %v1597_v58, %v1201_v4 }
 0x141   : > { %v1366_v13 = vadd.f32 %v1610_v62, %v1357_v8  ;;  %1625 = vst [vmem:[%s352_s20] sm:$0xff] %v1624_v11   ;;  %v1232_v16 = vmax.f32 %v1230_v10, 0.0 }
 0x142   : > { %v1231_v14 = vadd.f32 %v1598_v63, %v1222_v12 }
 0x143   : > { %v1634_v15 = vpack.c.bf16 %v1366_v13, %v1365_v7 }
 0x144   : > { %v1233_v17 = vmax.f32 %v1231_v14, 0.0 }
 0x145   : > { %1635 = vst [vmem:[%s364_s23] sm:$0xff] %v1634_v15  }
 0x146   : > { %v1629_v18 = vpack.c.bf16 %v1233_v17, %v1232_v16 }
 0x148   : > { %1630 = vst [vmem:[%s358_s26] sm:$0xff] %v1629_v18  }
 0x149 PF: > { %s20_s30 = sadd.s32 1, %s1892_s30  }
 0x14a   : > { %p17_p4 = scmp.ge.s32.totalorder %s20_s30, 4  }
 0x14c   :  { %19 = sbr.rel (!%p17_p4) target bundleno = 1 (0x1), region = 102 }

// kernel: _lambda_.19
= control target key start
LH: loop header
LB: loop body
LE: loop exit
PB: predicated region body
PF: predicated region fallthrough
CT: control target
= control target key end

     0   :  { %s1557_s18 = smov 0   ;;  %s1816_s0 = inlined_call_operand.vmem [shape: bf16[32,1152], index: 0, kind: input, shape index: {}]   ;;  %s1817_s1 = inlined_call_operand.vmem [shape: bf16[1152,128], index: 1, kind: input, shape index: {}]   ;;  %s1818_s2 = inlined_call_operand.vmem [shape: f32[1,128], index: 2, kind: input, shape index: {}]   ;;  %s1819_s3 = inlined_call_operand.vmem [shape: f32[1,128], index: 3, kind: input, shape index: {}]   ;;  %s1820_s4 = inlined_call_operand.vmem [shape: bf16[32,128], index: 4, kind: input, shape index: {}]   ;;  %s1821_s5 = inlined_call_operand.vmem [shape: bf16[32,128], index: 5, kind: output, shape index: {}]  }
   0x1 LB: > { %s1195_s19 = sadd.s32 4294967295, %s1523_s18   ;;  %p1199_p0 = scmp.ge.s32.totalorder %s1523_s18, 1  ;;  %s1523_s18 = sphi %s1557_s18, %s15_s18  }
   0x2   : > { %p200_p1 = scmp.lt.s32.totalorder %s1523_s18, 3 }
   0x4   : > { %p201_p2 = pnand %p1199_p0, %p200_p1 }
   0x5   : > { %v1432_v0 = vld [vmem:[%s1817_s1 + $0x40] sm:$0xff] (!%p201_p2)   ;;  %v1436_v4 = vld [vmem:[%s1817_s1 + $0x48] sm:$0xff] (!%p201_p2)   ;;  %v1440_v8 = vld [vmem:[%s1817_s1 + $0x50] sm:$0xff] (!%p201_p2)   ;;  %s1200_s27 = sshll.u32 (!%p201_p2), %s1195_s19, 1  ;;  %vm1526_vm0 = vmmov (!%p201_p2), 0  }
   0x6   : > { %204 = sbr.rel (%p201_p2) target bundleno = 330 (0x14a), region = 40  ;;  %v1433_v1 = vld [vmem:[%s1817_s1 + $0xc0] sm:$0xff] (!%p201_p2)   ;;  %1304 = vmatprep.subr.bf16.mxu0 (!%p201_p2), %v1432_v0  ;;  %v1437_v5 = vld [vmem:[%s1817_s1 + $0xc8] sm:$0xff] (!%p201_p2)   ;;  %v1441_v9 = vld [vmem:[%s1817_s1 + $0xd0] sm:$0xff] (!%p201_p2)   ;;  %p235_p3 = scmp.lt.s32.totalorder (!%p201_p2), %s1200_s27, 3 }
   0x7   : > { %v1434_v2 = vld [vmem:[%s1817_s1] sm:$0xff] (!%p201_p2)   ;;  %1326 = vmatprep.subr.bf16.mxu1 (!%p201_p2), %v1433_v1  ;;  %v1438_v6 = vld [vmem:[%s1817_s1 + $0x8] sm:$0xff] (!%p201_p2)   ;;  %v1442_v10 = vld [vmem:[%s1817_s1 + $0x10] sm:$0xff] (!%p201_p2)  }
   0x8   : > { %v1435_v3 = vld [vmem:[%s1817_s1 + $0x80] sm:$0xff] (!%p201_p2)   ;;  %1305 = vmatpush3.bf16.msra.mxu0 (!%p201_p2), %v1434_v2  ;;  %v1439_v7 = vld [vmem:[%s1817_s1 + $0x88] sm:$0xff] (!%p201_p2)   ;;  %v1443_v11 = vld [vmem:[%s1817_s1 + $0x90] sm:$0xff] (!%p201_p2)  }
   0x9   : > { %1327 = vmatpush3.bf16.msra.mxu1 (!%p201_p2), %v1435_v3  ;;  %1306 = vmatprep.subr.bf16.mxu0 (!%p201_p2), %v1436_v4  ;;  %v1444_v12 = vld [vmem:[%s1817_s1 + $0x58] sm:$0xff] (!%p201_p2)   ;;  %v1448_v16 = vld [vmem:[%s1817_s1 + $0x60] sm:$0xff] (!%p201_p2)   ;;  %v1452_v20 = vld [vmem:[%s1817_s1 + $0x68] sm:$0xff] (!%p201_p2)  }
   0xa   : > { %1328 = vmatprep.subr.bf16.mxu1 (!%p201_p2), %v1437_v5  ;;  %v1445_v13 = vld [vmem:[%s1817_s1 + $0xd8] sm:$0xff] (!%p201_p2)   ;;  %v1449_v17 = vld [vmem:[%s1817_s1 + $0xe0] sm:$0xff] (!%p201_p2)   ;;  %v1453_v21 = vld [vmem:[%s1817_s1 + $0xe8] sm:$0xff] (!%p201_p2)  }
   0xb   : > { %v1446_v14 = vld [vmem:[%s1817_s1 + $0x18] sm:$0xff] (!%p201_p2)   ;;  %v1450_v18 = vld [vmem:[%s1817_s1 + $0x20] sm:$0xff] (!%p201_p2)   ;;  %v1454_v22 = vld [vmem:[%s1817_s1 + $0x28] sm:$0xff] (!%p201_p2)  }
   0xc   : > { %1307 = vmatpush3.bf16.msra.mxu0 (!%p201_p2), %v1438_v6  ;;  %v1447_v15 = vld [vmem:[%s1817_s1 + $0x98] sm:$0xff] (!%p201_p2)   ;;  %v1451_v19 = vld [vmem:[%s1817_s1 + $0xa0] sm:$0xff] (!%p201_p2)   ;;  %v1455_v23 = vld [vmem:[%s1817_s1 + $0xa8] sm:$0xff] (!%p201_p2)   ;;  %v1525_v6 = vmov (!%p201_p2), 0.0  }
   0xd   : > { %1329 = vmatpush3.bf16.msra.mxu1 %v1439_v7  ;;  %1308 = vmatprep.subr.bf16.mxu0 %v1440_v8  ;;  %s1823_s27 = smov (!%p235_p3, %s1200_s27), 3  ;;  %v1456_v24 = vld [vmem:[%s1817_s1 + $0x70] sm:$0xff]   ;;  %v1460_v28 = vld [vmem:[%s1817_s1 + $0x78] sm:$0xff]   ;;  %v1470_v36 = vld [vmem:[%s1817_s1 + $0x140] sm:$0xff]  }
   0xe   : > { %1330 = vmatprep.subr.bf16.mxu1 %v1441_v9  ;;  %v1457_v25 = vld [vmem:[%s1817_s1 + $0xf0] sm:$0xff]   ;;  %s1421_s26 = smul.u32 36, %s1823_s27  ;;  %v1461_v29 = vld [vmem:[%s1817_s1 + $0xf8] sm:$0xff]   ;;  %v1471_v37 = vld [vmem:[%s1817_s1 + $0x100] sm:$0xff]  }
   0xf   : > { %v1458_v26 = vld [vmem:[%s1817_s1 + $0x30] sm:$0xff]   ;;  %v1462_v30 = vld [vmem:[%s1817_s1 + $0x38] sm:$0xff]   ;;  %v1472_v38 = vld [vmem:[%s1817_s1 + $0x1c0] sm:$0xff]  }
  0x10   : > { %1309 = vmatpush3.bf16.msra.mxu0 %v1442_v10  ;;  %v1459_v27 = vld [vmem:[%s1817_s1 + $0xb0] sm:$0xff]   ;;  %s1663_s12 = scalar_lea.vmem %s1816_s0, %s1421_s26  ;;  %v1463_v31 = vld [vmem:[%s1817_s1 + $0xb8] sm:$0xff]   ;;  %v1473_v39 = vld [vmem:[%s1817_s1 + $0x180] sm:$0xff]  }
  0x11   : > { %1331 = vmatpush3.bf16.msra.mxu1 %v1443_v11  ;;  %1310 = vmatprep.subr.bf16.mxu0 %v1444_v12  ;;  %v1464_v32 = vld [vmem:[%s1663_s12] ss:$36 sps:$4 sm:$0xff]   ;;  %v1467_v34 = vld [vmem:[%s1663_s12 + $0x8] ss:$36 sps:$4 sm:$0xff]   ;;  %v1478_v44 = vld [vmem:[%s1817_s1 + $0x150] sm:$0xff]  }
  0x12   : > { %1332 = vmatprep.subr.bf16.mxu1 %v1445_v13  ;;  %v1466_v33 = vld [vmem:[%s1663_s12 + $0x4] ss:$36 sps:$4 sm:$0xff]   ;;  %v1469_v35 = vld [vmem:[%s1663_s12 + $0xc] ss:$36 sps:$4 sm:$0xff]   ;;  %v1482_v48 = vld [vmem:[%s1817_s1 + $0x158] sm:$0xff]  }
  0x13   : > { %918 = vmatprep.mubr.bf16.mxu0 %v1466_v33  ;;  %959 = vmatprep.mubr.bf16.mxu1 %v1469_v35  ;;  %v1474_v40 = vld [vmem:[%s1817_s1 + $0x148] sm:$0xff]   ;;  %v1479_v45 = vld [vmem:[%s1817_s1 + $0x110] sm:$0xff]   ;;  %v1483_v49 = vld [vmem:[%s1817_s1 + $0x118] sm:$0xff]  }
  0x14   : > { %1311 = vmatpush3.bf16.msra.mxu0 %v1446_v14  ;;  %v1475_v41 = vld [vmem:[%s1817_s1 + $0x108] sm:$0xff]   ;;  %v1480_v46 = vld [vmem:[%s1817_s1 + $0x1d0] sm:$0xff]   ;;  %v1484_v50 = vld [vmem:[%s1817_s1 + $0x1d8] sm:$0xff]  }
  0x15   : > { %1333 = vmatpush3.bf16.msra.mxu1 %v1447_v15  ;;  %1312 = vmatprep.subr.bf16.mxu0 %v1448_v16  ;;  %v1476_v42 = vld [vmem:[%s1817_s1 + $0x1c8] sm:$0xff]   ;;  %v1481_v47 = vld [vmem:[%s1817_s1 + $0x190] sm:$0xff]   ;;  %v1485_v51 = vld [vmem:[%s1817_s1 + $0x198] sm:$0xff]  }
  0x16   : > { %1334 = vmatprep.subr.bf16.mxu1 %v1449_v17  ;;  %v1477_v43 = vld [vmem:[%s1817_s1 + $0x188] sm:$0xff]   ;;  %v1486_v52 = vld [vmem:[%s1817_s1 + $0x160] sm:$0xff]   ;;  %v1494_v60 = vld [vmem:[%s1817_s1 + $0x170] sm:$0xff]  }
  0x17   : > { %v1487_v53 = vld [vmem:[%s1817_s1 + $0x120] sm:$0xff]   ;;  %v1490_v56 = vld [vmem:[%s1817_s1 + $0x168] sm:$0xff]   ;;  %v1495_v61 = vld [vmem:[%s1817_s1 + $0x130] sm:$0xff]  }
  0x18   : > { %1313 = vmatpush3.bf16.msra.mxu0 %v1450_v18  ;;  %v1488_v54 = vld [vmem:[%s1817_s1 + $0x1e0] sm:$0xff]   ;;  %v1491_v57 = vld [vmem:[%s1817_s1 + $0x128] sm:$0xff]   ;;  %v1496_v62 = vld [vmem:[%s1817_s1 + $0x1f0] sm:$0xff]  }
  0x19   : > { %1335 = vmatpush3.bf16.msra.mxu1 %v1451_v19  ;;  %1314 = vmatprep.subr.bf16.mxu0 %v1452_v20  ;;  %v1489_v55 = vld [vmem:[%s1817_s1 + $0x1a0] sm:$0xff]   ;;  %v1492_v58 = vld [vmem:[%s1817_s1 + $0x1e8] sm:$0xff]   ;;  %v1497_v63 = vld [vmem:[%s1817_s1 + $0x1b0] sm:$0xff]  }
  0x1a   : > { %1336 = vmatprep.subr.bf16.mxu1 %v1453_v21  ;;  %v1493_v59 = vld [vmem:[%s1817_s1 + $0x1a8] sm:$0xff]   ;;  %v1498_v0 = vld [vmem:[%s1817_s1 + $0x178] sm:$0xff]   ;;  %v1501_v3 = vld [vmem:[%s1663_s12 + $0x10] ss:$36 sps:$4 sm:$0xff]  }
  0x1b   : > { %v1499_v1 = vld [vmem:[%s1817_s1 + $0x138] sm:$0xff]   ;;  %v1508_v9 = vld [vmem:[%s1817_s1 + $0x200] sm:$0xff]   ;;  %v1509_v10 = vld [vmem:[%s1817_s1 + $0x208] sm:$0xff]  }
  0x1c   : > { %1315 = vmatpush3.bf16.msra.mxu0 %v1454_v22  ;;  %v1500_v2 = vld [vmem:[%s1817_s1 + $0x1f8] sm:$0xff]   ;;  %v1510_v11 = vld [vmem:[%s1817_s1 + $0x210] sm:$0xff]   ;;  %v1512_v13 = vld [vmem:[%s1817_s1 + $0x220] sm:$0xff]  }
  0x1d   : > { %1337 = vmatpush3.bf16.msra.mxu1 %v1455_v23  ;;  %1316 = vmatprep.subr.bf16.mxu0 %v1456_v24  ;;  %v1503_v4 = vld [vmem:[%s1663_s12 + $0x14] ss:$36 sps:$4 sm:$0xff]   ;;  %v1507_v8 = vld [vmem:[%s1663_s12 + $0x1c] ss:$36 sps:$4 sm:$0xff]   ;;  %v1513_v14 = vld [vmem:[%s1817_s1 + $0x228] sm:$0xff]  }
  0x1e   : > { %1338 = vmatprep.subr.bf16.mxu1 %v1457_v25  ;;  %v1504_v5 = vld [vmem:[%s1817_s1 + $0x1b8] sm:$0xff]   ;;  %v1514_v15 = vld [vmem:[%s1817_s1 + $0x230] sm:$0xff]   ;;  %v1516_v17 = vld [vmem:[%s1663_s12 + $0x20] ss:$36 sps:$4 sm:$0xff]  }
  0x1f   : > { %v1505_v7 = vld [vmem:[%s1663_s12 + $0x18] ss:$36 sps:$4 sm:$0xff]   ;;  %s1203_s12 = sshll.u32 %s1823_s27, 2 }
  0x20   : > { %1317 = vmatpush3.bf16.msra.mxu0 %v1458_v26  ;;  %v1511_v12 = vld [vmem:[%s1817_s1 + $0x218] sm:$0xff]   ;;  %s245_s19 = scalar_lea.vmem %s1820_s4, %s1203_s12  ;;  %s251_s17 = scalar_lea.vmem %s1821_s5, %s1203_s12 }
  0x21   : > { %1339 = vmatpush3.bf16.msra.mxu1 %v1459_v27  ;;  %1318 = vmatprep.subr.bf16.mxu0 %v1460_v28  ;;  %v1515_v16 = vld [vmem:[%s1817_s1 + $0x238] sm:$0xff]  }
  0x22   : > { %1340 = vmatprep.subr.bf16.mxu1 %v1461_v29 }
  0x24   : > { %1319 = vmatpush3.bf16.msra.mxu0 %v1462_v30 }
  0x25   : > { %1341 = vmatpush3.bf16.msra.mxu1 %v1463_v31  ;;  %1348 = vmatprep.subr.bf16.mxu0 %v1470_v36 }
  0x26   : > { %1370 = vmatprep.subr.bf16.mxu1 %v1472_v38 }
  0x27   : > { %919 = vmatmul.mubr.bf16.vlgmr.msra.gmra.mrb[0].mxu0 %v1464_v32 }
  0x28   : > { %960 = vmatmul.mubr.bf16.vlgmr.msra.gmra.mrb[0].mxu1 %v1467_v34  ;;  %1349 = vmatpush3.bf16.msra.mxu0 %v1471_v37 }
  0x29   : > { %1371 = vmatpush3.bf16.msra.mxu1 %v1473_v39  ;;  %1350 = vmatprep.subr.bf16.mxu0 %v1474_v40 }
  0x2a   : > { %1372 = vmatprep.subr.bf16.mxu1 %v1476_v42  ;;  %1000 = vmatprep.mubr.bf16.mxu0 %v1503_v4 }
  0x2b   : > { %1041 = vmatprep.mubr.bf16.mxu1 %v1507_v8 }
  0x2c   : > { %1351 = vmatpush3.bf16.msra.mxu0 %v1475_v41 }
  0x2d   : > { %1373 = vmatpush3.bf16.msra.mxu1 %v1477_v43  ;;  %1352 = vmatprep.subr.bf16.mxu0 %v1478_v44 }
  0x2e   : > { %1374 = vmatprep.subr.bf16.mxu1 %v1480_v46 }
  0x30   : > { %1353 = vmatpush3.bf16.msra.mxu0 %v1479_v45 }
  0x31   : > { %1375 = vmatpush3.bf16.msra.mxu1 %v1481_v47  ;;  %1354 = vmatprep.subr.bf16.mxu0 %v1482_v48 }
  0x32   : > { %1376 = vmatprep.subr.bf16.mxu1 %v1484_v50  ;;  %v1296_v50 = vld [vmem:[%s245_s19] sm:$0xff]  }
  0x34   : > { %1355 = vmatpush3.bf16.msra.mxu0 %v1483_v49  ;;  %v1287_v49 = vld [vmem:[%s1818_s2] ss:$0 sm:$0xff] }
  0x35   : > { %1377 = vmatpush3.bf16.msra.mxu1 %v1485_v51  ;;  %1356 = vmatprep.subr.bf16.mxu0 %v1486_v52 }
  0x36   : > { %1378 = vmatprep.subr.bf16.mxu1 %v1488_v54 }
  0x38   : > { %1357 = vmatpush3.bf16.msra.mxu0 %v1487_v53  ;;  %v1288_v53 = vld [vmem:[%s1819_s3] ss:$0 sm:$0xff] }
  0x39   : > { %1379 = vmatpush3.bf16.msra.mxu1 %v1489_v55  ;;  %1358 = vmatprep.subr.bf16.mxu0 %v1490_v56  ;;  %v1297_v56 = vunpack.c.l.bf16 %v1296_v50 }
  0x3a   : > { %1380 = vmatprep.subr.bf16.mxu1 %v1492_v58 }
  0x3c   : > { %1359 = vmatpush3.bf16.msra.mxu0 %v1491_v57 }
  0x3d   : > { %1381 = vmatpush3.bf16.msra.mxu1 %v1493_v59  ;;  %1360 = vmatprep.subr.bf16.mxu0 %v1494_v60 }
  0x3e   : > { %1382 = vmatprep.subr.bf16.mxu1 %v1496_v62 }
  0x40   : > { %1361 = vmatpush3.bf16.msra.mxu0 %v1495_v61  ;;  %v1298_v61 = vunpack.c.h.bf16 %v1296_v50 }
  0x41   : > { %1383 = vmatpush3.bf16.msra.mxu1 %v1497_v63  ;;  %1362 = vmatprep.subr.bf16.mxu0 %v1498_v0 }
  0x42   : > { %1384 = vmatprep.subr.bf16.mxu1 %v1500_v2 }
  0x44   : > { %1363 = vmatpush3.bf16.msra.mxu0 %v1499_v1 }
  0x45   : > { %1401 = vmatprep.subr.bf16.mxu0 %v1525_v6  ;;  %1385 = vmatpush3.bf16.msra.mxu1 %v1504_v5 }
  0x47   : > { %1001 = vmatmul.mubr.bf16.vlgmr.msra.gmra.mrb[4].mxu0 %v1501_v3 }
  0x48   : > { %1417 = vmatprep.mubr.msk.bf16.mxu0 %vm1526_vm0, %v1525_v6  ;;  %1402 = vmatpush3.bf16.msra.mxu0 %v1508_v9 }
  0x49   : > { %1042 = vmatmul.mubr.bf16.vlgmr.msra.gmra.mrb[4].mxu1 %v1505_v7  ;;  %1403 = vmatprep.subr.bf16.mxu0 %v1525_v6 }
  0x4c   : > { %1404 = vmatpush3.bf16.msra.mxu0 %v1509_v10 }
  0x4d   : > { %1405 = vmatprep.subr.bf16.mxu0 %v1525_v6 }
  0x50   : > { %1406 = vmatpush3.bf16.msra.mxu0 %v1510_v11 }
  0x51   : > { %1407 = vmatprep.subr.bf16.mxu0 %v1525_v6 }
  0x54   : > { %1408 = vmatpush3.bf16.msra.mxu0 %v1511_v12 }
  0x55   : > { %1409 = vmatprep.subr.bf16.mxu0 %v1525_v6 }
  0x58   : > { %1410 = vmatpush3.bf16.msra.mxu0 %v1512_v13 }
  0x59   : > { %1411 = vmatprep.subr.bf16.mxu0 %v1525_v6 }
  0x5c   : > { %1412 = vmatpush3.bf16.msra.mxu0 %v1513_v14 }
  0x5d   : > { %1413 = vmatprep.subr.bf16.mxu0 %v1525_v6 }
  0x60   : > { %1414 = vmatpush3.bf16.msra.mxu0 %v1514_v15 }
  0x61   : > { %1415 = vmatprep.subr.bf16.mxu0 %v1525_v6 }
  0x64   : > { %1416 = vmatpush3.bf16.msra.mxu0 %v1515_v16 }
  0x67   : > { %1418 = vmatmul.mubr.bf16.vlgmr.msra.gmra.mrb[8].mxu0 %v1516_v17 }
  0xfa   : > { %v1320_v18 = vpop.f32.mrb[0].mxu0 }
  0xfb   : > { %v1342_v19 = vpop.f32.mrb[0].mxu1  ;;  %v1321_v20 = vpop.f32.mrb[1].mxu0 }
  0xfc   : > { %v1322_v21 = vadd.f32 %v1321_v20, %v1320_v18  ;;  %v1343_v22 = vpop.f32.mrb[1].mxu1  ;;  %v1323_v23 = vpop.f32.mrb[2].mxu0 }
  0xfd   : > { %v1344_v24 = vadd.f32 %v1343_v22, %v1342_v19  ;;  %v1345_v25 = vpop.f32.mrb[2].mxu1  ;;  %v1324_v26 = vpop.f32.mrb[3].mxu0 }
  0xfe   : > { %v1325_v27 = vadd.f32 %v1324_v26, %v1323_v23  ;;  %v1346_v28 = vpop.f32.mrb[3].mxu1 }
  0xff   : > { %v962_v29 = vadd.f32 %v1344_v24, %v1322_v21  ;;  %v1347_v30 = vadd.f32 %v1346_v28, %v1345_v25 }
 0x101   : > { %v965_v31 = vadd.f32 %v1347_v30, %v1325_v27 }
 0x11a   : > { %v1364_v32 = vpop.f32.mrb[4].mxu0 }
 0x11b   : > { %v1365_v33 = vpop.f32.mrb[5].mxu0 }
 0x11c   : > { %v1366_v34 = vadd.f32 %v1365_v33, %v1364_v32  ;;  %v1367_v35 = vpop.f32.mrb[6].mxu0  ;;  %v1386_v36 = vpop.f32.mrb[4].mxu1 }
 0x11d   : > { %v1368_v37 = vpop.f32.mrb[7].mxu0  ;;  %v1387_v40 = vpop.f32.mrb[5].mxu1 }
 0x11e   : > { %v1003_v38 = vadd.f32 %v1366_v34, %v962_v29  ;;  %v1369_v39 = vadd.f32 %v1368_v37, %v1367_v35  ;;  %v1388_v41 = vadd.f32 %v1387_v40, %v1386_v36  ;;  %v1389_v42 = vpop.f32.mrb[6].mxu1 }
 0x11f   : > { %v1390_v44 = vpop.f32.mrb[7].mxu1 }
 0x120   : > { %v1006_v43 = vadd.f32 %v1369_v39, %v965_v31  ;;  %v1391_v45 = vadd.f32 %v1390_v44, %v1389_v42  ;;  %v1044_v46 = vadd.f32 %v1388_v41, %v1003_v38 }
 0x122   : > { %v1047_v47 = vadd.f32 %v1391_v45, %v1006_v43 }
 0x13a   : > { %v1084_v48 = vpop.f32.mrb[8].mxu0 }
 0x13b   : > { %v1085_v51 = vadd.f32 %v1084_v48, %v1044_v46  ;;  %v1419_v52 = vpop.f32.mrb[9].mxu0 }
 0x13c   : > { %v1087_v54 = vpop.f32.mrb[10].mxu0 }
 0x13d   : > { %v1098_v55 = vmul.f32 %v1287_v49, %v1085_v51  ;;  %v1088_v57 = vadd.f32 %v1087_v54, %v1047_v47  ;;  %v1420_v58 = vpop.f32.mrb[11].mxu0 }
 0x13f   : > { %v1107_v59 = vadd.f32 %v1288_v53, %v1098_v55  ;;  %v1099_v60 = vmul.f32 %v1287_v49, %v1088_v57 }
 0x141   : > { %v1113_v62 = vadd.f32 %v1297_v56, %v1107_v59  ;;  %v1108_v63 = vadd.f32 %v1288_v53, %v1099_v60 }
 0x143   : > { %v1114_v0 = vadd.f32 %v1298_v61, %v1108_v63  ;;  %v1115_v1 = vmax.f32 %v1113_v62, 0.0 }
 0x145   : > { %v1116_v2 = vmax.f32 %v1114_v0, 0.0 }
 0x147   : > { %v1302_v3 = vpack.c.bf16 %v1116_v2, %v1115_v1 }
 0x149   : > { %1303 = vst [vmem:[%s251_s17] sm:$0xff] %v1302_v3  }
 0x14a PF: > { %s15_s18 = sadd.s32 1, %s1523_s18  }
 0x14b   : > { %p12_p4 = scmp.ge.s32.totalorder %s15_s18, 4  }
 0x14d   :  { %14 = sbr.rel (!%p12_p4) target bundleno = 1 (0x1), region = 73 }

// kernel: _lambda_.18
= control target key start
LH: loop header
LB: loop body
LE: loop exit
PB: predicated region body
PF: predicated region fallthrough
CT: control target
= control target key end

     0   :  { %s1469_s12 = smov 0   ;;  %s1726_s0 = inlined_call_operand.vmem [shape: bf16[32,1152], index: 0, kind: input, shape index: {}]   ;;  %s1727_s1 = inlined_call_operand.vmem [shape: bf16[1152,128], index: 1, kind: input, shape index: {}]   ;;  %s1728_s2 = inlined_call_operand.vmem [shape: bf16[32,128], index: 2, kind: input, shape index: {}]   ;;  %s1729_s3 = inlined_call_operand.vmem [shape: bf16[32,128], index: 3, kind: output, shape index: {}]  }
   0x1 LB: > { %s1119_s13 = sadd.s32 4294967295, %s1445_s12   ;;  %p1123_p0 = scmp.ge.s32.totalorder %s1445_s12, 1  ;;  %s1445_s12 = sphi %s1469_s12, %s13_s12  }
   0x2   : > { %p150_p1 = scmp.lt.s32.totalorder %s1445_s12, 3 }
   0x4   : > { %p151_p2 = pnand %p1123_p0, %p150_p1 }
   0x5   : > { %v1354_v0 = vld [vmem:[%s1727_s1 + $0x40] sm:$0xff] (!%p151_p2)   ;;  %v1358_v4 = vld [vmem:[%s1727_s1 + $0x48] sm:$0xff] (!%p151_p2)   ;;  %v1362_v8 = vld [vmem:[%s1727_s1 + $0x50] sm:$0xff] (!%p151_p2)   ;;  %s1124_s17 = sshll.u32 (!%p151_p2), %s1119_s13, 1  ;;  %vm1448_vm0 = vmmov (!%p151_p2), 0  }
   0x6   : > { %154 = sbr.rel (%p151_p2) target bundleno = 321 (0x141), region = 32  ;;  %v1355_v1 = vld [vmem:[%s1727_s1] sm:$0xff] (!%p151_p2)   ;;  %1226 = vmatprep.subr.bf16.mxu0 (!%p151_p2), %v1354_v0  ;;  %v1359_v5 = vld [vmem:[%s1727_s1 + $0x8] sm:$0xff] (!%p151_p2)   ;;  %v1363_v9 = vld [vmem:[%s1727_s1 + $0x10] sm:$0xff] (!%p151_p2)   ;;  %p181_p3 = scmp.lt.s32.totalorder (!%p151_p2), %s1124_s17, 3 }
   0x7   : > { %v1356_v2 = vld [vmem:[%s1727_s1 + $0xc0] sm:$0xff] (!%p151_p2)   ;;  %1227 = vmatpush3.bf16.msra.mxu0 (!%p151_p2), %v1355_v1  ;;  %v1360_v6 = vld [vmem:[%s1727_s1 + $0xc8] sm:$0xff] (!%p151_p2)   ;;  %v1364_v10 = vld [vmem:[%s1727_s1 + $0xd0] sm:$0xff] (!%p151_p2)  }
   0x8   : > { %v1357_v3 = vld [vmem:[%s1727_s1 + $0x80] sm:$0xff] (!%p151_p2)   ;;  %1248 = vmatprep.subr.bf16.mxu1 (!%p151_p2), %v1356_v2  ;;  %1228 = vmatprep.subr.bf16.mxu0 (!%p151_p2), %v1358_v4  ;;  %v1361_v7 = vld [vmem:[%s1727_s1 + $0x88] sm:$0xff] (!%p151_p2)   ;;  %v1365_v11 = vld [vmem:[%s1727_s1 + $0x90] sm:$0xff] (!%p151_p2)  }
   0x9   : > { %1249 = vmatpush3.bf16.msra.mxu1 (!%p151_p2), %v1357_v3  ;;  %v1366_v12 = vld [vmem:[%s1727_s1 + $0x58] sm:$0xff] (!%p151_p2)   ;;  %v1370_v16 = vld [vmem:[%s1727_s1 + $0x60] sm:$0xff] (!%p151_p2)   ;;  %v1374_v20 = vld [vmem:[%s1727_s1 + $0x68] sm:$0xff] (!%p151_p2)  }
   0xa   : > { %1250 = vmatprep.subr.bf16.mxu1 (!%p151_p2), %v1360_v6  ;;  %v1367_v13 = vld [vmem:[%s1727_s1 + $0x18] sm:$0xff] (!%p151_p2)   ;;  %v1371_v17 = vld [vmem:[%s1727_s1 + $0x20] sm:$0xff] (!%p151_p2)   ;;  %v1375_v21 = vld [vmem:[%s1727_s1 + $0x28] sm:$0xff] (!%p151_p2)   ;;  %v1447_v6 = vmov (!%p151_p2), 0.0  }
   0xb   : > { %1229 = vmatpush3.bf16.msra.mxu0 (!%p151_p2), %v1359_v5  ;;  %v1368_v14 = vld [vmem:[%s1727_s1 + $0xd8] sm:$0xff] (!%p151_p2)   ;;  %v1372_v18 = vld [vmem:[%s1727_s1 + $0xe0] sm:$0xff] (!%p151_p2)   ;;  %v1376_v22 = vld [vmem:[%s1727_s1 + $0xe8] sm:$0xff] (!%p151_p2)  }
   0xc   : > { %1230 = vmatprep.subr.bf16.mxu0 (!%p151_p2), %v1362_v8  ;;  %v1369_v15 = vld [vmem:[%s1727_s1 + $0x98] sm:$0xff] (!%p151_p2)   ;;  %v1373_v19 = vld [vmem:[%s1727_s1 + $0xa0] sm:$0xff] (!%p151_p2)   ;;  %v1377_v23 = vld [vmem:[%s1727_s1 + $0xa8] sm:$0xff] (!%p151_p2)  }
   0xd   : > { %1251 = vmatpush3.bf16.msra.mxu1 %v1361_v7  ;;  %s1731_s17 = smov (!%p181_p3, %s1124_s17), 3  ;;  %v1378_v24 = vld [vmem:[%s1727_s1 + $0x70] sm:$0xff]   ;;  %v1382_v28 = vld [vmem:[%s1727_s1 + $0x78] sm:$0xff]   ;;  %v1389_v34 = vld [vmem:[%s1727_s1 + $0x140] sm:$0xff]  }
   0xe   : > { %1252 = vmatprep.subr.bf16.mxu1 %v1364_v10  ;;  %s1343_s14 = smul.u32 36, %s1731_s17  ;;  %v1379_v25 = vld [vmem:[%s1727_s1 + $0x30] sm:$0xff]   ;;  %v1383_v29 = vld [vmem:[%s1727_s1 + $0x38] sm:$0xff]   ;;  %v1393_v37 = vld [vmem:[%s1727_s1 + $0x100] sm:$0xff]   ;;  %s1127_s15 = sshll.u32 %s1731_s17, 2 }
   0xf   : > { %1231 = vmatpush3.bf16.msra.mxu0 %v1363_v9  ;;  %v1380_v26 = vld [vmem:[%s1727_s1 + $0xf0] sm:$0xff]   ;;  %v1384_v30 = vld [vmem:[%s1727_s1 + $0xf8] sm:$0xff]   ;;  %v1394_v38 = vld [vmem:[%s1727_s1 + $0x1c0] sm:$0xff]   ;;  %s191_s19 = scalar_lea.vmem %s1728_s2, %s1127_s15  ;;  %s197_s21 = scalar_lea.vmem %s1729_s3, %s1127_s15 }
  0x10   : > { %1232 = vmatprep.subr.bf16.mxu0 %v1366_v12  ;;  %v1381_v27 = vld [vmem:[%s1727_s1 + $0xb0] sm:$0xff]   ;;  %s1572_s13 = scalar_lea.vmem %s1726_s0, %s1343_s14  ;;  %v1388_v33 = vld [vmem:[%s1727_s1 + $0xb8] sm:$0xff]   ;;  %v1395_v39 = vld [vmem:[%s1727_s1 + $0x180] sm:$0xff]  }
  0x11   : > { %1253 = vmatpush3.bf16.msra.mxu1 %v1365_v11  ;;  %v1385_v31 = vld [vmem:[%s1572_s13] ss:$36 sps:$4 sm:$0xff]   ;;  %v1390_v35 = vld [vmem:[%s1572_s13 + $0x8] ss:$36 sps:$4 sm:$0xff]   ;;  %v1400_v44 = vld [vmem:[%s1727_s1 + $0x150] sm:$0xff]  }
  0x12   : > { %1254 = vmatprep.subr.bf16.mxu1 %v1368_v14  ;;  %v1387_v32 = vld [vmem:[%s1572_s13 + $0x4] ss:$36 sps:$4 sm:$0xff]   ;;  %v1392_v36 = vld [vmem:[%s1572_s13 + $0xc] ss:$36 sps:$4 sm:$0xff]   ;;  %v1404_v48 = vld [vmem:[%s1727_s1 + $0x158] sm:$0xff]  }
  0x13   : > { %1233 = vmatpush3.bf16.msra.mxu0 %v1367_v13  ;;  %868 = vmatprep.mubr.bf16.mxu0 %v1387_v32  ;;  %v1396_v40 = vld [vmem:[%s1727_s1 + $0x148] sm:$0xff]   ;;  %v1401_v45 = vld [vmem:[%s1727_s1 + $0x110] sm:$0xff]   ;;  %v1405_v49 = vld [vmem:[%s1727_s1 + $0x118] sm:$0xff]  }
  0x14   : > { %1234 = vmatprep.subr.bf16.mxu0 %v1370_v16  ;;  %909 = vmatprep.mubr.bf16.mxu1 %v1392_v36  ;;  %v1397_v41 = vld [vmem:[%s1727_s1 + $0x108] sm:$0xff]   ;;  %v1402_v46 = vld [vmem:[%s1727_s1 + $0x1d0] sm:$0xff]   ;;  %v1406_v50 = vld [vmem:[%s1727_s1 + $0x1d8] sm:$0xff]  }
  0x15   : > { %1255 = vmatpush3.bf16.msra.mxu1 %v1369_v15  ;;  %v1398_v42 = vld [vmem:[%s1727_s1 + $0x1c8] sm:$0xff]   ;;  %v1403_v47 = vld [vmem:[%s1727_s1 + $0x190] sm:$0xff]   ;;  %v1407_v51 = vld [vmem:[%s1727_s1 + $0x198] sm:$0xff]  }
  0x16   : > { %1256 = vmatprep.subr.bf16.mxu1 %v1372_v18  ;;  %v1399_v43 = vld [vmem:[%s1727_s1 + $0x188] sm:$0xff]   ;;  %v1408_v52 = vld [vmem:[%s1727_s1 + $0x160] sm:$0xff]   ;;  %v1416_v60 = vld [vmem:[%s1727_s1 + $0x170] sm:$0xff]  }
  0x17   : > { %1235 = vmatpush3.bf16.msra.mxu0 %v1371_v17  ;;  %v1409_v53 = vld [vmem:[%s1727_s1 + $0x120] sm:$0xff]   ;;  %v1412_v56 = vld [vmem:[%s1727_s1 + $0x168] sm:$0xff]   ;;  %v1417_v61 = vld [vmem:[%s1727_s1 + $0x130] sm:$0xff]  }
  0x18   : > { %1236 = vmatprep.subr.bf16.mxu0 %v1374_v20  ;;  %v1410_v54 = vld [vmem:[%s1727_s1 + $0x1e0] sm:$0xff]   ;;  %v1413_v57 = vld [vmem:[%s1727_s1 + $0x128] sm:$0xff]   ;;  %v1418_v62 = vld [vmem:[%s1727_s1 + $0x1f0] sm:$0xff]  }
  0x19   : > { %1257 = vmatpush3.bf16.msra.mxu1 %v1373_v19  ;;  %v1411_v55 = vld [vmem:[%s1727_s1 + $0x1a0] sm:$0xff]   ;;  %v1414_v58 = vld [vmem:[%s1727_s1 + $0x1e8] sm:$0xff]   ;;  %v1419_v63 = vld [vmem:[%s1727_s1 + $0x1b0] sm:$0xff]  }
  0x1a   : > { %1258 = vmatprep.subr.bf16.mxu1 %v1376_v22  ;;  %v1415_v59 = vld [vmem:[%s1727_s1 + $0x1a8] sm:$0xff]   ;;  %v1420_v0 = vld [vmem:[%s1727_s1 + $0x178] sm:$0xff]   ;;  %v1423_v3 = vld [vmem:[%s1572_s13 + $0x10] ss:$36 sps:$4 sm:$0xff]  }
  0x1b   : > { %1237 = vmatpush3.bf16.msra.mxu0 %v1375_v21  ;;  %v1421_v1 = vld [vmem:[%s1727_s1 + $0x138] sm:$0xff]   ;;  %v1430_v9 = vld [vmem:[%s1727_s1 + $0x200] sm:$0xff]   ;;  %v1431_v10 = vld [vmem:[%s1727_s1 + $0x208] sm:$0xff]  }
  0x1c   : > { %1238 = vmatprep.subr.bf16.mxu0 %v1378_v24  ;;  %v1422_v2 = vld [vmem:[%s1727_s1 + $0x1f8] sm:$0xff]   ;;  %v1432_v11 = vld [vmem:[%s1727_s1 + $0x210] sm:$0xff]   ;;  %v1434_v13 = vld [vmem:[%s1727_s1 + $0x220] sm:$0xff]  }
  0x1d   : > { %1259 = vmatpush3.bf16.msra.mxu1 %v1377_v23  ;;  %v1425_v4 = vld [vmem:[%s1572_s13 + $0x14] ss:$36 sps:$4 sm:$0xff]   ;;  %v1429_v8 = vld [vmem:[%s1572_s13 + $0x1c] ss:$36 sps:$4 sm:$0xff]   ;;  %v1435_v14 = vld [vmem:[%s1727_s1 + $0x228] sm:$0xff]  }
  0x1e   : > { %1260 = vmatprep.subr.bf16.mxu1 %v1380_v26  ;;  %v1426_v5 = vld [vmem:[%s1727_s1 + $0x1b8] sm:$0xff]   ;;  %v1436_v15 = vld [vmem:[%s1727_s1 + $0x230] sm:$0xff]   ;;  %v1438_v17 = vld [vmem:[%s1572_s13 + $0x20] ss:$36 sps:$4 sm:$0xff]  }
  0x1f   : > { %1239 = vmatpush3.bf16.msra.mxu0 %v1379_v25  ;;  %v1427_v7 = vld [vmem:[%s1572_s13 + $0x18] ss:$36 sps:$4 sm:$0xff]   ;;  %v1218_v18 = vld [vmem:[%s191_s19] sm:$0xff]  }
  0x20   : > { %1240 = vmatprep.subr.bf16.mxu0 %v1382_v28  ;;  %v1433_v12 = vld [vmem:[%s1727_s1 + $0x218] sm:$0xff]   ;;  %v1219_v20 = vunpack.c.l.bf16 %v1218_v18  ;;  %v1220_v24 = vunpack.c.h.bf16 %v1218_v18 }
  0x21   : > { %1261 = vmatpush3.bf16.msra.mxu1 %v1381_v27  ;;  %v1437_v16 = vld [vmem:[%s1727_s1 + $0x238] sm:$0xff]  }
  0x22   : > { %1262 = vmatprep.subr.bf16.mxu1 %v1384_v30 }
  0x23   : > { %1241 = vmatpush3.bf16.msra.mxu0 %v1383_v29 }
  0x24   : > { %1270 = vmatprep.subr.bf16.mxu0 %v1389_v34 }
  0x25   : > { %1263 = vmatpush3.bf16.msra.mxu1 %v1388_v33 }
  0x26   : > { %869 = vmatmul.mubr.bf16.vlgmr.msra.gmra.mrb[0].mxu0 %v1385_v31  ;;  %1292 = vmatprep.subr.bf16.mxu1 %v1394_v38 }
  0x27   : > { %1271 = vmatpush3.bf16.msra.mxu0 %v1393_v37  ;;  %950 = vmatprep.mubr.bf16.mxu0 %v1425_v4 }
  0x28   : > { %910 = vmatmul.mubr.bf16.vlgmr.msra.gmra.mrb[0].mxu1 %v1390_v35  ;;  %1272 = vmatprep.subr.bf16.mxu0 %v1396_v40 }
  0x29   : > { %1293 = vmatpush3.bf16.msra.mxu1 %v1395_v39  ;;  %991 = vmatprep.mubr.bf16.mxu1 %v1429_v8 }
  0x2a   : > { %1294 = vmatprep.subr.bf16.mxu1 %v1398_v42 }
  0x2b   : > { %1273 = vmatpush3.bf16.msra.mxu0 %v1397_v41 }
  0x2c   : > { %1274 = vmatprep.subr.bf16.mxu0 %v1400_v44 }
  0x2d   : > { %1295 = vmatpush3.bf16.msra.mxu1 %v1399_v43 }
  0x2e   : > { %1296 = vmatprep.subr.bf16.mxu1 %v1402_v46 }
  0x2f   : > { %1275 = vmatpush3.bf16.msra.mxu0 %v1401_v45 }
  0x30   : > { %1276 = vmatprep.subr.bf16.mxu0 %v1404_v48 }
  0x31   : > { %1297 = vmatpush3.bf16.msra.mxu1 %v1403_v47 }
  0x32   : > { %1298 = vmatprep.subr.bf16.mxu1 %v1406_v50 }
  0x33   : > { %1277 = vmatpush3.bf16.msra.mxu0 %v1405_v49 }
  0x34   : > { %1278 = vmatprep.subr.bf16.mxu0 %v1408_v52 }
  0x35   : > { %1299 = vmatpush3.bf16.msra.mxu1 %v1407_v51 }
  0x36   : > { %1300 = vmatprep.subr.bf16.mxu1 %v1410_v54 }
  0x37   : > { %1279 = vmatpush3.bf16.msra.mxu0 %v1409_v53 }
  0x38   : > { %1280 = vmatprep.subr.bf16.mxu0 %v1412_v56 }
  0x39   : > { %1301 = vmatpush3.bf16.msra.mxu1 %v1411_v55 }
  0x3a   : > { %1302 = vmatprep.subr.bf16.mxu1 %v1414_v58 }
  0x3b   : > { %1281 = vmatpush3.bf16.msra.mxu0 %v1413_v57 }
  0x3c   : > { %1282 = vmatprep.subr.bf16.mxu0 %v1416_v60 }
  0x3d   : > { %1303 = vmatpush3.bf16.msra.mxu1 %v1415_v59 }
  0x3e   : > { %1304 = vmatprep.subr.bf16.mxu1 %v1418_v62 }
  0x3f   : > { %1283 = vmatpush3.bf16.msra.mxu0 %v1417_v61 }
  0x40   : > { %1284 = vmatprep.subr.bf16.mxu0 %v1420_v0 }
  0x41   : > { %1305 = vmatpush3.bf16.msra.mxu1 %v1419_v63 }
  0x42   : > { %1306 = vmatprep.subr.bf16.mxu1 %v1422_v2 }
  0x43   : > { %1285 = vmatpush3.bf16.msra.mxu0 %v1421_v1 }
  0x44   : > { %1323 = vmatprep.subr.bf16.mxu0 %v1447_v6 }
  0x45   : > { %1307 = vmatpush3.bf16.msra.mxu1 %v1426_v5 }
  0x46   : > { %951 = vmatmul.mubr.bf16.vlgmr.msra.gmra.mrb[4].mxu0 %v1423_v3 }
  0x47   : > { %1339 = vmatprep.mubr.msk.bf16.mxu0 %vm1448_vm0, %v1447_v6  ;;  %1324 = vmatpush3.bf16.msra.mxu0 %v1430_v9 }
  0x48   : > { %992 = vmatmul.mubr.bf16.vlgmr.msra.gmra.mrb[4].mxu1 %v1427_v7  ;;  %1325 = vmatprep.subr.bf16.mxu0 %v1447_v6 }
  0x4b   : > { %1326 = vmatpush3.bf16.msra.mxu0 %v1431_v10 }
  0x4c   : > { %1327 = vmatprep.subr.bf16.mxu0 %v1447_v6 }
  0x4f   : > { %1328 = vmatpush3.bf16.msra.mxu0 %v1432_v11 }
  0x50   : > { %1329 = vmatprep.subr.bf16.mxu0 %v1447_v6 }
  0x53   : > { %1330 = vmatpush3.bf16.msra.mxu0 %v1433_v12 }
  0x54   : > { %1331 = vmatprep.subr.bf16.mxu0 %v1447_v6 }
  0x57   : > { %1332 = vmatpush3.bf16.msra.mxu0 %v1434_v13 }
  0x58   : > { %1333 = vmatprep.subr.bf16.mxu0 %v1447_v6 }
  0x5b   : > { %1334 = vmatpush3.bf16.msra.mxu0 %v1435_v14 }
  0x5c   : > { %1335 = vmatprep.subr.bf16.mxu0 %v1447_v6 }
  0x5f   : > { %1336 = vmatpush3.bf16.msra.mxu0 %v1436_v15 }
  0x60   : > { %1337 = vmatprep.subr.bf16.mxu0 %v1447_v6 }
  0x63   : > { %1338 = vmatpush3.bf16.msra.mxu0 %v1437_v16 }
  0x66   : > { %1340 = vmatmul.mubr.bf16.vlgmr.msra.gmra.mrb[8].mxu0 %v1438_v17 }
  0xf9   : > { %v1242_v19 = vpop.f32.mrb[0].mxu0 }
  0xfa   : > { %v1243_v21 = vpop.f32.mrb[1].mxu0 }
  0xfb   : > { %v1244_v22 = vadd.f32 %v1243_v21, %v1242_v19  ;;  %v1245_v23 = vpop.f32.mrb[2].mxu0  ;;  %v1264_v25 = vpop.f32.mrb[0].mxu1 }
  0xfc   : > { %v1246_v26 = vpop.f32.mrb[3].mxu0  ;;  %v1265_v29 = vpop.f32.mrb[1].mxu1 }
  0xfd   : > { %v871_v27 = vadd.f32 %v1244_v22, %v1219_v20  ;;  %v1247_v28 = vadd.f32 %v1246_v26, %v1245_v23  ;;  %v1266_v30 = vadd.f32 %v1265_v29, %v1264_v25  ;;  %v1267_v31 = vpop.f32.mrb[2].mxu1 }
  0xfe   : > { %v1268_v33 = vpop.f32.mrb[3].mxu1 }
  0xff   : > { %v874_v32 = vadd.f32 %v1247_v28, %v1220_v24  ;;  %v912_v34 = vadd.f32 %v1266_v30, %v871_v27  ;;  %v1269_v35 = vadd.f32 %v1268_v33, %v1267_v31 }
 0x101   : > { %v915_v36 = vadd.f32 %v1269_v35, %v874_v32 }
 0x119   : > { %v1286_v37 = vpop.f32.mrb[4].mxu0 }
 0x11a   : > { %v1287_v38 = vpop.f32.mrb[5].mxu0 }
 0x11b   : > { %v1288_v39 = vadd.f32 %v1287_v38, %v1286_v37  ;;  %v1289_v40 = vpop.f32.mrb[6].mxu0  ;;  %v1308_v41 = vpop.f32.mrb[4].mxu1 }
 0x11c   : > { %v1290_v42 = vpop.f32.mrb[7].mxu0  ;;  %v1309_v45 = vpop.f32.mrb[5].mxu1 }
 0x11d   : > { %v953_v43 = vadd.f32 %v1288_v39, %v912_v34  ;;  %v1291_v44 = vadd.f32 %v1290_v42, %v1289_v40  ;;  %v1310_v46 = vadd.f32 %v1309_v45, %v1308_v41  ;;  %v1311_v47 = vpop.f32.mrb[6].mxu1 }
 0x11e   : > { %v1312_v49 = vpop.f32.mrb[7].mxu1 }
 0x11f   : > { %v956_v48 = vadd.f32 %v1291_v44, %v915_v36  ;;  %v1313_v50 = vadd.f32 %v1312_v49, %v1311_v47  ;;  %v994_v51 = vadd.f32 %v1310_v46, %v953_v43 }
 0x121   : > { %v997_v52 = vadd.f32 %v1313_v50, %v956_v48 }
 0x139   : > { %v1034_v53 = vpop.f32.mrb[8].mxu0 }
 0x13a   : > { %v1035_v54 = vadd.f32 %v1034_v53, %v994_v51  ;;  %v1341_v55 = vpop.f32.mrb[9].mxu0 }
 0x13b   : > { %v1037_v56 = vpop.f32.mrb[10].mxu0 }
 0x13c   : > { %v1038_v57 = vadd.f32 %v1037_v56, %v997_v52  ;;  %v1342_v58 = vpop.f32.mrb[11].mxu0 }
 0x13e   : > { %v1224_v59 = vpack.c.bf16 %v1038_v57, %v1035_v54 }
 0x140   : > { %1225 = vst [vmem:[%s197_s21] sm:$0xff] %v1224_v59  }
 0x141 PF: > { %s13_s12 = sadd.s32 1, %s1445_s12  }
 0x142   : > { %p10_p4 = scmp.ge.s32.totalorder %s13_s12, 4  }
 0x144   :  { %12 = sbr.rel (!%p10_p4) target bundleno = 1 (0x1), region = 65 }

// kernel: _lambda_.20
= control target key start
LH: loop header
LB: loop body
LE: loop exit
PB: predicated region body
PF: predicated region fallthrough
CT: control target
= control target key end

     0   :  { %vm1329_vm0 = vmmov 0   ;;  %s1663_s1 = inlined_call_operand.vmem [shape: bf16[1152,128], index: 1, kind: input, shape index: {}]   ;;  %s1664_s0 = inlined_call_operand.vmem [shape: bf16[8,1152], index: 0, kind: input, shape index: {}]   ;;  %s1665_s2 = inlined_call_operand.vmem [shape: bf16[128,128], index: 2, kind: input, shape index: {}]   ;;  %s1666_s5 = inlined_call_operand.vmem [shape: f32[1,128], index: 5, kind: input, shape index: {}]   ;;  %s1667_s3 = inlined_call_operand.vmem [shape: f32[1,128], index: 3, kind: input, shape index: {}]   ;;  %s1668_s6 = inlined_call_operand.vmem [shape: f32[1,128], index: 6, kind: input, shape index: {}]   ;;  %s1669_s4 = inlined_call_operand.vmem [shape: f32[1,128], index: 4, kind: input, shape index: {}]   ;;  %s1670_s7 = inlined_call_operand.vmem [shape: bf16[8,128], index: 7, kind: output, shape index: {0}]   ;;  %s1671_s9 = inlined_call_operand.vmem [shape: bf16[8,128], index: 9, kind: output, shape index: {2}]   ;;  %s1672_s8 = inlined_call_operand.vmem [shape: bf16[8,128], index: 8, kind: output, shape index: {1}]  }
   0x1   :  { %v1239_v0 = vld [vmem:[%s1663_s1 + $0x40] sm:$0xff]   ;;  %v1243_v4 = vld [vmem:[%s1663_s1 + $0x48] sm:$0xff]   ;;  %v1247_v8 = vld [vmem:[%s1663_s1 + $0x50] sm:$0xff]  }
   0x2   :  { %v1240_v1 = vld [vmem:[%s1663_s1 + $0xc0] sm:$0xff]   ;;  %1091 = vmatprep.subr.bf16.mxu0 %v1239_v0  ;;  %v1244_v5 = vld [vmem:[%s1663_s1 + $0xc8] sm:$0xff]   ;;  %v1248_v9 = vld [vmem:[%s1663_s1 + $0xd0] sm:$0xff]  }
   0x3   :  { %v1241_v2 = vld [vmem:[%s1663_s1] sm:$0xff]   ;;  %1113 = vmatprep.subr.bf16.mxu1 %v1240_v1  ;;  %v1245_v6 = vld [vmem:[%s1663_s1 + $0x8] sm:$0xff]   ;;  %v1249_v10 = vld [vmem:[%s1663_s1 + $0x10] sm:$0xff]  }
   0x4   :  { %v1242_v3 = vld [vmem:[%s1663_s1 + $0x80] sm:$0xff]   ;;  %1092 = vmatpush3.bf16.msra.mxu0 %v1241_v2  ;;  %v1246_v7 = vld [vmem:[%s1663_s1 + $0x88] sm:$0xff]   ;;  %v1250_v11 = vld [vmem:[%s1663_s1 + $0x90] sm:$0xff]  }
   0x5   :  { %1114 = vmatpush3.bf16.msra.mxu1 %v1242_v3  ;;  %1093 = vmatprep.subr.bf16.mxu0 %v1243_v4  ;;  %v1251_v12 = vld [vmem:[%s1663_s1 + $0x58] sm:$0xff]   ;;  %v1255_v16 = vld [vmem:[%s1663_s1 + $0x60] sm:$0xff]   ;;  %v1259_v20 = vld [vmem:[%s1663_s1 + $0x68] sm:$0xff]  }
   0x6   :  { %1115 = vmatprep.subr.bf16.mxu1 %v1244_v5  ;;  %v1252_v13 = vld [vmem:[%s1663_s1 + $0xd8] sm:$0xff]   ;;  %v1256_v17 = vld [vmem:[%s1663_s1 + $0xe0] sm:$0xff]   ;;  %v1260_v21 = vld [vmem:[%s1663_s1 + $0xe8] sm:$0xff]  }
   0x7   :  { %v1253_v14 = vld [vmem:[%s1663_s1 + $0x18] sm:$0xff]   ;;  %v1257_v18 = vld [vmem:[%s1663_s1 + $0x20] sm:$0xff]   ;;  %v1261_v22 = vld [vmem:[%s1663_s1 + $0x28] sm:$0xff]  }
   0x8   :  { %1094 = vmatpush3.bf16.msra.mxu0 %v1245_v6  ;;  %v1254_v15 = vld [vmem:[%s1663_s1 + $0x98] sm:$0xff]   ;;  %v1258_v19 = vld [vmem:[%s1663_s1 + $0xa0] sm:$0xff]   ;;  %v1262_v23 = vld [vmem:[%s1663_s1 + $0xa8] sm:$0xff]  }
   0x9   :  { %1116 = vmatpush3.bf16.msra.mxu1 %v1246_v7  ;;  %1095 = vmatprep.subr.bf16.mxu0 %v1247_v8  ;;  %v1263_v24 = vld [vmem:[%s1663_s1 + $0x70] sm:$0xff]   ;;  %v1267_v28 = vld [vmem:[%s1663_s1 + $0x78] sm:$0xff]   ;;  %v30_v32 = vld [vmem:[%s1664_s0] sm:$0xff] }
   0xa   :  { %1117 = vmatprep.subr.bf16.mxu1 %v1248_v9  ;;  %v1264_v25 = vld [vmem:[%s1663_s1 + $0xf0] sm:$0xff]   ;;  %v1268_v29 = vld [vmem:[%s1663_s1 + $0xf8] sm:$0xff]   ;;  %v31_v33 = vld [vmem:[%s1664_s0 + $0x8] sm:$0xff]  ;;  %v998_v34 = vcombine.low %v30_v32, %v30_v32  ;;  %v999_v35 = vcombine.high %v30_v32, %v30_v32 }
   0xb   :  { %v1265_v26 = vld [vmem:[%s1663_s1 + $0x30] sm:$0xff]   ;;  %v1269_v30 = vld [vmem:[%s1663_s1 + $0x38] sm:$0xff]   ;;  %v1000_v36 = vcombine.low %v31_v33, %v31_v33  ;;  %v1001_v37 = vcombine.high %v31_v33, %v31_v33  ;;  %v1275_v38 = vld [vmem:[%s1663_s1 + $0x140] sm:$0xff]  }
   0xc   :  { %1096 = vmatpush3.bf16.msra.mxu0 %v1249_v10  ;;  %v1266_v27 = vld [vmem:[%s1663_s1 + $0xb0] sm:$0xff]   ;;  %v1270_v31 = vld [vmem:[%s1663_s1 + $0xb8] sm:$0xff]   ;;  %v1276_v39 = vld [vmem:[%s1663_s1 + $0x100] sm:$0xff]   ;;  %675 = vmatprep.mubr.bf16.mxu0 %v999_v35 }
   0xd   :  { %1118 = vmatpush3.bf16.msra.mxu1 %v1250_v11  ;;  %1097 = vmatprep.subr.bf16.mxu0 %v1251_v12  ;;  %v1277_v40 = vld [vmem:[%s1663_s1 + $0x1c0] sm:$0xff]   ;;  %v1279_v42 = vld [vmem:[%s1663_s1 + $0x148] sm:$0xff]   ;;  %v1283_v46 = vld [vmem:[%s1663_s1 + $0x150] sm:$0xff]  }
   0xe   :  { %1119 = vmatprep.subr.bf16.mxu1 %v1252_v13  ;;  %715 = vmatprep.mubr.bf16.mxu1 %v1001_v37  ;;  %v1278_v41 = vld [vmem:[%s1663_s1 + $0x180] sm:$0xff]   ;;  %v1280_v43 = vld [vmem:[%s1663_s1 + $0x108] sm:$0xff]   ;;  %v1284_v47 = vld [vmem:[%s1663_s1 + $0x110] sm:$0xff]   ;;  %v1328_v13 = vmov 0.0  }
   0xf   :  { %v1281_v44 = vld [vmem:[%s1663_s1 + $0x1c8] sm:$0xff]   ;;  %v1285_v48 = vld [vmem:[%s1663_s1 + $0x1d0] sm:$0xff]   ;;  %v1287_v50 = vld [vmem:[%s1663_s1 + $0x158] sm:$0xff]  }
  0x10   :  { %1098 = vmatpush3.bf16.msra.mxu0 %v1253_v14  ;;  %v1282_v45 = vld [vmem:[%s1663_s1 + $0x188] sm:$0xff]   ;;  %v1286_v49 = vld [vmem:[%s1663_s1 + $0x190] sm:$0xff]   ;;  %v1288_v51 = vld [vmem:[%s1663_s1 + $0x118] sm:$0xff]  }
  0x11   :  { %1120 = vmatpush3.bf16.msra.mxu1 %v1254_v15  ;;  %1099 = vmatprep.subr.bf16.mxu0 %v1255_v16  ;;  %v1289_v52 = vld [vmem:[%s1663_s1 + $0x1d8] sm:$0xff]   ;;  %v1291_v54 = vld [vmem:[%s1663_s1 + $0x160] sm:$0xff]   ;;  %v1295_v58 = vld [vmem:[%s1663_s1 + $0x168] sm:$0xff]  }
  0x12   :  { %1121 = vmatprep.subr.bf16.mxu1 %v1256_v17  ;;  %v1290_v53 = vld [vmem:[%s1663_s1 + $0x198] sm:$0xff]   ;;  %v1292_v55 = vld [vmem:[%s1663_s1 + $0x120] sm:$0xff]   ;;  %v1296_v59 = vld [vmem:[%s1663_s1 + $0x128] sm:$0xff]  }
  0x13   :  { %v1293_v56 = vld [vmem:[%s1663_s1 + $0x1e0] sm:$0xff]   ;;  %v1297_v60 = vld [vmem:[%s1663_s1 + $0x1e8] sm:$0xff]   ;;  %v1299_v62 = vld [vmem:[%s1663_s1 + $0x170] sm:$0xff]  }
  0x14   :  { %1100 = vmatpush3.bf16.msra.mxu0 %v1257_v18  ;;  %v1294_v57 = vld [vmem:[%s1663_s1 + $0x1a0] sm:$0xff]   ;;  %v1298_v61 = vld [vmem:[%s1663_s1 + $0x1a8] sm:$0xff]   ;;  %v1300_v63 = vld [vmem:[%s1663_s1 + $0x130] sm:$0xff]  }
  0x15   :  { %1122 = vmatpush3.bf16.msra.mxu1 %v1258_v19  ;;  %1101 = vmatprep.subr.bf16.mxu0 %v1259_v20  ;;  %v1301_v0 = vld [vmem:[%s1663_s1 + $0x1f0] sm:$0xff]   ;;  %v1303_v2 = vld [vmem:[%s1663_s1 + $0x178] sm:$0xff]   ;;  %v1311_v12 = vld [vmem:[%s1663_s1 + $0x200] sm:$0xff]  }
  0x16   :  { %1123 = vmatprep.subr.bf16.mxu1 %v1260_v21  ;;  %v1302_v1 = vld [vmem:[%s1663_s1 + $0x1b0] sm:$0xff]   ;;  %v1304_v3 = vld [vmem:[%s1663_s1 + $0x138] sm:$0xff]   ;;  %v1312_v14 = vld [vmem:[%s1665_s2] sm:$0xff]  }
  0x17   :  { %v1305_v4 = vld [vmem:[%s1663_s1 + $0x1f8] sm:$0xff]   ;;  %v1581_v6 = vld [vmem:[%s1664_s0 + $0x10] sm:$0xff]  ;;  %v1313_v15 = vld [vmem:[%s1663_s1 + $0x208] sm:$0xff]  }
  0x18   :  { %1102 = vmatpush3.bf16.msra.mxu0 %v1261_v22  ;;  %v1306_v5 = vld [vmem:[%s1663_s1 + $0x1b8] sm:$0xff]   ;;  %v1003_v7 = vcombine.high %v1581_v6, %v1581_v6  ;;  %v1002_v8 = vcombine.low %v1581_v6, %v1581_v6  ;;  %v1314_v16 = vld [vmem:[%s1665_s2 + $0x8] sm:$0xff]   ;;  %v1315_v17 = vld [vmem:[%s1663_s1 + $0x210] sm:$0xff]  }
  0x19   :  { %1124 = vmatpush3.bf16.msra.mxu1 %v1262_v23  ;;  %1103 = vmatprep.subr.bf16.mxu0 %v1263_v24  ;;  %v33_v9 = vld [vmem:[%s1664_s0 + $0x18] sm:$0xff]  ;;  %v1316_v18 = vld [vmem:[%s1665_s2 + $0x10] sm:$0xff]   ;;  %v1319_v21 = vld [vmem:[%s1663_s1 + $0x220] sm:$0xff]  }
  0x1a   :  { %1125 = vmatprep.subr.bf16.mxu1 %v1264_v25  ;;  %v1004_v10 = vcombine.low %v33_v9, %v33_v9  ;;  %v1005_v11 = vcombine.high %v33_v9, %v33_v9  ;;  %v1317_v19 = vld [vmem:[%s1663_s1 + $0x218] sm:$0xff]   ;;  %v1320_v22 = vld [vmem:[%s1665_s2 + $0x20] sm:$0xff]   ;;  %v1321_v23 = vld [vmem:[%s1663_s1 + $0x228] sm:$0xff]  }
  0x1b   :  { %v1318_v20 = vld [vmem:[%s1665_s2 + $0x18] sm:$0xff]   ;;  %v1322_v24 = vld [vmem:[%s1665_s2 + $0x28] sm:$0xff]   ;;  %v1323_v25 = vld [vmem:[%s1663_s1 + $0x230] sm:$0xff]  }
  0x1c   :  { %1104 = vmatpush3.bf16.msra.mxu0 %v1265_v26  ;;  %v1324_v26 = vld [vmem:[%s1665_s2 + $0x30] sm:$0xff]  }
  0x1d   :  { %1126 = vmatpush3.bf16.msra.mxu1 %v1266_v27  ;;  %1105 = vmatprep.subr.bf16.mxu0 %v1267_v28  ;;  %v1325_v27 = vld [vmem:[%s1663_s1 + $0x238] sm:$0xff]  }
  0x1e   :  { %1127 = vmatprep.subr.bf16.mxu1 %v1268_v29  ;;  %v1326_v28 = vld [vmem:[%s1665_s2 + $0x38] sm:$0xff]   ;;  %v1327_v29 = vld [vmem:[%s1664_s0 + $0x20] ss:$0 sps:$4 sm:$0xff]  }
  0x20   :  { %1106 = vmatpush3.bf16.msra.mxu0 %v1269_v30 }
  0x21   :  { %1128 = vmatpush3.bf16.msra.mxu1 %v1270_v31  ;;  %1135 = vmatprep.subr.bf16.mxu0 %v1275_v38 }
  0x22   :  { %1157 = vmatprep.subr.bf16.mxu1 %v1277_v40 }
  0x23   :  { %676 = vmatmul.mubr.bf16.vlgmr.msra.gmra.mrb[0].mxu0 %v998_v34 }
  0x24   :  { %716 = vmatmul.mubr.bf16.vlgmr.msra.gmra.mrb[0].mxu1 %v1000_v36  ;;  %1136 = vmatpush3.bf16.msra.mxu0 %v1276_v39 }
  0x25   :  { %1158 = vmatpush3.bf16.msra.mxu1 %v1278_v41  ;;  %1137 = vmatprep.subr.bf16.mxu0 %v1279_v42 }
  0x26   :  { %1159 = vmatprep.subr.bf16.mxu1 %v1281_v44  ;;  %755 = vmatprep.mubr.bf16.mxu0 %v1003_v7 }
  0x27   :  { %795 = vmatprep.mubr.bf16.mxu1 %v1005_v11 }
  0x28   :  { %1138 = vmatpush3.bf16.msra.mxu0 %v1280_v43 }
  0x29   :  { %1160 = vmatpush3.bf16.msra.mxu1 %v1282_v45  ;;  %1139 = vmatprep.subr.bf16.mxu0 %v1283_v46 }
  0x2a   :  { %1161 = vmatprep.subr.bf16.mxu1 %v1285_v48 }
  0x2c   :  { %1140 = vmatpush3.bf16.msra.mxu0 %v1284_v47 }
  0x2d   :  { %1162 = vmatpush3.bf16.msra.mxu1 %v1286_v49  ;;  %1141 = vmatprep.subr.bf16.mxu0 %v1287_v50 }
  0x2e   :  { %1163 = vmatprep.subr.bf16.mxu1 %v1289_v52 }
  0x30   :  { %1142 = vmatpush3.bf16.msra.mxu0 %v1288_v51 }
  0x31   :  { %1164 = vmatpush3.bf16.msra.mxu1 %v1290_v53  ;;  %1143 = vmatprep.subr.bf16.mxu0 %v1291_v54  ;;  %v1089_v53 = vld [vmem:[%s1666_s5] ss:$0 sm:$0xff] }
  0x32   :  { %1165 = vmatprep.subr.bf16.mxu1 %v1293_v56 }
  0x34   :  { %1144 = vmatpush3.bf16.msra.mxu0 %v1292_v55  ;;  %v1079_v55 = vld [vmem:[%s1667_s3] ss:$0 sm:$0xff] }
  0x35   :  { %1166 = vmatpush3.bf16.msra.mxu1 %v1294_v57  ;;  %1145 = vmatprep.subr.bf16.mxu0 %v1295_v58  ;;  %v1090_v57 = vld [vmem:[%s1668_s6] ss:$0 sm:$0xff] }
  0x36   :  { %1167 = vmatprep.subr.bf16.mxu1 %v1297_v60 }
  0x38   :  { %1146 = vmatpush3.bf16.msra.mxu0 %v1296_v59 }
  0x39   :  { %1168 = vmatpush3.bf16.msra.mxu1 %v1298_v61  ;;  %1147 = vmatprep.subr.bf16.mxu0 %v1299_v62  ;;  %v1080_v62 = vld [vmem:[%s1669_s4] ss:$0 sm:$0xff] }
  0x3a   :  { %1169 = vmatprep.subr.bf16.mxu1 %v1301_v0 }
  0x3c   :  { %1148 = vmatpush3.bf16.msra.mxu0 %v1300_v63 }
  0x3d   :  { %1170 = vmatpush3.bf16.msra.mxu1 %v1302_v1  ;;  %1149 = vmatprep.subr.bf16.mxu0 %v1303_v2 }
  0x3e   :  { %1171 = vmatprep.subr.bf16.mxu1 %v1305_v4 }
  0x40   :  { %1150 = vmatpush3.bf16.msra.mxu0 %v1304_v3 }
  0x41   :  { %1172 = vmatpush3.bf16.msra.mxu1 %v1306_v5  ;;  %1197 = vmatprep.subr.bf16.mxu0 %v1328_v13 }
  0x42   :  { %1217 = vmatprep.subr.bf16.mxu1 %v1328_v13 }
  0x43   :  { %756 = vmatmul.mubr.bf16.vlgmr.msra.gmra.mrb[4].mxu0 %v1002_v8 }
  0x44   :  { %796 = vmatmul.mubr.bf16.vlgmr.msra.gmra.mrb[4].mxu1 %v1004_v10  ;;  %1198 = vmatpush3.bf16.msra.mxu0 %v1311_v12 }
  0x45   :  { %1218 = vmatpush3.bf16.msra.mxu1 %v1312_v14  ;;  %1199 = vmatprep.subr.bf16.mxu0 %v1328_v13 }
  0x46   :  { %1219 = vmatprep.subr.bf16.mxu1 %v1328_v13  ;;  %1213 = vmatprep.mubr.msk.bf16.mxu0 %vm1329_vm0, %v1328_v13 }
  0x47   :  { %1233 = vmatprep.mubr.msk.bf16.mxu1 %vm1329_vm0, %v1328_v13 }
  0x48   :  { %1200 = vmatpush3.bf16.msra.mxu0 %v1313_v15 }
  0x49   :  { %1220 = vmatpush3.bf16.msra.mxu1 %v1314_v16  ;;  %1201 = vmatprep.subr.bf16.mxu0 %v1328_v13 }
  0x4a   :  { %1221 = vmatprep.subr.bf16.mxu1 %v1328_v13 }
  0x4c   :  { %1202 = vmatpush3.bf16.msra.mxu0 %v1315_v17 }
  0x4d   :  { %1222 = vmatpush3.bf16.msra.mxu1 %v1316_v18  ;;  %1203 = vmatprep.subr.bf16.mxu0 %v1328_v13 }
  0x4e   :  { %1223 = vmatprep.subr.bf16.mxu1 %v1328_v13 }
  0x50   :  { %1204 = vmatpush3.bf16.msra.mxu0 %v1317_v19 }
  0x51   :  { %1224 = vmatpush3.bf16.msra.mxu1 %v1318_v20  ;;  %1205 = vmatprep.subr.bf16.mxu0 %v1328_v13 }
  0x52   :  { %1225 = vmatprep.subr.bf16.mxu1 %v1328_v13 }
  0x54   :  { %1206 = vmatpush3.bf16.msra.mxu0 %v1319_v21 }
  0x55   :  { %1226 = vmatpush3.bf16.msra.mxu1 %v1320_v22  ;;  %1207 = vmatprep.subr.bf16.mxu0 %v1328_v13 }
  0x56   :  { %1227 = vmatprep.subr.bf16.mxu1 %v1328_v13 }
  0x58   :  { %1208 = vmatpush3.bf16.msra.mxu0 %v1321_v23 }
  0x59   :  { %1228 = vmatpush3.bf16.msra.mxu1 %v1322_v24  ;;  %1209 = vmatprep.subr.bf16.mxu0 %v1328_v13 }
  0x5a   :  { %1229 = vmatprep.subr.bf16.mxu1 %v1328_v13 }
  0x5c   :  { %1210 = vmatpush3.bf16.msra.mxu0 %v1323_v25 }
  0x5d   :  { %1230 = vmatpush3.bf16.msra.mxu1 %v1324_v26  ;;  %1211 = vmatprep.subr.bf16.mxu0 %v1328_v13 }
  0x5e   :  { %1231 = vmatprep.subr.bf16.mxu1 %v1328_v13 }
  0x60   :  { %1212 = vmatpush3.bf16.msra.mxu0 %v1325_v27 }
  0x61   :  { %1232 = vmatpush3.bf16.msra.mxu1 %v1326_v28 }
  0x63   :  { %1214 = vmatmul.mubr.bf16.vlgmr.msra.gmra.mrb[8].mxu0 %v1327_v29 }
  0x64   :  { %1234 = vmatmul.mubr.bf16.vlgmr.msra.gmra.mrb[8].mxu1 %v1581_v6 }
  0xf6   :  { %v1107_v30 = vpop.f32.mrb[0].mxu0 }
  0xf7   :  { %v1129_v31 = vpop.f32.mrb[0].mxu1  ;;  %v1108_v32 = vpop.f32.mrb[1].mxu0 }
  0xf8   :  { %v1130_v33 = vpop.f32.mrb[1].mxu1  ;;  %v1109_v34 = vadd.f32 %v1108_v32, %v1107_v30  ;;  %v1110_v36 = vpop.f32.mrb[2].mxu0 }
  0xf9   :  { %v1131_v35 = vadd.f32 %v1130_v33, %v1129_v31  ;;  %v1132_v37 = vpop.f32.mrb[2].mxu1  ;;  %v1111_v38 = vpop.f32.mrb[3].mxu0 }
  0xfa   :  { %v1133_v39 = vpop.f32.mrb[3].mxu1 }
  0xfb   :  { %v718_v40 = vadd.f32 %v1131_v35, %v1109_v34 }
 0x116   :  { %v1151_v41 = vpop.f32.mrb[4].mxu0 }
 0x117   :  { %v1173_v42 = vpop.f32.mrb[4].mxu1  ;;  %v1152_v43 = vpop.f32.mrb[5].mxu0 }
 0x118   :  { %v1174_v44 = vpop.f32.mrb[5].mxu1  ;;  %v1153_v45 = vadd.f32 %v1152_v43, %v1151_v41  ;;  %v1154_v46 = vpop.f32.mrb[6].mxu0 }
 0x119   :  { %v1175_v47 = vadd.f32 %v1174_v44, %v1173_v42  ;;  %v1176_v48 = vpop.f32.mrb[6].mxu1  ;;  %v1155_v49 = vpop.f32.mrb[7].mxu0 }
 0x11a   :  { %v1177_v50 = vpop.f32.mrb[7].mxu1  ;;  %v758_v51 = vadd.f32 %v1153_v45, %v718_v40 }
 0x11c   :  { %v798_v52 = vadd.f32 %v1175_v47, %v758_v51 }
 0x136   :  { %v837_v54 = vpop.f32.mrb[8].mxu0 }
 0x137   :  { %v962_v56 = vpop.f32.mrb[8].mxu1  ;;  %v838_v58 = vadd.f32 %v837_v54, %v798_v52  ;;  %v1215_v59 = vpop.f32.mrb[9].mxu0 }
 0x138   :  { %v975_v60 = vmul.f32 %v1089_v53, %v962_v56  ;;  %v1235_v61 = vpop.f32.mrb[9].mxu1  ;;  %v840_v63 = vpop.f32.mrb[10].mxu0 }
 0x139   :  { %v965_v0 = vpop.f32.mrb[10].mxu1  ;;  %v843_v1 = vpack.c.bf16 %v838_v58, %v838_v58  ;;  %v852_v2 = vmul.f32 %v1079_v55, %v838_v58  ;;  %v1216_v4 = vpop.f32.mrb[11].mxu0 }
 0x13a   :  { %v983_v3 = vadd.f32 %v1090_v57, %v975_v60  ;;  %v1236_v5 = vpop.f32.mrb[11].mxu1 }
 0x13b   :  { %844 = vst [vmem:[%s1670_s7] sm:$0xf] %v843_v1  ;;  %v860_v6 = vadd.f32 %v1080_v62, %v852_v2 }
 0x13c   :  { %v984_v7 = vpack.c.bf16 %v983_v3, %v983_v3 }
 0x13d   :  { %v861_v8 = vmax.f32 %v860_v6, 0.0 }
 0x13e   :  { %985 = vst [vmem:[%s1671_s9] sm:$0xf] %v984_v7 }
 0x13f   :  { %v862_v9 = vpack.c.bf16 %v861_v8, %v861_v8 }
 0x141   :  { %863 = vst [vmem:[%s1672_s8] sm:$0xf] %v862_v9 }

// kernel: _lambda_.21
= control target key start
LH: loop header
LB: loop body
LE: loop exit
PB: predicated region body
PF: predicated region fallthrough
CT: control target
= control target key end

     0   :  { %vm1118_vm0 = vmmov 0   ;;  %s1376_s1 = inlined_call_operand.vmem [shape: bf16[1152,128], index: 1, kind: input, shape index: {}]   ;;  %s1377_s0 = inlined_call_operand.vmem [shape: bf16[8,1152], index: 0, kind: input, shape index: {}]   ;;  %s1378_s2 = inlined_call_operand.vmem [shape: bf16[8,128], index: 2, kind: input, shape index: {}]   ;;  %s1379_s3 = inlined_call_operand.vmem [shape: bf16[8,128], index: 3, kind: output, shape index: {}]  }
   0x1   :  { %v1036_v0 = vld [vmem:[%s1376_s1 + $0x40] sm:$0xff]   ;;  %v1040_v4 = vld [vmem:[%s1376_s1 + $0x48] sm:$0xff]   ;;  %v1044_v8 = vld [vmem:[%s1376_s1 + $0x50] sm:$0xff]  }
   0x2   :  { %v1037_v1 = vld [vmem:[%s1376_s1] sm:$0xff]   ;;  %917 = vmatprep.subr.bf16.mxu0 %v1036_v0  ;;  %v1041_v5 = vld [vmem:[%s1376_s1 + $0x8] sm:$0xff]   ;;  %v1045_v9 = vld [vmem:[%s1376_s1 + $0x10] sm:$0xff]  }
   0x3   :  { %v1038_v2 = vld [vmem:[%s1376_s1 + $0xc0] sm:$0xff]   ;;  %918 = vmatpush3.bf16.msra.mxu0 %v1037_v1  ;;  %v1042_v6 = vld [vmem:[%s1376_s1 + $0xc8] sm:$0xff]   ;;  %v1046_v10 = vld [vmem:[%s1376_s1 + $0xd0] sm:$0xff]  }
   0x4   :  { %v1039_v3 = vld [vmem:[%s1376_s1 + $0x80] sm:$0xff]   ;;  %939 = vmatprep.subr.bf16.mxu1 %v1038_v2  ;;  %919 = vmatprep.subr.bf16.mxu0 %v1040_v4  ;;  %v1043_v7 = vld [vmem:[%s1376_s1 + $0x88] sm:$0xff]   ;;  %v1047_v11 = vld [vmem:[%s1376_s1 + $0x90] sm:$0xff]  }
   0x5   :  { %940 = vmatpush3.bf16.msra.mxu1 %v1039_v3  ;;  %v1048_v12 = vld [vmem:[%s1376_s1 + $0x58] sm:$0xff]   ;;  %v1052_v16 = vld [vmem:[%s1376_s1 + $0x60] sm:$0xff]   ;;  %v1056_v20 = vld [vmem:[%s1376_s1 + $0x68] sm:$0xff]  }
   0x6   :  { %941 = vmatprep.subr.bf16.mxu1 %v1042_v6  ;;  %v1049_v13 = vld [vmem:[%s1376_s1 + $0x18] sm:$0xff]   ;;  %v1053_v17 = vld [vmem:[%s1376_s1 + $0x20] sm:$0xff]   ;;  %v1057_v21 = vld [vmem:[%s1376_s1 + $0x28] sm:$0xff]  }
   0x7   :  { %920 = vmatpush3.bf16.msra.mxu0 %v1041_v5  ;;  %v1050_v14 = vld [vmem:[%s1376_s1 + $0xd8] sm:$0xff]   ;;  %v1054_v18 = vld [vmem:[%s1376_s1 + $0xe0] sm:$0xff]   ;;  %v1058_v22 = vld [vmem:[%s1376_s1 + $0xe8] sm:$0xff]  }
   0x8   :  { %921 = vmatprep.subr.bf16.mxu0 %v1044_v8  ;;  %v1051_v15 = vld [vmem:[%s1376_s1 + $0x98] sm:$0xff]   ;;  %v1055_v19 = vld [vmem:[%s1376_s1 + $0xa0] sm:$0xff]   ;;  %v1059_v23 = vld [vmem:[%s1376_s1 + $0xa8] sm:$0xff]  }
   0x9   :  { %942 = vmatpush3.bf16.msra.mxu1 %v1043_v7  ;;  %v1060_v24 = vld [vmem:[%s1376_s1 + $0x70] sm:$0xff]   ;;  %v1064_v28 = vld [vmem:[%s1376_s1 + $0x78] sm:$0xff]   ;;  %v15_v31 = vld [vmem:[%s1377_s0] sm:$0xff] }
   0xa   :  { %943 = vmatprep.subr.bf16.mxu1 %v1046_v10  ;;  %v1061_v25 = vld [vmem:[%s1376_s1 + $0x30] sm:$0xff]   ;;  %v1065_v29 = vld [vmem:[%s1376_s1 + $0x38] sm:$0xff]   ;;  %v836_v32 = vcombine.low %v15_v31, %v15_v31  ;;  %v837_v33 = vcombine.high %v15_v31, %v15_v31  ;;  %v1070_v35 = vld [vmem:[%s1376_s1 + $0x140] sm:$0xff]  }
   0xb   :  { %922 = vmatpush3.bf16.msra.mxu0 %v1045_v9  ;;  %v1062_v26 = vld [vmem:[%s1376_s1 + $0xf0] sm:$0xff]   ;;  %v1066_v30 = vld [vmem:[%s1376_s1 + $0xf8] sm:$0xff]   ;;  %v16_v36 = vld [vmem:[%s1377_s0 + $0x8] sm:$0xff]  ;;  %v1117_v9 = vmov 0.0  }
   0xc   :  { %923 = vmatprep.subr.bf16.mxu0 %v1048_v12  ;;  %v1063_v27 = vld [vmem:[%s1376_s1 + $0xb0] sm:$0xff]   ;;  %v1069_v34 = vld [vmem:[%s1376_s1 + $0xb8] sm:$0xff]   ;;  %662 = vmatprep.mubr.bf16.mxu0 %v837_v33  ;;  %v838_v37 = vcombine.low %v16_v36, %v16_v36  ;;  %v839_v38 = vcombine.high %v16_v36, %v16_v36  ;;  %v1073_v39 = vld [vmem:[%s1376_s1 + $0x100] sm:$0xff]  }
   0xd   :  { %944 = vmatpush3.bf16.msra.mxu1 %v1047_v11  ;;  %v1074_v40 = vld [vmem:[%s1376_s1 + $0x1c0] sm:$0xff]   ;;  %v1076_v42 = vld [vmem:[%s1376_s1 + $0x148] sm:$0xff]   ;;  %v1080_v46 = vld [vmem:[%s1376_s1 + $0x150] sm:$0xff]  }
   0xe   :  { %945 = vmatprep.subr.bf16.mxu1 %v1050_v14  ;;  %702 = vmatprep.mubr.bf16.mxu1 %v839_v38  ;;  %v1075_v41 = vld [vmem:[%s1376_s1 + $0x180] sm:$0xff]   ;;  %v1077_v43 = vld [vmem:[%s1376_s1 + $0x108] sm:$0xff]   ;;  %v1081_v47 = vld [vmem:[%s1376_s1 + $0x110] sm:$0xff]  }
   0xf   :  { %924 = vmatpush3.bf16.msra.mxu0 %v1049_v13  ;;  %v1078_v44 = vld [vmem:[%s1376_s1 + $0x1c8] sm:$0xff]   ;;  %v1082_v48 = vld [vmem:[%s1376_s1 + $0x1d0] sm:$0xff]   ;;  %v1084_v50 = vld [vmem:[%s1376_s1 + $0x158] sm:$0xff]  }
  0x10   :  { %925 = vmatprep.subr.bf16.mxu0 %v1052_v16  ;;  %v1079_v45 = vld [vmem:[%s1376_s1 + $0x188] sm:$0xff]   ;;  %v1083_v49 = vld [vmem:[%s1376_s1 + $0x190] sm:$0xff]   ;;  %v1085_v51 = vld [vmem:[%s1376_s1 + $0x118] sm:$0xff]  }
  0x11   :  { %946 = vmatpush3.bf16.msra.mxu1 %v1051_v15  ;;  %v1086_v52 = vld [vmem:[%s1376_s1 + $0x1d8] sm:$0xff]   ;;  %v1088_v54 = vld [vmem:[%s1376_s1 + $0x160] sm:$0xff]   ;;  %v1092_v58 = vld [vmem:[%s1376_s1 + $0x168] sm:$0xff]  }
  0x12   :  { %947 = vmatprep.subr.bf16.mxu1 %v1054_v18  ;;  %v1087_v53 = vld [vmem:[%s1376_s1 + $0x198] sm:$0xff]   ;;  %v1089_v55 = vld [vmem:[%s1376_s1 + $0x120] sm:$0xff]   ;;  %v1093_v59 = vld [vmem:[%s1376_s1 + $0x128] sm:$0xff]  }
  0x13   :  { %926 = vmatpush3.bf16.msra.mxu0 %v1053_v17  ;;  %v1090_v56 = vld [vmem:[%s1376_s1 + $0x1e0] sm:$0xff]   ;;  %v1094_v60 = vld [vmem:[%s1376_s1 + $0x1e8] sm:$0xff]   ;;  %v1096_v62 = vld [vmem:[%s1376_s1 + $0x170] sm:$0xff]  }
  0x14   :  { %927 = vmatprep.subr.bf16.mxu0 %v1056_v20  ;;  %v1091_v57 = vld [vmem:[%s1376_s1 + $0x1a0] sm:$0xff]   ;;  %v1095_v61 = vld [vmem:[%s1376_s1 + $0x1a8] sm:$0xff]   ;;  %v1097_v63 = vld [vmem:[%s1376_s1 + $0x130] sm:$0xff]  }
  0x15   :  { %948 = vmatpush3.bf16.msra.mxu1 %v1055_v19  ;;  %v1098_v0 = vld [vmem:[%s1376_s1 + $0x1f0] sm:$0xff]   ;;  %v1100_v2 = vld [vmem:[%s1376_s1 + $0x178] sm:$0xff]   ;;  %v1108_v13 = vld [vmem:[%s1376_s1 + $0x200] sm:$0xff]  }
  0x16   :  { %949 = vmatprep.subr.bf16.mxu1 %v1058_v22  ;;  %v1099_v1 = vld [vmem:[%s1376_s1 + $0x1b0] sm:$0xff]   ;;  %v1101_v3 = vld [vmem:[%s1376_s1 + $0x138] sm:$0xff]   ;;  %v1109_v14 = vld [vmem:[%s1376_s1 + $0x208] sm:$0xff]  }
  0x17   :  { %928 = vmatpush3.bf16.msra.mxu0 %v1057_v21  ;;  %v1102_v4 = vld [vmem:[%s1376_s1 + $0x1f8] sm:$0xff]   ;;  %v17_v5 = vld [vmem:[%s1377_s0 + $0x10] sm:$0xff]  ;;  %v1112_v17 = vld [vmem:[%s1376_s1 + $0x220] sm:$0xff]  }
  0x18   :  { %929 = vmatprep.subr.bf16.mxu0 %v1060_v24  ;;  %v840_v6 = vcombine.low %v17_v5, %v17_v5  ;;  %v841_v7 = vcombine.high %v17_v5, %v17_v5  ;;  %v1105_v8 = vld [vmem:[%s1376_s1 + $0x1b8] sm:$0xff]   ;;  %v1110_v15 = vld [vmem:[%s1376_s1 + $0x210] sm:$0xff]   ;;  %v1113_v18 = vld [vmem:[%s1376_s1 + $0x228] sm:$0xff]  }
  0x19   :  { %950 = vmatpush3.bf16.msra.mxu1 %v1059_v23  ;;  %v18_v10 = vld [vmem:[%s1377_s0 + $0x18] sm:$0xff]  ;;  %v1114_v19 = vld [vmem:[%s1376_s1 + $0x230] sm:$0xff]   ;;  %v1116_v21 = vld [vmem:[%s1377_s0 + $0x20] ss:$0 sps:$4 sm:$0xff]  }
  0x1a   :  { %951 = vmatprep.subr.bf16.mxu1 %v1062_v26  ;;  %v842_v11 = vcombine.low %v18_v10, %v18_v10  ;;  %v843_v12 = vcombine.high %v18_v10, %v18_v10  ;;  %v1111_v16 = vld [vmem:[%s1376_s1 + $0x218] sm:$0xff]   ;;  %v164_v22 = vld [vmem:[%s1378_s2] sm:$0xf] }
  0x1b   :  { %930 = vmatpush3.bf16.msra.mxu0 %v1061_v25  ;;  %v1115_v20 = vld [vmem:[%s1376_s1 + $0x238] sm:$0xff]   ;;  %v165_v24 = vunpack.c.l.bf16 %v164_v22 }
  0x1c   :  { %931 = vmatprep.subr.bf16.mxu0 %v1064_v28 }
  0x1d   :  { %952 = vmatpush3.bf16.msra.mxu1 %v1063_v27 }
  0x1e   :  { %953 = vmatprep.subr.bf16.mxu1 %v1066_v30 }
  0x1f   :  { %932 = vmatpush3.bf16.msra.mxu0 %v1065_v29 }
  0x20   :  { %961 = vmatprep.subr.bf16.mxu0 %v1070_v35 }
  0x21   :  { %954 = vmatpush3.bf16.msra.mxu1 %v1069_v34 }
  0x22   :  { %663 = vmatmul.mubr.bf16.vlgmr.msra.gmra.mrb[0].mxu0 %v836_v32  ;;  %983 = vmatprep.subr.bf16.mxu1 %v1074_v40 }
  0x23   :  { %962 = vmatpush3.bf16.msra.mxu0 %v1073_v39  ;;  %742 = vmatprep.mubr.bf16.mxu0 %v841_v7 }
  0x24   :  { %703 = vmatmul.mubr.bf16.vlgmr.msra.gmra.mrb[0].mxu1 %v838_v37  ;;  %963 = vmatprep.subr.bf16.mxu0 %v1076_v42 }
  0x25   :  { %984 = vmatpush3.bf16.msra.mxu1 %v1075_v41  ;;  %782 = vmatprep.mubr.bf16.mxu1 %v843_v12 }
  0x26   :  { %985 = vmatprep.subr.bf16.mxu1 %v1078_v44 }
  0x27   :  { %964 = vmatpush3.bf16.msra.mxu0 %v1077_v43 }
  0x28   :  { %965 = vmatprep.subr.bf16.mxu0 %v1080_v46 }
  0x29   :  { %986 = vmatpush3.bf16.msra.mxu1 %v1079_v45 }
  0x2a   :  { %987 = vmatprep.subr.bf16.mxu1 %v1082_v48 }
  0x2b   :  { %966 = vmatpush3.bf16.msra.mxu0 %v1081_v47 }
  0x2c   :  { %967 = vmatprep.subr.bf16.mxu0 %v1084_v50 }
  0x2d   :  { %988 = vmatpush3.bf16.msra.mxu1 %v1083_v49 }
  0x2e   :  { %989 = vmatprep.subr.bf16.mxu1 %v1086_v52 }
  0x2f   :  { %968 = vmatpush3.bf16.msra.mxu0 %v1085_v51 }
  0x30   :  { %969 = vmatprep.subr.bf16.mxu0 %v1088_v54 }
  0x31   :  { %990 = vmatpush3.bf16.msra.mxu1 %v1087_v53 }
  0x32   :  { %991 = vmatprep.subr.bf16.mxu1 %v1090_v56 }
  0x33   :  { %970 = vmatpush3.bf16.msra.mxu0 %v1089_v55 }
  0x34   :  { %971 = vmatprep.subr.bf16.mxu0 %v1092_v58 }
  0x35   :  { %992 = vmatpush3.bf16.msra.mxu1 %v1091_v57 }
  0x36   :  { %993 = vmatprep.subr.bf16.mxu1 %v1094_v60 }
  0x37   :  { %972 = vmatpush3.bf16.msra.mxu0 %v1093_v59 }
  0x38   :  { %973 = vmatprep.subr.bf16.mxu0 %v1096_v62 }
  0x39   :  { %994 = vmatpush3.bf16.msra.mxu1 %v1095_v61 }
  0x3a   :  { %995 = vmatprep.subr.bf16.mxu1 %v1098_v0 }
  0x3b   :  { %974 = vmatpush3.bf16.msra.mxu0 %v1097_v63 }
  0x3c   :  { %975 = vmatprep.subr.bf16.mxu0 %v1100_v2 }
  0x3d   :  { %996 = vmatpush3.bf16.msra.mxu1 %v1099_v1 }
  0x3e   :  { %997 = vmatprep.subr.bf16.mxu1 %v1102_v4 }
  0x3f   :  { %976 = vmatpush3.bf16.msra.mxu0 %v1101_v3 }
  0x40   :  { %1014 = vmatprep.subr.bf16.mxu0 %v1117_v9 }
  0x41   :  { %998 = vmatpush3.bf16.msra.mxu1 %v1105_v8 }
  0x42   :  { %743 = vmatmul.mubr.bf16.vlgmr.msra.gmra.mrb[4].mxu0 %v840_v6 }
  0x43   :  { %1015 = vmatpush3.bf16.msra.mxu0 %v1108_v13  ;;  %1030 = vmatprep.mubr.msk.bf16.mxu0 %vm1118_vm0, %v1117_v9 }
  0x44   :  { %783 = vmatmul.mubr.bf16.vlgmr.msra.gmra.mrb[4].mxu1 %v842_v11  ;;  %1016 = vmatprep.subr.bf16.mxu0 %v1117_v9 }
  0x47   :  { %1017 = vmatpush3.bf16.msra.mxu0 %v1109_v14 }
  0x48   :  { %1018 = vmatprep.subr.bf16.mxu0 %v1117_v9 }
  0x4b   :  { %1019 = vmatpush3.bf16.msra.mxu0 %v1110_v15 }
  0x4c   :  { %1020 = vmatprep.subr.bf16.mxu0 %v1117_v9 }
  0x4f   :  { %1021 = vmatpush3.bf16.msra.mxu0 %v1111_v16 }
  0x50   :  { %1022 = vmatprep.subr.bf16.mxu0 %v1117_v9 }
  0x53   :  { %1023 = vmatpush3.bf16.msra.mxu0 %v1112_v17 }
  0x54   :  { %1024 = vmatprep.subr.bf16.mxu0 %v1117_v9 }
  0x57   :  { %1025 = vmatpush3.bf16.msra.mxu0 %v1113_v18 }
  0x58   :  { %1026 = vmatprep.subr.bf16.mxu0 %v1117_v9 }
  0x5b   :  { %1027 = vmatpush3.bf16.msra.mxu0 %v1114_v19 }
  0x5c   :  { %1028 = vmatprep.subr.bf16.mxu0 %v1117_v9 }
  0x5f   :  { %1029 = vmatpush3.bf16.msra.mxu0 %v1115_v20 }
  0x62   :  { %1031 = vmatmul.mubr.bf16.vlgmr.msra.gmra.mrb[8].mxu0 %v1116_v21 }
  0xf5   :  { %v933_v23 = vpop.f32.mrb[0].mxu0 }
  0xf6   :  { %v934_v25 = vpop.f32.mrb[1].mxu0 }
  0xf7   :  { %v935_v26 = vadd.f32 %v934_v25, %v933_v23  ;;  %v936_v27 = vpop.f32.mrb[2].mxu0  ;;  %v955_v28 = vpop.f32.mrb[0].mxu1 }
  0xf8   :  { %v937_v29 = vpop.f32.mrb[3].mxu0  ;;  %v956_v30 = vpop.f32.mrb[1].mxu1 }
  0xf9   :  { %v665_v31 = vadd.f32 %v935_v26, %v165_v24  ;;  %v957_v32 = vadd.f32 %v956_v30, %v955_v28  ;;  %v958_v33 = vpop.f32.mrb[2].mxu1 }
  0xfa   :  { %v959_v34 = vpop.f32.mrb[3].mxu1 }
  0xfb   :  { %v705_v35 = vadd.f32 %v957_v32, %v665_v31 }
 0x115   :  { %v977_v36 = vpop.f32.mrb[4].mxu0 }
 0x116   :  { %v978_v37 = vpop.f32.mrb[5].mxu0 }
 0x117   :  { %v979_v38 = vadd.f32 %v978_v37, %v977_v36  ;;  %v980_v39 = vpop.f32.mrb[6].mxu0  ;;  %v999_v40 = vpop.f32.mrb[4].mxu1 }
 0x118   :  { %v981_v41 = vpop.f32.mrb[7].mxu0  ;;  %v1000_v42 = vpop.f32.mrb[5].mxu1 }
 0x119   :  { %v745_v43 = vadd.f32 %v979_v38, %v705_v35  ;;  %v1001_v44 = vadd.f32 %v1000_v42, %v999_v40  ;;  %v1002_v45 = vpop.f32.mrb[6].mxu1 }
 0x11a   :  { %v1003_v46 = vpop.f32.mrb[7].mxu1 }
 0x11b   :  { %v785_v47 = vadd.f32 %v1001_v44, %v745_v43 }
 0x135   :  { %v824_v48 = vpop.f32.mrb[8].mxu0 }
 0x136   :  { %v825_v49 = vadd.f32 %v824_v48, %v785_v47  ;;  %v1032_v50 = vpop.f32.mrb[9].mxu0 }
 0x137   :  { %v827_v51 = vpop.f32.mrb[10].mxu0 }
 0x138   :  { %v830_v52 = vpack.c.bf16 %v825_v49, %v825_v49  ;;  %v1033_v53 = vpop.f32.mrb[11].mxu0 }
 0x13a   :  { %831 = vst [vmem:[%s1379_s3] sm:$0xf] %v830_v52 }

// kernel: _lambda_.22
= control target key start
LH: loop header
LB: loop body
LE: loop exit
PB: predicated region body
PF: predicated region fallthrough
CT: control target
= control target key end

     0   :  { %vm1144_vm0 = vmmov 0   ;;  %s1418_s1 = inlined_call_operand.vmem [shape: bf16[1152,128], index: 1, kind: input, shape index: {}]   ;;  %s1419_s0 = inlined_call_operand.vmem [shape: bf16[8,1152], index: 0, kind: input, shape index: {}]   ;;  %s1420_s2 = inlined_call_operand.vmem [shape: f32[1,128], index: 2, kind: input, shape index: {}]   ;;  %s1421_s4 = inlined_call_operand.vmem [shape: bf16[8,128], index: 4, kind: input, shape index: {}]   ;;  %s1422_s3 = inlined_call_operand.vmem [shape: f32[1,128], index: 3, kind: input, shape index: {}]   ;;  %s1423_s5 = inlined_call_operand.vmem [shape: bf16[8,128], index: 5, kind: output, shape index: {}]  }
   0x1   :  { %v1062_v0 = vld [vmem:[%s1418_s1 + $0x40] sm:$0xff]   ;;  %v1066_v4 = vld [vmem:[%s1418_s1 + $0x48] sm:$0xff]   ;;  %v1070_v8 = vld [vmem:[%s1418_s1 + $0x50] sm:$0xff]  }
   0x2   :  { %v1063_v1 = vld [vmem:[%s1418_s1 + $0xc0] sm:$0xff]   ;;  %943 = vmatprep.subr.bf16.mxu0 %v1062_v0  ;;  %v1067_v5 = vld [vmem:[%s1418_s1 + $0xc8] sm:$0xff]   ;;  %v1071_v9 = vld [vmem:[%s1418_s1 + $0xd0] sm:$0xff]  }
   0x3   :  { %v1064_v2 = vld [vmem:[%s1418_s1] sm:$0xff]   ;;  %965 = vmatprep.subr.bf16.mxu1 %v1063_v1  ;;  %v1068_v6 = vld [vmem:[%s1418_s1 + $0x8] sm:$0xff]   ;;  %v1072_v10 = vld [vmem:[%s1418_s1 + $0x10] sm:$0xff]  }
   0x4   :  { %v1065_v3 = vld [vmem:[%s1418_s1 + $0x80] sm:$0xff]   ;;  %944 = vmatpush3.bf16.msra.mxu0 %v1064_v2  ;;  %v1069_v7 = vld [vmem:[%s1418_s1 + $0x88] sm:$0xff]   ;;  %v1073_v11 = vld [vmem:[%s1418_s1 + $0x90] sm:$0xff]  }
   0x5   :  { %966 = vmatpush3.bf16.msra.mxu1 %v1065_v3  ;;  %945 = vmatprep.subr.bf16.mxu0 %v1066_v4  ;;  %v1074_v12 = vld [vmem:[%s1418_s1 + $0x58] sm:$0xff]   ;;  %v1078_v16 = vld [vmem:[%s1418_s1 + $0x60] sm:$0xff]   ;;  %v1082_v20 = vld [vmem:[%s1418_s1 + $0x68] sm:$0xff]  }
   0x6   :  { %967 = vmatprep.subr.bf16.mxu1 %v1067_v5  ;;  %v1075_v13 = vld [vmem:[%s1418_s1 + $0xd8] sm:$0xff]   ;;  %v1079_v17 = vld [vmem:[%s1418_s1 + $0xe0] sm:$0xff]   ;;  %v1083_v21 = vld [vmem:[%s1418_s1 + $0xe8] sm:$0xff]  }
   0x7   :  { %v1076_v14 = vld [vmem:[%s1418_s1 + $0x18] sm:$0xff]   ;;  %v1080_v18 = vld [vmem:[%s1418_s1 + $0x20] sm:$0xff]   ;;  %v1084_v22 = vld [vmem:[%s1418_s1 + $0x28] sm:$0xff]  }
   0x8   :  { %946 = vmatpush3.bf16.msra.mxu0 %v1068_v6  ;;  %v1077_v15 = vld [vmem:[%s1418_s1 + $0x98] sm:$0xff]   ;;  %v1081_v19 = vld [vmem:[%s1418_s1 + $0xa0] sm:$0xff]   ;;  %v1085_v23 = vld [vmem:[%s1418_s1 + $0xa8] sm:$0xff]  }
   0x9   :  { %968 = vmatpush3.bf16.msra.mxu1 %v1069_v7  ;;  %947 = vmatprep.subr.bf16.mxu0 %v1070_v8  ;;  %v1086_v24 = vld [vmem:[%s1418_s1 + $0x70] sm:$0xff]   ;;  %v1090_v28 = vld [vmem:[%s1418_s1 + $0x78] sm:$0xff]   ;;  %v21_v32 = vld [vmem:[%s1419_s0] sm:$0xff] }
   0xa   :  { %969 = vmatprep.subr.bf16.mxu1 %v1071_v9  ;;  %v1087_v25 = vld [vmem:[%s1418_s1 + $0xf0] sm:$0xff]   ;;  %v1091_v29 = vld [vmem:[%s1418_s1 + $0xf8] sm:$0xff]   ;;  %v22_v33 = vld [vmem:[%s1419_s0 + $0x8] sm:$0xff]  ;;  %v860_v34 = vcombine.low %v21_v32, %v21_v32  ;;  %v861_v35 = vcombine.high %v21_v32, %v21_v32 }
   0xb   :  { %v1088_v26 = vld [vmem:[%s1418_s1 + $0x30] sm:$0xff]   ;;  %v1092_v30 = vld [vmem:[%s1418_s1 + $0x38] sm:$0xff]   ;;  %v862_v36 = vcombine.low %v22_v33, %v22_v33  ;;  %v863_v37 = vcombine.high %v22_v33, %v22_v33  ;;  %v1098_v38 = vld [vmem:[%s1418_s1 + $0x140] sm:$0xff]  }
   0xc   :  { %948 = vmatpush3.bf16.msra.mxu0 %v1072_v10  ;;  %v1089_v27 = vld [vmem:[%s1418_s1 + $0xb0] sm:$0xff]   ;;  %v1093_v31 = vld [vmem:[%s1418_s1 + $0xb8] sm:$0xff]   ;;  %v1099_v39 = vld [vmem:[%s1418_s1 + $0x100] sm:$0xff]   ;;  %666 = vmatprep.mubr.bf16.mxu0 %v861_v35 }
   0xd   :  { %970 = vmatpush3.bf16.msra.mxu1 %v1073_v11  ;;  %949 = vmatprep.subr.bf16.mxu0 %v1074_v12  ;;  %v1100_v40 = vld [vmem:[%s1418_s1 + $0x1c0] sm:$0xff]   ;;  %v1102_v42 = vld [vmem:[%s1418_s1 + $0x148] sm:$0xff]   ;;  %v1106_v46 = vld [vmem:[%s1418_s1 + $0x150] sm:$0xff]  }
   0xe   :  { %971 = vmatprep.subr.bf16.mxu1 %v1075_v13  ;;  %706 = vmatprep.mubr.bf16.mxu1 %v863_v37  ;;  %v1101_v41 = vld [vmem:[%s1418_s1 + $0x180] sm:$0xff]   ;;  %v1103_v43 = vld [vmem:[%s1418_s1 + $0x108] sm:$0xff]   ;;  %v1107_v47 = vld [vmem:[%s1418_s1 + $0x110] sm:$0xff]   ;;  %v1143_v13 = vmov 0.0  }
   0xf   :  { %v1104_v44 = vld [vmem:[%s1418_s1 + $0x1c8] sm:$0xff]   ;;  %v1108_v48 = vld [vmem:[%s1418_s1 + $0x1d0] sm:$0xff]   ;;  %v1110_v50 = vld [vmem:[%s1418_s1 + $0x158] sm:$0xff]  }
  0x10   :  { %950 = vmatpush3.bf16.msra.mxu0 %v1076_v14  ;;  %v1105_v45 = vld [vmem:[%s1418_s1 + $0x188] sm:$0xff]   ;;  %v1109_v49 = vld [vmem:[%s1418_s1 + $0x190] sm:$0xff]   ;;  %v1111_v51 = vld [vmem:[%s1418_s1 + $0x118] sm:$0xff]  }
  0x11   :  { %972 = vmatpush3.bf16.msra.mxu1 %v1077_v15  ;;  %951 = vmatprep.subr.bf16.mxu0 %v1078_v16  ;;  %v1112_v52 = vld [vmem:[%s1418_s1 + $0x1d8] sm:$0xff]   ;;  %v1114_v54 = vld [vmem:[%s1418_s1 + $0x160] sm:$0xff]   ;;  %v1118_v58 = vld [vmem:[%s1418_s1 + $0x168] sm:$0xff]  }
  0x12   :  { %973 = vmatprep.subr.bf16.mxu1 %v1079_v17  ;;  %v1113_v53 = vld [vmem:[%s1418_s1 + $0x198] sm:$0xff]   ;;  %v1115_v55 = vld [vmem:[%s1418_s1 + $0x120] sm:$0xff]   ;;  %v1119_v59 = vld [vmem:[%s1418_s1 + $0x128] sm:$0xff]  }
  0x13   :  { %v1116_v56 = vld [vmem:[%s1418_s1 + $0x1e0] sm:$0xff]   ;;  %v1120_v60 = vld [vmem:[%s1418_s1 + $0x1e8] sm:$0xff]   ;;  %v1122_v62 = vld [vmem:[%s1418_s1 + $0x170] sm:$0xff]  }
  0x14   :  { %952 = vmatpush3.bf16.msra.mxu0 %v1080_v18  ;;  %v1117_v57 = vld [vmem:[%s1418_s1 + $0x1a0] sm:$0xff]   ;;  %v1121_v61 = vld [vmem:[%s1418_s1 + $0x1a8] sm:$0xff]   ;;  %v1123_v63 = vld [vmem:[%s1418_s1 + $0x130] sm:$0xff]  }
  0x15   :  { %974 = vmatpush3.bf16.msra.mxu1 %v1081_v19  ;;  %953 = vmatprep.subr.bf16.mxu0 %v1082_v20  ;;  %v1124_v0 = vld [vmem:[%s1418_s1 + $0x1f0] sm:$0xff]   ;;  %v1126_v2 = vld [vmem:[%s1418_s1 + $0x178] sm:$0xff]   ;;  %v1134_v12 = vld [vmem:[%s1418_s1 + $0x200] sm:$0xff]  }
  0x16   :  { %975 = vmatprep.subr.bf16.mxu1 %v1083_v21  ;;  %v1125_v1 = vld [vmem:[%s1418_s1 + $0x1b0] sm:$0xff]   ;;  %v1127_v3 = vld [vmem:[%s1418_s1 + $0x138] sm:$0xff]   ;;  %v1135_v14 = vld [vmem:[%s1418_s1 + $0x208] sm:$0xff]  }
  0x17   :  { %v1128_v4 = vld [vmem:[%s1418_s1 + $0x1f8] sm:$0xff]   ;;  %v23_v5 = vld [vmem:[%s1419_s0 + $0x10] sm:$0xff]  ;;  %v1138_v17 = vld [vmem:[%s1418_s1 + $0x220] sm:$0xff]  }
  0x18   :  { %954 = vmatpush3.bf16.msra.mxu0 %v1084_v22  ;;  %v865_v6 = vcombine.high %v23_v5, %v23_v5  ;;  %v1131_v7 = vld [vmem:[%s1418_s1 + $0x1b8] sm:$0xff]   ;;  %v864_v8 = vcombine.low %v23_v5, %v23_v5  ;;  %v1136_v15 = vld [vmem:[%s1418_s1 + $0x210] sm:$0xff]   ;;  %v1139_v18 = vld [vmem:[%s1418_s1 + $0x228] sm:$0xff]  }
  0x19   :  { %976 = vmatpush3.bf16.msra.mxu1 %v1085_v23  ;;  %955 = vmatprep.subr.bf16.mxu0 %v1086_v24  ;;  %v24_v9 = vld [vmem:[%s1419_s0 + $0x18] sm:$0xff]  ;;  %v1140_v19 = vld [vmem:[%s1418_s1 + $0x230] sm:$0xff]   ;;  %v1142_v21 = vld [vmem:[%s1419_s0 + $0x20] ss:$0 sps:$4 sm:$0xff]  }
  0x1a   :  { %977 = vmatprep.subr.bf16.mxu1 %v1087_v25  ;;  %v866_v10 = vcombine.low %v24_v9, %v24_v9  ;;  %v867_v11 = vcombine.high %v24_v9, %v24_v9  ;;  %v1137_v16 = vld [vmem:[%s1418_s1 + $0x218] sm:$0xff]  }
  0x1b   :  { %v1141_v20 = vld [vmem:[%s1418_s1 + $0x238] sm:$0xff]  }
  0x1c   :  { %956 = vmatpush3.bf16.msra.mxu0 %v1088_v26 }
  0x1d   :  { %978 = vmatpush3.bf16.msra.mxu1 %v1089_v27  ;;  %957 = vmatprep.subr.bf16.mxu0 %v1090_v28 }
  0x1e   :  { %979 = vmatprep.subr.bf16.mxu1 %v1091_v29 }
  0x20   :  { %958 = vmatpush3.bf16.msra.mxu0 %v1092_v30 }
  0x21   :  { %980 = vmatpush3.bf16.msra.mxu1 %v1093_v31  ;;  %987 = vmatprep.subr.bf16.mxu0 %v1098_v38 }
  0x22   :  { %1009 = vmatprep.subr.bf16.mxu1 %v1100_v40 }
  0x23   :  { %667 = vmatmul.mubr.bf16.vlgmr.msra.gmra.mrb[0].mxu0 %v860_v34 }
  0x24   :  { %707 = vmatmul.mubr.bf16.vlgmr.msra.gmra.mrb[0].mxu1 %v862_v36  ;;  %988 = vmatpush3.bf16.msra.mxu0 %v1099_v39 }
  0x25   :  { %1010 = vmatpush3.bf16.msra.mxu1 %v1101_v41  ;;  %989 = vmatprep.subr.bf16.mxu0 %v1102_v42 }
  0x26   :  { %1011 = vmatprep.subr.bf16.mxu1 %v1104_v44  ;;  %746 = vmatprep.mubr.bf16.mxu0 %v865_v6 }
  0x27   :  { %786 = vmatprep.mubr.bf16.mxu1 %v867_v11 }
  0x28   :  { %990 = vmatpush3.bf16.msra.mxu0 %v1103_v43 }
  0x29   :  { %1012 = vmatpush3.bf16.msra.mxu1 %v1105_v45  ;;  %991 = vmatprep.subr.bf16.mxu0 %v1106_v46  ;;  %v941_v46 = vld [vmem:[%s1420_s2] ss:$0 sm:$0xff] }
  0x2a   :  { %1013 = vmatprep.subr.bf16.mxu1 %v1108_v48 }
  0x2c   :  { %992 = vmatpush3.bf16.msra.mxu0 %v1107_v47  ;;  %v850_v47 = vld [vmem:[%s1421_s4] sm:$0xf] }
  0x2d   :  { %1014 = vmatpush3.bf16.msra.mxu1 %v1109_v49  ;;  %993 = vmatprep.subr.bf16.mxu0 %v1110_v50  ;;  %v942_v50 = vld [vmem:[%s1422_s3] ss:$0 sm:$0xff] }
  0x2e   :  { %1015 = vmatprep.subr.bf16.mxu1 %v1112_v52 }
  0x30   :  { %994 = vmatpush3.bf16.msra.mxu0 %v1111_v51 }
  0x31   :  { %1016 = vmatpush3.bf16.msra.mxu1 %v1113_v53  ;;  %995 = vmatprep.subr.bf16.mxu0 %v1114_v54  ;;  %v851_v53 = vunpack.c.l.bf16 %v850_v47 }
  0x32   :  { %1017 = vmatprep.subr.bf16.mxu1 %v1116_v56 }
  0x34   :  { %996 = vmatpush3.bf16.msra.mxu0 %v1115_v55 }
  0x35   :  { %1018 = vmatpush3.bf16.msra.mxu1 %v1117_v57  ;;  %997 = vmatprep.subr.bf16.mxu0 %v1118_v58 }
  0x36   :  { %1019 = vmatprep.subr.bf16.mxu1 %v1120_v60 }
  0x38   :  { %998 = vmatpush3.bf16.msra.mxu0 %v1119_v59 }
  0x39   :  { %1020 = vmatpush3.bf16.msra.mxu1 %v1121_v61  ;;  %999 = vmatprep.subr.bf16.mxu0 %v1122_v62 }
  0x3a   :  { %1021 = vmatprep.subr.bf16.mxu1 %v1124_v0 }
  0x3c   :  { %1000 = vmatpush3.bf16.msra.mxu0 %v1123_v63 }
  0x3d   :  { %1022 = vmatpush3.bf16.msra.mxu1 %v1125_v1  ;;  %1001 = vmatprep.subr.bf16.mxu0 %v1126_v2 }
  0x3e   :  { %1023 = vmatprep.subr.bf16.mxu1 %v1128_v4 }
  0x40   :  { %1002 = vmatpush3.bf16.msra.mxu0 %v1127_v3 }
  0x41   :  { %1024 = vmatpush3.bf16.msra.mxu1 %v1131_v7  ;;  %1040 = vmatprep.subr.bf16.mxu0 %v1143_v13 }
  0x43   :  { %747 = vmatmul.mubr.bf16.vlgmr.msra.gmra.mrb[4].mxu0 %v864_v8 }
  0x44   :  { %1041 = vmatpush3.bf16.msra.mxu0 %v1134_v12  ;;  %787 = vmatmul.mubr.bf16.vlgmr.msra.gmra.mrb[4].mxu1 %v866_v10 }
  0x45   :  { %1042 = vmatprep.subr.bf16.mxu0 %v1143_v13  ;;  %1056 = vmatprep.mubr.msk.bf16.mxu0 %vm1144_vm0, %v1143_v13 }
  0x48   :  { %1043 = vmatpush3.bf16.msra.mxu0 %v1135_v14 }
  0x49   :  { %1044 = vmatprep.subr.bf16.mxu0 %v1143_v13 }
  0x4c   :  { %1045 = vmatpush3.bf16.msra.mxu0 %v1136_v15 }
  0x4d   :  { %1046 = vmatprep.subr.bf16.mxu0 %v1143_v13 }
  0x50   :  { %1047 = vmatpush3.bf16.msra.mxu0 %v1137_v16 }
  0x51   :  { %1048 = vmatprep.subr.bf16.mxu0 %v1143_v13 }
  0x54   :  { %1049 = vmatpush3.bf16.msra.mxu0 %v1138_v17 }
  0x55   :  { %1050 = vmatprep.subr.bf16.mxu0 %v1143_v13 }
  0x58   :  { %1051 = vmatpush3.bf16.msra.mxu0 %v1139_v18 }
  0x59   :  { %1052 = vmatprep.subr.bf16.mxu0 %v1143_v13 }
  0x5c   :  { %1053 = vmatpush3.bf16.msra.mxu0 %v1140_v19 }
  0x5d   :  { %1054 = vmatprep.subr.bf16.mxu0 %v1143_v13 }
  0x60   :  { %1055 = vmatpush3.bf16.msra.mxu0 %v1141_v20 }
  0x63   :  { %1057 = vmatmul.mubr.bf16.vlgmr.msra.gmra.mrb[8].mxu0 %v1142_v21 }
  0xf6   :  { %v959_v22 = vpop.f32.mrb[0].mxu0 }
  0xf7   :  { %v981_v23 = vpop.f32.mrb[0].mxu1  ;;  %v960_v24 = vpop.f32.mrb[1].mxu0 }
  0xf8   :  { %v982_v25 = vpop.f32.mrb[1].mxu1  ;;  %v961_v26 = vadd.f32 %v960_v24, %v959_v22  ;;  %v962_v28 = vpop.f32.mrb[2].mxu0 }
  0xf9   :  { %v983_v27 = vadd.f32 %v982_v25, %v981_v23  ;;  %v984_v29 = vpop.f32.mrb[2].mxu1  ;;  %v963_v30 = vpop.f32.mrb[3].mxu0 }
  0xfa   :  { %v985_v31 = vpop.f32.mrb[3].mxu1 }
  0xfb   :  { %v709_v32 = vadd.f32 %v983_v27, %v961_v26 }
 0x116   :  { %v1003_v33 = vpop.f32.mrb[4].mxu0 }
 0x117   :  { %v1004_v34 = vpop.f32.mrb[5].mxu0  ;;  %v1025_v35 = vpop.f32.mrb[4].mxu1 }
 0x118   :  { %v1005_v36 = vadd.f32 %v1004_v34, %v1003_v33  ;;  %v1006_v37 = vpop.f32.mrb[6].mxu0  ;;  %v1026_v38 = vpop.f32.mrb[5].mxu1 }
 0x119   :  { %v1007_v39 = vpop.f32.mrb[7].mxu0  ;;  %v1027_v40 = vadd.f32 %v1026_v38, %v1025_v35  ;;  %v1028_v41 = vpop.f32.mrb[6].mxu1 }
 0x11a   :  { %v749_v42 = vadd.f32 %v1005_v36, %v709_v32  ;;  %v1029_v43 = vpop.f32.mrb[7].mxu1 }
 0x11c   :  { %v789_v44 = vadd.f32 %v1027_v40, %v749_v42 }
 0x136   :  { %v828_v45 = vpop.f32.mrb[8].mxu0 }
 0x137   :  { %v829_v48 = vadd.f32 %v828_v45, %v789_v44  ;;  %v1058_v49 = vpop.f32.mrb[9].mxu0 }
 0x138   :  { %v831_v51 = vpop.f32.mrb[10].mxu0 }
 0x139   :  { %v841_v52 = vmul.f32 %v941_v46, %v829_v48  ;;  %v1059_v54 = vpop.f32.mrb[11].mxu0 }
 0x13b   :  { %v849_v55 = vadd.f32 %v942_v50, %v841_v52 }
 0x13d   :  { %v852_v56 = vadd.f32 %v851_v53, %v849_v55 }
 0x13f   :  { %v853_v57 = vmax.f32 %v852_v56, 0.0 }
 0x141   :  { %v854_v58 = vpack.c.bf16 %v853_v57, %v853_v57 }
 0x143   :  { %855 = vst [vmem:[%s1423_s5] sm:$0xf] %v854_v58 }

// kernel: _lambda_.24
= control target key start
LH: loop header
LB: loop body
LE: loop exit
PB: predicated region body
PF: predicated region fallthrough
CT: control target
= control target key end

     0   :  { %v190_v29 = vlaneseq  ;;  %v1286_v34 = vmov 1966171168   ;;  %vm1288_vm0 = vmmov 0   ;;  %s1585_s0 = inlined_call_operand.vmem [shape: bf16[2,1152], index: 0, kind: input, shape index: {}]   ;;  %s1586_s1 = inlined_call_operand.vmem [shape: bf16[1152,128], index: 1, kind: input, shape index: {}]   ;;  %s1587_s2 = inlined_call_operand.vmem [shape: bf16[2,128], index: 2, kind: input, shape index: {}]   ;;  %s1588_s3 = inlined_call_operand.vmem [shape: bf16[2,128], index: 3, kind: output, shape index: {}]  }
   0x1   :  { %v1206_v0 = vld [vmem:[%s1586_s1 + $0x40] sm:$0xff]   ;;  %v1210_v4 = vld [vmem:[%s1586_s1 + $0x48] sm:$0xff]   ;;  %v1214_v8 = vld [vmem:[%s1586_s1 + $0x50] sm:$0xff]   ;;  %v188_v35 = vunpack.c.l.s4 %v1286_v34 }
   0x2   :  { %v1207_v1 = vld [vmem:[%s1586_s1] sm:$0xff]   ;;  %1085 = vmatprep.subr.bf16.mxu0 %v1206_v0  ;;  %v1211_v5 = vld [vmem:[%s1586_s1 + $0x8] sm:$0xff]   ;;  %v1215_v9 = vld [vmem:[%s1586_s1 + $0x10] sm:$0xff]   ;;  %v1409_v36 = vshrl.u32 %v190_v29, 7 }
   0x3   :  { %v1208_v2 = vld [vmem:[%s1586_s1 + $0xc0] sm:$0xff]   ;;  %1086 = vmatpush3.bf16.msra.mxu0 %v1207_v1  ;;  %v1212_v6 = vld [vmem:[%s1586_s1 + $0xc8] sm:$0xff]   ;;  %v1216_v10 = vld [vmem:[%s1586_s1 + $0xd0] sm:$0xff]   ;;  %v189_v39 = vunpack.c.0.s8 %v188_v35 }
   0x4   :  { %v1209_v3 = vld [vmem:[%s1586_s1 + $0x80] sm:$0xff]   ;;  %1107 = vmatprep.subr.bf16.mxu1 %v1208_v2  ;;  %1087 = vmatprep.subr.bf16.mxu0 %v1210_v4  ;;  %v1213_v7 = vld [vmem:[%s1586_s1 + $0x88] sm:$0xff]   ;;  %v1217_v11 = vld [vmem:[%s1586_s1 + $0x90] sm:$0xff]  }
   0x5   :  { %1108 = vmatpush3.bf16.msra.mxu1 %v1209_v3  ;;  %v1218_v12 = vld [vmem:[%s1586_s1 + $0x58] sm:$0xff]   ;;  %v1222_v16 = vld [vmem:[%s1586_s1 + $0x60] sm:$0xff]   ;;  %v1226_v20 = vld [vmem:[%s1586_s1 + $0x68] sm:$0xff]   ;;  %v1424_v42 = vsub.s32 %v189_v39, %v1409_v36 }
   0x6   :  { %1109 = vmatprep.subr.bf16.mxu1 %v1212_v6  ;;  %v1219_v13 = vld [vmem:[%s1586_s1 + $0x18] sm:$0xff]   ;;  %v1223_v17 = vld [vmem:[%s1586_s1 + $0x20] sm:$0xff]   ;;  %v1227_v21 = vld [vmem:[%s1586_s1 + $0x28] sm:$0xff]  }
   0x7   :  { %1088 = vmatpush3.bf16.msra.mxu0 %v1211_v5  ;;  %v1220_v14 = vld [vmem:[%s1586_s1 + $0xd8] sm:$0xff]   ;;  %v1224_v18 = vld [vmem:[%s1586_s1 + $0xe0] sm:$0xff]   ;;  %v1228_v22 = vld [vmem:[%s1586_s1 + $0xe8] sm:$0xff]  }
   0x8   :  { %1089 = vmatprep.subr.bf16.mxu0 %v1214_v8  ;;  %v1221_v15 = vld [vmem:[%s1586_s1 + $0x98] sm:$0xff]   ;;  %v1225_v19 = vld [vmem:[%s1586_s1 + $0xa0] sm:$0xff]   ;;  %v1229_v23 = vld [vmem:[%s1586_s1 + $0xa8] sm:$0xff]  }
   0x9   :  { %1110 = vmatpush3.bf16.msra.mxu1 %v1213_v7  ;;  %v1230_v24 = vld [vmem:[%s1586_s1 + $0x70] sm:$0xff]   ;;  %v1234_v28 = vld [vmem:[%s1586_s1 + $0x78] sm:$0xff]   ;;  %v1237_v32 = vld [vmem:[%s1585_s0] ss:$9 sps:$4 sm:$0xff]  }
   0xa   :  { %1111 = vmatprep.subr.bf16.mxu1 %v1216_v10  ;;  %v1231_v25 = vld [vmem:[%s1586_s1 + $0x30] sm:$0xff]   ;;  %v1235_v30 = vld [vmem:[%s1586_s1 + $0x38] sm:$0xff]   ;;  %v1244_v41 = vld [vmem:[%s1586_s1 + $0x140] sm:$0xff]   ;;  %v193_v44 = vrot.slane %v1237_v32, %v1424_v42 }
   0xb   :  { %1090 = vmatpush3.bf16.msra.mxu0 %v1215_v9  ;;  %v1232_v26 = vld [vmem:[%s1586_s1 + $0xf0] sm:$0xff]   ;;  %v1236_v31 = vld [vmem:[%s1586_s1 + $0xf8] sm:$0xff]   ;;  %v1246_v43 = vld [vmem:[%s1586_s1 + $0x1c0] sm:$0xff]  }
   0xc   :  { %1091 = vmatprep.subr.bf16.mxu0 %v1218_v12  ;;  %v1233_v27 = vld [vmem:[%s1586_s1 + $0xb0] sm:$0xff]   ;;  %v1243_v40 = vld [vmem:[%s1586_s1 + $0xb8] sm:$0xff]   ;;  %v1245_v53 = vld [vmem:[%s1586_s1 + $0x100] sm:$0xff]  }
   0xd   :  { %1112 = vmatpush3.bf16.msra.mxu1 %v1217_v11  ;;  %v1239_v33 = vld [vmem:[%s1585_s0 + $0x4] ss:$9 sps:$4 sm:$0xff]   ;;  %v1240_v37 = vld [vmem:[%s1585_s0 + $0x12] ss:$9 sps:$4 sm:$0xff]   ;;  %v1242_v38 = vld [vmem:[%s1585_s0 + $0x16] ss:$9 sps:$4 sm:$0xff]  }
   0xe   :  { %1113 = vmatprep.subr.bf16.mxu1 %v1220_v14  ;;  %v207_v45 = vrot.slane %v1240_v37, %v1424_v42  ;;  %v1432_v46 = vrot.slane %v1239_v33, %v1424_v42  ;;  %v1435_v47 = vrot.slane %v1242_v38, %v1424_v42  ;;  %v1248_v55 = vld [vmem:[%s1586_s1 + $0x148] sm:$0xff]   ;;  %v1247_v58 = vld [vmem:[%s1586_s1 + $0x180] sm:$0xff]   ;;  %v1252_v62 = vld [vmem:[%s1586_s1 + $0x150] sm:$0xff]  }
   0xf   :  { %1092 = vmatpush3.bf16.msra.mxu0 %v1219_v13  ;;  %v1250_v59 = vld [vmem:[%s1586_s1 + $0x1c8] sm:$0xff]   ;;  %v1254_v0 = vld [vmem:[%s1586_s1 + $0x1d0] sm:$0xff]   ;;  %v1256_v2 = vld [vmem:[%s1586_s1 + $0x158] sm:$0xff]  }
  0x10   :  { %1093 = vmatprep.subr.bf16.mxu0 %v1222_v16  ;;  %v216_v48 = vcombine.high %v193_v44, %v207_v45  ;;  %v215_v49 = vcombine.low %v193_v44, %v207_v45  ;;  %v218_v50 = vcombine.high %v1432_v46, %v1435_v47  ;;  %v1249_v61 = vld [vmem:[%s1586_s1 + $0x108] sm:$0xff]   ;;  %v1253_v1 = vld [vmem:[%s1586_s1 + $0x110] sm:$0xff]   ;;  %v1258_v4 = vld [vmem:[%s1586_s1 + $0x1d8] sm:$0xff]   ;;  %v1289_v44 = vmov 1983009808  }
  0x11   :  { %1114 = vmatpush3.bf16.msra.mxu1 %v1221_v15  ;;  %v1251_v63 = vld [vmem:[%s1586_s1 + $0x188] sm:$0xff]   ;;  %v1255_v3 = vld [vmem:[%s1586_s1 + $0x190] sm:$0xff]   ;;  %v1257_v5 = vld [vmem:[%s1586_s1 + $0x118] sm:$0xff]   ;;  %v723_v45 = vunpack.c.l.s4 %v1289_v44 }
  0x12   :  { %1115 = vmatprep.subr.bf16.mxu1 %v1224_v18  ;;  %v239_v51 = vrot.slane %v216_v48, %v1424_v42  ;;  %v225_v52 = vrot.slane %v215_v49, %v1424_v42  ;;  %v246_v54 = vrot.slane %v218_v50, %v1424_v42  ;;  %v1260_v6 = vld [vmem:[%s1586_s1 + $0x160] sm:$0xff]   ;;  %v1259_v7 = vld [vmem:[%s1586_s1 + $0x198] sm:$0xff]   ;;  %v1264_v10 = vld [vmem:[%s1586_s1 + $0x168] sm:$0xff]  }
  0x13   :  { %1094 = vmatpush3.bf16.msra.mxu0 %v1223_v17  ;;  %v1262_v8 = vld [vmem:[%s1586_s1 + $0x1e0] sm:$0xff]   ;;  %v1266_v12 = vld [vmem:[%s1586_s1 + $0x1e8] sm:$0xff]   ;;  %v1268_v14 = vld [vmem:[%s1586_s1 + $0x170] sm:$0xff]  }
  0x14   :  { %1095 = vmatprep.subr.bf16.mxu0 %v1226_v20  ;;  %770 = vmatprep.mubr.bf16.mxu0 %v239_v51  ;;  %v249_v56 = vcombine.high %v239_v51, %v239_v51  ;;  %v247_v57 = vcombine.high %v225_v52, %v225_v52  ;;  %v250_v60 = vcombine.high %v246_v54, %v246_v54  ;;  %v1261_v9 = vld [vmem:[%s1586_s1 + $0x120] sm:$0xff]   ;;  %v1265_v13 = vld [vmem:[%s1586_s1 + $0x128] sm:$0xff]   ;;  %v1270_v16 = vld [vmem:[%s1586_s1 + $0x1f0] sm:$0xff]  }
  0x15   :  { %1116 = vmatpush3.bf16.msra.mxu1 %v1225_v19  ;;  %v1263_v11 = vld [vmem:[%s1586_s1 + $0x1a0] sm:$0xff]   ;;  %v1267_v15 = vld [vmem:[%s1586_s1 + $0x1a8] sm:$0xff]   ;;  %v1269_v17 = vld [vmem:[%s1586_s1 + $0x130] sm:$0xff]   ;;  %v217_v19 = vcombine.low %v1432_v46, %v1435_v47 }
  0x16   :  { %1117 = vmatprep.subr.bf16.mxu1 %v1228_v22  ;;  %810 = vmatprep.mubr.bf16.mxu1 %v249_v56  ;;  %v1272_v18 = vld [vmem:[%s1586_s1 + $0x178] sm:$0xff]   ;;  %v1271_v20 = vld [vmem:[%s1586_s1 + $0x1b0] sm:$0xff]   ;;  %v1281_v34 = vld [vmem:[%s1586_s1 + $0x228] sm:$0xff]  }
  0x17   :  { %1096 = vmatpush3.bf16.msra.mxu0 %v1227_v21  ;;  %v1274_v21 = vld [vmem:[%s1586_s1 + $0x1f8] sm:$0xff]   ;;  %v1278_v29 = vld [vmem:[%s1586_s1 + $0x210] sm:$0xff]   ;;  %v168_v46 = vld [vmem:[%s1587_s2 + $0x1] sm:$0x1] }
  0x18   :  { %1097 = vmatprep.subr.bf16.mxu0 %v1230_v24  ;;  %v1273_v22 = vld [vmem:[%s1586_s1 + $0x138] sm:$0xff]   ;;  %v1284_v32 = vld [vmem:[%s1585_s0 + $0x8] ss:$9 sps:$4 sm:$0x11]   ;;  %v169_v47 = vld [vmem:[%s1587_s2 + $0x2] sm:$0x1]  ;;  %v172_v50 = vunpack.c.l.bf16 %v168_v46 }
  0x19   :  { %1118 = vmatpush3.bf16.msra.mxu1 %v1229_v23  ;;  %v232_v23 = vrot.slane %v217_v19, %v1424_v42  ;;  %v1275_v24 = vld [vmem:[%s1586_s1 + $0x1b8] sm:$0xff]   ;;  %v259_v35 = vrot.slane %v1284_v32, %v1424_v42  ;;  %v1282_v38 = vld [vmem:[%s1586_s1 + $0x230] sm:$0xff]   ;;  %v170_v48 = vld [vmem:[%s1587_s2 + $0x3] sm:$0x1]  ;;  %v173_v51 = vunpack.c.l.bf16 %v169_v47 }
  0x1a   :  { %1119 = vmatprep.subr.bf16.mxu1 %v1232_v26  ;;  %v1287_v26 = vmov 0.0   ;;  %v1285_v33 = vld [vmem:[%s1585_s0 + $0x1a] ss:$9 sps:$4 sm:$0x11]  }
  0x1b   :  { %1098 = vmatpush3.bf16.msra.mxu0 %v1231_v25  ;;  %v1276_v25 = vld [vmem:[%s1586_s1 + $0x200] sm:$0xff]   ;;  %v266_v37 = vrot.slane %v1285_v33, %v1424_v42 }
  0x1c   :  { %1099 = vmatprep.subr.bf16.mxu0 %v1234_v28  ;;  %v1277_v28 = vld [vmem:[%s1586_s1 + $0x208] sm:$0xff]  }
  0x1d   :  { %1120 = vmatpush3.bf16.msra.mxu1 %v1233_v27  ;;  %v248_v27 = vcombine.high %v232_v23, %v232_v23  ;;  %v267_v39 = vcombine.low %v259_v35, %v266_v37 }
  0x1e   :  { %1121 = vmatprep.subr.bf16.mxu1 %v1236_v31  ;;  %v1280_v31 = vld [vmem:[%s1586_s1 + $0x220] sm:$0xff]  }
  0x1f   :  { %1100 = vmatpush3.bf16.msra.mxu0 %v1235_v30  ;;  %v1279_v30 = vld [vmem:[%s1586_s1 + $0x218] sm:$0xff]  }
  0x20   :  { %1129 = vmatprep.subr.bf16.mxu0 %v1244_v41  ;;  %v274_v41 = vrot.slane %v267_v39, %v1424_v42 }
  0x21   :  { %1122 = vmatpush3.bf16.msra.mxu1 %v1243_v40  ;;  %v1283_v40 = vld [vmem:[%s1586_s1 + $0x238] sm:$0xff]  }
  0x22   :  { %1151 = vmatprep.subr.bf16.mxu1 %v1246_v43  ;;  %771 = vmatmul.mubr.bf16.vlgmr.msra.gmra.mrb[0].mxu0 %v225_v52  ;;  %v167_v43 = vld [vmem:[%s1587_s2] sm:$0x1]  ;;  %v174_v52 = vunpack.c.l.bf16 %v170_v48 }
  0x23   :  { %1130 = vmatpush3.bf16.msra.mxu0 %v1245_v53  ;;  %850 = vmatprep.mubr.bf16.mxu0 %v246_v54  ;;  %v171_v49 = vunpack.c.l.bf16 %v167_v43  ;;  %v724_v53 = vunpack.c.0.s8 %v723_v45 }
  0x24   :  { %811 = vmatmul.mubr.bf16.vlgmr.msra.gmra.mrb[0].mxu1 %v247_v57  ;;  %1131 = vmatprep.subr.bf16.mxu0 %v1248_v55  ;;  %v721_v55 = vcombine.low %v173_v51, %v174_v52 }
  0x25   :  { %1152 = vmatpush3.bf16.msra.mxu1 %v1247_v58  ;;  %890 = vmatprep.mubr.bf16.mxu1 %v250_v60  ;;  %v720_v54 = vcombine.low %v171_v49, %v172_v50  ;;  %v727_v56 = vsub.s32 %v724_v53, %v1409_v36 }
  0x26   :  { %1153 = vmatprep.subr.bf16.mxu1 %v1250_v59 }
  0x27   :  { %1132 = vmatpush3.bf16.msra.mxu0 %v1249_v61  ;;  %v728_v57 = vrot.slane %v720_v54, %v727_v56  ;;  %v735_v58 = vrot.slane %v721_v55, %v727_v56 }
  0x28   :  { %1133 = vmatprep.subr.bf16.mxu0 %v1252_v62 }
  0x29   :  { %1154 = vmatpush3.bf16.msra.mxu1 %v1251_v63  ;;  %v736_v60 = vcombine.low %v728_v57, %v735_v58 }
  0x2a   :  { %1155 = vmatprep.subr.bf16.mxu1 %v1254_v0 }
  0x2b   :  { %1134 = vmatpush3.bf16.msra.mxu0 %v1253_v1 }
  0x2c   :  { %1135 = vmatprep.subr.bf16.mxu0 %v1256_v2 }
  0x2d   :  { %1156 = vmatpush3.bf16.msra.mxu1 %v1255_v3 }
  0x2e   :  { %1157 = vmatprep.subr.bf16.mxu1 %v1258_v4 }
  0x2f   :  { %1136 = vmatpush3.bf16.msra.mxu0 %v1257_v5 }
  0x30   :  { %1137 = vmatprep.subr.bf16.mxu0 %v1260_v6 }
  0x31   :  { %1158 = vmatpush3.bf16.msra.mxu1 %v1259_v7 }
  0x32   :  { %1159 = vmatprep.subr.bf16.mxu1 %v1262_v8 }
  0x33   :  { %1138 = vmatpush3.bf16.msra.mxu0 %v1261_v9 }
  0x34   :  { %1139 = vmatprep.subr.bf16.mxu0 %v1264_v10 }
  0x35   :  { %1160 = vmatpush3.bf16.msra.mxu1 %v1263_v11 }
  0x36   :  { %1161 = vmatprep.subr.bf16.mxu1 %v1266_v12 }
  0x37   :  { %1140 = vmatpush3.bf16.msra.mxu0 %v1265_v13 }
  0x38   :  { %1141 = vmatprep.subr.bf16.mxu0 %v1268_v14 }
  0x39   :  { %1162 = vmatpush3.bf16.msra.mxu1 %v1267_v15 }
  0x3a   :  { %1163 = vmatprep.subr.bf16.mxu1 %v1270_v16 }
  0x3b   :  { %1142 = vmatpush3.bf16.msra.mxu0 %v1269_v17 }
  0x3c   :  { %1143 = vmatprep.subr.bf16.mxu0 %v1272_v18 }
  0x3d   :  { %1164 = vmatpush3.bf16.msra.mxu1 %v1271_v20 }
  0x3e   :  { %1165 = vmatprep.subr.bf16.mxu1 %v1274_v21 }
  0x3f   :  { %1144 = vmatpush3.bf16.msra.mxu0 %v1273_v22 }
  0x40   :  { %1182 = vmatprep.subr.bf16.mxu0 %v1287_v26 }
  0x41   :  { %1166 = vmatpush3.bf16.msra.mxu1 %v1275_v24 }
  0x42   :  { %851 = vmatmul.mubr.bf16.vlgmr.msra.gmra.mrb[4].mxu0 %v232_v23 }
  0x43   :  { %1183 = vmatpush3.bf16.msra.mxu0 %v1276_v25  ;;  %1198 = vmatprep.mubr.msk.bf16.mxu0 %vm1288_vm0, %v1287_v26 }
  0x44   :  { %891 = vmatmul.mubr.bf16.vlgmr.msra.gmra.mrb[4].mxu1 %v248_v27  ;;  %1184 = vmatprep.subr.bf16.mxu0 %v1287_v26 }
  0x47   :  { %1185 = vmatpush3.bf16.msra.mxu0 %v1277_v28 }
  0x48   :  { %1186 = vmatprep.subr.bf16.mxu0 %v1287_v26 }
  0x4b   :  { %1187 = vmatpush3.bf16.msra.mxu0 %v1278_v29 }
  0x4c   :  { %1188 = vmatprep.subr.bf16.mxu0 %v1287_v26 }
  0x4f   :  { %1189 = vmatpush3.bf16.msra.mxu0 %v1279_v30 }
  0x50   :  { %1190 = vmatprep.subr.bf16.mxu0 %v1287_v26 }
  0x53   :  { %1191 = vmatpush3.bf16.msra.mxu0 %v1280_v31 }
  0x54   :  { %1192 = vmatprep.subr.bf16.mxu0 %v1287_v26 }
  0x57   :  { %1193 = vmatpush3.bf16.msra.mxu0 %v1281_v34 }
  0x58   :  { %1194 = vmatprep.subr.bf16.mxu0 %v1287_v26 }
  0x5b   :  { %1195 = vmatpush3.bf16.msra.mxu0 %v1282_v38 }
  0x5c   :  { %1196 = vmatprep.subr.bf16.mxu0 %v1287_v26 }
  0x5f   :  { %1197 = vmatpush3.bf16.msra.mxu0 %v1283_v40 }
  0x62   :  { %1199 = vmatmul.mubr.bf16.vlgmr.msra.gmra.mrb[8].mxu0 %v274_v41 }
  0xf5   :  { %v1101_v59 = vpop.f32.mrb[0].mxu0 }
  0xf6   :  { %v1102_v61 = vpop.f32.mrb[1].mxu0 }
  0xf7   :  { %v1103_v62 = vadd.f32 %v1102_v61, %v1101_v59  ;;  %v1104_v63 = vpop.f32.mrb[2].mxu0  ;;  %v1123_v0 = vpop.f32.mrb[0].mxu1 }
  0xf8   :  { %v1105_v1 = vpop.f32.mrb[3].mxu0  ;;  %v1124_v2 = vpop.f32.mrb[1].mxu1 }
  0xf9   :  { %v773_v3 = vadd.f32 %v1103_v62, %v736_v60  ;;  %v1125_v4 = vadd.f32 %v1124_v2, %v1123_v0  ;;  %v1126_v5 = vpop.f32.mrb[2].mxu1 }
  0xfa   :  { %v1127_v6 = vpop.f32.mrb[3].mxu1 }
  0xfb   :  { %v813_v7 = vadd.f32 %v1125_v4, %v773_v3 }
 0x115   :  { %v1145_v8 = vpop.f32.mrb[4].mxu0 }
 0x116   :  { %v1146_v9 = vpop.f32.mrb[5].mxu0 }
 0x117   :  { %v1147_v10 = vadd.f32 %v1146_v9, %v1145_v8  ;;  %v1148_v11 = vpop.f32.mrb[6].mxu0  ;;  %v1167_v36 = vpop.f32.mrb[4].mxu1 }
 0x118   :  { %v1149_v12 = vpop.f32.mrb[7].mxu0  ;;  %v1168_v13 = vpop.f32.mrb[5].mxu1 }
 0x119   :  { %v853_v14 = vadd.f32 %v1147_v10, %v813_v7  ;;  %v1169_v15 = vadd.f32 %v1168_v13, %v1167_v36  ;;  %v1170_v16 = vpop.f32.mrb[6].mxu1 }
 0x11a   :  { %v1171_v17 = vpop.f32.mrb[7].mxu1 }
 0x11b   :  { %v893_v18 = vadd.f32 %v1169_v15, %v853_v14 }
 0x135   :  { %v932_v19 = vpop.f32.mrb[8].mxu0 }
 0x136   :  { %v933_v20 = vadd.f32 %v932_v19, %v893_v18  ;;  %v1200_v21 = vpop.f32.mrb[9].mxu0 }
 0x137   :  { %v935_v22 = vpop.f32.mrb[10].mxu0 }
 0x138   :  { %v938_v23 = vpack.c.bf16 %v933_v20, %v933_v20  ;;  %v1201_v24 = vpop.f32.mrb[11].mxu0 }
 0x13a   :  { %v946_v25 = vrot.slane %v938_v23, %v1424_v42 }
 0x13c   :  { %1083 = vst.sshfl [vmem:[#allocation2] sm:$0x1 pattern:$0x73625140] %v946_v25 }
 0x143   :  { %v989_v26 = vld [vmem:[#allocation2] sm:$0x1] }
 0x144   :  { %990 = vst [vmem:[%s1588_s3] sm:$0x1] %v989_v26 }

// kernel: _lambda_.23
= control target key start
LH: loop header
LB: loop body
LE: loop exit
PB: predicated region body
PF: predicated region fallthrough
CT: control target
= control target key end

     0   :  { %v197_v30 = vlaneseq  ;;  %v1606_v35 = vmov 1966171168   ;;  %vm1608_vm0 = vmmov 0   ;;  %s1968_s0 = inlined_call_operand.vmem [shape: bf16[2,1152], index: 0, kind: input, shape index: {}]   ;;  %s1969_s1 = inlined_call_operand.vmem [shape: bf16[1152,128], index: 1, kind: input, shape index: {}]   ;;  %s1970_s2 = inlined_call_operand.vmem [shape: bf16[128,128], index: 2, kind: input, shape index: {}]   ;;  %s1971_s3 = inlined_call_operand.vmem [shape: f32[1,128], index: 3, kind: input, shape index: {}]   ;;  %s1972_s4 = inlined_call_operand.vmem [shape: f32[1,128], index: 4, kind: input, shape index: {}]   ;;  %s1973_s5 = inlined_call_operand.vmem [shape: f32[1,128], index: 5, kind: input, shape index: {}]   ;;  %s1974_s6 = inlined_call_operand.vmem [shape: f32[1,128], index: 6, kind: input, shape index: {}]   ;;  %s1975_s7 = inlined_call_operand.vmem [shape: bf16[2,128], index: 7, kind: output, shape index: {0}]   ;;  %s1976_s8 = inlined_call_operand.vmem [shape: bf16[2,128], index: 8, kind: output, shape index: {1}]   ;;  %s1977_s9 = inlined_call_operand.vmem [shape: bf16[2,128], index: 9, kind: output, shape index: {2}]  }
   0x1   :  { %v1518_v0 = vld [vmem:[%s1969_s1 + $0x40] sm:$0xff]   ;;  %v1522_v4 = vld [vmem:[%s1969_s1 + $0x48] sm:$0xff]   ;;  %v1526_v8 = vld [vmem:[%s1969_s1 + $0x50] sm:$0xff]   ;;  %v195_v36 = vunpack.c.l.s4 %v1606_v35 }
   0x2   :  { %v1519_v1 = vld [vmem:[%s1969_s1 + $0xc0] sm:$0xff]   ;;  %1369 = vmatprep.subr.bf16.mxu0 %v1518_v0  ;;  %v1523_v5 = vld [vmem:[%s1969_s1 + $0xc8] sm:$0xff]   ;;  %v1527_v9 = vld [vmem:[%s1969_s1 + $0xd0] sm:$0xff]   ;;  %v198_v37 = vshrl.u32 %v197_v30, 7 }
   0x3   :  { %v1520_v2 = vld [vmem:[%s1969_s1] sm:$0xff]   ;;  %1391 = vmatprep.subr.bf16.mxu1 %v1519_v1  ;;  %v1524_v6 = vld [vmem:[%s1969_s1 + $0x8] sm:$0xff]   ;;  %v1528_v10 = vld [vmem:[%s1969_s1 + $0x10] sm:$0xff]   ;;  %v196_v40 = vunpack.c.0.s8 %v195_v36 }
   0x4   :  { %v1521_v3 = vld [vmem:[%s1969_s1 + $0x80] sm:$0xff]   ;;  %1370 = vmatpush3.bf16.msra.mxu0 %v1520_v2  ;;  %v1525_v7 = vld [vmem:[%s1969_s1 + $0x88] sm:$0xff]   ;;  %v1529_v11 = vld [vmem:[%s1969_s1 + $0x90] sm:$0xff]  }
   0x5   :  { %1392 = vmatpush3.bf16.msra.mxu1 %v1521_v3  ;;  %1371 = vmatprep.subr.bf16.mxu0 %v1522_v4  ;;  %v1530_v12 = vld [vmem:[%s1969_s1 + $0x58] sm:$0xff]   ;;  %v1534_v16 = vld [vmem:[%s1969_s1 + $0x60] sm:$0xff]   ;;  %v1538_v20 = vld [vmem:[%s1969_s1 + $0x68] sm:$0xff]   ;;  %v1770_v42 = vsub.s32 %v196_v40, %v198_v37 }
   0x6   :  { %1393 = vmatprep.subr.bf16.mxu1 %v1523_v5  ;;  %v1531_v13 = vld [vmem:[%s1969_s1 + $0xd8] sm:$0xff]   ;;  %v1535_v17 = vld [vmem:[%s1969_s1 + $0xe0] sm:$0xff]   ;;  %v1539_v21 = vld [vmem:[%s1969_s1 + $0xe8] sm:$0xff]  }
   0x7   :  { %v1532_v14 = vld [vmem:[%s1969_s1 + $0x18] sm:$0xff]   ;;  %v1536_v18 = vld [vmem:[%s1969_s1 + $0x20] sm:$0xff]   ;;  %v1540_v22 = vld [vmem:[%s1969_s1 + $0x28] sm:$0xff]  }
   0x8   :  { %1372 = vmatpush3.bf16.msra.mxu0 %v1524_v6  ;;  %v1533_v15 = vld [vmem:[%s1969_s1 + $0x98] sm:$0xff]   ;;  %v1537_v19 = vld [vmem:[%s1969_s1 + $0xa0] sm:$0xff]   ;;  %v1541_v23 = vld [vmem:[%s1969_s1 + $0xa8] sm:$0xff]  }
   0x9   :  { %1394 = vmatpush3.bf16.msra.mxu1 %v1525_v7  ;;  %1373 = vmatprep.subr.bf16.mxu0 %v1526_v8  ;;  %v1542_v24 = vld [vmem:[%s1969_s1 + $0x70] sm:$0xff]   ;;  %v1546_v28 = vld [vmem:[%s1969_s1 + $0x78] sm:$0xff]   ;;  %v1550_v33 = vld [vmem:[%s1968_s0] ss:$9 sps:$4 sm:$0xff]  }
   0xa   :  { %1395 = vmatprep.subr.bf16.mxu1 %v1527_v9  ;;  %v1543_v25 = vld [vmem:[%s1969_s1 + $0xf0] sm:$0xff]   ;;  %v1547_v29 = vld [vmem:[%s1969_s1 + $0xf8] sm:$0xff]   ;;  %v1556_v41 = vld [vmem:[%s1969_s1 + $0x140] sm:$0xff]   ;;  %v200_v44 = vrot.slane %v1550_v33, %v1770_v42 }
   0xb   :  { %v1544_v26 = vld [vmem:[%s1969_s1 + $0x30] sm:$0xff]   ;;  %v1548_v31 = vld [vmem:[%s1969_s1 + $0x38] sm:$0xff]   ;;  %v1558_v43 = vld [vmem:[%s1969_s1 + $0x1c0] sm:$0xff]  }
   0xc   :  { %1374 = vmatpush3.bf16.msra.mxu0 %v1528_v10  ;;  %v1545_v27 = vld [vmem:[%s1969_s1 + $0xb0] sm:$0xff]   ;;  %v1549_v32 = vld [vmem:[%s1969_s1 + $0xb8] sm:$0xff]   ;;  %v1557_v53 = vld [vmem:[%s1969_s1 + $0x100] sm:$0xff]  }
   0xd   :  { %1396 = vmatpush3.bf16.msra.mxu1 %v1529_v11  ;;  %1375 = vmatprep.subr.bf16.mxu0 %v1530_v12  ;;  %v1552_v34 = vld [vmem:[%s1968_s0 + $0x4] ss:$9 sps:$4 sm:$0xff]   ;;  %v1553_v38 = vld [vmem:[%s1968_s0 + $0x12] ss:$9 sps:$4 sm:$0xff]   ;;  %v1555_v39 = vld [vmem:[%s1968_s0 + $0x16] ss:$9 sps:$4 sm:$0xff]  }
   0xe   :  { %1397 = vmatprep.subr.bf16.mxu1 %v1531_v13  ;;  %v214_v45 = vrot.slane %v1553_v38, %v1770_v42  ;;  %v1778_v46 = vrot.slane %v1552_v34, %v1770_v42  ;;  %v1781_v47 = vrot.slane %v1555_v39, %v1770_v42  ;;  %v1560_v55 = vld [vmem:[%s1969_s1 + $0x148] sm:$0xff]   ;;  %v1559_v58 = vld [vmem:[%s1969_s1 + $0x180] sm:$0xff]   ;;  %v1564_v62 = vld [vmem:[%s1969_s1 + $0x150] sm:$0xff]  }
   0xf   :  { %v1562_v59 = vld [vmem:[%s1969_s1 + $0x1c8] sm:$0xff]   ;;  %v1566_v0 = vld [vmem:[%s1969_s1 + $0x1d0] sm:$0xff]   ;;  %v1568_v2 = vld [vmem:[%s1969_s1 + $0x158] sm:$0xff]  }
  0x10   :  { %1376 = vmatpush3.bf16.msra.mxu0 %v1532_v14  ;;  %v223_v48 = vcombine.high %v200_v44, %v214_v45  ;;  %v222_v49 = vcombine.low %v200_v44, %v214_v45  ;;  %v225_v50 = vcombine.high %v1778_v46, %v1781_v47  ;;  %v1561_v61 = vld [vmem:[%s1969_s1 + $0x108] sm:$0xff]   ;;  %v1565_v1 = vld [vmem:[%s1969_s1 + $0x110] sm:$0xff]   ;;  %v1570_v4 = vld [vmem:[%s1969_s1 + $0x1d8] sm:$0xff]  }
  0x11   :  { %1398 = vmatpush3.bf16.msra.mxu1 %v1533_v15  ;;  %1377 = vmatprep.subr.bf16.mxu0 %v1534_v16  ;;  %v1563_v63 = vld [vmem:[%s1969_s1 + $0x188] sm:$0xff]   ;;  %v1567_v3 = vld [vmem:[%s1969_s1 + $0x190] sm:$0xff]   ;;  %v1569_v5 = vld [vmem:[%s1969_s1 + $0x118] sm:$0xff]  }
  0x12   :  { %1399 = vmatprep.subr.bf16.mxu1 %v1535_v17  ;;  %v246_v51 = vrot.slane %v223_v48, %v1770_v42  ;;  %v232_v52 = vrot.slane %v222_v49, %v1770_v42  ;;  %v253_v54 = vrot.slane %v225_v50, %v1770_v42  ;;  %v1572_v6 = vld [vmem:[%s1969_s1 + $0x160] sm:$0xff]   ;;  %v1571_v7 = vld [vmem:[%s1969_s1 + $0x198] sm:$0xff]   ;;  %v1576_v10 = vld [vmem:[%s1969_s1 + $0x168] sm:$0xff]  }
  0x13   :  { %v1574_v8 = vld [vmem:[%s1969_s1 + $0x1e0] sm:$0xff]   ;;  %v1578_v12 = vld [vmem:[%s1969_s1 + $0x1e8] sm:$0xff]   ;;  %v1580_v14 = vld [vmem:[%s1969_s1 + $0x170] sm:$0xff]  }
  0x14   :  { %1378 = vmatpush3.bf16.msra.mxu0 %v1536_v18  ;;  %755 = vmatprep.mubr.bf16.mxu0 %v246_v51  ;;  %v256_v56 = vcombine.high %v246_v51, %v246_v51  ;;  %v254_v57 = vcombine.high %v232_v52, %v232_v52  ;;  %v257_v60 = vcombine.high %v253_v54, %v253_v54  ;;  %v1573_v9 = vld [vmem:[%s1969_s1 + $0x120] sm:$0xff]   ;;  %v1577_v13 = vld [vmem:[%s1969_s1 + $0x128] sm:$0xff]   ;;  %v1582_v16 = vld [vmem:[%s1969_s1 + $0x1f0] sm:$0xff]  }
  0x15   :  { %1400 = vmatpush3.bf16.msra.mxu1 %v1537_v19  ;;  %1379 = vmatprep.subr.bf16.mxu0 %v1538_v20  ;;  %v1575_v11 = vld [vmem:[%s1969_s1 + $0x1a0] sm:$0xff]   ;;  %v1579_v15 = vld [vmem:[%s1969_s1 + $0x1a8] sm:$0xff]   ;;  %v1581_v17 = vld [vmem:[%s1969_s1 + $0x130] sm:$0xff]   ;;  %v224_v19 = vcombine.low %v1778_v46, %v1781_v47 }
  0x16   :  { %1401 = vmatprep.subr.bf16.mxu1 %v1539_v21  ;;  %795 = vmatprep.mubr.bf16.mxu1 %v256_v56  ;;  %v1584_v18 = vld [vmem:[%s1969_s1 + $0x178] sm:$0xff]   ;;  %v1583_v20 = vld [vmem:[%s1969_s1 + $0x1b0] sm:$0xff]   ;;  %v1591_v30 = vld [vmem:[%s1970_s2 + $0x8] sm:$0xff]  }
  0x17   :  { %v1586_v21 = vld [vmem:[%s1969_s1 + $0x1f8] sm:$0xff]   ;;  %v1596_v35 = vld [vmem:[%s1969_s1 + $0x220] sm:$0xff]   ;;  %v1604_v37 = vld [vmem:[%s1968_s0 + $0x8] ss:$9 sps:$4 sm:$0x11]  }
  0x18   :  { %1380 = vmatpush3.bf16.msra.mxu0 %v1540_v22  ;;  %v1585_v22 = vld [vmem:[%s1969_s1 + $0x138] sm:$0xff]   ;;  %v1597_v36 = vld [vmem:[%s1970_s2 + $0x20] sm:$0xff]   ;;  %v1598_v39 = vld [vmem:[%s1969_s1 + $0x228] sm:$0xff]  }
  0x19   :  { %1402 = vmatpush3.bf16.msra.mxu1 %v1541_v23  ;;  %1381 = vmatprep.subr.bf16.mxu0 %v1542_v24  ;;  %v1878_v23 = vrot.slane %v224_v19, %v1770_v42  ;;  %v1587_v24 = vld [vmem:[%s1969_s1 + $0x1b8] sm:$0xff]   ;;  %v1599_v40 = vld [vmem:[%s1970_s2 + $0x28] sm:$0xff]   ;;  %v1600_v44 = vld [vmem:[%s1969_s1 + $0x230] sm:$0xff]  }
  0x1a   :  { %1403 = vmatprep.subr.bf16.mxu1 %v1543_v25  ;;  %v1588_v25 = vld [vmem:[%s1969_s1 + $0x200] sm:$0xff]   ;;  %v1594_v33 = vld [vmem:[%s1969_s1 + $0x218] sm:$0xff]   ;;  %v1601_v45 = vld [vmem:[%s1970_s2 + $0x30] sm:$0xff]  }
  0x1b   :  { %v1595_v34 = vld [vmem:[%s1970_s2 + $0x18] sm:$0xff]  }
  0x1c   :  { %1382 = vmatpush3.bf16.msra.mxu0 %v1544_v26  ;;  %v1607_v26 = vmov 0.0   ;;  %v1605_v38 = vld [vmem:[%s1968_s0 + $0x1a] ss:$9 sps:$4 sm:$0x11]  }
  0x1d   :  { %1404 = vmatpush3.bf16.msra.mxu1 %v1545_v27  ;;  %1383 = vmatprep.subr.bf16.mxu0 %v1546_v28  ;;  %v255_v27 = vcombine.high %v1878_v23, %v1878_v23  ;;  %v1589_v28 = vld [vmem:[%s1970_s2] sm:$0xff]   ;;  %v1602_v47 = vld [vmem:[%s1969_s1 + $0x238] sm:$0xff]  }
  0x1e   :  { %1405 = vmatprep.subr.bf16.mxu1 %v1547_v29  ;;  %v1590_v29 = vld [vmem:[%s1969_s1 + $0x208] sm:$0xff]   ;;  %v1603_v48 = vld [vmem:[%s1970_s2 + $0x38] sm:$0xff]  }
  0x20   :  { %1384 = vmatpush3.bf16.msra.mxu0 %v1548_v31  ;;  %v1592_v31 = vld [vmem:[%s1969_s1 + $0x210] sm:$0xff]  }
  0x21   :  { %1406 = vmatpush3.bf16.msra.mxu1 %v1549_v32  ;;  %1413 = vmatprep.subr.bf16.mxu0 %v1556_v41  ;;  %v1593_v32 = vld [vmem:[%s1970_s2 + $0x10] sm:$0xff]   ;;  %v266_v41 = vrot.slane %v1604_v37, %v1770_v42 }
  0x22   :  { %1435 = vmatprep.subr.bf16.mxu1 %v1558_v43  ;;  %v273_v43 = vrot.slane %v1605_v38, %v1770_v42 }
  0x23   :  { %756 = vmatmul.mubr.bf16.vlgmr.msra.gmra.mrb[0].mxu0 %v232_v52 }
  0x24   :  { %1414 = vmatpush3.bf16.msra.mxu0 %v1557_v53  ;;  %796 = vmatmul.mubr.bf16.vlgmr.msra.gmra.mrb[0].mxu1 %v254_v57  ;;  %v274_v46 = vcombine.low %v266_v41, %v273_v43 }
  0x25   :  { %1415 = vmatprep.subr.bf16.mxu0 %v1560_v55  ;;  %1436 = vmatpush3.bf16.msra.mxu1 %v1559_v58 }
  0x26   :  { %835 = vmatprep.mubr.bf16.mxu0 %v253_v54  ;;  %1437 = vmatprep.subr.bf16.mxu1 %v1562_v59  ;;  %v281_v49 = vrot.slane %v274_v46, %v1770_v42 }
  0x27   :  { %875 = vmatprep.mubr.bf16.mxu1 %v257_v60 }
  0x28   :  { %1416 = vmatpush3.bf16.msra.mxu0 %v1561_v61 }
  0x29   :  { %1417 = vmatprep.subr.bf16.mxu0 %v1564_v62  ;;  %1438 = vmatpush3.bf16.msra.mxu1 %v1563_v63 }
  0x2a   :  { %1439 = vmatprep.subr.bf16.mxu1 %v1566_v0 }
  0x2c   :  { %1418 = vmatpush3.bf16.msra.mxu0 %v1565_v1 }
  0x2d   :  { %1419 = vmatprep.subr.bf16.mxu0 %v1568_v2  ;;  %1440 = vmatpush3.bf16.msra.mxu1 %v1567_v3 }
  0x2e   :  { %1441 = vmatprep.subr.bf16.mxu1 %v1570_v4 }
  0x30   :  { %1420 = vmatpush3.bf16.msra.mxu0 %v1569_v5 }
  0x31   :  { %1421 = vmatprep.subr.bf16.mxu0 %v1572_v6  ;;  %1442 = vmatpush3.bf16.msra.mxu1 %v1571_v7 }
  0x32   :  { %1443 = vmatprep.subr.bf16.mxu1 %v1574_v8 }
  0x34   :  { %1422 = vmatpush3.bf16.msra.mxu0 %v1573_v9 }
  0x35   :  { %1423 = vmatprep.subr.bf16.mxu0 %v1576_v10  ;;  %1444 = vmatpush3.bf16.msra.mxu1 %v1575_v11  ;;  %v1353_v10 = vld [vmem:[%s1971_s3] ss:$0 sm:$0xff] }
  0x36   :  { %1445 = vmatprep.subr.bf16.mxu1 %v1578_v12  ;;  %v1365_v11 = vld [vmem:[%s1973_s5] ss:$0 sm:$0xff] }
  0x38   :  { %1424 = vmatpush3.bf16.msra.mxu0 %v1577_v13 }
  0x39   :  { %1425 = vmatprep.subr.bf16.mxu0 %v1580_v14  ;;  %1446 = vmatpush3.bf16.msra.mxu1 %v1579_v15  ;;  %v1354_v14 = vld [vmem:[%s1972_s4] ss:$0 sm:$0xff] }
  0x3a   :  { %1447 = vmatprep.subr.bf16.mxu1 %v1582_v16  ;;  %v1366_v16 = vld [vmem:[%s1974_s6] ss:$0 sm:$0xff] }
  0x3c   :  { %1426 = vmatpush3.bf16.msra.mxu0 %v1581_v17 }
  0x3d   :  { %1427 = vmatprep.subr.bf16.mxu0 %v1584_v18  ;;  %1448 = vmatpush3.bf16.msra.mxu1 %v1583_v20 }
  0x3e   :  { %1449 = vmatprep.subr.bf16.mxu1 %v1586_v21 }
  0x40   :  { %1428 = vmatpush3.bf16.msra.mxu0 %v1585_v22 }
  0x41   :  { %1475 = vmatprep.subr.bf16.mxu0 %v1607_v26  ;;  %1450 = vmatpush3.bf16.msra.mxu1 %v1587_v24 }
  0x42   :  { %1495 = vmatprep.subr.bf16.mxu1 %v1607_v26 }
  0x43   :  { %836 = vmatmul.mubr.bf16.vlgmr.msra.gmra.mrb[4].mxu0 %v1878_v23 }
  0x44   :  { %1476 = vmatpush3.bf16.msra.mxu0 %v1588_v25  ;;  %1491 = vmatprep.mubr.msk.bf16.mxu0 %vm1608_vm0, %v1607_v26 }
  0x45   :  { %876 = vmatmul.mubr.bf16.vlgmr.msra.gmra.mrb[4].mxu1 %v255_v27  ;;  %1477 = vmatprep.subr.bf16.mxu0 %v1607_v26 }
  0x46   :  { %1496 = vmatpush3.bf16.msra.mxu1 %v1589_v28  ;;  %1511 = vmatprep.mubr.msk.bf16.mxu1 %vm1608_vm0, %v1607_v26 }
  0x47   :  { %1497 = vmatprep.subr.bf16.mxu1 %v1607_v26 }
  0x48   :  { %1478 = vmatpush3.bf16.msra.mxu0 %v1590_v29 }
  0x49   :  { %1479 = vmatprep.subr.bf16.mxu0 %v1607_v26 }
  0x4a   :  { %1498 = vmatpush3.bf16.msra.mxu1 %v1591_v30 }
  0x4b   :  { %1499 = vmatprep.subr.bf16.mxu1 %v1607_v26 }
  0x4c   :  { %1480 = vmatpush3.bf16.msra.mxu0 %v1592_v31 }
  0x4d   :  { %1481 = vmatprep.subr.bf16.mxu0 %v1607_v26 }
  0x4e   :  { %1500 = vmatpush3.bf16.msra.mxu1 %v1593_v32 }
  0x4f   :  { %1501 = vmatprep.subr.bf16.mxu1 %v1607_v26 }
  0x50   :  { %1482 = vmatpush3.bf16.msra.mxu0 %v1594_v33 }
  0x51   :  { %1483 = vmatprep.subr.bf16.mxu0 %v1607_v26 }
  0x52   :  { %1502 = vmatpush3.bf16.msra.mxu1 %v1595_v34 }
  0x53   :  { %1503 = vmatprep.subr.bf16.mxu1 %v1607_v26 }
  0x54   :  { %1484 = vmatpush3.bf16.msra.mxu0 %v1596_v35 }
  0x55   :  { %1485 = vmatprep.subr.bf16.mxu0 %v1607_v26 }
  0x56   :  { %1504 = vmatpush3.bf16.msra.mxu1 %v1597_v36 }
  0x57   :  { %1505 = vmatprep.subr.bf16.mxu1 %v1607_v26 }
  0x58   :  { %1486 = vmatpush3.bf16.msra.mxu0 %v1598_v39 }
  0x59   :  { %1487 = vmatprep.subr.bf16.mxu0 %v1607_v26 }
  0x5a   :  { %1506 = vmatpush3.bf16.msra.mxu1 %v1599_v40 }
  0x5b   :  { %1507 = vmatprep.subr.bf16.mxu1 %v1607_v26 }
  0x5c   :  { %1488 = vmatpush3.bf16.msra.mxu0 %v1600_v44 }
  0x5d   :  { %1489 = vmatprep.subr.bf16.mxu0 %v1607_v26 }
  0x5e   :  { %1508 = vmatpush3.bf16.msra.mxu1 %v1601_v45 }
  0x5f   :  { %1509 = vmatprep.subr.bf16.mxu1 %v1607_v26 }
  0x60   :  { %1490 = vmatpush3.bf16.msra.mxu0 %v1602_v47 }
  0x62   :  { %1510 = vmatpush3.bf16.msra.mxu1 %v1603_v48 }
  0x63   :  { %1492 = vmatmul.mubr.bf16.vlgmr.msra.gmra.mrb[8].mxu0 %v281_v49 }
  0x65   :  { %1512 = vmatmul.mubr.bf16.vlgmr.msra.gmra.mrb[8].mxu1 %v1878_v23 }
  0xf6   :  { %v1385_v50 = vpop.f32.mrb[0].mxu0 }
  0xf7   :  { %v1386_v51 = vpop.f32.mrb[1].mxu0  ;;  %v1407_v52 = vpop.f32.mrb[0].mxu1 }
  0xf8   :  { %v1387_v53 = vadd.f32 %v1386_v51, %v1385_v50  ;;  %v1388_v54 = vpop.f32.mrb[2].mxu0  ;;  %v1408_v55 = vpop.f32.mrb[1].mxu1 }
  0xf9   :  { %v1389_v56 = vpop.f32.mrb[3].mxu0  ;;  %v1409_v57 = vadd.f32 %v1408_v55, %v1407_v52  ;;  %v1410_v58 = vpop.f32.mrb[2].mxu1 }
  0xfa   :  { %v1411_v59 = vpop.f32.mrb[3].mxu1 }
  0xfb   :  { %v798_v60 = vadd.f32 %v1409_v57, %v1387_v53 }
 0x116   :  { %v1429_v61 = vpop.f32.mrb[4].mxu0 }
 0x117   :  { %v1430_v62 = vpop.f32.mrb[5].mxu0 }
 0x118   :  { %v1431_v63 = vadd.f32 %v1430_v62, %v1429_v61  ;;  %v1432_v0 = vpop.f32.mrb[6].mxu0  ;;  %v1451_v1 = vpop.f32.mrb[4].mxu1 }
 0x119   :  { %v1433_v2 = vpop.f32.mrb[7].mxu0  ;;  %v1452_v3 = vpop.f32.mrb[5].mxu1 }
 0x11a   :  { %v838_v4 = vadd.f32 %v1431_v63, %v798_v60  ;;  %v1453_v5 = vadd.f32 %v1452_v3, %v1451_v1  ;;  %v1454_v6 = vpop.f32.mrb[6].mxu1 }
 0x11b   :  { %v1455_v7 = vpop.f32.mrb[7].mxu1 }
 0x11c   :  { %v878_v8 = vadd.f32 %v1453_v5, %v838_v4 }
 0x136   :  { %v917_v9 = vpop.f32.mrb[8].mxu0 }
 0x137   :  { %v918_v12 = vadd.f32 %v917_v9, %v878_v8  ;;  %v1493_v13 = vpop.f32.mrb[9].mxu0 }
 0x138   :  { %v1106_v15 = vpop.f32.mrb[8].mxu1  ;;  %v920_v17 = vpop.f32.mrb[10].mxu0 }
 0x139   :  { %v923_v18 = vpack.c.bf16 %v918_v12, %v918_v12  ;;  %v964_v19 = vmul.f32 %v1353_v10, %v918_v12  ;;  %v1119_v20 = vmul.f32 %v1365_v11, %v1106_v15  ;;  %v1513_v21 = vpop.f32.mrb[9].mxu1  ;;  %v1494_v22 = vpop.f32.mrb[11].mxu0 }
 0x13a   :  { %v1109_v23 = vpop.f32.mrb[10].mxu1 }
 0x13b   :  { %v931_v24 = vrot.slane %v923_v18, %v1770_v42  ;;  %v972_v25 = vadd.f32 %v1354_v14, %v964_v19  ;;  %v1127_v26 = vadd.f32 %v1366_v16, %v1119_v20  ;;  %v1514_v27 = vpop.f32.mrb[11].mxu1 }
 0x13d   :  { %1351 = vst.sshfl [vmem:[#allocation2] sm:$0x1 pattern:$0x73625140] %v931_v24  ;;  %v973_v28 = vmax.f32 %v972_v25, 0.0  ;;  %v1128_v29 = vpack.c.bf16 %v1127_v26, %v1127_v26 }
 0x13f   :  { %v974_v30 = vpack.c.bf16 %v973_v28, %v973_v28  ;;  %v1136_v31 = vrot.slane %v1128_v29, %v1770_v42 }
 0x141   :  { %v982_v32 = vrot.slane %v974_v30, %v1770_v42  ;;  %1367 = vst.sshfl [vmem:[#allocation4] sm:$0x1 pattern:$0x73625140] %v1136_v31 }
 0x143   :  { %1355 = vst.sshfl [vmem:[#allocation3] sm:$0x1 pattern:$0x73625140] %v982_v32 }
 0x144   :  { %v1179_v33 = vld [vmem:[#allocation2] sm:$0x1] }
 0x145   :  { %1180 = vst [vmem:[%s1975_s7] sm:$0x1] %v1179_v33 }
 0x148   :  { %v1245_v34 = vld [vmem:[#allocation4] sm:$0x1] }
 0x149   :  { %1246 = vst [vmem:[%s1977_s9] sm:$0x1] %v1245_v34 }
 0x14a   :  { %v1212_v35 = vld [vmem:[#allocation3] sm:$0x1] }
 0x14b   :  { %1213 = vst [vmem:[%s1976_s8] sm:$0x1] %v1212_v35 }

// kernel: _lambda_.25
= control target key start
LH: loop header
LB: loop body
LE: loop exit
PB: predicated region body
PF: predicated region fallthrough
CT: control target
= control target key end

     0   :  { %v188_v30 = vlaneseq  ;;  %v1312_v35 = vmov 1966171168   ;;  %vm1314_vm0 = vmmov 0   ;;  %s1627_s0 = inlined_call_operand.vmem [shape: bf16[2,1152], index: 0, kind: input, shape index: {}]   ;;  %s1628_s1 = inlined_call_operand.vmem [shape: bf16[1152,128], index: 1, kind: input, shape index: {}]   ;;  %s1629_s2 = inlined_call_operand.vmem [shape: f32[1,128], index: 2, kind: input, shape index: {}]   ;;  %s1630_s3 = inlined_call_operand.vmem [shape: f32[1,128], index: 3, kind: input, shape index: {}]   ;;  %s1631_s4 = inlined_call_operand.vmem [shape: bf16[2,128], index: 4, kind: input, shape index: {}]   ;;  %s1632_s5 = inlined_call_operand.vmem [shape: bf16[2,128], index: 5, kind: output, shape index: {}]  }
   0x1   :  { %v1232_v0 = vld [vmem:[%s1628_s1 + $0x40] sm:$0xff]   ;;  %v1236_v4 = vld [vmem:[%s1628_s1 + $0x48] sm:$0xff]   ;;  %v1240_v8 = vld [vmem:[%s1628_s1 + $0x50] sm:$0xff]   ;;  %v186_v36 = vunpack.c.l.s4 %v1312_v35 }
   0x2   :  { %v1233_v1 = vld [vmem:[%s1628_s1 + $0xc0] sm:$0xff]   ;;  %1111 = vmatprep.subr.bf16.mxu0 %v1232_v0  ;;  %v1237_v5 = vld [vmem:[%s1628_s1 + $0xc8] sm:$0xff]   ;;  %v1241_v9 = vld [vmem:[%s1628_s1 + $0xd0] sm:$0xff]   ;;  %v1448_v37 = vshrl.u32 %v188_v30, 7 }
   0x3   :  { %v1234_v2 = vld [vmem:[%s1628_s1] sm:$0xff]   ;;  %1133 = vmatprep.subr.bf16.mxu1 %v1233_v1  ;;  %v1238_v6 = vld [vmem:[%s1628_s1 + $0x8] sm:$0xff]   ;;  %v1242_v10 = vld [vmem:[%s1628_s1 + $0x10] sm:$0xff]   ;;  %v187_v40 = vunpack.c.0.s8 %v186_v36 }
   0x4   :  { %v1235_v3 = vld [vmem:[%s1628_s1 + $0x80] sm:$0xff]   ;;  %1112 = vmatpush3.bf16.msra.mxu0 %v1234_v2  ;;  %v1239_v7 = vld [vmem:[%s1628_s1 + $0x88] sm:$0xff]   ;;  %v1243_v11 = vld [vmem:[%s1628_s1 + $0x90] sm:$0xff]  }
   0x5   :  { %1134 = vmatpush3.bf16.msra.mxu1 %v1235_v3  ;;  %1113 = vmatprep.subr.bf16.mxu0 %v1236_v4  ;;  %v1244_v12 = vld [vmem:[%s1628_s1 + $0x58] sm:$0xff]   ;;  %v1248_v16 = vld [vmem:[%s1628_s1 + $0x60] sm:$0xff]   ;;  %v1252_v20 = vld [vmem:[%s1628_s1 + $0x68] sm:$0xff]   ;;  %v1460_v42 = vsub.s32 %v187_v40, %v1448_v37 }
   0x6   :  { %1135 = vmatprep.subr.bf16.mxu1 %v1237_v5  ;;  %v1245_v13 = vld [vmem:[%s1628_s1 + $0xd8] sm:$0xff]   ;;  %v1249_v17 = vld [vmem:[%s1628_s1 + $0xe0] sm:$0xff]   ;;  %v1253_v21 = vld [vmem:[%s1628_s1 + $0xe8] sm:$0xff]  }
   0x7   :  { %v1246_v14 = vld [vmem:[%s1628_s1 + $0x18] sm:$0xff]   ;;  %v1250_v18 = vld [vmem:[%s1628_s1 + $0x20] sm:$0xff]   ;;  %v1254_v22 = vld [vmem:[%s1628_s1 + $0x28] sm:$0xff]  }
   0x8   :  { %1114 = vmatpush3.bf16.msra.mxu0 %v1238_v6  ;;  %v1247_v15 = vld [vmem:[%s1628_s1 + $0x98] sm:$0xff]   ;;  %v1251_v19 = vld [vmem:[%s1628_s1 + $0xa0] sm:$0xff]   ;;  %v1255_v23 = vld [vmem:[%s1628_s1 + $0xa8] sm:$0xff]  }
   0x9   :  { %1136 = vmatpush3.bf16.msra.mxu1 %v1239_v7  ;;  %1115 = vmatprep.subr.bf16.mxu0 %v1240_v8  ;;  %v1256_v24 = vld [vmem:[%s1628_s1 + $0x70] sm:$0xff]   ;;  %v1260_v28 = vld [vmem:[%s1628_s1 + $0x78] sm:$0xff]   ;;  %v1264_v33 = vld [vmem:[%s1627_s0] ss:$9 sps:$4 sm:$0xff]  }
   0xa   :  { %1137 = vmatprep.subr.bf16.mxu1 %v1241_v9  ;;  %v1257_v25 = vld [vmem:[%s1628_s1 + $0xf0] sm:$0xff]   ;;  %v1261_v29 = vld [vmem:[%s1628_s1 + $0xf8] sm:$0xff]   ;;  %v1270_v41 = vld [vmem:[%s1628_s1 + $0x140] sm:$0xff]   ;;  %v191_v44 = vrot.slane %v1264_v33, %v1460_v42 }
   0xb   :  { %v1258_v26 = vld [vmem:[%s1628_s1 + $0x30] sm:$0xff]   ;;  %v1262_v31 = vld [vmem:[%s1628_s1 + $0x38] sm:$0xff]   ;;  %v1272_v43 = vld [vmem:[%s1628_s1 + $0x1c0] sm:$0xff]  }
   0xc   :  { %1116 = vmatpush3.bf16.msra.mxu0 %v1242_v10  ;;  %v1259_v27 = vld [vmem:[%s1628_s1 + $0xb0] sm:$0xff]   ;;  %v1263_v32 = vld [vmem:[%s1628_s1 + $0xb8] sm:$0xff]   ;;  %v1271_v53 = vld [vmem:[%s1628_s1 + $0x100] sm:$0xff]  }
   0xd   :  { %1138 = vmatpush3.bf16.msra.mxu1 %v1243_v11  ;;  %1117 = vmatprep.subr.bf16.mxu0 %v1244_v12  ;;  %v1266_v34 = vld [vmem:[%s1627_s0 + $0x4] ss:$9 sps:$4 sm:$0xff]   ;;  %v1267_v38 = vld [vmem:[%s1627_s0 + $0x12] ss:$9 sps:$4 sm:$0xff]   ;;  %v1269_v39 = vld [vmem:[%s1627_s0 + $0x16] ss:$9 sps:$4 sm:$0xff]  }
   0xe   :  { %1139 = vmatprep.subr.bf16.mxu1 %v1245_v13  ;;  %v205_v45 = vrot.slane %v1267_v38, %v1460_v42  ;;  %v1468_v46 = vrot.slane %v1266_v34, %v1460_v42  ;;  %v1471_v47 = vrot.slane %v1269_v39, %v1460_v42  ;;  %v1274_v55 = vld [vmem:[%s1628_s1 + $0x148] sm:$0xff]   ;;  %v1273_v58 = vld [vmem:[%s1628_s1 + $0x180] sm:$0xff]   ;;  %v1278_v62 = vld [vmem:[%s1628_s1 + $0x150] sm:$0xff]  }
   0xf   :  { %v1276_v59 = vld [vmem:[%s1628_s1 + $0x1c8] sm:$0xff]   ;;  %v1280_v0 = vld [vmem:[%s1628_s1 + $0x1d0] sm:$0xff]   ;;  %v1282_v2 = vld [vmem:[%s1628_s1 + $0x158] sm:$0xff]  }
  0x10   :  { %1118 = vmatpush3.bf16.msra.mxu0 %v1246_v14  ;;  %v214_v48 = vcombine.high %v191_v44, %v205_v45  ;;  %v213_v49 = vcombine.low %v191_v44, %v205_v45  ;;  %v216_v50 = vcombine.high %v1468_v46, %v1471_v47  ;;  %v1275_v61 = vld [vmem:[%s1628_s1 + $0x108] sm:$0xff]   ;;  %v1279_v1 = vld [vmem:[%s1628_s1 + $0x110] sm:$0xff]   ;;  %v1284_v4 = vld [vmem:[%s1628_s1 + $0x1d8] sm:$0xff]  }
  0x11   :  { %1140 = vmatpush3.bf16.msra.mxu1 %v1247_v15  ;;  %1119 = vmatprep.subr.bf16.mxu0 %v1248_v16  ;;  %v1277_v63 = vld [vmem:[%s1628_s1 + $0x188] sm:$0xff]   ;;  %v1281_v3 = vld [vmem:[%s1628_s1 + $0x190] sm:$0xff]   ;;  %v1283_v5 = vld [vmem:[%s1628_s1 + $0x118] sm:$0xff]  }
  0x12   :  { %1141 = vmatprep.subr.bf16.mxu1 %v1249_v17  ;;  %v237_v51 = vrot.slane %v214_v48, %v1460_v42  ;;  %v223_v52 = vrot.slane %v213_v49, %v1460_v42  ;;  %v244_v54 = vrot.slane %v216_v50, %v1460_v42  ;;  %v1286_v6 = vld [vmem:[%s1628_s1 + $0x160] sm:$0xff]   ;;  %v1285_v7 = vld [vmem:[%s1628_s1 + $0x198] sm:$0xff]   ;;  %v1290_v10 = vld [vmem:[%s1628_s1 + $0x168] sm:$0xff]  }
  0x13   :  { %v1288_v8 = vld [vmem:[%s1628_s1 + $0x1e0] sm:$0xff]   ;;  %v1292_v12 = vld [vmem:[%s1628_s1 + $0x1e8] sm:$0xff]   ;;  %v1294_v14 = vld [vmem:[%s1628_s1 + $0x170] sm:$0xff]  }
  0x14   :  { %1120 = vmatpush3.bf16.msra.mxu0 %v1250_v18  ;;  %746 = vmatprep.mubr.bf16.mxu0 %v237_v51  ;;  %v247_v56 = vcombine.high %v237_v51, %v237_v51  ;;  %v245_v57 = vcombine.high %v223_v52, %v223_v52  ;;  %v248_v60 = vcombine.high %v244_v54, %v244_v54  ;;  %v1287_v9 = vld [vmem:[%s1628_s1 + $0x120] sm:$0xff]   ;;  %v1291_v13 = vld [vmem:[%s1628_s1 + $0x128] sm:$0xff]   ;;  %v1296_v16 = vld [vmem:[%s1628_s1 + $0x1f0] sm:$0xff]  }
  0x15   :  { %1142 = vmatpush3.bf16.msra.mxu1 %v1251_v19  ;;  %1121 = vmatprep.subr.bf16.mxu0 %v1252_v20  ;;  %v1289_v11 = vld [vmem:[%s1628_s1 + $0x1a0] sm:$0xff]   ;;  %v1293_v15 = vld [vmem:[%s1628_s1 + $0x1a8] sm:$0xff]   ;;  %v1295_v17 = vld [vmem:[%s1628_s1 + $0x130] sm:$0xff]   ;;  %v215_v19 = vcombine.low %v1468_v46, %v1471_v47 }
  0x16   :  { %1143 = vmatprep.subr.bf16.mxu1 %v1253_v21  ;;  %786 = vmatprep.mubr.bf16.mxu1 %v247_v56  ;;  %v1298_v18 = vld [vmem:[%s1628_s1 + $0x178] sm:$0xff]   ;;  %v1297_v20 = vld [vmem:[%s1628_s1 + $0x1b0] sm:$0xff]   ;;  %v1307_v34 = vld [vmem:[%s1628_s1 + $0x228] sm:$0xff]  }
  0x17   :  { %v1300_v21 = vld [vmem:[%s1628_s1 + $0x1f8] sm:$0xff]   ;;  %v1308_v38 = vld [vmem:[%s1628_s1 + $0x230] sm:$0xff]  }
  0x18   :  { %1122 = vmatpush3.bf16.msra.mxu0 %v1254_v22  ;;  %v1299_v22 = vld [vmem:[%s1628_s1 + $0x138] sm:$0xff]  }
  0x19   :  { %1144 = vmatpush3.bf16.msra.mxu1 %v1255_v23  ;;  %1123 = vmatprep.subr.bf16.mxu0 %v1256_v24  ;;  %v230_v23 = vrot.slane %v215_v19, %v1460_v42  ;;  %v1301_v24 = vld [vmem:[%s1628_s1 + $0x1b8] sm:$0xff]   ;;  %v1107_v19 = vld [vmem:[%s1629_s2] ss:$0 sm:$0xff] }
  0x1a   :  { %1145 = vmatprep.subr.bf16.mxu1 %v1257_v25  ;;  %v1302_v25 = vld [vmem:[%s1628_s1 + $0x200] sm:$0xff]   ;;  %v1305_v30 = vld [vmem:[%s1628_s1 + $0x218] sm:$0xff]  }
  0x1b   :  { %v1311_v33 = vld [vmem:[%s1627_s0 + $0x1a] ss:$9 sps:$4 sm:$0x11]  }
  0x1c   :  { %1124 = vmatpush3.bf16.msra.mxu0 %v1258_v26  ;;  %v1313_v26 = vmov 0.0   ;;  %v264_v36 = vrot.slane %v1311_v33, %v1460_v42  ;;  %v1309_v40 = vld [vmem:[%s1628_s1 + $0x238] sm:$0xff]  }
  0x1d   :  { %1146 = vmatpush3.bf16.msra.mxu1 %v1259_v27  ;;  %1125 = vmatprep.subr.bf16.mxu0 %v1260_v28  ;;  %v246_v27 = vcombine.high %v230_v23, %v230_v23  ;;  %v1303_v28 = vld [vmem:[%s1628_s1 + $0x208] sm:$0xff]  }
  0x1e   :  { %1147 = vmatprep.subr.bf16.mxu1 %v1261_v29  ;;  %v1304_v29 = vld [vmem:[%s1628_s1 + $0x210] sm:$0xff]  }
  0x20   :  { %1126 = vmatpush3.bf16.msra.mxu0 %v1262_v31  ;;  %v1306_v31 = vld [vmem:[%s1628_s1 + $0x220] sm:$0xff]  }
  0x21   :  { %1148 = vmatpush3.bf16.msra.mxu1 %v1263_v32  ;;  %1155 = vmatprep.subr.bf16.mxu0 %v1270_v41  ;;  %v1310_v32 = vld [vmem:[%s1627_s0 + $0x8] ss:$9 sps:$4 sm:$0x11]  }
  0x22   :  { %1177 = vmatprep.subr.bf16.mxu1 %v1272_v43  ;;  %v257_v35 = vrot.slane %v1310_v32, %v1460_v42 }
  0x23   :  { %747 = vmatmul.mubr.bf16.vlgmr.msra.gmra.mrb[0].mxu0 %v223_v52 }
  0x24   :  { %1156 = vmatpush3.bf16.msra.mxu0 %v1271_v53  ;;  %787 = vmatmul.mubr.bf16.vlgmr.msra.gmra.mrb[0].mxu1 %v245_v57  ;;  %v265_v39 = vcombine.low %v257_v35, %v264_v36 }
  0x25   :  { %1157 = vmatprep.subr.bf16.mxu0 %v1274_v55  ;;  %1178 = vmatpush3.bf16.msra.mxu1 %v1273_v58 }
  0x26   :  { %826 = vmatprep.mubr.bf16.mxu0 %v244_v54  ;;  %1179 = vmatprep.subr.bf16.mxu1 %v1276_v59  ;;  %v272_v41 = vrot.slane %v265_v39, %v1460_v42 }
  0x27   :  { %866 = vmatprep.mubr.bf16.mxu1 %v248_v60 }
  0x28   :  { %1158 = vmatpush3.bf16.msra.mxu0 %v1275_v61 }
  0x29   :  { %1159 = vmatprep.subr.bf16.mxu0 %v1278_v62  ;;  %1180 = vmatpush3.bf16.msra.mxu1 %v1277_v63 }
  0x2a   :  { %1181 = vmatprep.subr.bf16.mxu1 %v1280_v0 }
  0x2c   :  { %1160 = vmatpush3.bf16.msra.mxu0 %v1279_v1 }
  0x2d   :  { %1161 = vmatprep.subr.bf16.mxu0 %v1282_v2  ;;  %1182 = vmatpush3.bf16.msra.mxu1 %v1281_v3  ;;  %v930_v2 = vld [vmem:[%s1631_s4] sm:$0x1]  ;;  %v1315_v3 = vmov 1983009808  }
  0x2e   :  { %1183 = vmatprep.subr.bf16.mxu1 %v1284_v4  ;;  %v945_v4 = vunpack.c.l.s4 %v1315_v3 }
  0x30   :  { %1162 = vmatpush3.bf16.msra.mxu0 %v1283_v5  ;;  %v931_v5 = vld [vmem:[%s1631_s4 + $0x1] sm:$0x1] }
  0x31   :  { %1163 = vmatprep.subr.bf16.mxu0 %v1286_v6  ;;  %1184 = vmatpush3.bf16.msra.mxu1 %v1285_v7  ;;  %v932_v6 = vld [vmem:[%s1631_s4 + $0x2] sm:$0x1]  ;;  %v933_v7 = vld [vmem:[%s1631_s4 + $0x3] sm:$0x1] }
  0x32   :  { %1185 = vmatprep.subr.bf16.mxu1 %v1288_v8  ;;  %v934_v8 = vunpack.c.l.bf16 %v930_v2 }
  0x34   :  { %1164 = vmatpush3.bf16.msra.mxu0 %v1287_v9  ;;  %v935_v9 = vunpack.c.l.bf16 %v931_v5 }
  0x35   :  { %1165 = vmatprep.subr.bf16.mxu0 %v1290_v10  ;;  %1186 = vmatpush3.bf16.msra.mxu1 %v1289_v11  ;;  %v936_v10 = vunpack.c.l.bf16 %v932_v6  ;;  %v937_v11 = vunpack.c.l.bf16 %v933_v7 }
  0x36   :  { %1187 = vmatprep.subr.bf16.mxu1 %v1292_v12  ;;  %v946_v12 = vunpack.c.0.s8 %v945_v4 }
  0x38   :  { %1166 = vmatpush3.bf16.msra.mxu0 %v1291_v13  ;;  %v942_v13 = vcombine.low %v934_v8, %v935_v9 }
  0x39   :  { %1167 = vmatprep.subr.bf16.mxu0 %v1294_v14  ;;  %1188 = vmatpush3.bf16.msra.mxu1 %v1293_v15  ;;  %v943_v14 = vcombine.low %v936_v10, %v937_v11  ;;  %v949_v15 = vsub.s32 %v946_v12, %v1448_v37 }
  0x3a   :  { %1189 = vmatprep.subr.bf16.mxu1 %v1296_v16 }
  0x3b   :  { %v950_v16 = vrot.slane %v942_v13, %v949_v15 }
  0x3c   :  { %1168 = vmatpush3.bf16.msra.mxu0 %v1295_v17  ;;  %v957_v17 = vrot.slane %v943_v14, %v949_v15 }
  0x3d   :  { %1169 = vmatprep.subr.bf16.mxu0 %v1298_v18  ;;  %1190 = vmatpush3.bf16.msra.mxu1 %v1297_v20 }
  0x3e   :  { %1191 = vmatprep.subr.bf16.mxu1 %v1300_v21 }
  0x40   :  { %1170 = vmatpush3.bf16.msra.mxu0 %v1299_v22  ;;  %v1108_v22 = vld [vmem:[%s1630_s3] ss:$0 sm:$0xff] }
  0x41   :  { %1208 = vmatprep.subr.bf16.mxu0 %v1313_v26  ;;  %1192 = vmatpush3.bf16.msra.mxu1 %v1301_v24 }
  0x43   :  { %827 = vmatmul.mubr.bf16.vlgmr.msra.gmra.mrb[4].mxu0 %v230_v23 }
  0x44   :  { %1209 = vmatpush3.bf16.msra.mxu0 %v1302_v25  ;;  %1224 = vmatprep.mubr.msk.bf16.mxu0 %vm1314_vm0, %v1313_v26  ;;  %v958_v25 = vcombine.low %v950_v16, %v957_v17 }
  0x45   :  { %867 = vmatmul.mubr.bf16.vlgmr.msra.gmra.mrb[4].mxu1 %v246_v27  ;;  %1210 = vmatprep.subr.bf16.mxu0 %v1313_v26 }
  0x48   :  { %1211 = vmatpush3.bf16.msra.mxu0 %v1303_v28 }
  0x49   :  { %1212 = vmatprep.subr.bf16.mxu0 %v1313_v26 }
  0x4c   :  { %1213 = vmatpush3.bf16.msra.mxu0 %v1304_v29 }
  0x4d   :  { %1214 = vmatprep.subr.bf16.mxu0 %v1313_v26 }
  0x50   :  { %1215 = vmatpush3.bf16.msra.mxu0 %v1305_v30 }
  0x51   :  { %1216 = vmatprep.subr.bf16.mxu0 %v1313_v26 }
  0x54   :  { %1217 = vmatpush3.bf16.msra.mxu0 %v1306_v31 }
  0x55   :  { %1218 = vmatprep.subr.bf16.mxu0 %v1313_v26 }
  0x58   :  { %1219 = vmatpush3.bf16.msra.mxu0 %v1307_v34 }
  0x59   :  { %1220 = vmatprep.subr.bf16.mxu0 %v1313_v26 }
  0x5c   :  { %1221 = vmatpush3.bf16.msra.mxu0 %v1308_v38 }
  0x5d   :  { %1222 = vmatprep.subr.bf16.mxu0 %v1313_v26 }
  0x60   :  { %1223 = vmatpush3.bf16.msra.mxu0 %v1309_v40 }
  0x63   :  { %1225 = vmatmul.mubr.bf16.vlgmr.msra.gmra.mrb[8].mxu0 %v272_v41 }
  0xf6   :  { %v1127_v43 = vpop.f32.mrb[0].mxu0 }
  0xf7   :  { %v1128_v44 = vpop.f32.mrb[1].mxu0  ;;  %v1149_v45 = vpop.f32.mrb[0].mxu1 }
  0xf8   :  { %v1129_v46 = vadd.f32 %v1128_v44, %v1127_v43  ;;  %v1130_v47 = vpop.f32.mrb[2].mxu0  ;;  %v1150_v48 = vpop.f32.mrb[1].mxu1 }
  0xf9   :  { %v1131_v49 = vpop.f32.mrb[3].mxu0  ;;  %v1151_v50 = vadd.f32 %v1150_v48, %v1149_v45  ;;  %v1152_v51 = vpop.f32.mrb[2].mxu1 }
  0xfa   :  { %v1153_v52 = vpop.f32.mrb[3].mxu1 }
  0xfb   :  { %v789_v53 = vadd.f32 %v1151_v50, %v1129_v46 }
 0x116   :  { %v1171_v54 = vpop.f32.mrb[4].mxu0 }
 0x117   :  { %v1172_v55 = vpop.f32.mrb[5].mxu0 }
 0x118   :  { %v1173_v56 = vadd.f32 %v1172_v55, %v1171_v54  ;;  %v1174_v57 = vpop.f32.mrb[6].mxu0  ;;  %v1193_v58 = vpop.f32.mrb[4].mxu1 }
 0x119   :  { %v1175_v59 = vpop.f32.mrb[7].mxu0  ;;  %v1194_v60 = vpop.f32.mrb[5].mxu1 }
 0x11a   :  { %v829_v61 = vadd.f32 %v1173_v56, %v789_v53  ;;  %v1195_v62 = vadd.f32 %v1194_v60, %v1193_v58  ;;  %v1196_v63 = vpop.f32.mrb[6].mxu1 }
 0x11b   :  { %v1197_v0 = vpop.f32.mrb[7].mxu1 }
 0x11c   :  { %v869_v1 = vadd.f32 %v1195_v62, %v829_v61 }
 0x136   :  { %v908_v18 = vpop.f32.mrb[8].mxu0 }
 0x137   :  { %v909_v20 = vadd.f32 %v908_v18, %v869_v1  ;;  %v1226_v21 = vpop.f32.mrb[9].mxu0 }
 0x138   :  { %v911_v23 = vpop.f32.mrb[10].mxu0 }
 0x139   :  { %v921_v24 = vmul.f32 %v1107_v19, %v909_v20  ;;  %v1227_v26 = vpop.f32.mrb[11].mxu0 }
 0x13b   :  { %v929_v27 = vadd.f32 %v1108_v22, %v921_v24 }
 0x13d   :  { %v960_v28 = vadd.f32 %v958_v25, %v929_v27 }
 0x13f   :  { %v961_v37 = vmax.f32 %v960_v28, 0.0 }
 0x141   :  { %v962_v29 = vpack.c.bf16 %v961_v37, %v961_v37 }
 0x143   :  { %v970_v30 = vrot.slane %v962_v29, %v1460_v42 }
 0x145   :  { %1109 = vst.sshfl [vmem:[#allocation2] sm:$0x1 pattern:$0x73625140] %v970_v30 }
 0x14c   :  { %v1013_v31 = vld [vmem:[#allocation2] sm:$0x1] }
 0x14d   :  { %1014 = vst [vmem:[%s1632_s5] sm:$0x1] %v1013_v31 }

</bundles_post_ra>
